<compile_context>
chip_gen: v5e
topology: v5e:2x2
jax: 0.10.0
libtpu: 0.0.40
codegen_flags: <defaults>
</compile_context>

<pallas_src>
import jax
import jax.numpy as jnp
from jax.experimental import pallas as pl
from jax.experimental.pallas import tpu as pltpu

BN_EPS = 1e-5


def _round_up(x, m):
    return (x + m - 1) // m * m


def _vmem_limit():
    """Scoped-VMEM budget derived from the running chip (v5e/v6e: ~96 MiB,
    v7x: ~48 MiB), so tile choices never assume a 128 MiB part."""
    cap = 64 * 1024 * 1024  # conservative fallback: v7x physical VMEM
    try:
        cap = int(getattr(pltpu.get_tpu_info(), "vmem_capacity_bytes", cap))
    except Exception:
        pass
    return min((cap * 3) // 4, 100 * 1024 * 1024)


def _pick_row_tile(h, w, c):
    """Row tile TH (dividing H): aim for >=~512 matmul rows (M = TH*W) per
    tile while keeping f32 accumulator + double-buffered bf16 output tiles
    within a few MiB.  Always returns a divisor of h, never the full array
    unless it fits the target."""
    vmem_cap = max(1, (8 << 20) // max(1, w * c * 8))
    target = min(h, vmem_cap, max(1, -(-512 // max(1, w))))
    best = 1
    for t in range(1, target + 1):
        if h % t == 0:
            best = t
    return best


# ---------------------------------------------------------------------------
# In-kernel helpers
# ---------------------------------------------------------------------------
def _conv_rows_accum(load_rows, w_ref, th, w, cpi, cpo):
    """Nine accumulating MXU matmuls over the (ky, kx) taps of a 3x3 conv.

    load_rows(ky) -> (th, w + 2, cpi) bf16 rows of the padded activation.
    w_ref         -> (3, 3, cpi, cpo) bf16 weights (HWIO).
    Returns the f32 accumulator of shape (th * w, cpo).
    """
    acc = jnp.zeros((th * w, cpo), jnp.float32)
    for ky in range(3):
        rows = load_rows(ky)
        for kx in range(3):
            patch = rows[:, kx:kx + w, :].reshape(th * w, cpi)
            acc = acc + jnp.dot(patch, w_ref[ky, kx],
                                preferred_element_type=jnp.float32)
    return acc


def _emit_out_and_stats(acc, out_ref, stats_ref, th, w, cpo):
    """Store the bf16 conv tile and the per-tile [sum, sum_sq] channel stats
    (stats are taken from the f32 accumulator before the bf16 store)."""
    out_ref[0] = acc.reshape(th, w, cpo).astype(out_ref.dtype)
    stats_ref[0, 0, 0:1, :] = jnp.sum(acc, axis=0, keepdims=True)
    stats_ref[0, 0, 1:2, :] = jnp.sum(acc * acc, axis=0, keepdims=True)


# ---------------------------------------------------------------------------
# Kernels
# ---------------------------------------------------------------------------
def _conv_stats_kernel(xpad_ref, w_ref, out_ref, stats_ref):
    """Conv1: 3x3 conv over a pre-padded bf16 image + per-tile channel stats.

    xpad_ref : (1, H+2, W+2, Cpi) bf16 (whole image, resident across row tiles)
    w_ref    : (3, 3, Cpi, Cpo)   bf16
    out_ref  : (1, TH, W, Cpo)    bf16 raw conv output (no bias / BN)
    stats_ref: (1, 1, 2, Cpo)     f32  [sum, sum_sq] over this tile
    """
    _, th, w, cpo = out_ref.shape
    cpi = xpad_ref.shape[-1]
    r0 = pl.program_id(1) * th
    acc = _conv_rows_accum(
        lambda ky: xpad_ref[0, pl.ds(r0 + ky, th), :, :],
        w_ref, th, w, cpi, cpo)
    _emit_out_and_stats(acc, out_ref, stats_ref, th, w, cpo)


def _bn_relu_conv_stats_kernel(raw_ref, sc_ref, sh_ref, w_ref,
                               out_ref, stats_ref, apad_ref):
    """Conv2 with BN1+ReLU+halo fused into the prologue.

    raw_ref  : (1, H, W, Cp) bf16 raw conv1 output (resident across row tiles)
    sc_ref   : (1, Cp) f32 folded BN1 scale   (gamma * rsqrt(var + eps))
    sh_ref   : (1, Cp) f32 folded BN1 shift   (beta  - mean * scale)
    w_ref    : (3, 3, Cp, Cpo) bf16
    out_ref  : (1, TH, W, Cpo) bf16 raw conv2 output
    stats_ref: (1, 1, 2, Cpo)  f32
    apad_ref : (H+2, W+2, Cp)  bf16 VMEM scratch, written once per image.
    """
    _, h, w, cpi = raw_ref.shape
    _, th, _, cpo = out_ref.shape
    t = pl.program_id(1)

    @pl.when(t == 0)
    def _():
        # BN1 (scale/shift) + ReLU once per image; the zero border provides
        # conv2's SAME padding.  All of this stays in VMEM (no HBM round trip).
        act = jnp.maximum(
            raw_ref[0].astype(jnp.float32) * sc_ref[0] + sh_ref[0], 0.0)
        apad_ref[...] = jnp.zeros(apad_ref.shape, apad_ref.dtype)
        apad_ref[1:h + 1, 1:w + 1, :] = act.astype(apad_ref.dtype)

    r0 = t * th
    acc = _conv_rows_accum(
        lambda ky: apad_ref[pl.ds(r0 + ky, th), :, :],
        w_ref, th, w, cpi, cpo)
    _emit_out_and_stats(acc, out_ref, stats_ref, th, w, cpo)


def _bn_relu_kernel(y_ref, sc_ref, sh_ref, o_ref):
    """Streaming BN2 (folded scale/shift) + ReLU on (1, TH, W, Cp) tiles."""
    y = y_ref[...].astype(jnp.float32)
    o_ref[...] = jnp.maximum(y * sc_ref[0] + sh_ref[0], 0.0)


# ---------------------------------------------------------------------------
# pallas_call wrappers
# ---------------------------------------------------------------------------
def _conv_pass(xpad, wt, th, vmem_limit):
    n, hp, wp, cpi = xpad.shape
    h, w = hp - 2, wp - 2
    cpo = wt.shape[-1]
    nt = h // th
    return pl.pallas_call(
        _conv_stats_kernel,
        out_shape=(jax.ShapeDtypeStruct((n, h, w, cpo), jnp.bfloat16),
                   jax.ShapeDtypeStruct((n, nt, 2, cpo), jnp.float32)),
        grid_spec=pltpu.PrefetchScalarGridSpec(
            num_scalar_prefetch=0,
            grid=(n, nt),
            in_specs=[
                # whole image; block index constant along the row-tile axis,
                # so it is DMA'd once per image.
                pl.BlockSpec((1, hp, wp, cpi), lambda i, j: (i, 0, 0, 0)),
                pl.BlockSpec((3, 3, cpi, cpo), lambda i, j: (0, 0, 0, 0)),
            ],
            out_specs=(
                pl.BlockSpec((1, th, w, cpo), lambda i, j: (i, j, 0, 0)),
                pl.BlockSpec((1, 1, 2, cpo), lambda i, j: (i, j, 0, 0)),
            )),
        compiler_params=pltpu.CompilerParams(
            # both axes parallel: keeps both v7x TensorCores busy even at N=1.
            dimension_semantics=("parallel", "parallel"),
            vmem_limit_bytes=vmem_limit),
    )(xpad, wt)


def _bn_relu_conv_pass(raw, sc, sh, wt, th, vmem_limit):
    n, h, w, cpi = raw.shape
    cpo = wt.shape[-1]
    nt = h // th
    return pl.pallas_call(
        _bn_relu_conv_stats_kernel,
        out_shape=(jax.ShapeDtypeStruct((n, h, w, cpo), jnp.bfloat16),
                   jax.ShapeDtypeStruct((n, nt, 2, cpo), jnp.float32)),
        grid_spec=pltpu.PrefetchScalarGridSpec(
            num_scalar_prefetch=0,
            grid=(n, nt),
            in_specs=[
                pl.BlockSpec((1, h, w, cpi), lambda i, j: (i, 0, 0, 0)),
                pl.BlockSpec((1, cpi), lambda i, j: (0, 0)),
                pl.BlockSpec((1, cpi), lambda i, j: (0, 0)),
                pl.BlockSpec((3, 3, cpi, cpo), lambda i, j: (0, 0, 0, 0)),
            ],
            out_specs=(
                pl.BlockSpec((1, th, w, cpo), lambda i, j: (i, j, 0, 0)),
                pl.BlockSpec((1, 1, 2, cpo), lambda i, j: (i, j, 0, 0)),
            ),
            scratch_shapes=[pltpu.VMEM((h + 2, w + 2, cpi), jnp.bfloat16)]),
        compiler_params=pltpu.CompilerParams(
            # row-tile axis is sequential: the per-image scratch is written at
            # the first tile and read by the remaining tiles of that image.
            dimension_semantics=("parallel", "arbitrary"),
            vmem_limit_bytes=vmem_limit),
    )(raw, sc, sh, wt)


def _bn_relu_pass(raw, sc, sh, th, vmem_limit):
    n, h, w, cp = raw.shape
    nt = h // th
    return pl.pallas_call(
        _bn_relu_kernel,
        out_shape=jax.ShapeDtypeStruct((n, h, w, cp), jnp.float32),
        grid_spec=pltpu.PrefetchScalarGridSpec(
            num_scalar_prefetch=0,
            grid=(n, nt),
            in_specs=[
                pl.BlockSpec((1, th, w, cp), lambda i, j: (i, j, 0, 0)),
                pl.BlockSpec((1, cp), lambda i, j: (0, 0)),
                pl.BlockSpec((1, cp), lambda i, j: (0, 0)),
            ],
            out_specs=pl.BlockSpec((1, th, w, cp), lambda i, j: (i, j, 0, 0))),
        compiler_params=pltpu.CompilerParams(
            dimension_semantics=("parallel", "parallel"),
            vmem_limit_bytes=vmem_limit),
    )(raw, sc, sh)


# ---------------------------------------------------------------------------
# BN folding and parameter prep
# ---------------------------------------------------------------------------
def _bn_scale_shift(stats, gamma_p, beta_p, count):
    """Reduce per-tile [sum, sum_sq] and fold BN into one scale/shift.

    Note: single-pass E[x^2] - E[x]^2 in f32 — fine at these scales; consider
    a shifted/two-pass accumulation for very deep/large production shapes.
    """
    tot = jnp.sum(stats, axis=(0, 1))                 # (2, Cp)
    mean = tot[0] / count
    var = jnp.maximum(tot[1] / count - mean * mean, 0.0)
    inv = jax.lax.rsqrt(var + BN_EPS)
    scale = gamma_p * inv                             # (1, Cp)
    shift = beta_p - mean * scale                     # (1, Cp)
    return scale, shift


def _prep_weight(w, cpi, cpo):
    """(3,3,Cin,Cout) f32 -> zero-pad channels to the padded widths, bf16."""
    kh, kw, ci, co = w.shape
    w = jnp.pad(w, ((0, 0), (0, 0), (0, cpi - ci), (0, cpo - co)))
    return w.astype(jnp.bfloat16)


def _pad_vec(v, cp):
    # gamma/beta zero-padded: keeps the padded channel lanes exactly zero.
    return jnp.pad(v, ((0, 0), (0, cp - v.shape[-1])))


# ---------------------------------------------------------------------------
# DoubleConv forward (NCHW in / NCHW out, matching the PyTorch module)
# ---------------------------------------------------------------------------
def double_conv(x_nchw, params):
    n, c_in, h, w = x_nchw.shape
    c_out = params["w1"].shape[-1]
    cpi = _round_up(c_in, 8)          # pad channels to a multiple of 8 only
    cpo = _round_up(c_out, 8)
    th = _pick_row_tile(h, w, cpo)
    vmem_limit = _vmem_limit()

    # NCHW -> NHWC, bf16 (halves the HBM slab), spatial halo for conv1.
    x = jnp.transpose(x_nchw, (0, 2, 3, 1)).astype(jnp.bfloat16)
    x = jnp.pad(x, ((0, 0), (1, 1), (1, 1), (0, cpi - c_in)))

    w1 = _prep_weight(params["w1"], cpi, cpo)
    g1, be1 = _pad_vec(params["g1"], cpo), _pad_vec(params["be1"], cpo)
    w2 = _prep_weight(params["w2"], cpo, cpo)
    g2, be2 = _pad_vec(params["g2"], cpo), _pad_vec(params["be2"], cpo)
    # Conv biases b1/b2 are cancelled exactly by the BN batch-mean subtraction.

    count = jnp.float32(n * h * w)

    # Stage 1: conv1 -> raw bf16 + per-tile stats; fold BN1 into scale/shift.
    raw1, st1 = _conv_pass(x, w1, th, vmem_limit)
    sc1, sh1 = _bn_scale_shift(st1, g1, be1, count)

    # Stage 2: BN1+ReLU+halo fused into conv2's prologue (no padded HBM tensor).
    raw2, st2 = _bn_relu_conv_pass(raw1, sc1, sh1, w2, th, vmem_limit)
    sc2, sh2 = _bn_scale_shift(st2, g2, be2, count)

    # Stage 3: streaming BN2 + ReLU.
    y = _bn_relu_pass(raw2, sc2, sh2, th, vmem_limit)
    y = y[:, :, :, :c_out]
    return jnp.transpose(y, (0, 3, 1, 2))             # NHWC -> NCHW


# ---------------------------------------------------------------------------
# Pure-JAX f32 reference and parameter construction
# ---------------------------------------------------------------------------
def _ref_conv_bn_relu(x, w, b, g, beta):
    y = jax.lax.conv_general_dilated(
        x, w, window_strides=(1, 1), padding="SAME",
        dimension_numbers=("NHWC", "HWIO", "NHWC"),
        precision=jax.lax.Precision.HIGHEST)
    y = y + b.reshape(1, 1, 1, -1)
    mean = y.mean(axis=(0, 1, 2), keepdims=True)
    var = ((y - mean) ** 2).mean(axis=(0, 1, 2), keepdims=True)
    y = (y - mean) * jax.lax.rsqrt(var + BN_EPS)
    y = y * g.reshape(1, 1, 1, -1) + beta.reshape(1, 1, 1, -1)
    return jnp.maximum(y, 0.0)


def _ref_double_conv(x_nchw, p):
    x = jnp.transpose(x_nchw, (0, 2, 3, 1))
    h = _ref_conv_bn_relu(x, p["w1"], p["b1"], p["g1"], p["be1"])
    h = _ref_conv_bn_relu(h, p["w2"], p["b2"], p["g2"], p["be2"])
    return jnp.transpose(h, (0, 3, 1, 2))


def make_params(key, c_in, c_out):
    ks = jax.random.split(key, 8)
    s1 = 1.0 / jnp.sqrt(c_in * 9.0)
    s2 = 1.0 / jnp.sqrt(c_out * 9.0)
    return {
        "w1": jax.random.normal(ks[0], (3, 3, c_in, c_out), jnp.float32) * s1,
        "b1": jax.random.normal(ks[1], (1, c_out), jnp.float32) * s1,
        "g1": 0.5 + jax.random.uniform(ks[2], (1, c_out), jnp.float32),
        "be1": 0.1 * jax.random.normal(ks[3], (1, c_out), jnp.float32),
        "w2": jax.random.normal(ks[4], (3, 3, c_out, c_out), jnp.float32) * s2,
        "b2": jax.random.normal(ks[5], (1, c_out), jnp.float32) * s2,
        "g2": 0.5 + jax.random.uniform(ks[6], (1, c_out), jnp.float32),
        "be2": 0.1 * jax.random.normal(ks[7], (1, c_out), jnp.float32),
    }


if __name__ == "__main__":
    key = jax.random.PRNGKey(0)
    k1, k2, k3, k4 = jax.random.split(key, 4)
    fwd = jax.jit(double_conv)

    # Test 1: module-sized toy shape (single row tile per image).
    N, C_IN, C_OUT, H, W = 2, 4, 8, 16, 16
    x = jax.random.normal(k1, (N, C_IN, H, W), jnp.float32)
    params = make_params(k2, C_IN, C_OUT)
    out = jax.block_until_ready(fwd(x, params))
    assert out.shape == (N, C_OUT, H, W), out.shape
    ref = _ref_double_conv(x, params)
    err = float(jnp.max(jnp.abs(out - ref)))
    # Tolerance accounts for bf16 MXU operands / bf16 intermediates
    # (f32 reference, f32 accumulation).
    assert jnp.allclose(out, ref, rtol=5e-2, atol=5e-2), err

    # Test 2: exercises the multi-row-tile path (T > 1), odd channel counts.
    N2, C_IN2, C_OUT2, H2, W2 = 1, 3, 5, 24, 24
    x2 = jax.random.normal(k3, (N2, C_IN2, H2, W2), jnp.float32)
    params2 = make_params(k4, C_IN2, C_OUT2)
    out2 = jax.block_until_ready(fwd(x2, params2))
    assert out2.shape == (N2, C_OUT2, H2, W2), out2.shape
    ref2 = _ref_double_conv(x2, params2)
    err2 = float(jnp.max(jnp.abs(out2 - ref2)))
    assert jnp.allclose(out2, ref2, rtol=5e-2, atol=5e-2), err2

    print("KERNEL_OK")
</pallas_src>

<mosaic_0001>
module attributes {stable_mosaic.version = 11 : i64} {
  func.func @_conv_stats_kernel(%arg0: i32, %arg1: i32, %arg2: memref<1x18x18x8xbf16, #tpu.memory_space<vmem>>, %arg3: memref<3x3x8x8xbf16, #tpu.memory_space<vmem>>, %arg4: memref<1x16x16x8xbf16, #tpu.memory_space<vmem>>, %arg5: memref<1x1x2x8xf32, #tpu.memory_space<vmem>>) attributes {dimension_semantics = [#tpu.dimension_semantics<parallel>, #tpu.dimension_semantics<parallel>], iteration_bounds = array<i64: 2, 1>, scalar_prefetch = 0 : i64, scratch_operands = 0 : i64, tpu.core_type = #tpu.core_type<tc>, window_params = [{transform_indices = @transform_0, window_bounds = array<i64: 1, 18, 18, 8>}, {pipeline_mode = #tpu.pipeline_mode<synchronous>, transform_indices = @transform_1, window_bounds = array<i64: 3, 3, 8, 8>}, {transform_indices = @transform_2, window_bounds = array<i64: 1, 16, 16, 8>}, {transform_indices = @transform_3, window_bounds = array<i64: 1, 1, 2, 8>}]} {
    %c16_i32 = arith.constant 16 : i32
    %0 = arith.muli %arg1, %c16_i32 : i32
    %cst = arith.constant 0.000000e+00 : f32
    %1 = vector.broadcast %cst : f32 to vector<256x8xf32>
    %c0_i32 = arith.constant 0 : i32
    %2 = arith.addi %0, %c0_i32 : i32
    %c0 = arith.constant 0 : index
    %3 = arith.index_cast %2 : i32 to index
    %c0_0 = arith.constant 0 : index
    %c0_1 = arith.constant 0 : index
    %4 = vector.load %arg2[%c0, %3, %c0_0, %c0_1] : memref<1x18x18x8xbf16, #tpu.memory_space<vmem>>, vector<1x16x18x8xbf16>
    %5 = vector.shape_cast %4 : vector<1x16x18x8xbf16> to vector<16x18x8xbf16>
    %6 = vector.extract_strided_slice %5 {offsets = [0, 0, 0], sizes = [16, 16, 8], strides = [1, 1, 1]} : vector<16x18x8xbf16> to vector<16x16x8xbf16>
    %7 = vector.shape_cast %6 : vector<16x16x8xbf16> to vector<256x8xbf16>
    %c0_2 = arith.constant 0 : index
    %c0_3 = arith.constant 0 : index
    %c0_4 = arith.constant 0 : index
    %c0_5 = arith.constant 0 : index
    %8 = vector.load %arg3[%c0_2, %c0_3, %c0_4, %c0_5] : memref<3x3x8x8xbf16, #tpu.memory_space<vmem>>, vector<1x1x8x8xbf16>
    %9 = vector.shape_cast %8 : vector<1x1x8x8xbf16> to vector<8x8xbf16>
    %cst_6 = arith.constant dense<0.000000e+00> : vector<256x8xf32>
    %10 = tpu.matmul %7, %9, %cst_6 {dimension_numbers = #tpu.dot_dimension_numbers<[1], [0], [0], [1], [0, 0, 1, 1], [], []>} : vector<256x8xbf16>, vector<8x8xbf16>, vector<256x8xf32> -> vector<256x8xf32>
    %11 = arith.addf %1, %10 : vector<256x8xf32>
    %12 = vector.extract_strided_slice %5 {offsets = [0, 1, 0], sizes = [16, 16, 8], strides = [1, 1, 1]} : vector<16x18x8xbf16> to vector<16x16x8xbf16>
    %13 = vector.shape_cast %12 : vector<16x16x8xbf16> to vector<256x8xbf16>
    %c0_7 = arith.constant 0 : index
    %c1 = arith.constant 1 : index
    %c0_8 = arith.constant 0 : index
    %c0_9 = arith.constant 0 : index
    %14 = vector.load %arg3[%c0_7, %c1, %c0_8, %c0_9] : memref<3x3x8x8xbf16, #tpu.memory_space<vmem>>, vector<1x1x8x8xbf16>
    %15 = vector.shape_cast %14 : vector<1x1x8x8xbf16> to vector<8x8xbf16>
    %cst_10 = arith.constant dense<0.000000e+00> : vector<256x8xf32>
    %16 = tpu.matmul %13, %15, %cst_10 {dimension_numbers = #tpu.dot_dimension_numbers<[1], [0], [0], [1], [0, 0, 1, 1], [], []>} : vector<256x8xbf16>, vector<8x8xbf16>, vector<256x8xf32> -> vector<256x8xf32>
    %17 = arith.addf %11, %16 : vector<256x8xf32>
    %18 = vector.extract_strided_slice %5 {offsets = [0, 2, 0], sizes = [16, 16, 8], strides = [1, 1, 1]} : vector<16x18x8xbf16> to vector<16x16x8xbf16>
    %19 = vector.shape_cast %18 : vector<16x16x8xbf16> to vector<256x8xbf16>
    %c0_11 = arith.constant 0 : index
    %c2 = arith.constant 2 : index
    %c0_12 = arith.constant 0 : index
    %c0_13 = arith.constant 0 : index
    %20 = vector.load %arg3[%c0_11, %c2, %c0_12, %c0_13] : memref<3x3x8x8xbf16, #tpu.memory_space<vmem>>, vector<1x1x8x8xbf16>
    %21 = vector.shape_cast %20 : vector<1x1x8x8xbf16> to vector<8x8xbf16>
    %cst_14 = arith.constant dense<0.000000e+00> : vector<256x8xf32>
    %22 = tpu.matmul %19, %21, %cst_14 {dimension_numbers = #tpu.dot_dimension_numbers<[1], [0], [0], [1], [0, 0, 1, 1], [], []>} : vector<256x8xbf16>, vector<8x8xbf16>, vector<256x8xf32> -> vector<256x8xf32>
    %23 = arith.addf %17, %22 : vector<256x8xf32>
    %c1_i32 = arith.constant 1 : i32
    %24 = arith.addi %0, %c1_i32 : i32
    %c0_15 = arith.constant 0 : index
    %25 = arith.index_cast %24 : i32 to index
    %c0_16 = arith.constant 0 : index
    %c0_17 = arith.constant 0 : index
    %26 = vector.load %arg2[%c0_15, %25, %c0_16, %c0_17] : memref<1x18x18x8xbf16, #tpu.memory_space<vmem>>, vector<1x16x18x8xbf16>
    %27 = vector.shape_cast %26 : vector<1x16x18x8xbf16> to vector<16x18x8xbf16>
    %28 = vector.extract_strided_slice %27 {offsets = [0, 0, 0], sizes = [16, 16, 8], strides = [1, 1, 1]} : vector<16x18x8xbf16> to vector<16x16x8xbf16>
    %29 = vector.shape_cast %28 : vector<16x16x8xbf16> to vector<256x8xbf16>
    %c1_18 = arith.constant 1 : index
    %c0_19 = arith.constant 0 : index
    %c0_20 = arith.constant 0 : index
    %c0_21 = arith.constant 0 : index
    %30 = vector.load %arg3[%c1_18, %c0_19, %c0_20, %c0_21] : memref<3x3x8x8xbf16, #tpu.memory_space<vmem>>, vector<1x1x8x8xbf16>
    %31 = vector.shape_cast %30 : vector<1x1x8x8xbf16> to vector<8x8xbf16>
    %cst_22 = arith.constant dense<0.000000e+00> : vector<256x8xf32>
    %32 = tpu.matmul %29, %31, %cst_22 {dimension_numbers = #tpu.dot_dimension_numbers<[1], [0], [0], [1], [0, 0, 1, 1], [], []>} : vector<256x8xbf16>, vector<8x8xbf16>, vector<256x8xf32> -> vector<256x8xf32>
    %33 = arith.addf %23, %32 : vector<256x8xf32>
    %34 = vector.extract_strided_slice %27 {offsets = [0, 1, 0], sizes = [16, 16, 8], strides = [1, 1, 1]} : vector<16x18x8xbf16> to vector<16x16x8xbf16>
    %35 = vector.shape_cast %34 : vector<16x16x8xbf16> to vector<256x8xbf16>
    %c1_23 = arith.constant 1 : index
    %c1_24 = arith.constant 1 : index
    %c0_25 = arith.constant 0 : index
    %c0_26 = arith.constant 0 : index
    %36 = vector.load %arg3[%c1_23, %c1_24, %c0_25, %c0_26] : memref<3x3x8x8xbf16, #tpu.memory_space<vmem>>, vector<1x1x8x8xbf16>
    %37 = vector.shape_cast %36 : vector<1x1x8x8xbf16> to vector<8x8xbf16>
    %cst_27 = arith.constant dense<0.000000e+00> : vector<256x8xf32>
    %38 = tpu.matmul %35, %37, %cst_27 {dimension_numbers = #tpu.dot_dimension_numbers<[1], [0], [0], [1], [0, 0, 1, 1], [], []>} : vector<256x8xbf16>, vector<8x8xbf16>, vector<256x8xf32> -> vector<256x8xf32>
    %39 = arith.addf %33, %38 : vector<256x8xf32>
    %40 = vector.extract_strided_slice %27 {offsets = [0, 2, 0], sizes = [16, 16, 8], strides = [1, 1, 1]} : vector<16x18x8xbf16> to vector<16x16x8xbf16>
    %41 = vector.shape_cast %40 : vector<16x16x8xbf16> to vector<256x8xbf16>
    %c1_28 = arith.constant 1 : index
    %c2_29 = arith.constant 2 : index
    %c0_30 = arith.constant 0 : index
    %c0_31 = arith.constant 0 : index
    %42 = vector.load %arg3[%c1_28, %c2_29, %c0_30, %c0_31] : memref<3x3x8x8xbf16, #tpu.memory_space<vmem>>, vector<1x1x8x8xbf16>
    %43 = vector.shape_cast %42 : vector<1x1x8x8xbf16> to vector<8x8xbf16>
    %cst_32 = arith.constant dense<0.000000e+00> : vector<256x8xf32>
    %44 = tpu.matmul %41, %43, %cst_32 {dimension_numbers = #tpu.dot_dimension_numbers<[1], [0], [0], [1], [0, 0, 1, 1], [], []>} : vector<256x8xbf16>, vector<8x8xbf16>, vector<256x8xf32> -> vector<256x8xf32>
    %45 = arith.addf %39, %44 : vector<256x8xf32>
    %c2_i32 = arith.constant 2 : i32
    %46 = arith.addi %0, %c2_i32 : i32
    %c0_33 = arith.constant 0 : index
    %47 = arith.index_cast %46 : i32 to index
    %c0_34 = arith.constant 0 : index
    %c0_35 = arith.constant 0 : index
    %48 = vector.load %arg2[%c0_33, %47, %c0_34, %c0_35] : memref<1x18x18x8xbf16, #tpu.memory_space<vmem>>, vector<1x16x18x8xbf16>
    %49 = vector.shape_cast %48 : vector<1x16x18x8xbf16> to vector<16x18x8xbf16>
    %50 = vector.extract_strided_slice %49 {offsets = [0, 0, 0], sizes = [16, 16, 8], strides = [1, 1, 1]} : vector<16x18x8xbf16> to vector<16x16x8xbf16>
    %51 = vector.shape_cast %50 : vector<16x16x8xbf16> to vector<256x8xbf16>
    %c2_36 = arith.constant 2 : index
    %c0_37 = arith.constant 0 : index
    %c0_38 = arith.constant 0 : index
    %c0_39 = arith.constant 0 : index
    %52 = vector.load %arg3[%c2_36, %c0_37, %c0_38, %c0_39] : memref<3x3x8x8xbf16, #tpu.memory_space<vmem>>, vector<1x1x8x8xbf16>
    %53 = vector.shape_cast %52 : vector<1x1x8x8xbf16> to vector<8x8xbf16>
    %cst_40 = arith.constant dense<0.000000e+00> : vector<256x8xf32>
    %54 = tpu.matmul %51, %53, %cst_40 {dimension_numbers = #tpu.dot_dimension_numbers<[1], [0], [0], [1], [0, 0, 1, 1], [], []>} : vector<256x8xbf16>, vector<8x8xbf16>, vector<256x8xf32> -> vector<256x8xf32>
    %55 = arith.addf %45, %54 : vector<256x8xf32>
    %56 = vector.extract_strided_slice %49 {offsets = [0, 1, 0], sizes = [16, 16, 8], strides = [1, 1, 1]} : vector<16x18x8xbf16> to vector<16x16x8xbf16>
    %57 = vector.shape_cast %56 : vector<16x16x8xbf16> to vector<256x8xbf16>
    %c2_41 = arith.constant 2 : index
    %c1_42 = arith.constant 1 : index
    %c0_43 = arith.constant 0 : index
    %c0_44 = arith.constant 0 : index
    %58 = vector.load %arg3[%c2_41, %c1_42, %c0_43, %c0_44] : memref<3x3x8x8xbf16, #tpu.memory_space<vmem>>, vector<1x1x8x8xbf16>
    %59 = vector.shape_cast %58 : vector<1x1x8x8xbf16> to vector<8x8xbf16>
    %cst_45 = arith.constant dense<0.000000e+00> : vector<256x8xf32>
    %60 = tpu.matmul %57, %59, %cst_45 {dimension_numbers = #tpu.dot_dimension_numbers<[1], [0], [0], [1], [0, 0, 1, 1], [], []>} : vector<256x8xbf16>, vector<8x8xbf16>, vector<256x8xf32> -> vector<256x8xf32>
    %61 = arith.addf %55, %60 : vector<256x8xf32>
    %62 = vector.extract_strided_slice %49 {offsets = [0, 2, 0], sizes = [16, 16, 8], strides = [1, 1, 1]} : vector<16x18x8xbf16> to vector<16x16x8xbf16>
    %63 = vector.shape_cast %62 : vector<16x16x8xbf16> to vector<256x8xbf16>
    %c2_46 = arith.constant 2 : index
    %c2_47 = arith.constant 2 : index
    %c0_48 = arith.constant 0 : index
    %c0_49 = arith.constant 0 : index
    %64 = vector.load %arg3[%c2_46, %c2_47, %c0_48, %c0_49] : memref<3x3x8x8xbf16, #tpu.memory_space<vmem>>, vector<1x1x8x8xbf16>
    %65 = vector.shape_cast %64 : vector<1x1x8x8xbf16> to vector<8x8xbf16>
    %cst_50 = arith.constant dense<0.000000e+00> : vector<256x8xf32>
    %66 = tpu.matmul %63, %65, %cst_50 {dimension_numbers = #tpu.dot_dimension_numbers<[1], [0], [0], [1], [0, 0, 1, 1], [], []>} : vector<256x8xbf16>, vector<8x8xbf16>, vector<256x8xf32> -> vector<256x8xf32>
    %67 = arith.addf %61, %66 : vector<256x8xf32>
    %68 = vector.shape_cast %67 : vector<256x8xf32> to vector<16x16x8xf32>
    %69 = arith.truncf %68 : vector<16x16x8xf32> to vector<16x16x8xbf16>
    %c0_51 = arith.constant 0 : index
    %c0_52 = arith.constant 0 : index
    %c0_53 = arith.constant 0 : index
    %c0_54 = arith.constant 0 : index
    %70 = vector.load %arg4[%c0_51, %c0_52, %c0_53, %c0_54] : memref<1x16x16x8xbf16, #tpu.memory_space<vmem>>, vector<1x16x16x8xbf16>
    %71 = vector.shape_cast %70 : vector<1x16x16x8xbf16> to vector<16x16x8xbf16>
    %72 = vector.shape_cast %69 : vector<16x16x8xbf16> to vector<1x16x16x8xbf16>
    tpu.vector_store %arg4[%c0_51, %c0_52, %c0_53, %c0_54], %72 {strides = array<i32>} : memref<1x16x16x8xbf16, #tpu.memory_space<vmem>>, vector<1x16x16x8xbf16>,
    %cst_55 = arith.constant dense<0.000000e+00> : vector<8xf32>
    %73 = vector.multi_reduction <add>, %67, %cst_55 [0] : vector<256x8xf32> to vector<8xf32>
    %74 = vector.shape_cast %73 : vector<8xf32> to vector<1x8xf32>
    %c0_56 = arith.constant 0 : index
    %c0_57 = arith.constant 0 : index
    %c0_58 = arith.constant 0 : index
    %c0_59 = arith.constant 0 : index
    %75 = vector.load %arg5[%c0_56, %c0_57, %c0_58, %c0_59] : memref<1x1x2x8xf32, #tpu.memory_space<vmem>>, vector<1x1x1x8xf32>
    %76 = vector.shape_cast %75 : vector<1x1x1x8xf32> to vector<1x8xf32>
    %77 = vector.shape_cast %74 : vector<1x8xf32> to vector<1x1x1x8xf32>
    tpu.vector_store %arg5[%c0_56, %c0_57, %c0_58, %c0_59], %77 {strides = array<i32>} : memref<1x1x2x8xf32, #tpu.memory_space<vmem>>, vector<1x1x1x8xf32>,
    %78 = arith.mulf %67, %67 : vector<256x8xf32>
    %cst_60 = arith.constant dense<0.000000e+00> : vector<8xf32>
    %79 = vector.multi_reduction <add>, %78, %cst_60 [0] : vector<256x8xf32> to vector<8xf32>
    %80 = vector.shape_cast %79 : vector<8xf32> to vector<1x8xf32>
    %c0_61 = arith.constant 0 : index
    %c0_62 = arith.constant 0 : index
    %c1_63 = arith.constant 1 : index
    %c0_64 = arith.constant 0 : index
    %81 = vector.load %arg5[%c0_61, %c0_62, %c1_63, %c0_64] : memref<1x1x2x8xf32, #tpu.memory_space<vmem>>, vector<1x1x1x8xf32>
    %82 = vector.shape_cast %81 : vector<1x1x1x8xf32> to vector<1x8xf32>
    %83 = vector.shape_cast %80 : vector<1x8xf32> to vector<1x1x1x8xf32>
    tpu.vector_store %arg5[%c0_61, %c0_62, %c1_63, %c0_64], %83 {strides = array<i32>} : memref<1x1x2x8xf32, #tpu.memory_space<vmem>>, vector<1x1x1x8xf32>,
    return
  }
  func.func @transform_0(%arg0: i32, %arg1: i32) -> (i32, i32, i32, i32) {
    %c0_i32 = arith.constant 0 : i32
    %c0_i32_0 = arith.constant 0 : i32
    %c0_i32_1 = arith.constant 0 : i32
    %c0_i32_2 = arith.constant 0 : i32
    return %arg0, %c0_i32, %c0_i32_0, %c0_i32_1 : i32, i32, i32, i32
  }
  func.func @transform_1(%arg0: i32, %arg1: i32) -> (i32, i32, i32, i32) {
    %c0_i32 = arith.constant 0 : i32
    %c0_i32_0 = arith.constant 0 : i32
    %c0_i32_1 = arith.constant 0 : i32
    %c0_i32_2 = arith.constant 0 : i32
    %c0_i32_3 = arith.constant 0 : i32
    return %c0_i32, %c0_i32_0, %c0_i32_1, %c0_i32_2 : i32, i32, i32, i32
  }
  func.func @transform_2(%arg0: i32, %arg1: i32) -> (i32, i32, i32, i32) {
    %c0_i32 = arith.constant 0 : i32
    %c0_i32_0 = arith.constant 0 : i32
    %c0_i32_1 = arith.constant 0 : i32
    return %arg0, %arg1, %c0_i32, %c0_i32_0 : i32, i32, i32, i32
  }
  func.func @transform_3(%arg0: i32, %arg1: i32) -> (i32, i32, i32, i32) {
    %c0_i32 = arith.constant 0 : i32
    %c0_i32_0 = arith.constant 0 : i32
    %c0_i32_1 = arith.constant 0 : i32
    return %arg0, %arg1, %c0_i32, %c0_i32_0 : i32, i32, i32, i32
  }
}

module attributes {stable_mosaic.version = 11 : i64} {
  func.func @_bn_relu_conv_stats_kernel(%arg0: i32, %arg1: i32, %arg2: memref<1x16x16x8xbf16, #tpu.memory_space<vmem>>, %arg3: memref<1x8xf32, #tpu.memory_space<vmem>>, %arg4: memref<1x8xf32, #tpu.memory_space<vmem>>, %arg5: memref<3x3x8x8xbf16, #tpu.memory_space<vmem>>, %arg6: memref<1x16x16x8xbf16, #tpu.memory_space<vmem>>, %arg7: memref<1x1x2x8xf32, #tpu.memory_space<vmem>>, %arg8: memref<18x18x8xbf16, #tpu.memory_space<vmem>>) attributes {dimension_semantics = [#tpu.dimension_semantics<parallel>, #tpu.dimension_semantics<arbitrary>], iteration_bounds = array<i64: 2, 1>, scalar_prefetch = 0 : i64, scratch_operands = 1 : i64, tpu.core_type = #tpu.core_type<tc>, window_params = [{transform_indices = @transform_0, window_bounds = array<i64: 1, 16, 16, 8>}, {pipeline_mode = #tpu.pipeline_mode<synchronous>, transform_indices = @transform_1, window_bounds = array<i64: 1, 8>}, {pipeline_mode = #tpu.pipeline_mode<synchronous>, transform_indices = @transform_2, window_bounds = array<i64: 1, 8>}, {pipeline_mode = #tpu.pipeline_mode<synchronous>, transform_indices = @transform_3, window_bounds = array<i64: 3, 3, 8, 8>}, {transform_indices = @transform_4, window_bounds = array<i64: 1, 16, 16, 8>}, {transform_indices = @transform_5, window_bounds = array<i64: 1, 1, 2, 8>}]} {
    %c0_i32 = arith.constant 0 : i32
    %0 = arith.cmpi eq, %arg1, %c0_i32 : i32
    %1 = arith.extui %0 : i1 to i32
    %c0_i32_0 = arith.constant 0 : i32
    %2 = arith.cmpi ne, %1, %c0_i32_0 : i32
    scf.if %2 {
      %c0_64 = arith.constant 0 : index
      %c0_65 = arith.constant 0 : index
      %c0_66 = arith.constant 0 : index
      %c0_67 = arith.constant 0 : index
      %84 = vector.load %arg2[%c0_64, %c0_65, %c0_66, %c0_67] : memref<1x16x16x8xbf16, #tpu.memory_space<vmem>>, vector<1x16x16x8xbf16>
      %85 = vector.shape_cast %84 : vector<1x16x16x8xbf16> to vector<16x16x8xbf16>
      %86 = arith.extf %85 : vector<16x16x8xbf16> to vector<16x16x8xf32>
      %c0_68 = arith.constant 0 : index
      %c0_69 = arith.constant 0 : index
      %87 = vector.load %arg3[%c0_68, %c0_69] : memref<1x8xf32, #tpu.memory_space<vmem>>, vector<1x8xf32>
      %88 = vector.shape_cast %87 : vector<1x8xf32> to vector<8xf32>
      %89 = vector.shape_cast %88 : vector<8xf32> to vector<1x1x8xf32>
      %90 = vector.broadcast %89 : vector<1x1x8xf32> to vector<16x16x8xf32>
      %91 = arith.mulf %86, %90 : vector<16x16x8xf32>
      %c0_70 = arith.constant 0 : index
      %c0_71 = arith.constant 0 : index
      %92 = vector.load %arg4[%c0_70, %c0_71] : memref<1x8xf32, #tpu.memory_space<vmem>>, vector<1x8xf32>
      %93 = vector.shape_cast %92 : vector<1x8xf32> to vector<8xf32>
      %94 = vector.shape_cast %93 : vector<8xf32> to vector<1x1x8xf32>
      %95 = vector.broadcast %94 : vector<1x1x8xf32> to vector<16x16x8xf32>
      %96 = arith.addf %91, %95 : vector<16x16x8xf32>
      %cst_72 = arith.constant 0.000000e+00 : f32
      %97 = vector.broadcast %cst_72 : f32 to vector<16x16x8xf32>
      %98 = arith.maximumf %96, %97 : vector<16x16x8xf32>
      %cst_73 = arith.constant 0.000000e+00 : bf16
      %99 = vector.broadcast %cst_73 : bf16 to vector<18x18x8xbf16>
      %c0_74 = arith.constant 0 : index
      %c0_75 = arith.constant 0 : index
      %c0_76 = arith.constant 0 : index
      %100 = vector.load %arg8[%c0_74, %c0_75, %c0_76] : memref<18x18x8xbf16, #tpu.memory_space<vmem>>, vector<18x18x8xbf16>
      tpu.vector_store %arg8[%c0_74, %c0_75, %c0_76], %99 {strides = array<i32>} : memref<18x18x8xbf16, #tpu.memory_space<vmem>>, vector<18x18x8xbf16>,
      %101 = arith.truncf %98 : vector<16x16x8xf32> to vector<16x16x8xbf16>
      %c1_77 = arith.constant 1 : index
      %c1_78 = arith.constant 1 : index
      %c0_79 = arith.constant 0 : index
      %102 = vector.load %arg8[%c1_77, %c1_78, %c0_79] : memref<18x18x8xbf16, #tpu.memory_space<vmem>>, vector<16x16x8xbf16>
      tpu.vector_store %arg8[%c1_77, %c1_78, %c0_79], %101 {strides = array<i32>} : memref<18x18x8xbf16, #tpu.memory_space<vmem>>, vector<16x16x8xbf16>,
    } else {
    }
    %c16_i32 = arith.constant 16 : i32
    %3 = arith.muli %arg1, %c16_i32 : i32
    %cst = arith.constant 0.000000e+00 : f32
    %4 = vector.broadcast %cst : f32 to vector<256x8xf32>
    %c0_i32_1 = arith.constant 0 : i32
    %5 = arith.addi %3, %c0_i32_1 : i32
    %6 = arith.index_cast %5 : i32 to index
    %c0 = arith.constant 0 : index
    %c0_2 = arith.constant 0 : index
    %7 = vector.load %arg8[%6, %c0, %c0_2] : memref<18x18x8xbf16, #tpu.memory_space<vmem>>, vector<16x18x8xbf16>
    %8 = vector.extract_strided_slice %7 {offsets = [0, 0, 0], sizes = [16, 16, 8], strides = [1, 1, 1]} : vector<16x18x8xbf16> to vector<16x16x8xbf16>
    %9 = vector.shape_cast %8 : vector<16x16x8xbf16> to vector<256x8xbf16>
    %c0_3 = arith.constant 0 : index
    %c0_4 = arith.constant 0 : index
    %c0_5 = arith.constant 0 : index
    %c0_6 = arith.constant 0 : index
    %10 = vector.load %arg5[%c0_3, %c0_4, %c0_5, %c0_6] : memref<3x3x8x8xbf16, #tpu.memory_space<vmem>>, vector<1x1x8x8xbf16>
    %11 = vector.shape_cast %10 : vector<1x1x8x8xbf16> to vector<8x8xbf16>
    %cst_7 = arith.constant dense<0.000000e+00> : vector<256x8xf32>
    %12 = tpu.matmul %9, %11, %cst_7 {dimension_numbers = #tpu.dot_dimension_numbers<[1], [0], [0], [1], [0, 0, 1, 1], [], []>} : vector<256x8xbf16>, vector<8x8xbf16>, vector<256x8xf32> -> vector<256x8xf32>
    %13 = arith.addf %4, %12 : vector<256x8xf32>
    %14 = vector.extract_strided_slice %7 {offsets = [0, 1, 0], sizes = [16, 16, 8], strides = [1, 1, 1]} : vector<16x18x8xbf16> to vector<16x16x8xbf16>
    %15 = vector.shape_cast %14 : vector<16x16x8xbf16> to vector<256x8xbf16>
    %c0_8 = arith.constant 0 : index
    %c1 = arith.constant 1 : index
    %c0_9 = arith.constant 0 : index
    %c0_10 = arith.constant 0 : index
    %16 = vector.load %arg5[%c0_8, %c1, %c0_9, %c0_10] : memref<3x3x8x8xbf16, #tpu.memory_space<vmem>>, vector<1x1x8x8xbf16>
    %17 = vector.shape_cast %16 : vector<1x1x8x8xbf16> to vector<8x8xbf16>
    %cst_11 = arith.constant dense<0.000000e+00> : vector<256x8xf32>
    %18 = tpu.matmul %15, %17, %cst_11 {dimension_numbers = #tpu.dot_dimension_numbers<[1], [0], [0], [1], [0, 0, 1, 1], [], []>} : vector<256x8xbf16>, vector<8x8xbf16>, vector<256x8xf32> -> vector<256x8xf32>
    %19 = arith.addf %13, %18 : vector<256x8xf32>
    %20 = vector.extract_strided_slice %7 {offsets = [0, 2, 0], sizes = [16, 16, 8], strides = [1, 1, 1]} : vector<16x18x8xbf16> to vector<16x16x8xbf16>
    %21 = vector.shape_cast %20 : vector<16x16x8xbf16> to vector<256x8xbf16>
    %c0_12 = arith.constant 0 : index
    %c2 = arith.constant 2 : index
    %c0_13 = arith.constant 0 : index
    %c0_14 = arith.constant 0 : index
    %22 = vector.load %arg5[%c0_12, %c2, %c0_13, %c0_14] : memref<3x3x8x8xbf16, #tpu.memory_space<vmem>>, vector<1x1x8x8xbf16>
    %23 = vector.shape_cast %22 : vector<1x1x8x8xbf16> to vector<8x8xbf16>
    %cst_15 = arith.constant dense<0.000000e+00> : vector<256x8xf32>
    %24 = tpu.matmul %21, %23, %cst_15 {dimension_numbers = #tpu.dot_dimension_numbers<[1], [0], [0], [1], [0, 0, 1, 1], [], []>} : vector<256x8xbf16>, vector<8x8xbf16>, vector<256x8xf32> -> vector<256x8xf32>
    %25 = arith.addf %19, %24 : vector<256x8xf32>
    %c1_i32 = arith.constant 1 : i32
    %26 = arith.addi %3, %c1_i32 : i32
    %27 = arith.index_cast %26 : i32 to index
    %c0_16 = arith.constant 0 : index
    %c0_17 = arith.constant 0 : index
    %28 = vector.load %arg8[%27, %c0_16, %c0_17] : memref<18x18x8xbf16, #tpu.memory_space<vmem>>, vector<16x18x8xbf16>
    %29 = vector.extract_strided_slice %28 {offsets = [0, 0, 0], sizes = [16, 16, 8], strides = [1, 1, 1]} : vector<16x18x8xbf16> to vector<16x16x8xbf16>
    %30 = vector.shape_cast %29 : vector<16x16x8xbf16> to vector<256x8xbf16>
    %c1_18 = arith.constant 1 : index
    %c0_19 = arith.constant 0 : index
    %c0_20 = arith.constant 0 : index
    %c0_21 = arith.constant 0 : index
    %31 = vector.load %arg5[%c1_18, %c0_19, %c0_20, %c0_21] : memref<3x3x8x8xbf16, #tpu.memory_space<vmem>>, vector<1x1x8x8xbf16>
    %32 = vector.shape_cast %31 : vector<1x1x8x8xbf16> to vector<8x8xbf16>
    %cst_22 = arith.constant dense<0.000000e+00> : vector<256x8xf32>
    %33 = tpu.matmul %30, %32, %cst_22 {dimension_numbers = #tpu.dot_dimension_numbers<[1], [0], [0], [1], [0, 0, 1, 1], [], []>} : vector<256x8xbf16>, vector<8x8xbf16>, vector<256x8xf32> -> vector<256x8xf32>
    %34 = arith.addf %25, %33 : vector<256x8xf32>
    %35 = vector.extract_strided_slice %28 {offsets = [0, 1, 0], sizes = [16, 16, 8], strides = [1, 1, 1]} : vector<16x18x8xbf16> to vector<16x16x8xbf16>
    %36 = vector.shape_cast %35 : vector<16x16x8xbf16> to vector<256x8xbf16>
    %c1_23 = arith.constant 1 : index
    %c1_24 = arith.constant 1 : index
    %c0_25 = arith.constant 0 : index
    %c0_26 = arith.constant 0 : index
    %37 = vector.load %arg5[%c1_23, %c1_24, %c0_25, %c0_26] : memref<3x3x8x8xbf16, #tpu.memory_space<vmem>>, vector<1x1x8x8xbf16>
    %38 = vector.shape_cast %37 : vector<1x1x8x8xbf16> to vector<8x8xbf16>
    %cst_27 = arith.constant dense<0.000000e+00> : vector<256x8xf32>
    %39 = tpu.matmul %36, %38, %cst_27 {dimension_numbers = #tpu.dot_dimension_numbers<[1], [0], [0], [1], [0, 0, 1, 1], [], []>} : vector<256x8xbf16>, vector<8x8xbf16>, vector<256x8xf32> -> vector<256x8xf32>
    %40 = arith.addf %34, %39 : vector<256x8xf32>
    %41 = vector.extract_strided_slice %28 {offsets = [0, 2, 0], sizes = [16, 16, 8], strides = [1, 1, 1]} : vector<16x18x8xbf16> to vector<16x16x8xbf16>
    %42 = vector.shape_cast %41 : vector<16x16x8xbf16> to vector<256x8xbf16>
    %c1_28 = arith.constant 1 : index
    %c2_29 = arith.constant 2 : index
    %c0_30 = arith.constant 0 : index
    %c0_31 = arith.constant 0 : index
    %43 = vector.load %arg5[%c1_28, %c2_29, %c0_30, %c0_31] : memref<3x3x8x8xbf16, #tpu.memory_space<vmem>>, vector<1x1x8x8xbf16>
    %44 = vector.shape_cast %43 : vector<1x1x8x8xbf16> to vector<8x8xbf16>
    %cst_32 = arith.constant dense<0.000000e+00> : vector<256x8xf32>
    %45 = tpu.matmul %42, %44, %cst_32 {dimension_numbers = #tpu.dot_dimension_numbers<[1], [0], [0], [1], [0, 0, 1, 1], [], []>} : vector<256x8xbf16>, vector<8x8xbf16>, vector<256x8xf32> -> vector<256x8xf32>
    %46 = arith.addf %40, %45 : vector<256x8xf32>
    %c2_i32 = arith.constant 2 : i32
    %47 = arith.addi %3, %c2_i32 : i32
    %48 = arith.index_cast %47 : i32 to index
    %c0_33 = arith.constant 0 : index
    %c0_34 = arith.constant 0 : index
    %49 = vector.load %arg8[%48, %c0_33, %c0_34] : memref<18x18x8xbf16, #tpu.memory_space<vmem>>, vector<16x18x8xbf16>
    %50 = vector.extract_strided_slice %49 {offsets = [0, 0, 0], sizes = [16, 16, 8], strides = [1, 1, 1]} : vector<16x18x8xbf16> to vector<16x16x8xbf16>
    %51 = vector.shape_cast %50 : vector<16x16x8xbf16> to vector<256x8xbf16>
    %c2_35 = arith.constant 2 : index
    %c0_36 = arith.constant 0 : index
    %c0_37 = arith.constant 0 : index
    %c0_38 = arith.constant 0 : index
    %52 = vector.load %arg5[%c2_35, %c0_36, %c0_37, %c0_38] : memref<3x3x8x8xbf16, #tpu.memory_space<vmem>>, vector<1x1x8x8xbf16>
    %53 = vector.shape_cast %52 : vector<1x1x8x8xbf16> to vector<8x8xbf16>
    %cst_39 = arith.constant dense<0.000000e+00> : vector<256x8xf32>
    %54 = tpu.matmul %51, %53, %cst_39 {dimension_numbers = #tpu.dot_dimension_numbers<[1], [0], [0], [1], [0, 0, 1, 1], [], []>} : vector<256x8xbf16>, vector<8x8xbf16>, vector<256x8xf32> -> vector<256x8xf32>
    %55 = arith.addf %46, %54 : vector<256x8xf32>
    %56 = vector.extract_strided_slice %49 {offsets = [0, 1, 0], sizes = [16, 16, 8], strides = [1, 1, 1]} : vector<16x18x8xbf16> to vector<16x16x8xbf16>
    %57 = vector.shape_cast %56 : vector<16x16x8xbf16> to vector<256x8xbf16>
    %c2_40 = arith.constant 2 : index
    %c1_41 = arith.constant 1 : index
    %c0_42 = arith.constant 0 : index
    %c0_43 = arith.constant 0 : index
    %58 = vector.load %arg5[%c2_40, %c1_41, %c0_42, %c0_43] : memref<3x3x8x8xbf16, #tpu.memory_space<vmem>>, vector<1x1x8x8xbf16>
    %59 = vector.shape_cast %58 : vector<1x1x8x8xbf16> to vector<8x8xbf16>
    %cst_44 = arith.constant dense<0.000000e+00> : vector<256x8xf32>
    %60 = tpu.matmul %57, %59, %cst_44 {dimension_numbers = #tpu.dot_dimension_numbers<[1], [0], [0], [1], [0, 0, 1, 1], [], []>} : vector<256x8xbf16>, vector<8x8xbf16>, vector<256x8xf32> -> vector<256x8xf32>
    %61 = arith.addf %55, %60 : vector<256x8xf32>
    %62 = vector.extract_strided_slice %49 {offsets = [0, 2, 0], sizes = [16, 16, 8], strides = [1, 1, 1]} : vector<16x18x8xbf16> to vector<16x16x8xbf16>
    %63 = vector.shape_cast %62 : vector<16x16x8xbf16> to vector<256x8xbf16>
    %c2_45 = arith.constant 2 : index
    %c2_46 = arith.constant 2 : index
    %c0_47 = arith.constant 0 : index
    %c0_48 = arith.constant 0 : index
    %64 = vector.load %arg5[%c2_45, %c2_46, %c0_47, %c0_48] : memref<3x3x8x8xbf16, #tpu.memory_space<vmem>>, vector<1x1x8x8xbf16>
    %65 = vector.shape_cast %64 : vector<1x1x8x8xbf16> to vector<8x8xbf16>
    %cst_49 = arith.constant dense<0.000000e+00> : vector<256x8xf32>
    %66 = tpu.matmul %63, %65, %cst_49 {dimension_numbers = #tpu.dot_dimension_numbers<[1], [0], [0], [1], [0, 0, 1, 1], [], []>} : vector<256x8xbf16>, vector<8x8xbf16>, vector<256x8xf32> -> vector<256x8xf32>
    %67 = arith.addf %61, %66 : vector<256x8xf32>
    %68 = vector.shape_cast %67 : vector<256x8xf32> to vector<16x16x8xf32>
    %69 = arith.truncf %68 : vector<16x16x8xf32> to vector<16x16x8xbf16>
    %c0_50 = arith.constant 0 : index
    %c0_51 = arith.constant 0 : index
    %c0_52 = arith.constant 0 : index
    %c0_53 = arith.constant 0 : index
    %70 = vector.load %arg6[%c0_50, %c0_51, %c0_52, %c0_53] : memref<1x16x16x8xbf16, #tpu.memory_space<vmem>>, vector<1x16x16x8xbf16>
    %71 = vector.shape_cast %70 : vector<1x16x16x8xbf16> to vector<16x16x8xbf16>
    %72 = vector.shape_cast %69 : vector<16x16x8xbf16> to vector<1x16x16x8xbf16>
    tpu.vector_store %arg6[%c0_50, %c0_51, %c0_52, %c0_53], %72 {strides = array<i32>} : memref<1x16x16x8xbf16, #tpu.memory_space<vmem>>, vector<1x16x16x8xbf16>,
    %cst_54 = arith.constant dense<0.000000e+00> : vector<8xf32>
    %73 = vector.multi_reduction <add>, %67, %cst_54 [0] : vector<256x8xf32> to vector<8xf32>
    %74 = vector.shape_cast %73 : vector<8xf32> to vector<1x8xf32>
    %c0_55 = arith.constant 0 : index
    %c0_56 = arith.constant 0 : index
    %c0_57 = arith.constant 0 : index
    %c0_58 = arith.constant 0 : index
    %75 = vector.load %arg7[%c0_55, %c0_56, %c0_57, %c0_58] : memref<1x1x2x8xf32, #tpu.memory_space<vmem>>, vector<1x1x1x8xf32>
    %76 = vector.shape_cast %75 : vector<1x1x1x8xf32> to vector<1x8xf32>
    %77 = vector.shape_cast %74 : vector<1x8xf32> to vector<1x1x1x8xf32>
    tpu.vector_store %arg7[%c0_55, %c0_56, %c0_57, %c0_58], %77 {strides = array<i32>} : memref<1x1x2x8xf32, #tpu.memory_space<vmem>>, vector<1x1x1x8xf32>,
    %78 = arith.mulf %67, %67 : vector<256x8xf32>
    %cst_59 = arith.constant dense<0.000000e+00> : vector<8xf32>
    %79 = vector.multi_reduction <add>, %78, %cst_59 [0] : vector<256x8xf32> to vector<8xf32>
    %80 = vector.shape_cast %79 : vector<8xf32> to vector<1x8xf32>
    %c0_60 = arith.constant 0 : index
    %c0_61 = arith.constant 0 : index
    %c1_62 = arith.constant 1 : index
    %c0_63 = arith.constant 0 : index
    %81 = vector.load %arg7[%c0_60, %c0_61, %c1_62, %c0_63] : memref<1x1x2x8xf32, #tpu.memory_space<vmem>>, vector<1x1x1x8xf32>
    %82 = vector.shape_cast %81 : vector<1x1x1x8xf32> to vector<1x8xf32>
    %83 = vector.shape_cast %80 : vector<1x8xf32> to vector<1x1x1x8xf32>
    tpu.vector_store %arg7[%c0_60, %c0_61, %c1_62, %c0_63], %83 {strides = array<i32>} : memref<1x1x2x8xf32, #tpu.memory_space<vmem>>, vector<1x1x1x8xf32>,
    return
  }
  func.func @transform_0(%arg0: i32, %arg1: i32) -> (i32, i32, i32, i32) {
    %c0_i32 = arith.constant 0 : i32
    %c0_i32_0 = arith.constant 0 : i32
    %c0_i32_1 = arith.constant 0 : i32
    %c0_i32_2 = arith.constant 0 : i32
    return %arg0, %c0_i32, %c0_i32_0, %c0_i32_1 : i32, i32, i32, i32
  }
  func.func @transform_1(%arg0: i32, %arg1: i32) -> (i32, i32) {
    %c0_i32 = arith.constant 0 : i32
    %c0_i32_0 = arith.constant 0 : i32
    %c0_i32_1 = arith.constant 0 : i32
    return %c0_i32, %c0_i32_0 : i32, i32
  }
  func.func @transform_2(%arg0: i32, %arg1: i32) -> (i32, i32) {
    %c0_i32 = arith.constant 0 : i32
    %c0_i32_0 = arith.constant 0 : i32
    %c0_i32_1 = arith.constant 0 : i32
    return %c0_i32, %c0_i32_0 : i32, i32
  }
  func.func @transform_3(%arg0: i32, %arg1: i32) -> (i32, i32, i32, i32) {
    %c0_i32 = arith.constant 0 : i32
    %c0_i32_0 = arith.constant 0 : i32
    %c0_i32_1 = arith.constant 0 : i32
    %c0_i32_2 = arith.constant 0 : i32
    %c0_i32_3 = arith.constant 0 : i32
    return %c0_i32, %c0_i32_0, %c0_i32_1, %c0_i32_2 : i32, i32, i32, i32
  }
  func.func @transform_4(%arg0: i32, %arg1: i32) -> (i32, i32, i32, i32) {
    %c0_i32 = arith.constant 0 : i32
    %c0_i32_0 = arith.constant 0 : i32
    %c0_i32_1 = arith.constant 0 : i32
    return %arg0, %arg1, %c0_i32, %c0_i32_0 : i32, i32, i32, i32
  }
  func.func @transform_5(%arg0: i32, %arg1: i32) -> (i32, i32, i32, i32) {
    %c0_i32 = arith.constant 0 : i32
    %c0_i32_0 = arith.constant 0 : i32
    %c0_i32_1 = arith.constant 0 : i32
    return %arg0, %arg1, %c0_i32, %c0_i32_0 : i32, i32, i32, i32
  }
}

module attributes {stable_mosaic.version = 11 : i64} {
  func.func @_bn_relu_kernel(%arg0: i32, %arg1: i32, %arg2: memref<1x16x16x8xbf16, #tpu.memory_space<vmem>>, %arg3: memref<1x8xf32, #tpu.memory_space<vmem>>, %arg4: memref<1x8xf32, #tpu.memory_space<vmem>>, %arg5: memref<1x16x16x8xf32, #tpu.memory_space<vmem>>) attributes {dimension_semantics = [#tpu.dimension_semantics<parallel>, #tpu.dimension_semantics<parallel>], iteration_bounds = array<i64: 2, 1>, scalar_prefetch = 0 : i64, scratch_operands = 0 : i64, tpu.core_type = #tpu.core_type<tc>, window_params = [{transform_indices = @transform_0, window_bounds = array<i64: 1, 16, 16, 8>}, {pipeline_mode = #tpu.pipeline_mode<synchronous>, transform_indices = @transform_1, window_bounds = array<i64: 1, 8>}, {pipeline_mode = #tpu.pipeline_mode<synchronous>, transform_indices = @transform_2, window_bounds = array<i64: 1, 8>}, {transform_indices = @transform_3, window_bounds = array<i64: 1, 16, 16, 8>}]} {
    %c0 = arith.constant 0 : index
    %c0_0 = arith.constant 0 : index
    %c0_1 = arith.constant 0 : index
    %c0_2 = arith.constant 0 : index
    %0 = vector.load %arg2[%c0, %c0_0, %c0_1, %c0_2] : memref<1x16x16x8xbf16, #tpu.memory_space<vmem>>, vector<1x16x16x8xbf16>
    %1 = arith.extf %0 : vector<1x16x16x8xbf16> to vector<1x16x16x8xf32>
    %c0_3 = arith.constant 0 : index
    %c0_4 = arith.constant 0 : index
    %2 = vector.load %arg3[%c0_3, %c0_4] : memref<1x8xf32, #tpu.memory_space<vmem>>, vector<1x8xf32>
    %3 = vector.shape_cast %2 : vector<1x8xf32> to vector<8xf32>
    %4 = vector.shape_cast %3 : vector<8xf32> to vector<1x1x1x8xf32>
    %5 = vector.broadcast %4 : vector<1x1x1x8xf32> to vector<1x16x16x8xf32>
    %6 = arith.mulf %1, %5 : vector<1x16x16x8xf32>
    %c0_5 = arith.constant 0 : index
    %c0_6 = arith.constant 0 : index
    %7 = vector.load %arg4[%c0_5, %c0_6] : memref<1x8xf32, #tpu.memory_space<vmem>>, vector<1x8xf32>
    %8 = vector.shape_cast %7 : vector<1x8xf32> to vector<8xf32>
    %9 = vector.shape_cast %8 : vector<8xf32> to vector<1x1x1x8xf32>
    %10 = vector.broadcast %9 : vector<1x1x1x8xf32> to vector<1x16x16x8xf32>
    %11 = arith.addf %6, %10 : vector<1x16x16x8xf32>
    %cst = arith.constant 0.000000e+00 : f32
    %12 = vector.broadcast %cst : f32 to vector<1x16x16x8xf32>
    %13 = arith.maximumf %11, %12 : vector<1x16x16x8xf32>
    %c0_7 = arith.constant 0 : index
    %c0_8 = arith.constant 0 : index
    %c0_9 = arith.constant 0 : index
    %c0_10 = arith.constant 0 : index
    %14 = vector.load %arg5[%c0_7, %c0_8, %c0_9, %c0_10] : memref<1x16x16x8xf32, #tpu.memory_space<vmem>>, vector<1x16x16x8xf32>
    tpu.vector_store %arg5[%c0_7, %c0_8, %c0_9, %c0_10], %13 {strides = array<i32>} : memref<1x16x16x8xf32, #tpu.memory_space<vmem>>, vector<1x16x16x8xf32>,
    return
  }
  func.func @transform_0(%arg0: i32, %arg1: i32) -> (i32, i32, i32, i32) {
    %c0_i32 = arith.constant 0 : i32
    %c0_i32_0 = arith.constant 0 : i32
    %c0_i32_1 = arith.constant 0 : i32
    return %arg0, %arg1, %c0_i32, %c0_i32_0 : i32, i32, i32, i32
  }
  func.func @transform_1(%arg0: i32, %arg1: i32) -> (i32, i32) {
    %c0_i32 = arith.constant 0 : i32
    %c0_i32_0 = arith.constant 0 : i32
    %c0_i32_1 = arith.constant 0 : i32
    return %c0_i32, %c0_i32_0 : i32, i32
  }
  func.func @transform_2(%arg0: i32, %arg1: i32) -> (i32, i32) {
    %c0_i32 = arith.constant 0 : i32
    %c0_i32_0 = arith.constant 0 : i32
    %c0_i32_1 = arith.constant 0 : i32
    return %c0_i32, %c0_i32_0 : i32, i32
  }
  func.func @transform_3(%arg0: i32, %arg1: i32) -> (i32, i32, i32, i32) {
    %c0_i32 = arith.constant 0 : i32
    %c0_i32_0 = arith.constant 0 : i32
    %c0_i32_1 = arith.constant 0 : i32
    return %arg0, %arg1, %c0_i32, %c0_i32_0 : i32, i32, i32, i32
  }
}

</mosaic_0001>

<bundles_post_ra>
// kernel: double_conv.5
= control target key start
LH: loop header
LB: loop body
LE: loop exit
PB: predicated region body
PF: predicated region fallthrough
CT: control target
= control target key end

     0   :  { %s674_s12 = smov 0   ;;  %s676_s13 = smov 0   ;;  %s869_s0 = inlined_call_operand.vmem [shape: bf16[2,16,16,8], index: 0, kind: input, shape index: {}]   ;;  %s870_s1 = inlined_call_operand.vmem [shape: f32[1,8], index: 1, kind: input, shape index: {}]   ;;  %s871_s2 = inlined_call_operand.vmem [shape: f32[1,8], index: 2, kind: input, shape index: {}]   ;;  %s872_s3 = inlined_call_operand.vmem [shape: f32[2,16,16,8], index: 3, kind: output, shape index: {}]  }
   0x1   :  { %s678_s14 = smov 0  }
   0x2 LB: > { %s25_s15 = sadd.s32 1, %s648_s13  ;;  %p516_p0 = scmp.ge.s32.totalorder %s652_s14, 1  ;;  %s652_s14 = sphi %s678_s14, %s13_s14   ;;  %s648_s13 = sphi %s676_s13, %s874_s13   ;;  %s644_s12 = sphi %s674_s12, %s873_s12  }
   0x3   : > { %p27_p1 = scmp.ge.s32.totalorder %s25_s15, 2  ;;  %p159_p2 = scmp.lt.s32.totalorder %s652_s14, 3 }
   0x5   : > { %s876_s15 = smov (%p27_p1, %s25_s15), 0  ;;  %p160_p3 = pnand %p516_p0, %p159_p2 }
   0x6   : > { %p194_p4 = scmp.lt.s32.totalorder (!%p160_p3), %s644_s12, 1 }
   0x7   : > { %163 = sbr.rel (%p160_p3) target bundleno = 56 (0x38), region = 32 }
   0xc   : > { %s878_s12 = smov (!%p194_p4, %s644_s12), 1  ;;  %v703_v0 = vld [vmem:[%s870_s1] ss:$0 sm:$0xff]  ;;  %vm383_vm0 = vcmask 64512  }
   0xd   : > { %s523_s16 = sshll.u32 %s878_s12, 7  ;;  %v711_v5 = vld [vmem:[%s871_s2] ss:$0 sm:$0xff]  ;;  %s524_s24 = sshll.u32 %s878_s12, 8 }
   0xe   : > { %s698_s19 = scalar_lea.vmem %s869_s0, %s523_s16  ;;  %s730_s27 = scalar_lea.vmem %s872_s3, %s524_s24 }
   0xf   : > { %v526_v1 = vld [vmem:[%s698_s19] sm:$0xff]   ;;  %v589_v2 = vld [vmem:[%s698_s19 + $0x8] sm:$0xff]   ;;  %v590_v3 = vld [vmem:[%s698_s19 + $0x10] sm:$0xff]  }
  0x10   : > { %v527_v4 = vunpack.c.l.bf16 %v526_v1  ;;  %v528_v6 = vunpack.c.h.bf16 %v526_v1  ;;  %v531_v7 = vunpack.c.l.bf16 %v589_v2  ;;  %v532_v8 = vunpack.c.h.bf16 %v589_v2  ;;  %v591_v9 = vld [vmem:[%s698_s19 + $0x18] sm:$0xff]   ;;  %v592_v30 = vld [vmem:[%s698_s19 + $0x20] sm:$0xff]   ;;  %v593_v31 = vld [vmem:[%s698_s19 + $0x28] sm:$0xff]  }
  0x11   : > { %v535_v10 = vunpack.c.l.bf16 %v590_v3  ;;  %v536_v11 = vunpack.c.h.bf16 %v590_v3  ;;  %v539_v12 = vunpack.c.l.bf16 %v591_v9  ;;  %v540_v13 = vunpack.c.h.bf16 %v591_v9  ;;  %v594_v36 = vld [vmem:[%s698_s19 + $0x30] sm:$0xff]   ;;  %v595_v37 = vld [vmem:[%s698_s19 + $0x38] sm:$0xff]   ;;  %v596_v3 = vld [vmem:[%s698_s19 + $0x40] sm:$0xff]  }
  0x12   : > { %v283_v14 = vmul.f32 %v703_v0, %v527_v4  ;;  %v284_v15 = vmul.f32 %v703_v0, %v528_v6  ;;  %v285_v16 = vmul.f32 %v703_v0, %v531_v7  ;;  %v286_v17 = vmul.f32 %v703_v0, %v532_v8  ;;  %v597_v4 = vld [vmem:[%s698_s19 + $0x48] sm:$0xff]   ;;  %v598_v6 = vld [vmem:[%s698_s19 + $0x50] sm:$0xff]  }
  0x13   : > { %v287_v18 = vmul.f32 %v703_v0, %v535_v10  ;;  %v288_v19 = vmul.f32 %v703_v0, %v536_v11  ;;  %v289_v20 = vmul.f32 %v703_v0, %v539_v12  ;;  %v290_v21 = vmul.f32 %v703_v0, %v540_v13  ;;  %v599_v11 = vld [vmem:[%s698_s19 + $0x58] sm:$0xff]  }
  0x14   : > { %v319_v22 = vadd.f32 %v711_v5, %v283_v14  ;;  %v320_v23 = vadd.f32 %v711_v5, %v284_v15  ;;  %v321_v24 = vadd.f32 %v711_v5, %v285_v16  ;;  %v322_v25 = vadd.f32 %v711_v5, %v286_v17 }
  0x15   : > { %v323_v26 = vadd.f32 %v711_v5, %v287_v18  ;;  %v324_v27 = vadd.f32 %v711_v5, %v288_v19  ;;  %v325_v28 = vadd.f32 %v711_v5, %v289_v20  ;;  %v326_v29 = vadd.f32 %v711_v5, %v290_v21 }
  0x16   : > { %v351_v32 = vmax.f32 %v319_v22, 0.0  ;;  %v352_v33 = vmax.f32 %v320_v23, 0.0  ;;  %v353_v34 = vmax.f32 %v321_v24, 0.0  ;;  %v354_v35 = vmax.f32 %v322_v25, 0.0 }
  0x17   : > { %v355_v38 = vmax.f32 %v323_v26, 0.0  ;;  %v356_v39 = vmax.f32 %v324_v27, 0.0  ;;  %v357_v40 = vmax.f32 %v325_v28, 0.0  ;;  %v358_v41 = vmax.f32 %v326_v29, 0.0 }
  0x18   : > { %384 = vst.msk [vmem:[%s730_s27] sm:$0xff] %vm383_vm0, %v351_v32  ;;  %v543_v42 = vunpack.c.l.bf16 %v592_v30  ;;  %v544_v43 = vunpack.c.h.bf16 %v592_v30  ;;  %v547_v44 = vunpack.c.l.bf16 %v593_v31  ;;  %v548_v45 = vunpack.c.h.bf16 %v593_v31 }
  0x19   : > { %385 = vst.msk [vmem:[%s730_s27 + $0x8] sm:$0xff] %vm383_vm0, %v352_v33  ;;  %v551_v46 = vunpack.c.l.bf16 %v594_v36  ;;  %v552_v47 = vunpack.c.h.bf16 %v594_v36  ;;  %v555_v48 = vunpack.c.l.bf16 %v595_v37  ;;  %v556_v49 = vunpack.c.h.bf16 %v595_v37 }
  0x1a   : > { %386 = vst.msk [vmem:[%s730_s27 + $0x10] sm:$0xff] %vm383_vm0, %v353_v34  ;;  %v291_v50 = vmul.f32 %v703_v0, %v543_v42  ;;  %v292_v51 = vmul.f32 %v703_v0, %v544_v43  ;;  %v293_v52 = vmul.f32 %v703_v0, %v547_v44  ;;  %v294_v53 = vmul.f32 %v703_v0, %v548_v45  ;;  %v602_v42 = vld [vmem:[%s698_s19 + $0x70] sm:$0xff]  }
  0x1b   : > { %387 = vst.msk [vmem:[%s730_s27 + $0x18] sm:$0xff] %vm383_vm0, %v354_v35  ;;  %v295_v54 = vmul.f32 %v703_v0, %v551_v46  ;;  %v296_v55 = vmul.f32 %v703_v0, %v552_v47  ;;  %v297_v56 = vmul.f32 %v703_v0, %v555_v48  ;;  %v298_v57 = vmul.f32 %v703_v0, %v556_v49  ;;  %v603_v47 = vld [vmem:[%s698_s19 + $0x78] sm:$0xff]  }
  0x1c   : > { %388 = vst.msk [vmem:[%s730_s27 + $0x20] sm:$0xff] %vm383_vm0, %v355_v38  ;;  %v327_v58 = vadd.f32 %v711_v5, %v291_v50  ;;  %v328_v59 = vadd.f32 %v711_v5, %v292_v51  ;;  %v329_v60 = vadd.f32 %v711_v5, %v293_v52  ;;  %v330_v61 = vadd.f32 %v711_v5, %v294_v53 }
  0x1d   : > { %389 = vst.msk [vmem:[%s730_s27 + $0x28] sm:$0xff] %vm383_vm0, %v356_v39  ;;  %v331_v62 = vadd.f32 %v711_v5, %v295_v54  ;;  %v332_v63 = vadd.f32 %v711_v5, %v296_v55  ;;  %v333_v1 = vadd.f32 %v711_v5, %v297_v56  ;;  %v334_v2 = vadd.f32 %v711_v5, %v298_v57 }
  0x1e   : > { %390 = vst.msk [vmem:[%s730_s27 + $0x30] sm:$0xff] %vm383_vm0, %v357_v40  ;;  %v359_v7 = vmax.f32 %v327_v58, 0.0  ;;  %v360_v8 = vmax.f32 %v328_v59, 0.0  ;;  %v361_v9 = vmax.f32 %v329_v60, 0.0  ;;  %v362_v10 = vmax.f32 %v330_v61, 0.0  ;;  %v600_v40 = vld [vmem:[%s698_s19 + $0x60] sm:$0xff]  }
  0x1f   : > { %391 = vst.msk [vmem:[%s730_s27 + $0x38] sm:$0xff] %vm383_vm0, %v358_v41  ;;  %v363_v12 = vmax.f32 %v331_v62, 0.0  ;;  %v364_v13 = vmax.f32 %v332_v63, 0.0  ;;  %v365_v14 = vmax.f32 %v333_v1, 0.0  ;;  %v366_v15 = vmax.f32 %v334_v2, 0.0  ;;  %v601_v41 = vld [vmem:[%s698_s19 + $0x68] sm:$0xff]  }
  0x20   : > { %392 = vst.msk [vmem:[%s730_s27 + $0x40] sm:$0xff] %vm383_vm0, %v359_v7  ;;  %v559_v16 = vunpack.c.l.bf16 %v596_v3  ;;  %v560_v17 = vunpack.c.h.bf16 %v596_v3  ;;  %v563_v18 = vunpack.c.l.bf16 %v597_v4  ;;  %v564_v19 = vunpack.c.h.bf16 %v597_v4 }
  0x21   : > { %393 = vst.msk [vmem:[%s730_s27 + $0x48] sm:$0xff] %vm383_vm0, %v360_v8  ;;  %v567_v20 = vunpack.c.l.bf16 %v598_v6  ;;  %v568_v21 = vunpack.c.h.bf16 %v598_v6  ;;  %v571_v22 = vunpack.c.l.bf16 %v599_v11  ;;  %v572_v23 = vunpack.c.h.bf16 %v599_v11 }
  0x22   : > { %394 = vst.msk [vmem:[%s730_s27 + $0x50] sm:$0xff] %vm383_vm0, %v361_v9  ;;  %v299_v24 = vmul.f32 %v703_v0, %v559_v16  ;;  %v300_v25 = vmul.f32 %v703_v0, %v560_v17  ;;  %v301_v26 = vmul.f32 %v703_v0, %v563_v18  ;;  %v302_v27 = vmul.f32 %v703_v0, %v564_v19 }
  0x23   : > { %395 = vst.msk [vmem:[%s730_s27 + $0x58] sm:$0xff] %vm383_vm0, %v362_v10  ;;  %v303_v28 = vmul.f32 %v703_v0, %v567_v20  ;;  %v304_v29 = vmul.f32 %v703_v0, %v568_v21  ;;  %v305_v30 = vmul.f32 %v703_v0, %v571_v22  ;;  %v306_v31 = vmul.f32 %v703_v0, %v572_v23 }
  0x24   : > { %396 = vst.msk [vmem:[%s730_s27 + $0x60] sm:$0xff] %vm383_vm0, %v363_v12  ;;  %v335_v32 = vadd.f32 %v711_v5, %v299_v24  ;;  %v336_v33 = vadd.f32 %v711_v5, %v300_v25  ;;  %v337_v34 = vadd.f32 %v711_v5, %v301_v26  ;;  %v338_v35 = vadd.f32 %v711_v5, %v302_v27 }
  0x25   : > { %397 = vst.msk [vmem:[%s730_s27 + $0x68] sm:$0xff] %vm383_vm0, %v364_v13  ;;  %v339_v36 = vadd.f32 %v711_v5, %v303_v28  ;;  %v340_v37 = vadd.f32 %v711_v5, %v304_v29  ;;  %v341_v38 = vadd.f32 %v711_v5, %v305_v30  ;;  %v342_v39 = vadd.f32 %v711_v5, %v306_v31 }
  0x26   : > { %398 = vst.msk [vmem:[%s730_s27 + $0x70] sm:$0xff] %vm383_vm0, %v365_v14  ;;  %v367_v43 = vmax.f32 %v335_v32, 0.0  ;;  %v368_v44 = vmax.f32 %v336_v33, 0.0  ;;  %v369_v45 = vmax.f32 %v337_v34, 0.0  ;;  %v370_v46 = vmax.f32 %v338_v35, 0.0 }
  0x27   : > { %399 = vst.msk [vmem:[%s730_s27 + $0x78] sm:$0xff] %vm383_vm0, %v366_v15  ;;  %v371_v48 = vmax.f32 %v339_v36, 0.0  ;;  %v372_v49 = vmax.f32 %v340_v37, 0.0  ;;  %v373_v50 = vmax.f32 %v341_v38, 0.0  ;;  %v374_v51 = vmax.f32 %v342_v39, 0.0 }
  0x28   : > { %400 = vst.msk [vmem:[%s730_s27 + $0x80] sm:$0xff] %vm383_vm0, %v367_v43  ;;  %v575_v52 = vunpack.c.l.bf16 %v600_v40  ;;  %v576_v53 = vunpack.c.h.bf16 %v600_v40  ;;  %v579_v54 = vunpack.c.l.bf16 %v601_v41  ;;  %v580_v55 = vunpack.c.h.bf16 %v601_v41 }
  0x29   : > { %401 = vst.msk [vmem:[%s730_s27 + $0x88] sm:$0xff] %vm383_vm0, %v368_v44  ;;  %v583_v56 = vunpack.c.l.bf16 %v602_v42  ;;  %v584_v57 = vunpack.c.h.bf16 %v602_v42  ;;  %v587_v58 = vunpack.c.l.bf16 %v603_v47  ;;  %v588_v59 = vunpack.c.h.bf16 %v603_v47 }
  0x2a   : > { %402 = vst.msk [vmem:[%s730_s27 + $0x90] sm:$0xff] %vm383_vm0, %v369_v45  ;;  %v307_v60 = vmul.f32 %v703_v0, %v575_v52  ;;  %v308_v61 = vmul.f32 %v703_v0, %v576_v53  ;;  %v309_v62 = vmul.f32 %v703_v0, %v579_v54  ;;  %v310_v63 = vmul.f32 %v703_v0, %v580_v55 }
  0x2b   : > { %403 = vst.msk [vmem:[%s730_s27 + $0x98] sm:$0xff] %vm383_vm0, %v370_v46  ;;  %v311_v1 = vmul.f32 %v703_v0, %v583_v56  ;;  %v312_v2 = vmul.f32 %v703_v0, %v584_v57  ;;  %v313_v3 = vmul.f32 %v703_v0, %v587_v58  ;;  %v314_v4 = vmul.f32 %v703_v0, %v588_v59 }
  0x2c   : > { %404 = vst.msk [vmem:[%s730_s27 + $0xa0] sm:$0xff] %vm383_vm0, %v371_v48  ;;  %v343_v6 = vadd.f32 %v711_v5, %v307_v60  ;;  %v344_v7 = vadd.f32 %v711_v5, %v308_v61  ;;  %v345_v8 = vadd.f32 %v711_v5, %v309_v62  ;;  %v346_v9 = vadd.f32 %v711_v5, %v310_v63 }
  0x2d   : > { %405 = vst.msk [vmem:[%s730_s27 + $0xa8] sm:$0xff] %vm383_vm0, %v372_v49  ;;  %v347_v10 = vadd.f32 %v711_v5, %v311_v1  ;;  %v348_v0 = vadd.f32 %v711_v5, %v312_v2  ;;  %v349_v14 = vadd.f32 %v711_v5, %v313_v3  ;;  %v350_v16 = vadd.f32 %v711_v5, %v314_v4 }
  0x2e   : > { %406 = vst.msk [vmem:[%s730_s27 + $0xb0] sm:$0xff] %vm383_vm0, %v373_v50  ;;  %v375_v11 = vmax.f32 %v343_v6, 0.0  ;;  %v376_v12 = vmax.f32 %v344_v7, 0.0  ;;  %v377_v13 = vmax.f32 %v345_v8, 0.0  ;;  %v378_v15 = vmax.f32 %v346_v9, 0.0 }
  0x2f   : > { %407 = vst.msk [vmem:[%s730_s27 + $0xb8] sm:$0xff] %vm383_vm0, %v374_v51  ;;  %v379_v17 = vmax.f32 %v347_v10, 0.0  ;;  %v380_v18 = vmax.f32 %v348_v0, 0.0  ;;  %v381_v19 = vmax.f32 %v349_v14, 0.0  ;;  %v382_v20 = vmax.f32 %v350_v16, 0.0 }
  0x30   : > { %408 = vst.msk [vmem:[%s730_s27 + $0xc0] sm:$0xff] %vm383_vm0, %v375_v11 }
  0x31   : > { %409 = vst.msk [vmem:[%s730_s27 + $0xc8] sm:$0xff] %vm383_vm0, %v376_v12 }
  0x32   : > { %410 = vst.msk [vmem:[%s730_s27 + $0xd0] sm:$0xff] %vm383_vm0, %v377_v13 }
  0x33   : > { %411 = vst.msk [vmem:[%s730_s27 + $0xd8] sm:$0xff] %vm383_vm0, %v378_v15 }
  0x34   : > { %412 = vst.msk [vmem:[%s730_s27 + $0xe0] sm:$0xff] %vm383_vm0, %v379_v17 }
  0x35   : > { %413 = vst.msk [vmem:[%s730_s27 + $0xe8] sm:$0xff] %vm383_vm0, %v380_v18 }
  0x36   : > { %414 = vst.msk [vmem:[%s730_s27 + $0xf0] sm:$0xff] %vm383_vm0, %v381_v19 }
  0x37   : > { %415 = vst.msk [vmem:[%s730_s27 + $0xf8] sm:$0xff] %vm383_vm0, %v382_v20 }
  0x38 PF: > { %s13_s14 = sadd.s32 1, %s652_s14   ;;  %s873_s12 = smov %s648_s13 }
  0x39   : > { %p10_p5 = scmp.ge.s32.totalorder %s13_s14, 4   ;;  %s874_s13 = smov %s876_s15 }
  0x3b   :  { %12 = sbr.rel (!%p10_p5) target bundleno = 2 (0x2), region = 62 }

// kernel: double_conv.3
= control target key start
LH: loop header
LB: loop body
LE: loop exit
PB: predicated region body
PF: predicated region fallthrough
CT: control target
= control target key end

     0   :  { %s5016_s12 = smov 0   ;;  %s5018_s13 = smov 0   ;;  %s6575_s0 = inlined_call_operand.vmem [shape: bf16[2,18,18,8], index: 0, kind: input, shape index: {}]   ;;  %s6576_s1 = inlined_call_operand.vmem [shape: bf16[3,3,8,8], index: 1, kind: input, shape index: {}]   ;;  %s6577_s2 = inlined_call_operand.vmem [shape: bf16[2,16,16,8], index: 2, kind: output, shape index: {0}]   ;;  %s6578_s3 = inlined_call_operand.vmem [shape: f32[2,1,2,8], index: 3, kind: output, shape index: {1}]  }
   0x1   :  { %s5020_s14 = smov 0  }
   0x2 LB: > { %s26_s15 = sadd.s32 1, %s4990_s13  ;;  %p4325_p0 = scmp.ge.s32.totalorder %s4994_s14, 1  ;;  %s4994_s14 = sphi %s5020_s14, %s14_s14   ;;  %s4990_s13 = sphi %s5018_s13, %s6594_s13   ;;  %s4986_s12 = sphi %s5016_s12, %s6593_s12  }
   0x3   : > { %p28_p1 = scmp.ge.s32.totalorder %s26_s15, 2  ;;  %p156_p2 = scmp.lt.s32.totalorder %s4994_s14, 3 }
   0x5   : > { %s6596_s15 = smov (%p28_p1, %s26_s15), 0  ;;  %p157_p3 = pnand %p4325_p0, %p156_p2 }
   0x7   : > { %160 = sbr.rel (%p157_p3) target bundleno = 772 (0x304), region = 28 }
   0xc   : > { %v4330_v0 = vld [vmem:[%s6576_s1 + $0x4] sm:$0xf]  ;;  %vm755_vm0 = vcmask 1043456   ;;  %p192_p4 = scmp.lt.s32.totalorder %s4986_s12, 1  ;;  %v4443_v2 = vld [vmem:[%s6576_s1 + $0x8] sm:$0xf] }
   0xd   : > { %v757_v1 = vsel %vm755_vm0, %v4330_v0, 0  ;;  %v1298_v3 = vsel %vm755_vm0, %v4443_v2, 0  ;;  %v4508_v4 = vld [vmem:[%s6576_s1 + $0xc] sm:$0xf]  ;;  %v268_v5 = vld [vmem:[%s6576_s1] sm:$0xf] }
   0xe   : > { %4869 = vmatpush.bf16.msra.mxu1 %v757_v1  ;;  %4870 = vmatpush.bf16.msra.mxu2 %v757_v1  ;;  %s6598_s12 = smov (!%p192_p4, %s4986_s12), 1  ;;  %v4589_v6 = vld [vmem:[%s6576_s1 + $0x10] sm:$0xf]  ;;  %v1604_v7 = vsel %vm755_vm0, %v4508_v4, 0  ;;  %v977_v8 = vsel %vm755_vm0, %v268_v5, 0  ;;  %vm706_vm4 = vcmask 64512  }
   0xf   : > { %4871 = vmatpush.bf16.msra.mxu3 %v757_v1  ;;  %766 = vmatpush.bf16.msra.mxu0 %v757_v1  ;;  %s4872_s26 = smul.u32 216, %s6598_s12  ;;  %v2210_v9 = vsel %vm755_vm0, %v4589_v6, 0  ;;  %vm269_vm1 = vsmask.f32 3328  ;;  %vm270_vm2 = vsmask.f32 7440 }
  0x10   : > { %vm5072_vm3 = vmor %vm269_vm1, %vm270_vm2  ;;  %vm1084_vm5 = vcmask 1042432   ;;  %vm1085_vm6 = vcmask 1046532   ;;  %s4820_s11 = sshll.u32 %s6598_s12, 7  ;;  %vm3977_vm8 = vcmask 60416   ;;  %s4329_s19 = sshll.u32 %s6598_s12, 1  ;;  %vm4079_vm9 = vcmask 57344  }
  0x11   : > { %s5060_s29 = scalar_lea.vmem %s6575_s0, %s4872_s26  ;;  %vm5274_vm7 = vmor %vm1084_vm5, %vm1085_vm6  ;;  %s6170_s18 = scalar_lea.vmem %s6577_s2, %s4820_s11 }
  0x12   : > { %1307 = vmatpush.bf16.msrb.mxu2 %v1298_v3  ;;  %986 = vmatpush.bf16.msrb.mxu1 %v977_v8  ;;  %v232_v10 = vld [vmem:[%s5060_s29 + $0x30] sm:$0xf]  ;;  %v233_v11 = vld [vmem:[%s5060_s29 + $0x34] sm:$0xf]  ;;  %v234_v12 = vld [vmem:[%s5060_s29 + $0x38] sm:$0x1]  ;;  %s214_s22 = scalar_lea.vmem %s6578_s3, %s4329_s19 }
  0x13   : > { %1613 = vmatpush.bf16.msrb.mxu3 %v1604_v7  ;;  %2219 = vmatpush.bf16.msrb.mxu0 %v2210_v9  ;;  %v369_v13 = vshrl.u32 %v232_v10, 16  ;;  %v372_v14 = vshll.u32 %v232_v10, 16  ;;  %v378_v15 = vshll.u32 %v233_v11, 16  ;;  %v382_v16 = vshrl.u32 %v233_v11, 16  ;;  %v244_v17 = vld [vmem:[%s5060_s29 + $0x60] sm:$0xf] }
  0x14   : > { %v388_v18 = vshll.u32 %v234_v12, 16  ;;  %v245_v19 = vld [vmem:[%s5060_s29 + $0x64] sm:$0xf]  ;;  %v246_v20 = vld [vmem:[%s5060_s29 + $0x68] sm:$0x1]  ;;  %v465_v21 = vshrl.u32 %v244_v17, 16 }
  0x15   : > { %v371_v22 = vrot.slane %v369_v13, 4  ;;  %v374_v23 = vrot.slane %v372_v14, 5  ;;  %v380_v24 = vrot.slane %v378_v15, 5  ;;  %v384_v25 = vrot.slane %v382_v16, 4  ;;  %v256_v26 = vld [vmem:[%s5060_s29 + $0x90] sm:$0xf] }
  0x16   : > { %v390_v27 = vrot.slane %v388_v18, 5  ;;  %v467_v28 = vrot.slane %v465_v21, 4  ;;  %v468_v29 = vshll.u32 %v244_v17, 16  ;;  %v474_v30 = vshll.u32 %v245_v19, 16  ;;  %v257_v35 = vld [vmem:[%s5060_s29 + $0x94] sm:$0xf] }
  0x17   : > { %v375_v31 = vor.u32 %v374_v23, %v371_v22  ;;  %v385_v32 = vor.u32 %v384_v25, %v380_v24  ;;  %v478_v33 = vshrl.u32 %v245_v19, 16  ;;  %v484_v34 = vshll.u32 %v246_v20, 16  ;;  %v258_v45 = vld [vmem:[%s5060_s29 + $0x98] sm:$0x1]  ;;  %v5082_v61 = vld [vmem:[%s5060_s29] sm:$0xf] }
  0x18   : > { %v470_v37 = vrot.slane %v468_v29, 5  ;;  %v476_v38 = vrot.slane %v474_v30, 5  ;;  %v561_v39 = vshrl.u32 %v256_v26, 16  ;;  %v564_v47 = vshll.u32 %v256_v26, 16  ;;  %v5087_v1 = vld [vmem:[%s5060_s29 + $0x4] sm:$0xf] }
  0x19   : > { %v376_v40 = vrot.slane %v375_v31, 4  ;;  %v386_v41 = vrot.slane %v385_v32, 4  ;;  %v480_v42 = vrot.slane %v478_v33, 4  ;;  %v486_v43 = vrot.slane %v484_v34, 5  ;;  %v5090_v2 = vld [vmem:[%s5060_s29 + $0x8] sm:$0x1] }
  0x1a   : > { %v471_v44 = vor.u32 %v470_v37, %v467_v28  ;;  %v563_v46 = vrot.slane %v561_v39, 4  ;;  %v570_v48 = vshll.u32 %v257_v35, 16  ;;  %v574_v52 = vshrl.u32 %v257_v35, 16  ;;  %v5103_v19 = vld [vmem:[%s5060_s29 + $0x3c] sm:$0xf] }
  0x1b   : > { %v381_v49 = vsel %vm5072_vm3, %v376_v40, %v380_v24  ;;  %v391_v50 = vsel %vm5072_vm3, %v386_v41, %v390_v27  ;;  %v481_v51 = vor.u32 %v480_v42, %v476_v38  ;;  %v566_v56 = vrot.slane %v564_v47, 5  ;;  %v5106_v20 = vld [vmem:[%s5060_s29 + $0x40] sm:$0xf]  ;;  %v5111_v25 = vld [vmem:[%s5060_s29 + $0x44] sm:$0x1] }
  0x1c   : > { %v666_v53 = vunpack.c.l.b16 %v381_v49  ;;  %v667_v54 = vunpack.c.l.b16 %v391_v50  ;;  %v472_v55 = vrot.slane %v471_v44, 4  ;;  %v572_v58 = vrot.slane %v570_v48, 5  ;;  %v247_v33 = vld [vmem:[%s5060_s29 + $0x6c] sm:$0xf]  ;;  %v249_v47 = vld [vmem:[%s5060_s29 + $0x74] sm:$0x1] }
  0x1d   : > { %v482_v57 = vrot.slane %v481_v51, 4  ;;  %v576_v59 = vrot.slane %v574_v52, 4  ;;  %v580_v60 = vshll.u32 %v258_v45, 16  ;;  %v567_v0 = vor.u32 %v566_v56, %v563_v46 }
  0x1e   : > { %v694_v62 = vpack.c.b16 %v667_v54, %v666_v53  ;;  %v477_v63 = vsel %vm5072_vm3, %v472_v55, %v476_v38  ;;  %v273_v9 = vshrl.u32 %v5082_v61, 16  ;;  %v276_v10 = vshll.u32 %v5082_v61, 16 }
  0x1f   : > { %v487_v3 = vsel %vm5072_vm3, %v482_v57, %v486_v43  ;;  %v674_v4 = vunpack.c.l.b16 %v477_v63  ;;  %v577_v5 = vor.u32 %v576_v59, %v572_v58  ;;  %v582_v6 = vrot.slane %v580_v60, 5  ;;  %v248_v43 = vld [vmem:[%s5060_s29 + $0x70] sm:$0xf] }
  0x20   : > { %4335 = vmatmul.msk.bf16.vlgmr.msra.gmra.mxu1 %vm706_vm4, %v694_v62  ;;  %v675_v7 = vunpack.c.l.b16 %v487_v3  ;;  %v568_v8 = vrot.slane %v567_v0, 4  ;;  %v282_v12 = vshll.u32 %v5087_v1, 16  ;;  %v286_v13 = vshrl.u32 %v5087_v1, 16  ;;  %v259_v62 = vld [vmem:[%s5060_s29 + $0x9c] sm:$0xf] }
  0x21   : > { %v578_v11 = vrot.slane %v577_v5, 4  ;;  %v292_v14 = vshll.u32 %v5090_v2, 16  ;;  %v275_v17 = vrot.slane %v273_v9, 4  ;;  %v278_v18 = vrot.slane %v276_v10, 5  ;;  %v261_v9 = vld [vmem:[%s5060_s29 + $0xa4] sm:$0x1] }
  0x22   : > { %v698_v15 = vpack.c.b16 %v675_v7, %v674_v4  ;;  %v573_v16 = vsel %vm5072_vm3, %v568_v8, %v572_v58  ;;  %v284_v23 = vrot.slane %v282_v12, 5  ;;  %v288_v24 = vrot.slane %v286_v13, 4  ;;  %v260_v4 = vld [vmem:[%s5060_s29 + $0xa0] sm:$0xf] }
  0x23   : > { %v583_v21 = vsel %vm5072_vm3, %v578_v11, %v582_v6  ;;  %v682_v22 = vunpack.c.l.b16 %v573_v16  ;;  %v279_v27 = vor.u32 %v278_v18, %v275_v17  ;;  %v294_v28 = vrot.slane %v292_v14, 5 }
  0x24   : > { %4339 = vmatmul.msk.bf16.vlgmr.msra.gmra.mxu2 %vm706_vm4, %v698_v15  ;;  %v683_v26 = vunpack.c.l.b16 %v583_v21  ;;  %v289_v29 = vor.u32 %v288_v24, %v284_v23  ;;  %v393_v30 = vshrl.u32 %v5103_v19, 16  ;;  %v396_v31 = vshll.u32 %v5103_v19, 16  ;;  %v5136_v24 = vld [vmem:[%s5060_s29 + $0xc] sm:$0xf] }
  0x25   : > { %v402_v32 = vshll.u32 %v5106_v20, 16  ;;  %v280_v35 = vrot.slane %v279_v27, 4  ;;  %v406_v37 = vshrl.u32 %v5106_v20, 16  ;;  %v412_v38 = vshll.u32 %v5111_v25, 16 }
  0x26   : > { %v702_v34 = vpack.c.b16 %v683_v26, %v682_v22  ;;  %v290_v39 = vrot.slane %v289_v29, 4  ;;  %v395_v40 = vrot.slane %v393_v30, 4  ;;  %v398_v41 = vrot.slane %v396_v31, 5  ;;  %v5141_v30 = vld [vmem:[%s5060_s29 + $0x10] sm:$0xf] }
  0x27   : > { %v404_v42 = vrot.slane %v402_v32, 5  ;;  %v285_v44 = vsel %vm5072_vm3, %v280_v35, %v284_v23  ;;  %v408_v45 = vrot.slane %v406_v37, 4  ;;  %v414_v46 = vrot.slane %v412_v38, 5 }
  0x28   : > { %4343 = vmatmul.msk.bf16.vlgmr.msra.gmra.mxu3 %vm706_vm4, %v702_v34  ;;  %v489_v48 = vshrl.u32 %v247_v33, 16  ;;  %v295_v49 = vsel %vm5072_vm3, %v290_v39, %v294_v28  ;;  %v658_v50 = vunpack.c.l.b16 %v285_v44  ;;  %v399_v51 = vor.u32 %v398_v41, %v395_v40  ;;  %v5144_v34 = vld [vmem:[%s5060_s29 + $0x14] sm:$0x1]  ;;  %v5153_v44 = vld [vmem:[%s5060_s29 + $0x48] sm:$0xf] }
  0x29   : > { %v492_v52 = vshll.u32 %v247_v33, 16  ;;  %v659_v53 = vunpack.c.l.b16 %v295_v49  ;;  %v409_v54 = vor.u32 %v408_v45, %v404_v42  ;;  %v498_v56 = vshll.u32 %v248_v43, 16  ;;  %v5158_v49 = vld [vmem:[%s5060_s29 + $0x4c] sm:$0xf] }
  0x2a   : > { %v491_v55 = vrot.slane %v489_v48, 4  ;;  %v400_v57 = vrot.slane %v399_v51, 4  ;;  %v502_v59 = vshrl.u32 %v248_v43, 16  ;;  %v508_v60 = vshll.u32 %v249_v47, 16 }
  0x2b   : > { %v494_v58 = vrot.slane %v492_v52, 5  ;;  %v690_v63 = vpack.c.b16 %v659_v53, %v658_v50  ;;  %v410_v0 = vrot.slane %v409_v54, 4  ;;  %v500_v3 = vrot.slane %v498_v56, 5 }
  0x2c   : > { %v405_v5 = vsel %vm5072_vm3, %v400_v57, %v404_v42  ;;  %v504_v7 = vrot.slane %v502_v59, 4  ;;  %v510_v8 = vrot.slane %v508_v60, 5  ;;  %v585_v12 = vshrl.u32 %v259_v62, 16 }
  0x2d   : > { %v495_v6 = vor.u32 %v494_v58, %v491_v55  ;;  %4331 = vmatmul.msk.bf16.vlgmr.msra.gmra.mxu0 %vm706_vm4, %v690_v63  ;;  %v415_v10 = vsel %vm5072_vm3, %v410_v0, %v414_v46  ;;  %v668_v11 = vunpack.c.l.b16 %v405_v5  ;;  %v588_v13 = vshll.u32 %v259_v62, 16  ;;  %v5163_v58 = vld [vmem:[%s5060_s29 + $0x50] sm:$0x1] }
  0x2e   : > { %v669_v14 = vunpack.c.l.b16 %v415_v10  ;;  %v505_v16 = vor.u32 %v504_v7, %v500_v3  ;;  %v594_v17 = vshll.u32 %v260_v4, 16  ;;  %v587_v18 = vrot.slane %v585_v12, 4 }
  0x2f   : > { %v496_v15 = vrot.slane %v495_v6, 4  ;;  %v590_v21 = vrot.slane %v588_v13, 5  ;;  %v598_v22 = vshrl.u32 %v260_v4, 16  ;;  %v604_v23 = vshll.u32 %v261_v9, 16  ;;  %v250_v6 = vld [vmem:[%s5060_s29 + $0x78] sm:$0xf] }
  0x30   : > { %v695_v26 = vpack.c.b16 %v669_v14, %v668_v11  ;;  %v506_v28 = vrot.slane %v505_v16, 4  ;;  %v596_v29 = vrot.slane %v594_v17, 5  ;;  %v297_v38 = vshrl.u32 %v5136_v24, 16  ;;  %v251_v11 = vld [vmem:[%s5060_s29 + $0x7c] sm:$0xf] }
  0x31   : > { %v501_v27 = vsel %vm5072_vm3, %v496_v15, %v500_v3  ;;  %v591_v32 = vor.u32 %v590_v21, %v587_v18  ;;  %v600_v33 = vrot.slane %v598_v22, 4  ;;  %v606_v37 = vrot.slane %v604_v23, 5  ;;  %v252_v21 = vld [vmem:[%s5060_s29 + $0x80] sm:$0x1] }
  0x32   : > { %v676_v31 = vunpack.c.l.b16 %v501_v27  ;;  %4336 = vmatmul.msk.bf16.gmra.mxu1 %vm706_vm4, %v695_v26  ;;  %v511_v35 = vsel %vm5072_vm3, %v506_v28, %v510_v8  ;;  %v300_v39 = vshll.u32 %v5136_v24, 16  ;;  %v306_v43 = vshll.u32 %v5141_v30, 16 }
  0x33   : > { %v677_v40 = vunpack.c.l.b16 %v511_v35  ;;  %v592_v41 = vrot.slane %v591_v32, 4  ;;  %v601_v42 = vor.u32 %v600_v33, %v596_v29  ;;  %v299_v45 = vrot.slane %v297_v38, 4 }
  0x34   : > { %v302_v46 = vrot.slane %v300_v39, 5  ;;  %v310_v47 = vshrl.u32 %v5141_v30, 16  ;;  %v316_v48 = vshll.u32 %v5144_v34, 16  ;;  %v308_v53 = vrot.slane %v306_v43, 5 }
  0x35   : > { %v699_v50 = vpack.c.b16 %v677_v40, %v676_v31  ;;  %v597_v51 = vsel %vm5072_vm3, %v592_v41, %v596_v29  ;;  %v602_v52 = vrot.slane %v601_v42, 4  ;;  %v417_v60 = vshrl.u32 %v5153_v44, 16  ;;  %v262_v40 = vld [vmem:[%s5060_s29 + $0xa8] sm:$0xf] }
  0x36   : > { %v684_v54 = vunpack.c.l.b16 %v597_v51  ;;  %v303_v55 = vor.u32 %v302_v46, %v299_v45  ;;  %v312_v56 = vrot.slane %v310_v47, 4  ;;  %v318_v57 = vrot.slane %v316_v48, 5  ;;  %v263_v45 = vld [vmem:[%s5060_s29 + $0xac] sm:$0xf]  ;;  %v264_v46 = vld [vmem:[%s5060_s29 + $0xb0] sm:$0x1] }
  0x37   : > { %4340 = vmatmul.msk.bf16.gmra.mxu2 %vm706_vm4, %v699_v50  ;;  %v607_v59 = vsel %vm5072_vm3, %v602_v52, %v606_v37  ;;  %v420_v62 = vshll.u32 %v5153_v44, 16  ;;  %v426_v63 = vshll.u32 %v5158_v49, 16  ;;  %v430_v5 = vshrl.u32 %v5158_v49, 16 }
  0x38   : > { %v685_v0 = vunpack.c.l.b16 %v607_v59  ;;  %v304_v3 = vrot.slane %v303_v55, 4  ;;  %v313_v4 = vor.u32 %v312_v56, %v308_v53  ;;  %v419_v7 = vrot.slane %v417_v60, 4 }
  0x39   : > { %v422_v8 = vrot.slane %v420_v62, 5  ;;  %v428_v9 = vrot.slane %v426_v63, 5  ;;  %v436_v10 = vshll.u32 %v5163_v58, 16  ;;  %v432_v15 = vrot.slane %v430_v5, 4 }
  0x3a   : > { %v703_v12 = vpack.c.b16 %v685_v0, %v684_v54  ;;  %v309_v13 = vsel %vm5072_vm3, %v304_v3, %v308_v53  ;;  %v314_v14 = vrot.slane %v313_v4, 4  ;;  %v513_v22 = vshrl.u32 %v250_v6, 16  ;;  %v5190_v4 = vld [vmem:[%s5060_s29 + $0x18] sm:$0xf] }
  0x3b   : > { %v660_v16 = vunpack.c.l.b16 %v309_v13  ;;  %v423_v17 = vor.u32 %v422_v8, %v419_v7  ;;  %v438_v18 = vrot.slane %v436_v10, 5  ;;  %v433_v26 = vor.u32 %v432_v15, %v428_v9  ;;  %v5195_v8 = vld [vmem:[%s5060_s29 + $0x1c] sm:$0xf] }
  0x3c   : > { %4344 = vmatmul.msk.bf16.gmra.mxu3 %vm706_vm4, %v703_v12  ;;  %v319_v23 = vsel %vm5072_vm3, %v314_v14, %v318_v57  ;;  %v516_v27 = vshll.u32 %v250_v6, 16  ;;  %v522_v28 = vshll.u32 %v251_v11, 16  ;;  %v515_v32 = vrot.slane %v513_v22, 4 }
  0x3d   : > { %v661_v29 = vunpack.c.l.b16 %v319_v23  ;;  %v424_v31 = vrot.slane %v423_v17, 4  ;;  %v526_v33 = vshrl.u32 %v251_v11, 16  ;;  %v434_v35 = vrot.slane %v433_v26, 4  ;;  %v5209_v26 = vld [vmem:[%s5060_s29 + $0x54] sm:$0xf] }
  0x3e   : > { %v518_v37 = vrot.slane %v516_v27, 5  ;;  %v524_v38 = vrot.slane %v522_v28, 5  ;;  %v532_v39 = vshll.u32 %v252_v21, 16  ;;  %v609_v54 = vshrl.u32 %v262_v40, 16 }
  0x3f   : > { %v691_v41 = vpack.c.b16 %v661_v29, %v660_v16  ;;  %v429_v42 = vsel %vm5072_vm3, %v424_v31, %v428_v9  ;;  %v528_v43 = vrot.slane %v526_v33, 4  ;;  %v439_v47 = vsel %vm5072_vm3, %v434_v35, %v438_v18  ;;  %v5198_v9 = vld [vmem:[%s5060_s29 + $0x20] sm:$0x1] }
  0x40   : > { %v670_v48 = vunpack.c.l.b16 %v429_v42  ;;  %v519_v50 = vor.u32 %v518_v37, %v515_v32  ;;  %v534_v51 = vrot.slane %v532_v39, 5  ;;  %v671_v52 = vunpack.c.l.b16 %v439_v47  ;;  %v5212_v32 = vld [vmem:[%s5060_s29 + $0x58] sm:$0xf]  ;;  %v5217_v39 = vld [vmem:[%s5060_s29 + $0x5c] sm:$0x1] }
  0x41   : > { %4332 = vmatmul.msk.bf16.gmra.mxu0 %vm706_vm4, %v691_v41  ;;  %v529_v53 = vor.u32 %v528_v43, %v524_v38  ;;  %v612_v55 = vshll.u32 %v262_v40, 16  ;;  %v618_v57 = vshll.u32 %v263_v45, 16  ;;  %v622_v59 = vshrl.u32 %v263_v45, 16 }
  0x42   : > { %v520_v56 = vrot.slane %v519_v50, 4  ;;  %v628_v60 = vshll.u32 %v264_v46, 16  ;;  %v696_v62 = vpack.c.b16 %v671_v52, %v670_v48  ;;  %v611_v0 = vrot.slane %v609_v54, 4  ;;  %v253_v50 = vld [vmem:[%s5060_s29 + $0x84] sm:$0xf] }
  0x43   : > { %v530_v63 = vrot.slane %v529_v53, 4  ;;  %v614_v3 = vrot.slane %v612_v55, 5  ;;  %v620_v6 = vrot.slane %v618_v57, 5  ;;  %v624_v7 = vrot.slane %v622_v59, 4 }
  0x44   : > { %v525_v5 = vsel %vm5072_vm3, %v520_v56, %v524_v38  ;;  %4337 = vmatmul.msk.bf16.gmra.mxu1 %vm706_vm4, %v696_v62  ;;  %v630_v13 = vrot.slane %v628_v60, 5  ;;  %v321_v16 = vshrl.u32 %v5190_v4, 16  ;;  %v324_v17 = vshll.u32 %v5190_v4, 16  ;;  %v254_v60 = vld [vmem:[%s5060_s29 + $0x88] sm:$0xf] }
  0x45   : > { %v535_v10 = vsel %vm5072_vm3, %v530_v63, %v534_v51  ;;  %v678_v11 = vunpack.c.l.b16 %v525_v5  ;;  %v615_v12 = vor.u32 %v614_v3, %v611_v0  ;;  %v625_v15 = vor.u32 %v624_v7, %v620_v6  ;;  %v255_v3 = vld [vmem:[%s5060_s29 + $0x8c] sm:$0x1] }
  0x46   : > { %v679_v14 = vunpack.c.l.b16 %v535_v10  ;;  %v330_v21 = vshll.u32 %v5195_v8, 16  ;;  %v334_v22 = vshrl.u32 %v5195_v8, 16  ;;  %v340_v23 = vshll.u32 %v5198_v9, 16 }
  0x47   : > { %v616_v18 = vrot.slane %v615_v12, 4  ;;  %v626_v28 = vrot.slane %v625_v15, 4  ;;  %v323_v29 = vrot.slane %v321_v16, 4  ;;  %v326_v31 = vrot.slane %v324_v17, 5 }
  0x48   : > { %v700_v27 = vpack.c.b16 %v679_v14, %v678_v11  ;;  %v332_v35 = vrot.slane %v330_v21, 5  ;;  %v336_v37 = vrot.slane %v334_v22, 4  ;;  %v342_v38 = vrot.slane %v340_v23, 5  ;;  %v265_v22 = vld [vmem:[%s5060_s29 + $0xb4] sm:$0xf] }
  0x49   : > { %v621_v33 = vsel %vm5072_vm3, %v616_v18, %v620_v6  ;;  %v631_v40 = vsel %vm5072_vm3, %v626_v28, %v630_v13  ;;  %v327_v42 = vor.u32 %v326_v31, %v323_v29  ;;  %v441_v43 = vshrl.u32 %v5209_v26, 16  ;;  %v266_v29 = vld [vmem:[%s5060_s29 + $0xb8] sm:$0xf] }
  0x4a   : > { %4341 = vmatmul.msk.bf16.gmra.mxu2 %vm706_vm4, %v700_v27  ;;  %v686_v41 = vunpack.c.l.b16 %v621_v33  ;;  %v687_v45 = vunpack.c.l.b16 %v631_v40  ;;  %v337_v46 = vor.u32 %v336_v37, %v332_v35  ;;  %v444_v47 = vshll.u32 %v5209_v26, 16 }
  0x4b   : > { %v450_v48 = vshll.u32 %v5212_v32, 16  ;;  %v328_v51 = vrot.slane %v327_v42, 4  ;;  %v443_v52 = vrot.slane %v441_v43, 4  ;;  %v454_v53 = vshrl.u32 %v5212_v32, 16 }
  0x4c   : > { %v460_v54 = vshll.u32 %v5217_v39, 16  ;;  %v704_v55 = vpack.c.b16 %v687_v45, %v686_v41  ;;  %v338_v56 = vrot.slane %v337_v46, 4  ;;  %v446_v57 = vrot.slane %v444_v47, 5 }
  0x4d   : > { %v452_v59 = vrot.slane %v450_v48, 5  ;;  %v333_v62 = vsel %vm5072_vm3, %v328_v51, %v332_v35  ;;  %v456_v63 = vrot.slane %v454_v53, 4  ;;  %v537_v5 = vshrl.u32 %v253_v50, 16 }
  0x4e   : > { %v462_v0 = vrot.slane %v460_v54, 5  ;;  %4345 = vmatmul.msk.bf16.gmra.mxu3 %vm706_vm4, %v704_v55  ;;  %v343_v6 = vsel %vm5072_vm3, %v338_v56, %v342_v38  ;;  %v662_v7 = vunpack.c.l.b16 %v333_v62  ;;  %v447_v10 = vor.u32 %v446_v57, %v443_v52  ;;  %v267_v38 = vld [vmem:[%s5060_s29 + $0xbc] sm:$0x1]  ;;  %v5244_v54 = vld [vmem:[%s5060_s29 + $0x24] sm:$0xf] }
  0x4f   : > { %v540_v11 = vshll.u32 %v253_v50, 16  ;;  %v663_v12 = vunpack.c.l.b16 %v343_v6  ;;  %v457_v13 = vor.u32 %v456_v63, %v452_v59  ;;  %v539_v14 = vrot.slane %v537_v5, 4  ;;  %v5253_v5 = vld [vmem:[%s5060_s29 + $0x2c] sm:$0x1] }
  0x50   : > { %v546_v15 = vshll.u32 %v254_v60, 16  ;;  %v448_v16 = vrot.slane %v447_v10, 4  ;;  %v550_v18 = vshrl.u32 %v254_v60, 16  ;;  %v556_v21 = vshll.u32 %v255_v3, 16  ;;  %v5249_v60 = vld [vmem:[%s5060_s29 + $0x28] sm:$0xf] }
  0x51   : > { %v542_v17 = vrot.slane %v540_v11, 5  ;;  %v692_v23 = vpack.c.b16 %v663_v12, %v662_v7  ;;  %v458_v27 = vrot.slane %v457_v13, 4  ;;  %v633_v42 = vshrl.u32 %v265_v22, 16 }
  0x52   : > { %v548_v28 = vrot.slane %v546_v15, 5  ;;  %v453_v31 = vsel %vm5072_vm3, %v448_v16, %v452_v59  ;;  %v552_v35 = vrot.slane %v550_v18, 4  ;;  %v558_v37 = vrot.slane %v556_v21, 5 }
  0x53   : > { %v543_v33 = vor.u32 %v542_v17, %v539_v14  ;;  %4333 = vmatmul.msk.bf16.gmra.mxu0 %vm706_vm4, %v692_v23  ;;  %v463_v40 = vsel %vm5072_vm3, %v458_v27, %v462_v0  ;;  %v672_v41 = vunpack.c.l.b16 %v453_v31  ;;  %v636_v43 = vshll.u32 %v265_v22, 16 }
  0x54   : > { %v673_v45 = vunpack.c.l.b16 %v463_v40  ;;  %v553_v47 = vor.u32 %v552_v35, %v548_v28  ;;  %v642_v48 = vshll.u32 %v266_v29, 16  ;;  %v635_v50 = vrot.slane %v633_v42, 4 }
  0x55   : > { %v544_v46 = vrot.slane %v543_v33, 4  ;;  %v638_v51 = vrot.slane %v636_v43, 5  ;;  %v646_v52 = vshrl.u32 %v266_v29, 16  ;;  %v652_v53 = vshll.u32 %v267_v38, 16  ;;  %v4461_v38 = vld [vmem:[%s5060_s29 + $0x10] sm:$0xf] }
  0x56   : > { %v697_v55 = vpack.c.b16 %v673_v45, %v672_v41  ;;  %v554_v57 = vrot.slane %v553_v47, 4  ;;  %v644_v59 = vrot.slane %v642_v48, 5  ;;  %v1092_v62 = vrot.slane %v5090_v2, 5 }
  0x57   : > { %v549_v56 = vsel %vm5072_vm3, %v544_v46, %v548_v28  ;;  %v639_v0 = vor.u32 %v638_v51, %v635_v50  ;;  %v648_v3 = vrot.slane %v646_v52, 4  ;;  %v654_v7 = vrot.slane %v652_v53, 5  ;;  %v4460_v28 = vld [vmem:[%s5060_s29 + $0xc] sm:$0xf] }
  0x58   : > { %v680_v63 = vunpack.c.l.b16 %v549_v56  ;;  %4338 = vmatmul.msk.bf16.gmra.mxu1 %vm706_vm4, %v697_v55  ;;  %v559_v6 = vsel %vm5072_vm3, %v554_v57, %v558_v37  ;;  %v345_v10 = vshrl.u32 %v5244_v54, 16  ;;  %v348_v11 = vshll.u32 %v5244_v54, 16  ;;  %v4687_v37 = vld [vmem:[%s6576_s1 + $0x18] sm:$0xf] }
  0x59   : > { %v681_v12 = vunpack.c.l.b16 %v559_v6  ;;  %v640_v13 = vrot.slane %v639_v0, 4  ;;  %v649_v14 = vor.u32 %v648_v3, %v644_v59  ;;  %v354_v2 = vshll.u32 %v5249_v60, 16  ;;  %v4462_v0 = vld [vmem:[%s5060_s29 + $0x14] sm:$0x1] }
  0x5a   : > { %v347_v15 = vrot.slane %v345_v10, 4  ;;  %v350_v16 = vrot.slane %v348_v11, 5  ;;  %v358_v17 = vshrl.u32 %v5249_v60, 16  ;;  %v364_v18 = vshll.u32 %v5253_v5, 16  ;;  %v4768_v11 = vld [vmem:[%s6576_s1 + $0x1c] sm:$0xf] }
  0x5b   : > { %v701_v21 = vpack.c.b16 %v681_v12, %v680_v63  ;;  %v645_v22 = vsel %vm5072_vm3, %v640_v13, %v644_v59  ;;  %v650_v23 = vrot.slane %v649_v14, 4  ;;  %v356_v27 = vrot.slane %v354_v2, 5  ;;  %v4821_v13 = vld [vmem:[%s5060_s29] sm:$0xff] }
  0x5c   : > { %v688_v29 = vunpack.c.l.b16 %v645_v22  ;;  %v351_v31 = vor.u32 %v350_v16, %v347_v15  ;;  %v360_v33 = vrot.slane %v358_v17, 4  ;;  %v366_v35 = vrot.slane %v364_v18, 5  ;;  %v4622_v18 = vld [vmem:[%s6576_s1 + $0x14] sm:$0xf] }
  0x5d   : > { %4342 = vmatmul.msk.bf16.gmra.mxu2 %vm706_vm4, %v701_v21  ;;  %v655_v40 = vsel %vm5072_vm3, %v650_v23, %v654_v7  ;;  %v4427_v41 = vrot.slane %v5082_v61, 9  ;;  %v1089_v47 = vrot.slane %v5087_v1, 5  ;;  %v2866_v48 = vsel %vm755_vm0, %v4687_v37, 0  ;;  %v4801_v21 = vld [vmem:[%s6576_s1 + $0x20] sm:$0xf] }
  0x5e   : > { %v689_v42 = vunpack.c.l.b16 %v655_v40  ;;  %v352_v43 = vrot.slane %v351_v31, 4  ;;  %v361_v45 = vor.u32 %v360_v33, %v356_v27  ;;  %v1728_v50 = vshrl.u32 %v4460_v28, 16  ;;  %2875 = vmatpush.bf16.msra.mxu2 %v2866_v48 }
  0x5f   : > { %v1731_v51 = vshll.u32 %v4460_v28, 16  ;;  %v1737_v52 = vshll.u32 %v4461_v38, 16  ;;  %v1090_v56 = vsel %vm5274_vm7, %v4427_v41, %v1089_v47  ;;  %v1091_v59 = vrot.slane %v1089_v47, 4  ;;  %v4463_v41 = vld [vmem:[%s5060_s29 + $0x18] sm:$0xf] }
  0x60   : > { %v705_v53 = vpack.c.b16 %v689_v42, %v688_v29  ;;  %v357_v55 = vsel %vm5072_vm3, %v352_v43, %v356_v27  ;;  %v362_v61 = vrot.slane %v361_v45, 4  ;;  %v1201_v63 = vunpack.c.l.b16 %v1090_v56  ;;  %v4464_v45 = vld [vmem:[%s5060_s29 + $0x1c] sm:$0xf] }
  0x61   : > { %v664_v57 = vunpack.c.l.b16 %v357_v55  ;;  %v1730_v1 = vrot.slane %v1728_v50, 4  ;;  %v1733_v6 = vrot.slane %v1731_v51, 5  ;;  %v1739_v7 = vrot.slane %v1737_v52, 5  ;;  %v4837_v55 = vld [vmem:[%s5060_s29 + $0xc] sm:$0xff] }
  0x62   : > { %4346 = vmatmul.msk.bf16.gmra.mxu3 %vm706_vm4, %v705_v53  ;;  %v367_v3 = vsel %vm5072_vm3, %v362_v61, %v366_v35  ;;  %v1741_v10 = vshrl.u32 %v4461_v38, 16  ;;  %v1093_v14 = vsel %vm5274_vm7, %v1091_v59, %v1092_v62  ;;  %v1747_v17 = vshll.u32 %v4462_v0, 16 }
  0x63   : > { %v665_v12 = vunpack.c.l.b16 %v367_v3  ;;  %v1202_v2 = vunpack.c.l.b16 %v1093_v14  ;;  %v1734_v15 = vor.u32 %v1733_v6, %v1730_v1  ;;  %v3472_v23 = vsel %vm755_vm0, %v4768_v11, 0  ;;  %v4465_v3 = vld [vmem:[%s5060_s29 + $0x20] sm:$0x1]  ;;  %v4466_v14 = vld [vmem:[%s5060_s29 + $0x24] sm:$0xf] }
  0x64   : > { %v1743_v16 = vrot.slane %v1741_v10, 4  ;;  %3481 = vmatpush.bf16.msra.mxu3 %v3472_v23  ;;  %v2560_v62 = vsel %vm755_vm0, %v4622_v18, 0  ;;  %v3822_v31 = vsel %vm755_vm0, %v4801_v21, 0  ;;  %v4428_v33 = vrot.slane %v5136_v24, 9  ;;  %v4822_v10 = vld [vmem:[%s5060_s29 + $0xc] sm:$0xff] }
  0x65   : > { %v693_v22 = vpack.c.b16 %v665_v12, %v664_v57  ;;  %v1233_v27 = vpack.c.b16 %v1202_v2, %v1201_v63  ;;  %v1735_v28 = vrot.slane %v1734_v15, 4  ;;  %v1096_v35 = vrot.slane %v5141_v30, 5  ;;  %3831 = vmatpush.bf16.msra.mxu0 %v3822_v31  ;;  %2569 = vmatpush.bf16.msra.mxu1 %v2560_v62  ;;  %v4838_v62 = vld [vmem:[%s5060_s29 + $0x18] sm:$0xff] }
  0x66   : > { %v1744_v29 = vor.u32 %v1743_v16, %v1739_v7  ;;  %v1749_v38 = vrot.slane %v1747_v17, 5  ;;  %v1099_v40 = vrot.slane %v5144_v34, 5  ;;  %v1752_v48 = vshrl.u32 %v4463_v41, 16  ;;  %v4467_v16 = vld [vmem:[%s5060_s29 + $0x28] sm:$0xf] }
  0x67   : > { %4334 = vmatmul.msk.bf16.gmra.mxu0 %vm706_vm4, %v693_v22  ;;  %v1097_v42 = vsel %vm5274_vm7, %v4428_v33, %v1096_v35  ;;  %v1098_v43 = vrot.slane %v1096_v35, 4  ;;  %v1740_v24 = vsel %vm5072_vm3, %v1735_v28, %v1739_v7  ;;  %v1755_v50 = vshll.u32 %v4463_v41, 16 }
  0x68   : > { %4411 = vmatmul.msk.bf16.vlgmr.msrb.gmra.mxu1 %vm706_vm4, %v4821_v13  ;;  %v1745_v37 = vrot.slane %v1744_v29, 4  ;;  %v1203_v47 = vunpack.c.l.b16 %v1097_v42  ;;  %v1761_v52 = vshll.u32 %v4464_v45, 16  ;;  %v1765_v53 = vshrl.u32 %v4464_v45, 16  ;;  %v4468_v42 = vld [vmem:[%s5060_s29 + $0x2c] sm:$0x1] }
  0x69   : > { %v1100_v30 = vsel %vm5274_vm7, %v1098_v43, %v1099_v40  ;;  %v2113_v56 = vunpack.c.l.b16 %v1740_v24  ;;  %v1754_v59 = vrot.slane %v1752_v48, 4  ;;  %v1757_v63 = vrot.slane %v1755_v50, 5 }
  0x6a   : > { %v1750_v34 = vsel %vm5072_vm3, %v1745_v37, %v1749_v38  ;;  %v1204_v51 = vunpack.c.l.b16 %v1100_v30  ;;  %v1763_v0 = vrot.slane %v1761_v52, 5  ;;  %v1767_v1 = vrot.slane %v1765_v53, 4  ;;  %v4823_v30 = vld [vmem:[%s5060_s29 + $0x18] sm:$0xff] }
  0x6b   : > { %v2114_v57 = vunpack.c.l.b16 %v1750_v34  ;;  %v1758_v7 = vor.u32 %v1757_v63, %v1754_v59  ;;  %v1771_v12 = vshll.u32 %v4465_v3, 16  ;;  %v1103_v17 = vrot.slane %v5195_v8, 5 }
  0x6c   : > { %v1234_v61 = vpack.c.b16 %v1204_v51, %v1203_v47  ;;  %v1768_v11 = vor.u32 %v1767_v1, %v1763_v0  ;;  %v1776_v18 = vshrl.u32 %v4466_v14, 16  ;;  %v1779_v22 = vshll.u32 %v4466_v14, 16 }
  0x6d   : > { %4444 = vmatmul.msk.bf16.vlgmr.msrb.gmra.mxu2 %vm706_vm4, %v1233_v27  ;;  %v2145_v6 = vpack.c.b16 %v2114_v57, %v2113_v56  ;;  %v1759_v13 = vrot.slane %v1758_v7, 4  ;;  %v1773_v15 = vrot.slane %v1771_v12, 5  ;;  %v1785_v23 = vshll.u32 %v4467_v16, 16 }
  0x6e   : > { %v1769_v2 = vrot.slane %v1768_v11, 4  ;;  %v1789_v27 = vshrl.u32 %v4467_v16, 16  ;;  %v4429_v29 = vrot.slane %v5190_v4, 9  ;;  %v1105_v33 = vrot.slane %v1103_v17, 4  ;;  %v4471_v16 = vld [vmem:[%s5060_s29 + $0x38] sm:$0x1] }
  0x6f   : > { %v1764_v21 = vsel %vm5072_vm3, %v1759_v13, %v1763_v0  ;;  %v1106_v8 = vrot.slane %v5198_v9, 5  ;;  %v1778_v35 = vrot.slane %v1776_v18, 4  ;;  %v1781_v38 = vrot.slane %v1779_v22, 5 }
  0x70   : > { %v1774_v28 = vsel %vm5072_vm3, %v1769_v2, %v1773_v15  ;;  %v2115_v31 = vunpack.c.l.b16 %v1764_v21  ;;  %v1787_v40 = vrot.slane %v1785_v23, 5  ;;  %v1791_v41 = vrot.slane %v1789_v27, 4 }
  0x71   : > { %v2116_v37 = vunpack.c.l.b16 %v1774_v28  ;;  %v1104_v43 = vsel %vm5274_vm7, %v4429_v29, %v1103_v17  ;;  %v1107_v4 = vsel %vm5274_vm7, %v1105_v33, %v1106_v8  ;;  %v1782_v47 = vor.u32 %v1781_v38, %v1778_v35  ;;  %v4472_v29 = vld [vmem:[%s5060_s29 + $0x3c] sm:$0xf] }
  0x72   : > { %4573 = vmatmul.msk.bf16.vlgmr.msrb.gmra.mxu3 %vm706_vm4, %v4837_v55  ;;  %v1792_v24 = vor.u32 %v1791_v41, %v1787_v40  ;;  %v1795_v9 = vshll.u32 %v4468_v42, 16  ;;  %v1205_v48 = vunpack.c.l.b16 %v1104_v43  ;;  %v1206_v50 = vunpack.c.l.b16 %v1107_v4  ;;  %v4469_v55 = vld [vmem:[%s5060_s29 + $0x30] sm:$0xf] }
  0x73   : > { %v2146_v45 = vpack.c.b16 %v2116_v37, %v2115_v31  ;;  %v1783_v34 = vrot.slane %v1782_v47, 4  ;;  %v1110_v56 = vrot.slane %v5249_v60, 5  ;;  %v1800_v63 = vshrl.u32 %v4469_v55, 16  ;;  %v4897_v37 = vld [vmem:[%s5060_s29 + $0x34] sm:$0xf] }
  0x74   : > { %v1793_v51 = vrot.slane %v1792_v24, 4  ;;  %v1797_v52 = vrot.slane %v1795_v9, 5  ;;  %v1235_v53 = vpack.c.b16 %v1206_v50, %v1205_v48  ;;  %v1803_v0 = vshll.u32 %v4469_v55, 16  ;;  %v4898_v24 = vld [vmem:[%s5060_s29 + $0x30] sm:$0xf] }
  0x75   : > { %v1788_v57 = vsel %vm5072_vm3, %v1783_v34, %v1787_v40  ;;  %v4430_v7 = vrot.slane %v5244_v54, 9  ;;  %v1113_v60 = vrot.slane %v5253_v5, 5  ;;  %v1802_v13 = vrot.slane %v1800_v63, 4  ;;  %v4824_v5 = vld [vmem:[%s5060_s29 + $0x24] sm:$0xff]  ;;  %v4899_v48 = vld [vmem:[%s5060_s29 + $0x38] sm:$0x1] }
  0x76   : > { %v1798_v59 = vsel %vm5072_vm3, %v1793_v51, %v1797_v52  ;;  %v2117_v11 = vunpack.c.l.b16 %v1788_v57  ;;  %v1805_v14 = vrot.slane %v1803_v0, 5  ;;  %v1819_v23 = vshll.u32 %v4471_v16, 16  ;;  %v4840_v34 = vld [vmem:[%s5060_s29 + $0x30] sm:$0xff]  ;;  %v4474_v57 = vld [vmem:[%s5060_s29 + $0x44] sm:$0x1] }
  0x77   : > { %4590 = vmatmul.msk.bf16.vlgmr.msrb.gmra.mxu0 %vm706_vm4, %v2145_v6  ;;  %v4839_v6 = vld [vmem:[%s5060_s29 + $0x24] sm:$0xff]  ;;  %v2118_v12 = vunpack.c.l.b16 %v1798_v59  ;;  %v1111_v17 = vsel %vm5274_vm7, %v4430_v7, %v1110_v56  ;;  %v1117_v38 = vrot.slane %v4897_v37, 5  ;;  %v1824_v40 = vshrl.u32 %v4472_v29, 16  ;;  %v4825_v7 = vld [vmem:[%s5060_s29 + $0x30] sm:$0xff]  ;;  %v4476_v16 = vld [vmem:[%s5060_s29 + $0x4c] sm:$0xf] }
  0x78   : > { %4412 = vmatmul.msk.bf16.gmra.mxu1 %vm706_vm4, %v4822_v10  ;;  %v1112_v10 = vrot.slane %v1110_v56, 4  ;;  %v1806_v21 = vor.u32 %v1805_v14, %v1802_v13  ;;  %v1207_v27 = vunpack.c.l.b16 %v1111_v17  ;;  %v1821_v8 = vrot.slane %v1819_v23, 5 }
  0x79   : > { %v2147_v18 = vpack.c.b16 %v2118_v12, %v2117_v11  ;;  %v1827_v41 = vshll.u32 %v4472_v29, 16  ;;  %v4431_v9 = vrot.slane %v4898_v24, 9  ;;  %v1120_v50 = vrot.slane %v4899_v48, 5 }
  0x7a   : > { %v1114_v54 = vsel %vm5274_vm7, %v1112_v10, %v1113_v60  ;;  %v1807_v31 = vrot.slane %v1806_v21, 4  ;;  %v1826_v51 = vrot.slane %v1824_v40, 4  ;;  %v1861_v29 = vshrl.u32 %v4476_v16, 16 }
  0x7b   : > { %v1208_v28 = vunpack.c.l.b16 %v1114_v54  ;;  %v1829_v52 = vrot.slane %v1827_v41, 5  ;;  %v1118_v59 = vsel %vm5274_vm7, %v4431_v9, %v1117_v38 }
  0x7c   : > { %v1209_v60 = vunpack.c.l.b16 %v1118_v59 }
  0x7d   : > { %4445 = vmatmul.msk.bf16.gmra.mxu2 %vm706_vm4, %v1234_v61  ;;  %v4470_v61 = vld [vmem:[%s5060_s29 + $0x34] sm:$0xf]  ;;  %v1236_v35 = vpack.c.b16 %v1208_v28, %v1207_v27  ;;  %v1830_v0 = vor.u32 %v1829_v52, %v1826_v51  ;;  %v1857_v28 = vshll.u32 %v4476_v16, 16 }
  0x7e   : > { %v1809_v1 = vshll.u32 %v4470_v61, 16  ;;  %v1813_v3 = vshrl.u32 %v4470_v61, 16 }
  0x7f   : > { %v1831_v13 = vrot.slane %v1830_v0, 4  ;;  %v4479_v0 = vld [vmem:[%s5060_s29 + $0x58] sm:$0xf] }
  0x80   : > { %v1811_v2 = vrot.slane %v1809_v1, 5  ;;  %v1815_v15 = vrot.slane %v1813_v3, 4  ;;  %v1843_v3 = vshll.u32 %v4474_v57, 16 }
  0x82   : > { %4574 = vmatmul.msk.bf16.gmra.mxu3 %vm706_vm4, %v4838_v62  ;;  %v1816_v22 = vor.u32 %v1815_v15, %v1811_v2  ;;  %v4473_v62 = vld [vmem:[%s5060_s29 + $0x40] sm:$0xf]  ;;  %v4475_v15 = vld [vmem:[%s5060_s29 + $0x48] sm:$0xf] }
  0x83   : > { %v1833_v42 = vshll.u32 %v4473_v62, 16  ;;  %v1837_v43 = vshrl.u32 %v4473_v62, 16  ;;  %v1848_v23 = vshrl.u32 %v4475_v15, 16  ;;  %v1851_v27 = vshll.u32 %v4475_v15, 16 }
  0x84   : > { %v1817_v33 = vrot.slane %v1816_v22, 4  ;;  %v1124_v22 = vrot.slane %v5106_v20, 5 }
  0x85   : > { %v1839_v55 = vrot.slane %v1837_v43, 4  ;;  %v1850_v20 = vrot.slane %v1848_v23, 4  ;;  %v1853_v41 = vrot.slane %v1851_v27, 5  ;;  %v1863_v43 = vrot.slane %v1861_v29, 4 }
  0x86   : > { %v1822_v47 = vsel %vm5072_vm3, %v1817_v33, %v1821_v8  ;;  %v1126_v37 = vrot.slane %v1124_v22, 4 }
  0x87   : > { %4591 = vmatmul.msk.bf16.gmra.mxu0 %vm706_vm4, %v2146_v45  ;;  %v1812_v45 = vsel %vm5072_vm3, %v1807_v31, %v1811_v2  ;;  %v2120_v56 = vunpack.c.l.b16 %v1822_v47  ;;  %v1845_v2 = vrot.slane %v1843_v3, 5  ;;  %v4841_v31 = vld [vmem:[%s5060_s29 + $0x3c] sm:$0xff] }
  0x88   : > { %4413 = vmatmul.msk.bf16.gmra.mxu1 %vm706_vm4, %v4823_v30  ;;  %v1119_v30 = vrot.slane %v1117_v38, 4  ;;  %v2119_v61 = vunpack.c.l.b16 %v1812_v45  ;;  %v1127_v38 = vrot.slane %v5111_v25, 5  ;;  %v4477_v45 = vld [vmem:[%s5060_s29 + $0x50] sm:$0x1]  ;;  %v1854_v25 = vor.u32 %v1853_v41, %v1850_v20 }
  0x89   : > { %v1867_v48 = vshll.u32 %v4477_v45, 16  ;;  %v4481_v45 = vld [vmem:[%s5060_s29 + $0x60] sm:$0xf] }
  0x8a   : > { %v1121_v63 = vsel %vm5274_vm7, %v1119_v30, %v1120_v50  ;;  %v1128_v24 = vsel %vm5274_vm7, %v1126_v37, %v1127_v38 }
  0x8b   : > { %v1210_v11 = vunpack.c.l.b16 %v1121_v63  ;;  %v1212_v52 = vunpack.c.l.b16 %v1128_v24  ;;  %v4478_v63 = vld [vmem:[%s5060_s29 + $0x54] sm:$0xf] }
  0x8d   : > { %4446 = vmatmul.msk.bf16.gmra.mxu2 %vm706_vm4, %v1235_v53  ;;  %v1835_v53 = vrot.slane %v1833_v42, 5  ;;  %v1237_v54 = vpack.c.b16 %v1210_v11, %v1209_v60  ;;  %v1859_v42 = vrot.slane %v1857_v28, 5  ;;  %v1875_v60 = vshll.u32 %v4478_v63, 16 }
  0x8e   : > { %v1881_v11 = vshll.u32 %v4479_v0, 16 }
  0x8f   : > { %v1840_v1 = vor.u32 %v1839_v55, %v1835_v53  ;;  %v1864_v30 = vor.u32 %v1863_v43, %v1859_v42  ;;  %v1877_v23 = vrot.slane %v1875_v60, 5 }
  0x90   : > { %v1883_v27 = vrot.slane %v1881_v11, 5  ;;  %v1141_v11 = vrot.slane %v5217_v39, 5 }
  0x91   : > { %v1841_v14 = vrot.slane %v1840_v1, 4  ;;  %v1865_v55 = vrot.slane %v1864_v30, 4  ;;  %v1131_v1 = vrot.slane %v5158_v49, 5  ;;  %v4433_v49 = vrot.slane %v5153_v44, 9 }
  0x92   : > { %4575 = vmatmul.msk.bf16.gmra.mxu3 %vm706_vm4, %v4839_v6  ;;  %v2148_v6 = vpack.c.b16 %v2120_v56, %v2119_v61  ;;  %v1869_v61 = vrot.slane %v1867_v48, 5 }
  0x93   : > { %v1133_v16 = vrot.slane %v1131_v1, 4  ;;  %v1132_v44 = vsel %vm5274_vm7, %v4433_v49, %v1131_v1 }
  0x94   : > { %v1213_v41 = vunpack.c.l.b16 %v1132_v44 }
  0x97   : > { %4592 = vmatmul.msk.bf16.gmra.mxu0 %vm706_vm4, %v2147_v18  ;;  %v1836_v18 = vsel %vm5072_vm3, %v1831_v13, %v1835_v53  ;;  %v1855_v53 = vrot.slane %v1854_v25, 4  ;;  %v1885_v13 = vshrl.u32 %v4479_v0, 16 }
  0x98   : > { %4414 = vmatmul.msk.bf16.gmra.mxu1 %vm706_vm4, %v4824_v5  ;;  %v1846_v5 = vsel %vm5072_vm3, %v1841_v14, %v1845_v2  ;;  %v2121_v62 = vunpack.c.l.b16 %v1836_v18  ;;  %v4842_v2 = vld [vmem:[%s5060_s29 + $0x48] sm:$0xff] }
  0x99   : > { %v2122_v33 = vunpack.c.l.b16 %v1846_v5  ;;  %v1860_v3 = vsel %vm5072_vm3, %v1855_v53, %v1859_v42  ;;  %v1887_v28 = vrot.slane %v1885_v13, 4  ;;  %v1138_v53 = vrot.slane %v5212_v32, 5 }
  0x9a   : > { %v2123_v18 = vunpack.c.l.b16 %v1860_v3  ;;  %v4434_v32 = vrot.slane %v5209_v26, 9 }
  0x9b   : > { %v1888_v38 = vor.u32 %v1887_v28, %v1883_v27  ;;  %v1140_v60 = vrot.slane %v1138_v53, 4  ;;  %v4828_v28 = vld [vmem:[%s5060_s29 + $0x54] sm:$0xff] }
  0x9d   : > { %v5368_v4 = vpop.f32.mrf.mxu1  ;;  %4447 = vmatmul.msk.bf16.gmra.mxu2 %vm706_vm4, %v1236_v35  ;;  %v4432_v35 = vrot.slane %v5103_v19, 9  ;;  %v2149_v19 = vpack.c.b16 %v2122_v33, %v2121_v62  ;;  %v4480_v62 = vld [vmem:[%s5060_s29 + $0x5c] sm:$0x1]  ;;  %v1889_v25 = vrot.slane %v1888_v38, 4  ;;  %v1142_v26 = vsel %vm5274_vm7, %v1140_v60, %v1141_v11 }
  0x9e   : > { %v1891_v20 = vshll.u32 %v4480_v62, 16 }
  0x9f   : > { %v1125_v47 = vsel %vm5274_vm7, %v4432_v35, %v1124_v22  ;;  %v4827_v35 = vld [vmem:[%s5060_s29 + $0x48] sm:$0xff] }
  0xa0   : > { %v1211_v51 = vunpack.c.l.b16 %v1125_v47  ;;  %v4482_v47 = vld [vmem:[%s5060_s29 + $0x64] sm:$0xf]  ;;  %v1893_v30 = vrot.slane %v1891_v20, 5  ;;  %v4484_v20 = vld [vmem:[%s5060_s29 + $0x6c] sm:$0xf] }
  0xa2   : > { %4576 = vmatmul.msk.bf16.gmra.mxu3 %vm706_vm4, %v4840_v34  ;;  %v4826_v34 = vld [vmem:[%s5060_s29 + $0x3c] sm:$0xff]  ;;  %v1238_v57 = vpack.c.b16 %v1212_v52, %v1211_v51  ;;  %v1899_v51 = vshll.u32 %v4481_v45, 16  ;;  %v1905_v52 = vshll.u32 %v4482_v47, 16 }
  0xa4   : > { %v1901_v3 = vrot.slane %v1899_v51, 5  ;;  %v1923_v51 = vshll.u32 %v4484_v20, 16 }
  0xa5   : > { %v5385_v10 = vpop.f32.mrf.mxu1 }
  0xa7   : > { %v5387_v12 = vpop.f32.mrf.mxu2  ;;  %4593 = vmatmul.msk.bf16.gmra.mxu0 %vm706_vm4, %v2148_v6  ;;  %v1870_v6 = vsel %vm5072_vm3, %v1865_v55, %v1869_v61  ;;  %v1909_v55 = vshrl.u32 %v4482_v47, 16 }
  0xa8   : > { %4415 = vmatmul.msk.bf16.gmra.mxu1 %vm706_vm4, %v4825_v7  ;;  %v1872_v7 = vshrl.u32 %v4478_v63, 16  ;;  %v2124_v5 = vunpack.c.l.b16 %v1870_v6  ;;  %v1894_v63 = vsel %vm5072_vm3, %v1889_v25, %v1893_v30  ;;  %v1907_v6 = vrot.slane %v1905_v52, 5  ;;  %v4900_v25 = vld [vmem:[%s5060_s29 + $0x64] sm:$0xf] }
  0xa9   : > { %v1911_v13 = vrot.slane %v1909_v55, 4  ;;  %v2126_v49 = vunpack.c.l.b16 %v1894_v63  ;;  %v1145_v30 = vrot.slane %v4900_v25, 5  ;;  %v4901_v55 = vld [vmem:[%s5060_s29 + $0x68] sm:$0x1] }
  0xaa   : > { %v5393_v17 = vpop.f32.mrf.mxu0  ;;  %v1874_v22 = vrot.slane %v1872_v7, 4  ;;  %v2150_v33 = vpack.c.b16 %v2124_v5, %v2123_v18  ;;  %v4843_v7 = vld [vmem:[%s5060_s29 + $0x54] sm:$0xff] }
  0xab   : > { %v5399_v21 = vpop.f32.mrf.mxu3  ;;  %v1912_v39 = vor.u32 %v1911_v13, %v1907_v6  ;;  %v1147_v60 = vrot.slane %v1145_v30, 4  ;;  %v1925_v13 = vrot.slane %v1923_v51, 5  ;;  %v4488_v51 = vld [vmem:[%s5060_s29 + $0x7c] sm:$0xf] }
  0xac   : > { %v1878_v37 = vor.u32 %v1877_v23, %v1874_v22  ;;  %v1139_v22 = vsel %vm5274_vm7, %v4434_v32, %v1138_v53 }
  0xad   : > { %4448 = vmatmul.msk.bf16.gmra.mxu2 %vm706_vm4, %v1237_v54  ;;  %v1134_v54 = vrot.slane %v5163_v58, 5  ;;  %v1215_v44 = vunpack.c.l.b16 %v1139_v22 }
  0xaf   : > { %v5404_v8 = vpop.f32.mrf.mxu1  ;;  %v5408_v40 = vpop.f32.mrf.mxu2  ;;  %v1135_v58 = vsel %vm5274_vm7, %v1133_v16, %v1134_v54  ;;  %v4483_v16 = vld [vmem:[%s5060_s29 + $0x68] sm:$0x1] }
  0xb0   : > { %v1214_v42 = vunpack.c.l.b16 %v1135_v58  ;;  %v1915_v23 = vshll.u32 %v4483_v16, 16  ;;  %v1216_v58 = vunpack.c.l.b16 %v1142_v26 }
  0xb2   : > { %4577 = vmatmul.msk.bf16.gmra.mxu3 %vm706_vm4, %v4841_v31  ;;  %v5416_v9 = vpop.f32.mrf.mxu0  ;;  %v1239_v48 = vpack.c.b16 %v1214_v42, %v1213_v41  ;;  %v1917_v38 = vrot.slane %v1915_v23, 5  ;;  %v4485_v41 = vld [vmem:[%s5060_s29 + $0x70] sm:$0xf]  ;;  %v1240_v42 = vpack.c.b16 %v1216_v58, %v1215_v44  ;;  %v4829_v58 = vld [vmem:[%s5060_s29 + $0x60] sm:$0xff] }
  0xb3   : > { %v5418_v50 = vpop.f32.mrf.mxu3  ;;  %v1929_v52 = vshll.u32 %v4485_v41, 16  ;;  %v1933_v53 = vshrl.u32 %v4485_v41, 16 }
  0xb7   : > { %4594 = vmatmul.msk.bf16.gmra.mxu0 %vm706_vm4, %v2149_v19  ;;  %v5422_v56 = vpop.f32.mrf.mxu1  ;;  %v1879_v19 = vrot.slane %v1878_v37, 4  ;;  %v1913_v37 = vrot.slane %v1912_v39, 4 }
  0xb8   : > { %4416 = vmatmul.msk.bf16.gmra.mxu1 %vm706_vm4, %v4826_v34  ;;  %v1896_v34 = vshrl.u32 %v4481_v45, 16 }
  0xba   : > { %v5425_v59 = vpop.f32.mrf.mxu2  ;;  %v1898_v1 = vrot.slane %v1896_v34, 4  ;;  %v1920_v34 = vshrl.u32 %v4484_v20, 16 }
  0xbc   : > { %v1902_v5 = vor.u32 %v1901_v3, %v1898_v1  ;;  %v4844_v1 = vld [vmem:[%s5060_s29 + $0x60] sm:$0xff]  ;;  %v1922_v11 = vrot.slane %v1920_v34, 4  ;;  %v4487_v34 = vld [vmem:[%s5060_s29 + $0x78] sm:$0xf] }
  0xbd   : > { %4449 = vmatmul.msk.bf16.gmra.mxu2 %vm706_vm4, %v1238_v57  ;;  %v1884_v57 = vsel %vm5072_vm3, %v1879_v19, %v1883_v27  ;;  %v1918_v19 = vsel %vm5072_vm3, %v1913_v37, %v1917_v38 }
  0xbe   : > { %v5434_v14 = vpop.f32.mrf.mxu0  ;;  %v1926_v23 = vor.u32 %v1925_v13, %v1922_v11  ;;  %v4904_v11 = vld [vmem:[%s5060_s29 + $0x74] sm:$0x1] }
  0xbf   : > { %v5438_v15 = vpop.f32.mrf.mxu3  ;;  %v1155_v13 = vrot.slane %v4904_v11, 5 }
  0xc1   : > { %v5442_v29 = vpop.f32.mrf.mxu1 }
  0xc2   : > { %4578 = vmatmul.msk.bf16.gmra.mxu3 %vm706_vm4, %v4842_v2  ;;  %v5446_v31 = vpop.f32.mrf.mxu2  ;;  %v2125_v2 = vunpack.c.l.b16 %v1884_v57  ;;  %v1148_v57 = vrot.slane %v4901_v55, 5 }
  0xc4   : > { %v2151_v27 = vpack.c.b16 %v2126_v49, %v2125_v2  ;;  %v1931_v2 = vrot.slane %v1929_v52, 5  ;;  %v1935_v49 = vrot.slane %v1933_v53, 4  ;;  %v1149_v26 = vsel %vm5274_vm7, %v1147_v60, %v1148_v57  ;;  %v4903_v52 = vld [vmem:[%s5060_s29 + $0x70] sm:$0xf] }
  0xc5   : > { %v1218_v20 = vunpack.c.l.b16 %v1149_v26  ;;  %v1152_v53 = vrot.slane %v4903_v52, 5 }
  0xc6   : > { %v5453_v43 = vpop.f32.mrf.mxu0 }
  0xc7   : > { %4595 = vmatmul.msk.bf16.gmra.mxu0 %vm706_vm4, %v2150_v33  ;;  %v5458_v24 = vpop.f32.mrf.mxu3  ;;  %v1154_v26 = vrot.slane %v1152_v53, 4 }
  0xc8   : > { %4417 = vmatmul.msk.bf16.gmra.mxu1 %vm706_vm4, %v4827_v35  ;;  %v1903_v35 = vrot.slane %v1902_v5, 4  ;;  %v4486_v5 = vld [vmem:[%s5060_s29 + $0x74] sm:$0x1] }
  0xc9   : > { %v5462_v61 = vpop.f32.mrf.mxu1 }
  0xca   : > { %v1908_v47 = vsel %vm5072_vm3, %v1903_v35, %v1907_v6  ;;  %v2128_v6 = vunpack.c.l.b16 %v1918_v19 }
  0xcb   : > { %v2127_v3 = vunpack.c.l.b16 %v1908_v47 }
  0xcd   : > { %v5468_v0 = vpop.f32.mrf.mxu2  ;;  %4450 = vmatmul.msk.bf16.gmra.mxu2 %vm706_vm4, %v1239_v48  ;;  %v2152_v39 = vpack.c.b16 %v2128_v6, %v2127_v3  ;;  %v1947_v3 = vshll.u32 %v4487_v34, 16  ;;  %v1953_v6 = vshll.u32 %v4488_v51, 16 }
  0xd0   : > { %v5475_v54 = vpop.f32.mrf.mxu0 }
  0xd1   : > { %v5477_v18 = vpop.f32.mrf.mxu3 }
  0xd2   : > { %4579 = vmatmul.msk.bf16.gmra.mxu3 %vm706_vm4, %v4843_v7  ;;  %v4902_v7 = vld [vmem:[%s5060_s29 + $0x60] sm:$0xf] }
  0xd3   : > { %v4435_v32 = vrot.slane %v4902_v7, 9  ;;  %v1957_v7 = vshrl.u32 %v4488_v51, 16 }
  0xd5   : > { %v5485_v62 = vpop.f32.mrf.mxu1  ;;  %v5487_v33 = vpop.f32.mrf.mxu2  ;;  %v1146_v22 = vsel %vm5274_vm7, %v4435_v32, %v1145_v30 }
  0xd6   : > { %v1217_v38 = vunpack.c.l.b16 %v1146_v22 }
  0xd7   : > { %4596 = vmatmul.msk.bf16.gmra.mxu0 %vm706_vm4, %v2151_v27  ;;  %v1936_v27 = vor.u32 %v1935_v49, %v1931_v2  ;;  %v4845_v49 = vld [vmem:[%s5060_s29 + $0x6c] sm:$0xff] }
  0xd8   : > { %4418 = vmatmul.msk.bf16.gmra.mxu1 %vm706_vm4, %v4828_v28  ;;  %v5493_v45 = vpop.f32.mrf.mxu0  ;;  %v1939_v28 = vshll.u32 %v4486_v5, 16  ;;  %v1241_v30 = vpack.c.b16 %v1218_v20, %v1217_v38  ;;  %v4905_v5 = vld [vmem:[%s5060_s29 + $0x6c] sm:$0xf]  ;;  %v1959_v38 = vrot.slane %v1957_v7, 4 }
  0xd9   : > { %v5500_v48 = vpop.f32.mrf.mxu3  ;;  %v1937_v47 = vrot.slane %v1936_v27, 4  ;;  %v4436_v22 = vrot.slane %v4905_v5, 9 }
  0xda   : > { %v1941_v19 = vrot.slane %v1939_v28, 5 }
  0xdc   : > { %v1942_v55 = vsel %vm5072_vm3, %v1937_v47, %v1941_v19  ;;  %v1153_v47 = vsel %vm5274_vm7, %v4436_v22, %v1152_v53 }
  0xdd   : > { %4451 = vmatmul.msk.bf16.gmra.mxu2 %vm706_vm4, %v1240_v42  ;;  %v5504_v63 = vpop.f32.mrf.mxu1  ;;  %v1927_v42 = vrot.slane %v1926_v23, 4  ;;  %v2130_v23 = vunpack.c.l.b16 %v1942_v55 }
  0xe0   : > { %v5508_v16 = vpop.f32.mrf.mxu2 }
  0xe2   : > { %4580 = vmatmul.msk.bf16.gmra.mxu3 %vm706_vm4, %v4844_v1  ;;  %v1944_v1 = vshrl.u32 %v4487_v34, 16  ;;  %v4830_v34 = vld [vmem:[%s5060_s29 + $0x6c] sm:$0xff] }
  0xe4   : > { %v5516_v44 = vpop.f32.mrf.mxu0  ;;  %v1946_v28 = vrot.slane %v1944_v1, 4 }
  0xe5   : > { %v5519_v35 = vpop.f32.mrf.mxu3  ;;  %v988_v37 = vpop.f32.mrf.mxu1 }
  0xe6   : > { %v989_v41 = vadd.f32 %v988_v37, %v5393_v17  ;;  %v1932_v17 = vsel %vm5072_vm3, %v1927_v42, %v1931_v2  ;;  %v1955_v37 = vrot.slane %v1953_v6, 5  ;;  %v4489_v42 = vld [vmem:[%s5060_s29 + $0x80] sm:$0x1] }
  0xe7   : > { %4597 = vmatmul.msk.bf16.gmra.mxu0 %vm706_vm4, %v2152_v39  ;;  %v2129_v39 = vunpack.c.l.b16 %v1932_v17  ;;  %v1963_v17 = vshll.u32 %v4489_v42, 16 }
  0xe8   : > { %v5523_v25 = vpop.f32.mrf.mxu2  ;;  %4419 = vmatmul.msk.bf16.gmra.mxu1 %vm706_vm4, %v4829_v58  ;;  %v1949_v58 = vrot.slane %v1947_v3, 5  ;;  %v1960_v52 = vor.u32 %v1959_v38, %v1955_v37 }
  0xe9   : > { %v2153_v19 = vpack.c.b16 %v2130_v23, %v2129_v39  ;;  %v4491_v39 = vld [vmem:[%s5060_s29 + $0x88] sm:$0xf]  ;;  %v4906_v23 = vld [vmem:[%s5060_s29 + $0x7c] sm:$0xf] }
  0xea   : > { %v1950_v51 = vor.u32 %v1949_v58, %v1946_v28  ;;  %v1961_v11 = vrot.slane %v1960_v52, 4  ;;  %v1977_v42 = vshll.u32 %v4491_v39, 16 }
  0xec   : > { %v5533_v57 = vpop.f32.mrf.mxu0 }
  0xed   : > { %v5535_v32 = vpop.f32.mrf.mxu3  ;;  %4452 = vmatmul.msk.bf16.gmra.mxu2 %vm706_vm4, %v1241_v30  ;;  %v990_v60 = vpop.f32.mrf.mxu1 }
  0xee   : > { %v991_v2 = vadd.f32 %v990_v60, %v5416_v9  ;;  %v1156_v9 = vsel %vm5274_vm7, %v1154_v26, %v1155_v13  ;;  %v1951_v60 = vrot.slane %v1950_v51, 4  ;;  %v1965_v13 = vrot.slane %v1963_v17, 5  ;;  %v4846_v51 = vld [vmem:[%s5060_s29 + $0x78] sm:$0xff] }
  0xef   : > { %v1220_v3 = vunpack.c.l.b16 %v1156_v9  ;;  %v4907_v9 = vld [vmem:[%s5060_s29 + $0x80] sm:$0x1]  ;;  %v4908_v17 = vld [vmem:[%s5060_s29 + $0x78] sm:$0xf] }
  0xf0   : > { %v1309_v27 = vpop.f32.mrf.mxu2  ;;  %v1956_v38 = vsel %vm5072_vm3, %v1951_v60, %v1955_v37  ;;  %v1979_v60 = vrot.slane %v1977_v42, 5 }
  0xf1   : > { %v1389_v20 = vadd.f32 %v1309_v27, %v989_v41  ;;  %v1219_v41 = vunpack.c.l.b16 %v1153_v47  ;;  %v1159_v27 = vrot.slane %v4906_v23, 5  ;;  %v1981_v47 = vshrl.u32 %v4491_v39, 16 }
  0xf2   : > { %4581 = vmatmul.msk.bf16.gmra.mxu3 %vm706_vm4, %v4845_v49  ;;  %v4490_v49 = vld [vmem:[%s5060_s29 + $0x84] sm:$0xf]  ;;  %v2131_v37 = vunpack.c.l.b16 %v1956_v38 }
  0xf3   : > { %v1242_v26 = vpack.c.b16 %v1220_v3, %v1219_v41  ;;  %v1971_v28 = vshll.u32 %v4490_v49, 16 }
  0xf4   : > { %v2221_v30 = vpop.f32.mrf.mxu0 }
  0xf5   : > { %v1615_v55 = vpop.f32.mrf.mxu3  ;;  %v993_v1 = vpop.f32.mrf.mxu1 }
  0xf6   : > { %v1695_v6 = vadd.f32 %v1615_v55, %v1389_v20  ;;  %v994_v7 = vadd.f32 %v993_v1, %v5434_v14  ;;  %v1968_v14 = vshrl.u32 %v4490_v49, 16  ;;  %v1966_v20 = vsel %vm5072_vm3, %v1961_v11, %v1965_v13 }
  0xf7   : > { %4598 = vmatmul.msk.bf16.gmra.mxu0 %vm706_vm4, %v2153_v19  ;;  %v1162_v19 = vrot.slane %v4907_v9, 5  ;;  %v4437_v55 = vrot.slane %v4908_v17, 9  ;;  %v1161_v1 = vrot.slane %v1159_v27, 4  ;;  %v2132_v41 = vunpack.c.l.b16 %v1966_v20 }
  0xf8   : > { %v1311_v53 = vpop.f32.mrf.mxu2  ;;  %4420 = vmatmul.msk.bf16.gmra.mxu1 %vm706_vm4, %v4830_v34  ;;  %v5553_v5 = vadd.f32 %v2221_v30, %v1695_v6  ;;  %v1970_v3 = vrot.slane %v1968_v14, 4  ;;  %v1973_v6 = vrot.slane %v1971_v28, 5  ;;  %v1983_v11 = vrot.slane %v1981_v47, 4  ;;  %v4831_v14 = vld [vmem:[%s5060_s29 + $0x78] sm:$0xff] }
  0xf9   : > { %v1390_v22 = vadd.f32 %v1311_v53, %v991_v2  ;;  %v2154_v39 = vpack.c.b16 %v2132_v41, %v2131_v37  ;;  %v4494_v37 = vld [vmem:[%s5060_s29 + $0x94] sm:$0xf]  ;;  %v4909_v41 = vld [vmem:[%s5060_s29 + $0x88] sm:$0xf] }
  0xfa   : > { %v1974_v23 = vor.u32 %v1973_v6, %v1970_v3  ;;  %v1984_v28 = vor.u32 %v1983_v11, %v1979_v60  ;;  %v1166_v3 = vrot.slane %v4909_v41, 5 }
  0xfc   : > { %v2223_v58 = vpop.f32.mrf.mxu0 }
  0xfd   : > { %v1617_v2 = vpop.f32.mrf.mxu3  ;;  %4453 = vmatmul.msk.bf16.gmra.mxu2 %vm706_vm4, %v1242_v26  ;;  %v995_v30 = vpop.f32.mrf.mxu1  ;;  %v4492_v26 = vld [vmem:[%s5060_s29 + $0x8c] sm:$0x1] }
  0xfe   : > { %v1696_v34 = vadd.f32 %v1617_v2, %v1390_v22  ;;  %v996_v52 = vadd.f32 %v995_v30, %v5453_v43  ;;  %v1160_v43 = vsel %vm5274_vm7, %v4437_v55, %v1159_v27  ;;  %v1163_v22 = vsel %vm5274_vm7, %v1161_v1, %v1162_v19 }
  0xff   : > { %v1987_v20 = vshll.u32 %v4492_v26, 16  ;;  %v1222_v47 = vunpack.c.l.b16 %v1163_v22  ;;  %v1975_v27 = vrot.slane %v1974_v23, 4  ;;  %v1985_v30 = vrot.slane %v1984_v28, 4  ;;  %v4910_v22 = vld [vmem:[%s5060_s29 + $0x8c] sm:$0x1] }
 0x100   : > { %v1314_v53 = vpop.f32.mrf.mxu2  ;;  %v5566_v13 = vadd.f32 %v2223_v58, %v1696_v34  ;;  %v2001_v26 = vshll.u32 %v4494_v37, 16 }
 0x101   : > { %v1391_v49 = vadd.f32 %v1314_v53, %v994_v7  ;;  %v1221_v7 = vunpack.c.l.b16 %v1160_v43  ;;  %v1989_v34 = vrot.slane %v1987_v20, 5  ;;  %v2005_v43 = vshrl.u32 %v4494_v37, 16 }
 0x102   : > { %4582 = vmatmul.msk.bf16.gmra.mxu3 %vm706_vm4, %v4846_v51  ;;  %v4493_v51 = vld [vmem:[%s5060_s29 + $0x90] sm:$0xf] }
 0x103   : > { %v1243_v1 = vpack.c.b16 %v1222_v47, %v1221_v7  ;;  %v1992_v6 = vshrl.u32 %v4493_v51, 16  ;;  %v1990_v11 = vsel %vm5072_vm3, %v1985_v30, %v1989_v34  ;;  %v2007_v30 = vrot.slane %v2005_v43, 4 }
 0x104   : > { %v2226_v38 = vpop.f32.mrf.mxu0  ;;  %v2134_v7 = vunpack.c.l.b16 %v1990_v11 }
 0x105   : > { %v1620_v42 = vpop.f32.mrf.mxu3  ;;  %v998_v58 = vpop.f32.mrf.mxu1  ;;  %v1994_v47 = vrot.slane %v1992_v6, 4 }
 0x106   : > { %v1697_v9 = vadd.f32 %v1620_v42, %v1391_v49  ;;  %v999_v2 = vadd.f32 %v998_v58, %v5475_v54  ;;  %v1980_v54 = vsel %vm5072_vm3, %v1975_v27, %v1979_v60  ;;  %v1995_v49 = vshll.u32 %v4493_v51, 16  ;;  %v4911_v60 = vld [vmem:[%s5060_s29 + $0x84] sm:$0xf] }
 0x107   : > { %4599 = vmatmul.msk.bf16.gmra.mxu0 %vm706_vm4, %v2154_v39  ;;  %v1169_v39 = vrot.slane %v4910_v22, 5  ;;  %v4438_v20 = vrot.slane %v4911_v60, 9  ;;  %v1168_v42 = vrot.slane %v1166_v3, 4  ;;  %v2133_v58 = vunpack.c.l.b16 %v1980_v54  ;;  %v4832_v54 = vld [vmem:[%s5060_s29 + $0x84] sm:$0xff] }
 0x108   : > { %v1316_v19 = vpop.f32.mrf.mxu2  ;;  %4421 = vmatmul.msk.bf16.gmra.mxu1 %vm706_vm4, %v4831_v14  ;;  %v5579_v17 = vadd.f32 %v2226_v38, %v1697_v9  ;;  %v4847_v14 = vld [vmem:[%s5060_s29 + $0x84] sm:$0xff]  ;;  %v1997_v27 = vrot.slane %v1995_v49, 5 }
 0x109   : > { %v1392_v55 = vadd.f32 %v1316_v19, %v996_v52  ;;  %v2003_v19 = vrot.slane %v2001_v26, 5  ;;  %v2155_v37 = vpack.c.b16 %v2134_v7, %v2133_v58  ;;  %v4497_v58 = vld [vmem:[%s5060_s29 + $0xa0] sm:$0xf]  ;;  %v4912_v7 = vld [vmem:[%s5060_s29 + $0x94] sm:$0xf] }
 0x10a   : > { %v1998_v6 = vor.u32 %v1997_v27, %v1994_v47  ;;  %v1173_v47 = vrot.slane %v4912_v7, 5 }
 0x10b   : > { %v2008_v11 = vor.u32 %v2007_v30, %v2003_v19 }
 0x10c   : > { %v2228_v53 = vpop.f32.mrf.mxu0 }
 0x10d   : > { %v1622_v52 = vpop.f32.mrf.mxu3  ;;  %4454 = vmatmul.msk.bf16.gmra.mxu2 %vm706_vm4, %v1243_v1  ;;  %v1000_v23 = vpop.f32.mrf.mxu1  ;;  %v4495_v1 = vld [vmem:[%s5060_s29 + $0x98] sm:$0x1] }
 0x10e   : > { %v1698_v38 = vadd.f32 %v1622_v52, %v1392_v55  ;;  %v1001_v28 = vadd.f32 %v1000_v23, %v5493_v45  ;;  %v1167_v45 = vsel %vm5274_vm7, %v4438_v20, %v1166_v3  ;;  %v1170_v55 = vsel %vm5274_vm7, %v1168_v42, %v1169_v39 }
 0x10f   : > { %v2011_v49 = vshll.u32 %v4495_v1, 16  ;;  %v1224_v43 = vunpack.c.l.b16 %v1170_v55  ;;  %v1999_v39 = vrot.slane %v1998_v6, 4  ;;  %v2009_v23 = vrot.slane %v2008_v11, 4  ;;  %v4913_v55 = vld [vmem:[%s5060_s29 + $0x98] sm:$0x1]  ;;  %v4848_v6 = vld [vmem:[%s5060_s29 + $0x90] sm:$0xff] }
 0x110   : > { %v1319_v9 = vpop.f32.mrf.mxu2  ;;  %v5592_v34 = vadd.f32 %v2228_v53, %v1698_v38  ;;  %v2025_v1 = vshll.u32 %v4497_v58, 16 }
 0x111   : > { %v1393_v51 = vadd.f32 %v1319_v9, %v999_v2  ;;  %v1223_v2 = vunpack.c.l.b16 %v1167_v45  ;;  %v2013_v38 = vrot.slane %v2011_v49, 5  ;;  %v2004_v30 = vsel %vm5072_vm3, %v1999_v39, %v2003_v19  ;;  %v4914_v49 = vld [vmem:[%s5060_s29 + $0x90] sm:$0xf] }
 0x112   : > { %4583 = vmatmul.msk.bf16.gmra.mxu3 %vm706_vm4, %v4847_v14  ;;  %v4496_v14 = vld [vmem:[%s5060_s29 + $0x9c] sm:$0xf]  ;;  %v2029_v45 = vshrl.u32 %v4497_v58, 16  ;;  %v2135_v19 = vunpack.c.l.b16 %v2004_v30  ;;  %v2027_v39 = vrot.slane %v2025_v1, 5 }
 0x113   : > { %v1244_v42 = vpack.c.b16 %v1224_v43, %v1223_v2  ;;  %v2019_v9 = vshll.u32 %v4496_v14, 16 }
 0x114   : > { %v2231_v41 = vpop.f32.mrf.mxu0 }
 0x115   : > { %v1625_v26 = vpop.f32.mrf.mxu3  ;;  %v1003_v53 = vpop.f32.mrf.mxu1 }
 0x116   : > { %v1699_v22 = vadd.f32 %v1625_v26, %v1393_v51  ;;  %v1004_v52 = vadd.f32 %v1003_v53, %v5516_v44  ;;  %v2016_v44 = vshrl.u32 %v4496_v14, 16  ;;  %v2014_v51 = vsel %vm5072_vm3, %v2009_v23, %v2013_v38 }
 0x117   : > { %4600 = vmatmul.msk.bf16.gmra.mxu0 %vm706_vm4, %v2155_v37  ;;  %v1176_v37 = vrot.slane %v4913_v55, 5  ;;  %v4439_v26 = vrot.slane %v4914_v49, 9  ;;  %v1175_v53 = vrot.slane %v1173_v47, 4  ;;  %v2136_v2 = vunpack.c.l.b16 %v2014_v51 }
 0x118   : > { %v1321_v3 = vpop.f32.mrf.mxu2  ;;  %4422 = vmatmul.msk.bf16.gmra.mxu1 %vm706_vm4, %v4832_v54  ;;  %v5605_v60 = vadd.f32 %v2231_v41, %v1699_v22  ;;  %v2018_v43 = vrot.slane %v2016_v44, 4  ;;  %v2021_v22 = vrot.slane %v2019_v9, 5  ;;  %v2031_v23 = vrot.slane %v2029_v45, 4  ;;  %v4833_v9 = vld [vmem:[%s5060_s29 + $0x90] sm:$0xff] }
 0x119   : > { %v1394_v20 = vadd.f32 %v1321_v3, %v1001_v28  ;;  %v2156_v58 = vpack.c.b16 %v2136_v2, %v2135_v19  ;;  %v4915_v19 = vld [vmem:[%s5060_s29 + $0xa0] sm:$0xf] }
 0x11a   : > { %v2022_v7 = vor.u32 %v2021_v22, %v2018_v43  ;;  %v2032_v30 = vor.u32 %v2031_v23, %v2027_v39  ;;  %v1180_v2 = vrot.slane %v4915_v19, 5 }
 0x11c   : > { %v2233_v27 = vpop.f32.mrf.mxu0 }
 0x11d   : > { %v1627_v28 = vpop.f32.mrf.mxu3  ;;  %4455 = vmatmul.msk.bf16.gmra.mxu2 %vm706_vm4, %v1244_v42  ;;  %v1005_v41 = vpop.f32.mrf.mxu1  ;;  %v4498_v42 = vld [vmem:[%s5060_s29 + $0xa4] sm:$0x1] }
 0x11e   : > { %v1700_v54 = vadd.f32 %v1627_v28, %v1394_v20  ;;  %v1006_v11 = vadd.f32 %v1005_v41, %v5533_v57  ;;  %v1174_v57 = vsel %vm5274_vm7, %v4439_v26, %v1173_v47  ;;  %v1177_v20 = vsel %vm5274_vm7, %v1175_v53, %v1176_v37  ;;  %v4500_v53 = vld [vmem:[%s5060_s29 + $0xac] sm:$0xf] }
 0x11f   : > { %v2035_v51 = vshll.u32 %v4498_v42, 16  ;;  %v1225_v1 = vunpack.c.l.b16 %v1174_v57  ;;  %v1226_v45 = vunpack.c.l.b16 %v1177_v20  ;;  %v2023_v47 = vrot.slane %v2022_v7, 4  ;;  %v4916_v20 = vld [vmem:[%s5060_s29 + $0xa4] sm:$0x1] }
 0x120   : > { %v1324_v3 = vpop.f32.mrf.mxu2  ;;  %v5618_v38 = vadd.f32 %v2233_v27, %v1700_v54  ;;  %v2033_v37 = vrot.slane %v2032_v30, 4  ;;  %v4499_v54 = vld [vmem:[%s5060_s29 + $0xa8] sm:$0xf]  ;;  %v2049_v42 = vshll.u32 %v4500_v53, 16  ;;  %v2053_v57 = vshrl.u32 %v4500_v53, 16 }
 0x121   : > { %v1395_v14 = vadd.f32 %v1324_v3, %v1004_v52  ;;  %v2037_v41 = vrot.slane %v2035_v51, 5  ;;  %v1245_v26 = vpack.c.b16 %v1226_v45, %v1225_v1  ;;  %v2028_v43 = vsel %vm5072_vm3, %v2023_v47, %v2027_v39  ;;  %v4917_v51 = vld [vmem:[%s5060_s29 + $0x9c] sm:$0xf]  ;;  %v4501_v53 = vld [vmem:[%s5060_s29 + $0xb0] sm:$0x1] }
 0x122   : > { %4584 = vmatmul.msk.bf16.gmra.mxu3 %vm706_vm4, %v4848_v6  ;;  %v2040_v22 = vshrl.u32 %v4499_v54, 16  ;;  %v2043_v3 = vshll.u32 %v4499_v54, 16  ;;  %v2137_v30 = vunpack.c.l.b16 %v2028_v43  ;;  %v4440_v39 = vrot.slane %v4917_v51, 9  ;;  %v4502_v51 = vld [vmem:[%s5060_s29 + $0xb4] sm:$0xf] }
 0x124   : > { %v2236_v44 = vpop.f32.mrf.mxu0  ;;  %v2045_v47 = vrot.slane %v2043_v3, 5 }
 0x125   : > { %v1630_v27 = vpop.f32.mrf.mxu3  ;;  %v1008_v52 = vpop.f32.mrf.mxu1 }
 0x126   : > { %v1701_v55 = vadd.f32 %v1630_v27, %v1395_v14  ;;  %v2038_v14 = vsel %vm5072_vm3, %v2033_v37, %v2037_v41  ;;  %v1182_v27 = vrot.slane %v1180_v2, 4  ;;  %v1009_v1 = vadd.f32 %v1008_v52, %v5368_v4 }
 0x127   : > { %4601 = vmatmul.msk.bf16.gmra.mxu0 %vm706_vm4, %v2156_v58  ;;  %v1183_v58 = vrot.slane %v4916_v20, 5  ;;  %v2138_v45 = vunpack.c.l.b16 %v2038_v14  ;;  %v2051_v37 = vrot.slane %v2049_v42, 5  ;;  %v2055_v41 = vrot.slane %v2053_v57, 4 }
 0x128   : > { %v1326_v28 = vpop.f32.mrf.mxu2  ;;  %4423 = vmatmul.msk.bf16.gmra.mxu1 %vm706_vm4, %v4833_v9  ;;  %v5630_v6 = vadd.f32 %v2236_v44, %v1701_v55  ;;  %v4849_v9 = vld [vmem:[%s5060_s29 + $0x9c] sm:$0xff]  ;;  %v2042_v55 = vrot.slane %v2040_v22, 4  ;;  %v2059_v14 = vshll.u32 %v4501_v53, 16 }
 0x129   : > { %v1396_v49 = vadd.f32 %v1326_v28, %v1006_v11  ;;  %v1184_v19 = vsel %vm5274_vm7, %v1182_v27, %v1183_v58  ;;  %v2157_v4 = vpack.c.b16 %v2138_v45, %v2137_v30  ;;  %v4834_v22 = vld [vmem:[%s5060_s29 + $0x9c] sm:$0xff]  ;;  %v2056_v3 = vor.u32 %v2055_v41, %v2051_v37  ;;  %v4918_v45 = vld [vmem:[%s5060_s29 + $0xac] sm:$0xf] }
 0x12a   : > { %v2046_v52 = vor.u32 %v2045_v47, %v2042_v55  ;;  %v1228_v20 = vunpack.c.l.b16 %v1184_v19  ;;  %v2061_v30 = vrot.slane %v2059_v14, 5  ;;  %v1187_v55 = vrot.slane %v4918_v45, 5  ;;  %v4503_v47 = vld [vmem:[%s5060_s29 + $0xb8] sm:$0xf]  ;;  %v4919_v19 = vld [vmem:[%s5060_s29 + $0xb0] sm:$0x1] }
 0x12b   : > { %v2073_v53 = vshll.u32 %v4503_v47, 16 }
 0x12c   : > { %v2238_v23 = vpop.f32.mrf.mxu0  ;;  %v1189_v14 = vrot.slane %v1187_v55, 4 }
 0x12d   : > { %v1632_v11 = vpop.f32.mrf.mxu3  ;;  %4456 = vmatmul.msk.bf16.gmra.mxu2 %vm706_vm4, %v1245_v26  ;;  %v1010_v7 = vpop.f32.mrf.mxu1 }
 0x12e   : > { %v1702_v44 = vadd.f32 %v1632_v11, %v1396_v49  ;;  %v1181_v49 = vsel %vm5274_vm7, %v4440_v39, %v1180_v2  ;;  %v1011_v2 = vadd.f32 %v1010_v7, %v5385_v10  ;;  %v2064_v10 = vshrl.u32 %v4502_v51, 16 }
 0x12f   : > { %v1227_v57 = vunpack.c.l.b16 %v1181_v49  ;;  %v2067_v7 = vshll.u32 %v4502_v51, 16  ;;  %v2077_v49 = vshrl.u32 %v4503_v47, 16 }
 0x130   : > { %v1329_v28 = vpop.f32.mrf.mxu2  ;;  %v5643_v54 = vadd.f32 %v2238_v23, %v1702_v44  ;;  %v2047_v44 = vrot.slane %v2046_v52, 4 }
 0x131   : > { %v1397_v26 = vadd.f32 %v1329_v28, %v1009_v1  ;;  %v1246_v1 = vpack.c.b16 %v1228_v20, %v1227_v57 }
 0x132   : > { %4585 = vmatmul.msk.bf16.gmra.mxu3 %vm706_vm4, %v4849_v9  ;;  %v2057_v9 = vrot.slane %v2056_v3, 4  ;;  %v2052_v28 = vsel %vm5072_vm3, %v2047_v44, %v2051_v37  ;;  %v2069_v44 = vrot.slane %v2067_v7, 5 }
 0x133   : > { %v2139_v57 = vunpack.c.l.b16 %v2052_v28 }
 0x134   : > { %v2241_v43 = vpop.f32.mrf.mxu0 }
 0x135   : > { %v1635_v42 = vpop.f32.mrf.mxu3  ;;  %v1013_v23 = vpop.f32.mrf.mxu1 }
 0x136   : > { %v1703_v11 = vadd.f32 %v1635_v42, %v1397_v26  ;;  %v2062_v26 = vsel %vm5072_vm3, %v2057_v9, %v2061_v30  ;;  %v4850_v42 = vld [vmem:[%s5060_s29 + $0xa8] sm:$0xff]  ;;  %v1014_v20 = vadd.f32 %v1013_v23, %v5404_v8  ;;  %v2075_v9 = vrot.slane %v2073_v53, 5  ;;  %v4504_v8 = vld [vmem:[%s5060_s29 + $0xbc] sm:$0x1] }
 0x137   : > { %4602 = vmatmul.msk.bf16.gmra.mxu0 %vm706_vm4, %v2157_v4  ;;  %v1190_v4 = vrot.slane %v4919_v19, 5  ;;  %v2079_v30 = vrot.slane %v2077_v49, 4  ;;  %v2083_v53 = vshll.u32 %v4504_v8, 16 }
 0x138   : > { %v1331_v58 = vpop.f32.mrf.mxu2  ;;  %4424 = vmatmul.msk.bf16.gmra.mxu1 %vm706_vm4, %v4834_v22  ;;  %v5656_v39 = vadd.f32 %v2241_v43, %v1703_v11  ;;  %v4920_v22 = vld [vmem:[%s5060_s29 + $0xa8] sm:$0xf]  ;;  %v2140_v11 = vunpack.c.l.b16 %v2062_v26 }
 0x139   : > { %v1398_v27 = vadd.f32 %v1331_v58, %v1011_v2  ;;  %v4441_v3 = vrot.slane %v4920_v22, 9  ;;  %v2066_v2 = vrot.slane %v2064_v10, 4  ;;  %v4835_v10 = vld [vmem:[%s5060_s29 + $0xa8] sm:$0xff]  ;;  %v2080_v26 = vor.u32 %v2079_v30, %v2075_v9  ;;  %v4506_v22 = vld [vmem:[%s5060_s29 + $0xc4] sm:$0xf] }
 0x13a   : > { %v2158_v23 = vpack.c.b16 %v2140_v11, %v2139_v57  ;;  %v2085_v11 = vrot.slane %v2083_v53, 5  ;;  %v2097_v30 = vshll.u32 %v4506_v22, 16  ;;  %v2101_v8 = vshrl.u32 %v4506_v22, 16  ;;  %v4925_v53 = vld [vmem:[%s5060_s29 + $0xbc] sm:$0x1] }
 0x13b   : > { %v1188_v45 = vsel %vm5274_vm7, %v4441_v3, %v1187_v55  ;;  %v2070_v47 = vor.u32 %v2069_v44, %v2066_v2  ;;  %v4921_v3 = vld [vmem:[%s5060_s29 + $0x10] sm:$0xf] }
 0x13c   : > { %v2243_v41 = vpop.f32.mrf.mxu0  ;;  %v1229_v7 = vunpack.c.l.b16 %v1188_v45  ;;  %v4922_v45 = vld [vmem:[%s5060_s29 + $0xb8] sm:$0xf] }
 0x13d   : > { %v1637_v52 = vpop.f32.mrf.mxu3  ;;  %4457 = vmatmul.msk.bf16.gmra.mxu2 %vm706_vm4, %v1246_v1  ;;  %v1015_v43 = vpop.f32.mrf.mxu1 }
 0x13e   : > { %v1704_v37 = vadd.f32 %v1637_v52, %v1398_v27  ;;  %v1191_v27 = vsel %vm5274_vm7, %v1189_v14, %v1190_v4  ;;  %v4505_v52 = vld [vmem:[%s5060_s29 + $0xc0] sm:$0xf]  ;;  %v2351_v4 = vrot.slane %v4921_v3, 5  ;;  %v1016_v14 = vadd.f32 %v1015_v43, %v5422_v56 }
 0x13f   : > { %v2088_v2 = vshrl.u32 %v4505_v52, 16  ;;  %v2099_v3 = vrot.slane %v2097_v30, 5 }
 0x140   : > { %v1334_v58 = vpop.f32.mrf.mxu2  ;;  %v5669_v51 = vadd.f32 %v2243_v41, %v1704_v37  ;;  %v1230_v41 = vunpack.c.l.b16 %v1191_v27  ;;  %v2071_v37 = vrot.slane %v2070_v47, 4  ;;  %v1194_v27 = vrot.slane %v4922_v45, 5  ;;  %v4924_v47 = vld [vmem:[%s5060_s29 + $0x14] sm:$0x1] }
 0x141   : > { %v1399_v1 = vadd.f32 %v1334_v58, %v1014_v20  ;;  %v2081_v20 = vrot.slane %v2080_v26, 4  ;;  %v2091_v58 = vshll.u32 %v4505_v52, 16  ;;  %v2353_v43 = vrot.slane %v2351_v4, 4  ;;  %v4926_v45 = vld [vmem:[%s5060_s29 + $0xb4] sm:$0xf] }
 0x142   : > { %4586 = vmatmul.msk.bf16.gmra.mxu3 %vm706_vm4, %v4850_v42  ;;  %v1247_v57 = vpack.c.b16 %v1230_v41, %v1229_v7  ;;  %v2076_v41 = vsel %vm5072_vm3, %v2071_v37, %v2075_v9 }
 0x143   : > { %v2086_v26 = vsel %vm5072_vm3, %v2081_v20, %v2085_v11  ;;  %v2093_v22 = vrot.slane %v2091_v58, 5  ;;  %v2141_v37 = vunpack.c.l.b16 %v2076_v41 }
 0x144   : > { %v2246_v28 = vpop.f32.mrf.mxu0  ;;  %v2142_v20 = vunpack.c.l.b16 %v2086_v26  ;;  %v5711_v26 = vld [vmem:[%s5060_s29 + $0x18] sm:$0xf] }
 0x145   : > { %v1640_v49 = vpop.f32.mrf.mxu3  ;;  %v1018_v19 = vpop.f32.mrf.mxu1 }
 0x146   : > { %v1705_v55 = vadd.f32 %v1640_v49, %v1399_v1  ;;  %v1019_v9 = vadd.f32 %v1018_v19, %v5442_v29  ;;  %v2159_v41 = vpack.c.b16 %v2142_v20, %v2141_v37 }
 0x147   : > { %4603 = vmatmul.msk.bf16.gmra.mxu0 %vm706_vm4, %v2158_v23  ;;  %v4923_v23 = vld [vmem:[%s5060_s29 + $0xc] sm:$0xf] }
 0x148   : > { %v1336_v42 = vpop.f32.mrf.mxu2  ;;  %4425 = vmatmul.msk.bf16.gmra.mxu1 %vm706_vm4, %v4835_v10  ;;  %v5684_v1 = vadd.f32 %v2246_v28, %v1705_v55  ;;  %v4606_v56 = vrot.slane %v4923_v23, 9  ;;  %v2354_v10 = vrot.slane %v4924_v47, 5  ;;  %v1197_v28 = vrot.slane %v4925_v53, 5  ;;  %v4507_v53 = vld [vmem:[%s5060_s29 + $0xc8] sm:$0x1] }
 0x149   : > { %v1400_v44 = vadd.f32 %v1336_v42, %v1016_v14  ;;  %v2090_v55 = vrot.slane %v2088_v2, 4  ;;  %v4851_v42 = vld [vmem:[%s5060_s29 + $0xb4] sm:$0xff]  ;;  %v4442_v23 = vrot.slane %v4926_v45, 9  ;;  %v1196_v47 = vrot.slane %v1194_v27, 4 }
 0x14a   : > { %6583 = vst [vmem:[#allocation2_spill] sm:$0xff] %v5684_v1  ;;  %v2103_v1 = vrot.slane %v2101_v8, 4  ;;  %v2355_v2 = vsel %vm5274_vm7, %v2353_v43, %v2354_v10 }
 0x14b   : > { %v2094_v58 = vor.u32 %v2093_v22, %v2090_v55  ;;  %v1195_v29 = vsel %vm5274_vm7, %v4442_v23, %v1194_v27  ;;  %v1198_v19 = vsel %vm5274_vm7, %v1196_v47, %v1197_v28  ;;  %v4836_v55 = vld [vmem:[%s5060_s29 + $0xb4] sm:$0xff]  ;;  %v5717_v22 = vld [vmem:[%s5060_s29 + $0x1c] sm:$0xf]  ;;  %v2993_v47 = vshll.u32 %v5711_v26, 16 }
 0x14c   : > { %v2248_v7 = vpop.f32.mrf.mxu0  ;;  %v2104_v8 = vor.u32 %v2103_v1, %v2099_v3  ;;  %v1232_v27 = vunpack.c.l.b16 %v1198_v19  ;;  %v2990_v1 = vshrl.u32 %v5711_v26, 16  ;;  %v2999_v37 = vshll.u32 %v5717_v22, 16 }
 0x14d   : > { %v1642_v49 = vpop.f32.mrf.mxu3  ;;  %4458 = vmatmul.msk.bf16.gmra.mxu2 %vm706_vm4, %v1247_v57  ;;  %v1020_v52 = vpop.f32.mrf.mxu1  ;;  %v2352_v57 = vsel %vm5274_vm7, %v4606_v56, %v2351_v4  ;;  %v2107_v4 = vshll.u32 %v4507_v53, 16  ;;  %v2095_v23 = vrot.slane %v2094_v58, 4  ;;  %v3003_v20 = vshrl.u32 %v5717_v22, 16 }
 0x14e   : > { %v1706_v14 = vadd.f32 %v1642_v49, %v1400_v44  ;;  %v2463_v30 = vunpack.c.l.b16 %v2352_v57  ;;  %v2464_v49 = vunpack.c.l.b16 %v2355_v2  ;;  %v2105_v28 = vrot.slane %v2104_v8, 4  ;;  %v4641_v8 = vld [vmem:[%s5060_s29 + $0x20] sm:$0x1] }
 0x14f   : > { %v2992_v58 = vrot.slane %v2990_v1, 4 }
 0x150   : > { %v1339_v11 = vpop.f32.mrf.mxu2  ;;  %v5708_v56 = vpack.c.b16 %v2464_v49, %v2463_v30  ;;  %v5713_v43 = vadd.f32 %v2248_v7, %v1706_v14  ;;  %v1021_v7 = vadd.f32 %v1020_v52, %v5462_v61  ;;  %v2109_v14 = vrot.slane %v2107_v4, 5 }
 0x151   : > { %v1401_v44 = vadd.f32 %v1339_v11, %v1019_v9  ;;  %v1231_v9 = vunpack.c.l.b16 %v1195_v29  ;;  %v2995_v30 = vrot.slane %v2993_v47, 5  ;;  %v2100_v49 = vsel %vm5072_vm3, %v2095_v23, %v2099_v3  ;;  %v5737_v47 = vld [vmem:[%s5060_s29 + $0x24] sm:$0xf] }
 0x152   : > { %4587 = vmatmul.msk.bf16.gmra.mxu3 %vm706_vm4, %v4851_v42  ;;  %v2110_v61 = vsel %vm5072_vm3, %v2105_v28, %v2109_v14  ;;  %v3001_v52 = vrot.slane %v2999_v37, 5  ;;  %v3005_v29 = vrot.slane %v3003_v20, 4 }
 0x153   : > { %v1248_v2 = vpack.c.b16 %v1232_v27, %v1231_v9  ;;  %v2144_v9 = vunpack.c.l.b16 %v2110_v61  ;;  %v2996_v27 = vor.u32 %v2995_v30, %v2992_v58  ;;  %v3017_v58 = vshll.u32 %v5737_v47, 16 }
 0x154   : > { %v2251_v10 = vpop.f32.mrf.mxu0  ;;  %v3006_v23 = vor.u32 %v3005_v29, %v3001_v52 }
 0x155   : > { %v1645_v42 = vpop.f32.mrf.mxu3  ;;  %v1023_v45 = vpop.f32.mrf.mxu1  ;;  %v2997_v37 = vrot.slane %v2996_v27, 4 }
 0x156   : > { %v1707_v11 = vadd.f32 %v1645_v42, %v1401_v44  ;;  %v2143_v42 = vunpack.c.l.b16 %v2100_v49  ;;  %v1024_v3 = vadd.f32 %v1023_v45, %v5485_v62  ;;  %v3007_v20 = vrot.slane %v3006_v23, 4 }
 0x157   : > { %4604 = vmatmul.msk.bf16.gmra.mxu0 %vm706_vm4, %v2159_v41  ;;  %v3014_v45 = vshrl.u32 %v5737_v47, 16 }
 0x158   : > { %v1341_v53 = vpop.f32.mrf.mxu2  ;;  %4426 = vmatmul.msk.bf16.gmra.mxu1 %vm706_vm4, %v4836_v55  ;;  %v5726_v44 = vadd.f32 %v2251_v10, %v1707_v11  ;;  %v4852_v55 = vld [vmem:[%s5060_s29 + $0xc0] sm:$0xff]  ;;  %v3009_v11 = vshll.u32 %v4641_v8, 16  ;;  %v2160_v14 = vpack.c.b16 %v2144_v9, %v2143_v42 }
 0x159   : > { %v1402_v57 = vadd.f32 %v1341_v53, %v1021_v7  ;;  %v5740_v7 = vld [vmem:[%s5060_s29 + $0x28] sm:$0xf]  ;;  %v4928_v42 = vld [vmem:[%s5060_s29 + $0x20] sm:$0x1] }
 0x15a   : > { %6584 = vst [vmem:[#allocation3_spill] sm:$0xff] %v5726_v44  ;;  %v3011_v53 = vrot.slane %v3009_v11, 5  ;;  %v3023_v30 = vshll.u32 %v5740_v7, 16  ;;  %v3027_v49 = vshrl.u32 %v5740_v7, 16  ;;  %v2361_v9 = vrot.slane %v4928_v42, 5 }
 0x15b   : > { %v3616_v11 = vrot.slane %v4641_v8, 5  ;;  %v4929_v42 = vld [vmem:[%s5060_s29 + $0x18] sm:$0xf] }
 0x15c   : > { %v2253_v19 = vpop.f32.mrf.mxu0 }
 0x15d   : > { %v1647_v41 = vpop.f32.mrf.mxu3  ;;  %4459 = vmatmul.msk.bf16.gmra.mxu2 %vm706_vm4, %v1248_v2  ;;  %v1025_v4 = vpop.f32.mrf.mxu1 }
 0x15e   : > { %v1708_v10 = vadd.f32 %v1647_v41, %v1402_v57  ;;  %v3613_v57 = vrot.slane %v5717_v22, 5  ;;  %v4927_v41 = vld [vmem:[%s5060_s29 + $0x1c] sm:$0xf]  ;;  %v3002_v22 = vsel %vm5072_vm3, %v2997_v37, %v3001_v52  ;;  %v3029_v52 = vrot.slane %v3027_v49, 4 }
 0x160   : > { %v1344_v28 = vpop.f32.mrf.mxu2  ;;  %v5744_v2 = vadd.f32 %v2253_v19, %v1708_v10  ;;  %v4785_v19 = vrot.slane %v5711_v26, 9  ;;  %v1026_v10 = vadd.f32 %v1025_v4, %v5504_v63  ;;  %v3615_v23 = vrot.slane %v3613_v57, 4  ;;  %v4853_v26 = vld [vmem:[%s5060_s29 + $0x18] sm:$0xff] }
 0x161   : > { %v1403_v1 = vadd.f32 %v1344_v28, %v1024_v3  ;;  %v3012_v3 = vsel %vm5072_vm3, %v3007_v20, %v3011_v53  ;;  %v3375_v4 = vunpack.c.l.b16 %v3002_v22  ;;  %v5766_v53 = vld [vmem:[%s5060_s29 + $0x2c] sm:$0x1] }
 0x162   : > { %4588 = vmatmul.msk.bf16.gmra.mxu3 %vm706_vm4, %v4852_v55  ;;  %6585 = vst [vmem:[#allocation4_spill] sm:$0xff] %v5744_v2  ;;  %v2358_v55 = vrot.slane %v4927_v41, 5  ;;  %v3025_v41 = vrot.slane %v3023_v30, 5  ;;  %v3376_v20 = vunpack.c.l.b16 %v3012_v3  ;;  %v3614_v44 = vsel %vm5274_vm7, %v4785_v19, %v3613_v57 }
 0x163   : > { %v3033_v22 = vshll.u32 %v5766_v53, 16  ;;  %v3725_v3 = vunpack.c.l.b16 %v3614_v44 }
 0x164   : > { %v2256_v62 = vpop.f32.mrf.mxu0  ;;  %v2360_v2 = vrot.slane %v2358_v55, 4  ;;  %v3407_v57 = vpack.c.b16 %v3376_v20, %v3375_v4 }
 0x165   : > { %v1650_v61 = vpop.f32.mrf.mxu3  ;;  %v1028_v29 = vpop.f32.mrf.mxu1 }
 0x166   : > { %v1709_v27 = vadd.f32 %v1650_v61, %v1403_v1  ;;  %v3016_v1 = vrot.slane %v3014_v45, 4  ;;  %v3019_v61 = vrot.slane %v3017_v58, 5  ;;  %v2362_v49 = vsel %vm5274_vm7, %v2360_v2, %v2361_v9  ;;  %v5781_v2 = vld [vmem:[%s5060_s29 + $0x30] sm:$0xf] }
 0x167   : > { %4605 = vmatmul.msk.bf16.gmra.mxu0 %vm706_vm4, %v2160_v14  ;;  %v4607_v14 = vrot.slane %v4929_v42, 9  ;;  %v1029_v19 = vadd.f32 %v1028_v29, %v5387_v12  ;;  %v3035_v42 = vrot.slane %v3033_v22, 5 }
 0x168   : > { %v1346_v28 = vpop.f32.mrf.mxu2  ;;  %4623 = vmatmul.msk.bf16.vlgmr.msra.gmra.mxu1 %vm706_vm4, %v5708_v56  ;;  %v5763_v63 = vadd.f32 %v2256_v62, %v1709_v27  ;;  %v3617_v56 = vsel %vm5274_vm7, %v3615_v23, %v3616_v11  ;;  %v3020_v45 = vor.u32 %v3019_v61, %v3016_v1  ;;  %v3030_v27 = vor.u32 %v3029_v52, %v3025_v41 }
 0x169   : > { %v1404_v37 = vadd.f32 %v1346_v28, %v1026_v10  ;;  %v2359_v62 = vsel %vm5274_vm7, %v4607_v14, %v2358_v55  ;;  %v3726_v23 = vunpack.c.l.b16 %v3617_v56  ;;  %v2466_v1 = vunpack.c.l.b16 %v2362_v49  ;;  %v4930_v14 = vld [vmem:[%s5060_s29 + $0x28] sm:$0xf] }
 0x16a   : > { %v2465_v28 = vunpack.c.l.b16 %v2359_v62  ;;  %v3021_v55 = vrot.slane %v3020_v45, 4  ;;  %v3620_v52 = vrot.slane %v5740_v7, 5  ;;  %v2365_v4 = vrot.slane %v4930_v14, 5 }
 0x16b   : > { %v3757_v9 = vpack.c.b16 %v3726_v23, %v3725_v3  ;;  %v4786_v7 = vrot.slane %v5737_v47, 9  ;;  %v3038_v62 = vshrl.u32 %v5781_v2, 16  ;;  %v3041_v49 = vshll.u32 %v5781_v2, 16 }
 0x16c   : > { %v2258_v8 = vpop.f32.mrf.mxu0  ;;  %v2496_v29 = vpack.c.b16 %v2466_v1, %v2465_v28  ;;  %v3026_v45 = vsel %vm5072_vm3, %v3021_v55, %v3025_v41  ;;  %v2367_v1 = vrot.slane %v2365_v4, 4  ;;  %v4854_v55 = vld [vmem:[%s5060_s29 + $0x24] sm:$0xff] }
 0x16d   : > { %v1652_v58 = vpop.f32.mrf.mxu3  ;;  %4752 = vmatmul.msk.bf16.vlgmr.msra.gmra.mxu2 %vm706_vm4, %v4853_v26  ;;  %v1030_v30 = vpop.f32.mrf.mxu1  ;;  %v3031_v26 = vrot.slane %v3030_v27, 4  ;;  %v3377_v23 = vunpack.c.l.b16 %v3026_v45 }
 0x16e   : > { %v1710_v10 = vadd.f32 %v1652_v58, %v1404_v37  ;;  %v5785_v37 = vld [vmem:[%s5060_s29 + $0x34] sm:$0xf]  ;;  %v1031_v41 = vadd.f32 %v1030_v30, %v5408_v40  ;;  %v3040_v30 = vrot.slane %v3038_v62, 4 }
 0x16f   : > { %v3036_v58 = vsel %vm5072_vm3, %v3031_v26, %v3035_v42  ;;  %v3047_v27 = vshll.u32 %v5785_v37, 16  ;;  %v3051_v22 = vshrl.u32 %v5785_v37, 16  ;;  %v3621_v42 = vsel %vm5274_vm7, %v4786_v7, %v3620_v52 }
 0x170   : > { %v1349_v11 = vpop.f32.mrf.mxu2  ;;  %v5787_v12 = vadd.f32 %v2258_v8, %v1710_v10  ;;  %v3622_v10 = vrot.slane %v3620_v52, 4  ;;  %v3378_v26 = vunpack.c.l.b16 %v3036_v58  ;;  %v3727_v7 = vunpack.c.l.b16 %v3621_v42 }
 0x171   : > { %v1405_v61 = vadd.f32 %v1349_v11, %v1029_v19  ;;  %v4931_v19 = vld [vmem:[%s5060_s29 + $0x2c] sm:$0x1]  ;;  %v4932_v11 = vld [vmem:[%s5060_s29 + $0x24] sm:$0xf]  ;;  %v3053_v14 = vrot.slane %v3051_v22, 4 }
 0x172   : > { %4769 = vmatmul.msk.bf16.vlgmr.msra.gmra.mxu3 %vm706_vm4, %v3407_v57  ;;  %v3623_v57 = vrot.slane %v5766_v53, 5  ;;  %v2368_v3 = vrot.slane %v4931_v19, 5  ;;  %v4608_v28 = vrot.slane %v4932_v11, 9  ;;  %v3043_v53 = vrot.slane %v3041_v49, 5  ;;  %v5826_v11 = vld [vmem:[%s5060_s29 + $0x3c] sm:$0xf] }
 0x174   : > { %v2261_v44 = vpop.f32.mrf.mxu0  ;;  %v2366_v45 = vsel %vm5274_vm7, %v4608_v28, %v2365_v4  ;;  %v2369_v58 = vsel %vm5274_vm7, %v2367_v1, %v2368_v3  ;;  %v5829_v28 = vld [vmem:[%s5060_s29 + $0x40] sm:$0xf] }
 0x175   : > { %v1655_v20 = vpop.f32.mrf.mxu3  ;;  %v1033_v56 = vpop.f32.mrf.mxu1 }
 0x176   : > { %v1711_v8 = vadd.f32 %v1655_v20, %v1405_v61  ;;  %v1034_v4 = vadd.f32 %v1033_v56, %v5425_v59  ;;  %v3627_v59 = vrot.slane %v5785_v37, 5  ;;  %v4787_v37 = vrot.slane %v5781_v2, 9 }
 0x177   : > { %4802 = vmatmul.msk.bf16.vlgmr.msra.gmra.mxu0 %vm706_vm4, %v3757_v9  ;;  %v5810_v9 = vrot.slane %v3047_v27, 5  ;;  %v3044_v27 = vor.u32 %v3043_v53, %v3040_v30  ;;  %v3062_v30 = vshrl.u32 %v5826_v11, 16  ;;  %v3065_v53 = vshll.u32 %v5826_v11, 16 }
 0x178   : > { %v1351_v47 = vpop.f32.mrf.mxu2  ;;  %4624 = vmatmul.msk.bf16.gmra.mxu1 %vm706_vm4, %v2496_v29  ;;  %v5808_v40 = vadd.f32 %v2261_v44, %v1711_v8  ;;  %v3624_v29 = vsel %vm5274_vm7, %v3622_v10, %v3623_v57  ;;  %v3408_v44 = vpack.c.b16 %v3378_v26, %v3377_v23  ;;  %v2467_v10 = vunpack.c.l.b16 %v2366_v45 }
 0x179   : > { %v1406_v61 = vadd.f32 %v1351_v47, %v1031_v41  ;;  %v5819_v41 = vld [vmem:[%s5060_s29 + $0x38] sm:$0x1]  ;;  %v3728_v49 = vunpack.c.l.b16 %v3624_v29  ;;  %v3054_v22 = vor.u32 %v3053_v14, %v5810_v9  ;;  %v2468_v57 = vunpack.c.l.b16 %v2369_v58 }
 0x17a   : > { %v3057_v19 = vshll.u32 %v5819_v41, 16  ;;  %v3045_v1 = vrot.slane %v3044_v27, 4  ;;  %v3071_v14 = vshll.u32 %v5829_v28, 16  ;;  %v3075_v29 = vshrl.u32 %v5829_v28, 16 }
 0x17b   : > { %v3758_v23 = vpack.c.b16 %v3728_v49, %v3727_v7  ;;  %v4934_v7 = vld [vmem:[%s5060_s29 + $0x38] sm:$0x1]  ;;  %v3067_v2 = vrot.slane %v3065_v53, 5 }
 0x17c   : > { %v2263_v20 = vpop.f32.mrf.mxu0  ;;  %v3059_v26 = vrot.slane %v3057_v19, 5  ;;  %v2375_v49 = vrot.slane %v4934_v7, 5  ;;  %v3064_v19 = vrot.slane %v3062_v30, 4  ;;  %v5856_v7 = vld [vmem:[%s5060_s29 + $0x44] sm:$0x1] }
 0x17d   : > { %v1657_v52 = vpop.f32.mrf.mxu3  ;;  %4753 = vmatmul.msk.bf16.gmra.mxu2 %vm706_vm4, %v4854_v55  ;;  %v1035_v62 = vpop.f32.mrf.mxu1  ;;  %v2497_v55 = vpack.c.b16 %v2468_v57, %v2467_v10  ;;  %v3629_v10 = vrot.slane %v3627_v59, 4 }
 0x17e   : > { %v1712_v8 = vadd.f32 %v1657_v52, %v1406_v61  ;;  %v3055_v61 = vrot.slane %v3054_v22, 4  ;;  %v4933_v52 = vld [vmem:[%s5060_s29 + $0x34] sm:$0xf]  ;;  %v3050_v22 = vsel %vm5072_vm3, %v3045_v1, %v5810_v9  ;;  %v3068_v30 = vor.u32 %v3067_v2, %v3064_v19 }
 0x17f   : > { %v3379_v9 = vunpack.c.l.b16 %v3050_v22 }
 0x180   : > { %v1354_v3 = vpop.f32.mrf.mxu2  ;;  %v5833_v56 = vadd.f32 %v2263_v20, %v1712_v8  ;;  %v3630_v20 = vrot.slane %v5819_v41, 5  ;;  %v1036_v8 = vadd.f32 %v1035_v62, %v5446_v31  ;;  %v3077_v41 = vrot.slane %v3075_v29, 4 }
 0x181   : > { %v1407_v47 = vadd.f32 %v1354_v3, %v1034_v4  ;;  %v3060_v4 = vsel %vm5072_vm3, %v3055_v61, %v3059_v26  ;;  %v3073_v3 = vrot.slane %v3071_v14, 5  ;;  %v3628_v26 = vsel %vm5274_vm7, %v4787_v37, %v3627_v59 }
 0x182   : > { %4770 = vmatmul.msk.bf16.gmra.mxu3 %vm706_vm4, %v3408_v44  ;;  %v2372_v44 = vrot.slane %v4933_v52, 5  ;;  %v3380_v1 = vunpack.c.l.b16 %v3060_v4 }
 0x184   : > { %v2266_v42 = vpop.f32.mrf.mxu0  ;;  %v2374_v62 = vrot.slane %v2372_v44, 4  ;;  %v3409_v59 = vpack.c.b16 %v3380_v1, %v3379_v9  ;;  %v4936_v9 = vld [vmem:[%s5060_s29 + $0x40] sm:$0xf] }
 0x185   : > { %v1660_v45 = vpop.f32.mrf.mxu3  ;;  %v1038_v58 = vpop.f32.mrf.mxu1  ;;  %v2379_v1 = vrot.slane %v4936_v9, 5 }
 0x186   : > { %v1713_v27 = vadd.f32 %v1660_v45, %v1407_v47  ;;  %v4935_v45 = vld [vmem:[%s5060_s29 + $0x30] sm:$0xf]  ;;  %v2376_v29 = vsel %vm5274_vm7, %v2374_v62, %v2375_v49  ;;  %v1039_v37 = vadd.f32 %v1038_v58, %v5468_v0  ;;  %v5871_v49 = vld [vmem:[%s5060_s29 + $0x48] sm:$0xf] }
 0x187   : > { %4803 = vmatmul.msk.bf16.gmra.mxu0 %vm706_vm4, %v3758_v23  ;;  %v4855_v23 = vld [vmem:[%s5060_s29 + $0x30] sm:$0xff]  ;;  %v4609_v31 = vrot.slane %v4935_v45, 9  ;;  %v2470_v19 = vunpack.c.l.b16 %v2376_v29  ;;  %v3089_v29 = vshll.u32 %v5871_v49, 16 }
 0x188   : > { %v1356_v57 = vpop.f32.mrf.mxu2  ;;  %4625 = vmatmul.msk.bf16.gmra.mxu1 %vm706_vm4, %v2497_v55  ;;  %v5853_v52 = vadd.f32 %v2266_v42, %v1713_v27  ;;  %v3631_v55 = vsel %vm5274_vm7, %v3629_v10, %v3630_v20  ;;  %v3078_v27 = vor.u32 %v3077_v41, %v3073_v3  ;;  %v3729_v20 = vunpack.c.l.b16 %v3628_v26 }
 0x189   : > { %v1408_v47 = vadd.f32 %v1356_v57, %v1036_v8  ;;  %v2373_v42 = vsel %vm5274_vm7, %v4609_v31, %v2372_v44  ;;  %v3081_v8 = vshll.u32 %v5856_v7, 16  ;;  %v3730_v4 = vunpack.c.l.b16 %v3631_v55  ;;  %v5875_v31 = vld [vmem:[%s5060_s29 + $0x4c] sm:$0xf] }
 0x18a   : > { %v2469_v57 = vunpack.c.l.b16 %v2373_v42  ;;  %v3069_v44 = vrot.slane %v3068_v30, 4  ;;  %v3086_v42 = vshrl.u32 %v5871_v49, 16 }
 0x18b   : > { %v3083_v45 = vrot.slane %v3081_v8, 5  ;;  %v3759_v41 = vpack.c.b16 %v3730_v4, %v3729_v20  ;;  %v3099_v8 = vshrl.u32 %v5875_v31, 16 }
 0x18c   : > { %v2268_v61 = vpop.f32.mrf.mxu0  ;;  %v2498_v62 = vpack.c.b16 %v2470_v19, %v2469_v57  ;;  %v3074_v30 = vsel %vm5072_vm3, %v3069_v44, %v3073_v3  ;;  %v2381_v19 = vrot.slane %v2379_v1, 4  ;;  %v4856_v44 = vld [vmem:[%s5060_s29 + $0x3c] sm:$0xff] }
 0x18d   : > { %v1662_v53 = vpop.f32.mrf.mxu3  ;;  %4754 = vmatmul.msk.bf16.gmra.mxu2 %vm706_vm4, %v4855_v23  ;;  %v1040_v14 = vpop.f32.mrf.mxu1  ;;  %v3079_v23 = vrot.slane %v3078_v27, 4  ;;  %v3095_v27 = vshll.u32 %v5875_v31, 16  ;;  %v3381_v4 = vunpack.c.l.b16 %v3074_v30  ;;  %v3101_v9 = vrot.slane %v3099_v8, 4 }
 0x18e   : > { %v1714_v22 = vadd.f32 %v1662_v53, %v1408_v47  ;;  %v3634_v47 = vrot.slane %v5829_v28, 5  ;;  %v4788_v28 = vrot.slane %v5826_v11, 9  ;;  %v1041_v3 = vadd.f32 %v1040_v14, %v5487_v33 }
 0x18f   : > { %v3084_v53 = vsel %vm5072_vm3, %v3079_v23, %v3083_v45  ;;  %v3088_v14 = vrot.slane %v3086_v42, 4 }
 0x190   : > { %v1359_v10 = vpop.f32.mrf.mxu2  ;;  %v5877_v0 = vadd.f32 %v2268_v61, %v1714_v22  ;;  %v3636_v22 = vrot.slane %v3634_v47, 4  ;;  %v3382_v23 = vunpack.c.l.b16 %v3084_v53  ;;  %v3635_v45 = vsel %vm5274_vm7, %v4788_v28, %v3634_v47 }
 0x191   : > { %v1409_v2 = vadd.f32 %v1359_v10, %v1039_v37  ;;  %v4937_v37 = vld [vmem:[%s5060_s29 + $0x44] sm:$0x1]  ;;  %v4938_v10 = vld [vmem:[%s5060_s29 + $0x3c] sm:$0xf]  ;;  %v3731_v28 = vunpack.c.l.b16 %v3635_v45 }
 0x192   : > { %4771 = vmatmul.msk.bf16.gmra.mxu3 %vm706_vm4, %v3409_v59  ;;  %v3637_v59 = vrot.slane %v5856_v7, 5  ;;  %v2382_v20 = vrot.slane %v4937_v37, 5  ;;  %v4610_v57 = vrot.slane %v4938_v10, 9  ;;  %v3091_v7 = vrot.slane %v3089_v29, 5  ;;  %v5916_v10 = vld [vmem:[%s5060_s29 + $0x54] sm:$0xf] }
 0x194   : > { %v2271_v58 = vpop.f32.mrf.mxu0  ;;  %v2380_v30 = vsel %vm5274_vm7, %v4610_v57, %v2379_v1  ;;  %v2383_v53 = vsel %vm5274_vm7, %v2381_v19, %v2382_v20  ;;  %v5919_v57 = vld [vmem:[%s5060_s29 + $0x58] sm:$0xf] }
 0x195   : > { %v1665_v26 = vpop.f32.mrf.mxu3  ;;  %v1043_v55 = vpop.f32.mrf.mxu1 }
 0x196   : > { %v1715_v61 = vadd.f32 %v1665_v26, %v1409_v2  ;;  %v1044_v1 = vadd.f32 %v1043_v55, %v5508_v16  ;;  %v3641_v16 = vrot.slane %v5875_v31, 5  ;;  %v4789_v31 = vrot.slane %v5871_v49, 9 }
 0x197   : > { %4804 = vmatmul.msk.bf16.gmra.mxu0 %vm706_vm4, %v3759_v41  ;;  %v5900_v41 = vrot.slane %v3095_v27, 5  ;;  %v3092_v27 = vor.u32 %v3091_v7, %v3088_v14  ;;  %v3110_v14 = vshrl.u32 %v5916_v10, 16  ;;  %v3113_v7 = vshll.u32 %v5916_v10, 16 }
 0x198   : > { %v1361_v11 = vpop.f32.mrf.mxu2  ;;  %4626 = vmatmul.msk.bf16.gmra.mxu1 %vm706_vm4, %v2498_v62  ;;  %v5898_v33 = vadd.f32 %v2271_v58, %v1715_v61  ;;  %v3638_v62 = vsel %vm5274_vm7, %v3636_v22, %v3637_v59  ;;  %v3410_v58 = vpack.c.b16 %v3382_v23, %v3381_v4  ;;  %v2471_v22 = vunpack.c.l.b16 %v2380_v30 }
 0x199   : > { %v1410_v2 = vadd.f32 %v1361_v11, %v1041_v3  ;;  %v5909_v3 = vld [vmem:[%s5060_s29 + $0x50] sm:$0x1]  ;;  %v3732_v29 = vunpack.c.l.b16 %v3638_v62  ;;  %v3102_v8 = vor.u32 %v3101_v9, %v5900_v41  ;;  %v2472_v59 = vunpack.c.l.b16 %v2383_v53 }
 0x19a   : > { %v3105_v37 = vshll.u32 %v5909_v3, 16  ;;  %v3093_v19 = vrot.slane %v3092_v27, 4  ;;  %v3119_v9 = vshll.u32 %v5919_v57, 16  ;;  %v3123_v62 = vshrl.u32 %v5919_v57, 16 }
 0x19b   : > { %v3760_v4 = vpack.c.b16 %v3732_v29, %v3731_v28  ;;  %v4940_v28 = vld [vmem:[%s5060_s29 + $0x50] sm:$0x1]  ;;  %v3115_v49 = vrot.slane %v3113_v7, 5 }
 0x19c   : > { %v2273_v26 = vpop.f32.mrf.mxu0  ;;  %v3107_v23 = vrot.slane %v3105_v37, 5  ;;  %v2389_v29 = vrot.slane %v4940_v28, 5  ;;  %v3112_v37 = vrot.slane %v3110_v14, 4  ;;  %v5946_v28 = vld [vmem:[%s5060_s29 + $0x5c] sm:$0x1] }
 0x19d   : > { %v1667_v47 = vpop.f32.mrf.mxu3  ;;  %4755 = vmatmul.msk.bf16.gmra.mxu2 %vm706_vm4, %v4856_v44  ;;  %v1045_v42 = vpop.f32.mrf.mxu1  ;;  %v2499_v44 = vpack.c.b16 %v2472_v59, %v2471_v22  ;;  %v3643_v22 = vrot.slane %v3641_v16, 4 }
 0x19e   : > { %v1716_v61 = vadd.f32 %v1667_v47, %v1410_v2  ;;  %v3103_v2 = vrot.slane %v3102_v8, 4  ;;  %v4939_v47 = vld [vmem:[%s5060_s29 + $0x4c] sm:$0xf]  ;;  %v3098_v8 = vsel %vm5072_vm3, %v3093_v19, %v5900_v41  ;;  %v3116_v14 = vor.u32 %v3115_v49, %v3112_v37 }
 0x19f   : > { %v3383_v41 = vunpack.c.l.b16 %v3098_v8 }
 0x1a0   : > { %v1364_v20 = vpop.f32.mrf.mxu2  ;;  %v5923_v55 = vadd.f32 %v2273_v26, %v1716_v61  ;;  %v3644_v26 = vrot.slane %v5909_v3, 5  ;;  %v1046_v61 = vadd.f32 %v1045_v42, %v5523_v25  ;;  %v3125_v3 = vrot.slane %v3123_v62, 4 }
 0x1a1   : > { %v1411_v11 = vadd.f32 %v1364_v20, %v1044_v1  ;;  %v3108_v1 = vsel %vm5072_vm3, %v3103_v2, %v3107_v23  ;;  %v3121_v20 = vrot.slane %v3119_v9, 5  ;;  %v3642_v23 = vsel %vm5274_vm7, %v4789_v31, %v3641_v16 }
 0x1a2   : > { %4772 = vmatmul.msk.bf16.gmra.mxu3 %vm706_vm4, %v3410_v58  ;;  %v2386_v58 = vrot.slane %v4939_v47, 5  ;;  %v3384_v19 = vunpack.c.l.b16 %v3108_v1  ;;  %v3733_v8 = vunpack.c.l.b16 %v3642_v23 }
 0x1a4   : > { %v2276_v45 = vpop.f32.mrf.mxu0  ;;  %v2388_v42 = vrot.slane %v2386_v58, 4  ;;  %v3411_v31 = vpack.c.b16 %v3384_v19, %v3383_v41 }
 0x1a5   : > { %v1670_v30 = vpop.f32.mrf.mxu3  ;;  %v1048_v53 = vpop.f32.mrf.mxu1 }
 0x1a6   : > { %v1717_v27 = vadd.f32 %v1670_v30, %v1411_v11  ;;  %v4941_v30 = vld [vmem:[%s5060_s29 + $0x48] sm:$0xf]  ;;  %v2390_v62 = vsel %vm5274_vm7, %v2388_v42, %v2389_v29  ;;  %v5961_v29 = vld [vmem:[%s5060_s29 + $0x60] sm:$0xf]  ;;  %v3648_v42 = vrot.slane %v5919_v57, 5 }
 0x1a7   : > { %4805 = vmatmul.msk.bf16.gmra.mxu0 %vm706_vm4, %v3760_v4  ;;  %v4857_v4 = vld [vmem:[%s5060_s29 + $0x48] sm:$0xff]  ;;  %v4611_v25 = vrot.slane %v4941_v30, 9  ;;  %v2474_v37 = vunpack.c.l.b16 %v2390_v62 }
 0x1a8   : > { %v1366_v59 = vpop.f32.mrf.mxu2  ;;  %4627 = vmatmul.msk.bf16.gmra.mxu1 %vm706_vm4, %v2499_v44  ;;  %v5943_v47 = vadd.f32 %v2276_v45, %v1717_v27  ;;  %v3645_v44 = vsel %vm5274_vm7, %v3643_v22, %v3644_v26  ;;  %v3126_v27 = vor.u32 %v3125_v3, %v3121_v20  ;;  %v1049_v26 = vadd.f32 %v1048_v53, %v5399_v21 }
 0x1a9   : > { %v1412_v11 = vadd.f32 %v1366_v59, %v1046_v61  ;;  %v2387_v45 = vsel %vm5274_vm7, %v4611_v25, %v2386_v58  ;;  %v3129_v61 = vshll.u32 %v5946_v28, 16  ;;  %v3734_v1 = vunpack.c.l.b16 %v3645_v44  ;;  %v5964_v25 = vld [vmem:[%s5060_s29 + $0x64] sm:$0xf] }
 0x1aa   : > { %v2473_v59 = vunpack.c.l.b16 %v2387_v45  ;;  %v3117_v58 = vrot.slane %v3116_v14, 4  ;;  %v4942_v14 = vld [vmem:[%s5060_s29 + $0x58] sm:$0xf]  ;;  %v3134_v45 = vshrl.u32 %v5961_v29, 16  ;;  %v3147_v57 = vshrl.u32 %v5964_v25, 16 }
 0x1ab   : > { %v3131_v30 = vrot.slane %v3129_v61, 5  ;;  %v3761_v3 = vpack.c.b16 %v3734_v1, %v3733_v8  ;;  %v4943_v61 = vld [vmem:[%s5060_s29 + $0x5c] sm:$0x1] }
 0x1ac   : > { %v2278_v2 = vpop.f32.mrf.mxu0  ;;  %v2500_v53 = vpack.c.b16 %v2474_v37, %v2473_v59  ;;  %v3122_v23 = vsel %vm5072_vm3, %v3117_v58, %v3121_v20  ;;  %v3651_v59 = vrot.slane %v5946_v28, 5  ;;  %v4944_v58 = vld [vmem:[%s5060_s29 + $0x54] sm:$0xf] }
 0x1ad   : > { %v1672_v7 = vpop.f32.mrf.mxu3  ;;  %4756 = vmatmul.msk.bf16.gmra.mxu2 %vm706_vm4, %v4857_v4  ;;  %v1050_v9 = vpop.f32.mrf.mxu1  ;;  %v3127_v4 = vrot.slane %v3126_v27, 4  ;;  %v3143_v27 = vshll.u32 %v5964_v25, 16  ;;  %v3385_v8 = vunpack.c.l.b16 %v3122_v23 }
 0x1ae   : > { %v1718_v16 = vadd.f32 %v1672_v7, %v1412_v11  ;;  %v2393_v7 = vrot.slane %v4942_v14, 5  ;;  %v1051_v20 = vadd.f32 %v1050_v9, %v5418_v50  ;;  %v5989_v14 = vld [vmem:[%s5060_s29 + $0x68] sm:$0x1] }
 0x1af   : > { %v3132_v44 = vsel %vm5072_vm3, %v3127_v4, %v3131_v30  ;;  %v4612_v4 = vrot.slane %v4944_v58, 9  ;;  %v3145_v9 = vrot.slane %v3143_v27, 5 }
 0x1b0   : > { %v1369_v22 = vpop.f32.mrf.mxu2  ;;  %v5966_v11 = vadd.f32 %v2278_v2, %v1718_v16  ;;  %v3137_v2 = vshll.u32 %v5961_v29, 16  ;;  %v2396_v16 = vrot.slane %v4943_v61, 5  ;;  %v3386_v1 = vunpack.c.l.b16 %v3132_v44 }
 0x1b1   : > { %v1413_v49 = vadd.f32 %v1369_v22, %v1049_v26  ;;  %v3650_v22 = vrot.slane %v3648_v42, 4  ;;  %v2395_v30 = vrot.slane %v2393_v7, 4 }
 0x1b2   : > { %4773 = vmatmul.msk.bf16.gmra.mxu3 %vm706_vm4, %v3411_v31  ;;  %v4790_v31 = vrot.slane %v5916_v10, 9  ;;  %v3139_v50 = vrot.slane %v3137_v2, 5  ;;  %v3149_v10 = vrot.slane %v3147_v57, 4  ;;  %v3412_v44 = vpack.c.b16 %v3386_v1, %v3385_v8 }
 0x1b3   : > { %v3652_v28 = vsel %vm5274_vm7, %v3650_v22, %v3651_v59 }
 0x1b4   : > { %v2281_v21 = vpop.f32.mrf.mxu0  ;;  %v3150_v57 = vor.u32 %v3149_v10, %v3145_v9 }
 0x1b5   : > { %v1675_v41 = vpop.f32.mrf.mxu3  ;;  %v1053_v19 = vpop.f32.mrf.mxu1 }
 0x1b6   : > { %v1719_v62 = vadd.f32 %v1675_v41, %v1413_v49  ;;  %v4858_v49 = vld [vmem:[%s5060_s29 + $0x54] sm:$0xff] }
 0x1b7   : > { %4806 = vmatmul.msk.bf16.gmra.mxu0 %vm706_vm4, %v3761_v3  ;;  %v3136_v3 = vrot.slane %v3134_v45, 4  ;;  %v2394_v45 = vsel %vm5274_vm7, %v4612_v4, %v2393_v7  ;;  %v3655_v4 = vrot.slane %v5964_v25, 5 }
 0x1b8   : > { %v1371_v26 = vpop.f32.mrf.mxu2  ;;  %4628 = vmatmul.msk.bf16.gmra.mxu1 %vm706_vm4, %v2500_v53  ;;  %v5986_v41 = vadd.f32 %v2281_v21, %v1719_v62  ;;  %v3649_v53 = vsel %vm5274_vm7, %v4790_v31, %v3648_v42  ;;  %v2397_v62 = vsel %vm5274_vm7, %v2395_v30, %v2396_v16  ;;  %v3153_v42 = vshll.u32 %v5989_v14, 16 }
 0x1b9   : > { %v1414_v37 = vadd.f32 %v1371_v26, %v1051_v20  ;;  %v3140_v27 = vor.u32 %v3139_v50, %v3136_v3  ;;  %v1054_v20 = vadd.f32 %v1053_v19, %v5438_v15  ;;  %v3735_v31 = vunpack.c.l.b16 %v3649_v53  ;;  %v6010_v3 = vld [vmem:[%s5060_s29 + $0x70] sm:$0xf] }
 0x1ba   : > { %v3736_v26 = vunpack.c.l.b16 %v3652_v28  ;;  %v2475_v59 = vunpack.c.l.b16 %v2394_v45  ;;  %v2476_v8 = vunpack.c.l.b16 %v2397_v62  ;;  %v3151_v16 = vrot.slane %v3150_v57, 4 }
 0x1bb   : > { %v3141_v7 = vrot.slane %v3140_v27, 4  ;;  %v3657_v57 = vrot.slane %v3655_v4, 4 }
 0x1bc   : > { %v2283_v61 = vpop.f32.mrf.mxu0  ;;  %v3762_v58 = vpack.c.b16 %v3736_v26, %v3735_v31  ;;  %v2501_v19 = vpack.c.b16 %v2476_v8, %v2475_v59  ;;  %v4859_v8 = vld [vmem:[%s5060_s29 + $0x60] sm:$0xff] }
 0x1bd   : > { %v1677_v23 = vpop.f32.mrf.mxu3  ;;  %4757 = vmatmul.msk.bf16.gmra.mxu2 %vm706_vm4, %v4858_v49  ;;  %v1055_v21 = vpop.f32.mrf.mxu1  ;;  %v6003_v49 = vld [vmem:[%s5060_s29 + $0x6c] sm:$0xf]  ;;  %v3146_v25 = vsel %vm5072_vm3, %v3141_v7, %v3145_v9 }
 0x1be   : > { %v1720_v2 = vadd.f32 %v1677_v23, %v1414_v37  ;;  %v3155_v37 = vrot.slane %v3153_v42, 5  ;;  %v3158_v50 = vshrl.u32 %v6003_v49, 16  ;;  %v3161_v10 = vshll.u32 %v6003_v49, 16 }
 0x1bf   : > { %v4791_v23 = vrot.slane %v5961_v29, 9  ;;  %v1056_v27 = vadd.f32 %v1055_v21, %v5458_v24  ;;  %v3167_v29 = vshll.u32 %v6010_v3, 16  ;;  %v3171_v42 = vshrl.u32 %v6010_v3, 16 }
 0x1c0   : > { %v1374_v22 = vpop.f32.mrf.mxu2  ;;  %v6007_v30 = vadd.f32 %v2283_v61, %v1720_v2  ;;  %v3156_v61 = vsel %vm5072_vm3, %v3151_v16, %v3155_v37  ;;  %v3658_v2 = vrot.slane %v5989_v14, 5  ;;  %v3160_v9 = vrot.slane %v3158_v50, 4  ;;  %v4947_v14 = vld [vmem:[%s5060_s29 + $0x60] sm:$0xf]  ;;  %v4662_v50 = vld [vmem:[%s5060_s29 + $0x74] sm:$0x1] }
 0x1c1   : > { %v1415_v1 = vadd.f32 %v1374_v22, %v1054_v20  ;;  %v4946_v20 = vld [vmem:[%s5060_s29 + $0x68] sm:$0x1]  ;;  %v3163_v22 = vrot.slane %v3161_v10, 5  ;;  %v3387_v24 = vunpack.c.l.b16 %v3146_v25  ;;  %v3388_v21 = vunpack.c.l.b16 %v3156_v61 }
 0x1c2   : > { %4774 = vmatmul.msk.bf16.gmra.mxu3 %vm706_vm4, %v3412_v44  ;;  %v4945_v44 = vld [vmem:[%s5060_s29 + $0x64] sm:$0xf]  ;;  %v2403_v31 = vrot.slane %v4946_v20, 5  ;;  %v3656_v37 = vsel %vm5274_vm7, %v4791_v23, %v3655_v4 }
 0x1c3   : > { %v2400_v45 = vrot.slane %v4945_v44, 5  ;;  %v3164_v10 = vor.u32 %v3163_v22, %v3160_v9  ;;  %v3413_v23 = vpack.c.b16 %v3388_v21, %v3387_v24  ;;  %v3737_v25 = vunpack.c.l.b16 %v3656_v37 }
 0x1c4   : > { %v2286_v15 = vpop.f32.mrf.mxu0 }
 0x1c5   : > { %v1680_v53 = vpop.f32.mrf.mxu3  ;;  %v1058_v28 = vpop.f32.mrf.mxu1  ;;  %v2402_v7 = vrot.slane %v2400_v45, 4  ;;  %v3165_v22 = vrot.slane %v3164_v10, 4 }
 0x1c6   : > { %v1721_v62 = vadd.f32 %v1680_v53, %v1415_v1  ;;  %v4613_v1 = vrot.slane %v4947_v14, 9  ;;  %v3169_v53 = vrot.slane %v3167_v29, 5  ;;  %v3177_v29 = vshll.u32 %v4662_v50, 16  ;;  %v6043_v14 = vld [vmem:[%s5060_s29 + $0x78] sm:$0xf] }
 0x1c7   : > { %4807 = vmatmul.msk.bf16.gmra.mxu0 %vm706_vm4, %v3762_v58  ;;  %v3659_v58 = vsel %vm5274_vm7, %v3657_v57, %v3658_v2  ;;  %v1059_v2 = vadd.f32 %v1058_v28, %v5477_v18  ;;  %v6049_v18 = vld [vmem:[%s5060_s29 + $0x7c] sm:$0xf] }
 0x1c8   : > { %v1376_v26 = vpop.f32.mrf.mxu2  ;;  %4629 = vmatmul.msk.bf16.gmra.mxu1 %vm706_vm4, %v2501_v19  ;;  %v6029_v16 = vadd.f32 %v2286_v15, %v1721_v62  ;;  %v3173_v19 = vrot.slane %v3171_v42, 4  ;;  %v2401_v15 = vsel %vm5274_vm7, %v4613_v1, %v2400_v45  ;;  %v2404_v62 = vsel %vm5274_vm7, %v2402_v7, %v2403_v31 }
 0x1c9   : > { %v1416_v59 = vadd.f32 %v1376_v26, %v1056_v27  ;;  %v3738_v61 = vunpack.c.l.b16 %v3659_v58  ;;  %v2477_v26 = vunpack.c.l.b16 %v2401_v15  ;;  %v2478_v9 = vunpack.c.l.b16 %v2404_v62  ;;  %v4948_v15 = vld [vmem:[%s5060_s29 + $0x70] sm:$0xf] }
 0x1ca   : > { %v3174_v57 = vor.u32 %v3173_v19, %v3169_v53  ;;  %v3662_v31 = vrot.slane %v6010_v3, 5  ;;  %v3179_v1 = vrot.slane %v3177_v29, 5  ;;  %v4792_v7 = vrot.slane %v6003_v49, 9 }
 0x1cb   : > { %v3763_v45 = vpack.c.b16 %v3738_v61, %v3737_v25  ;;  %v2502_v21 = vpack.c.b16 %v2478_v9, %v2477_v26  ;;  %v3170_v37 = vsel %vm5072_vm3, %v3165_v22, %v3169_v53  ;;  %v3182_v58 = vshrl.u32 %v6043_v14, 16  ;;  %v4860_v22 = vld [vmem:[%s5060_s29 + $0x6c] sm:$0xff] }
 0x1cc   : > { %v2288_v44 = vpop.f32.mrf.mxu0  ;;  %v3185_v19 = vshll.u32 %v6043_v14, 16  ;;  %v2407_v62 = vrot.slane %v4948_v15, 5  ;;  %v3389_v61 = vunpack.c.l.b16 %v3170_v37 }
 0x1cd   : > { %v1682_v27 = vpop.f32.mrf.mxu3  ;;  %4758 = vmatmul.msk.bf16.gmra.mxu2 %vm706_vm4, %v4859_v8  ;;  %v1060_v20 = vpop.f32.mrf.mxu1 }
 0x1ce   : > { %v1722_v4 = vadd.f32 %v1682_v27, %v1416_v59  ;;  %v3175_v59 = vrot.slane %v3174_v57, 4  ;;  %v3665_v27 = vrot.slane %v4662_v50, 5  ;;  %v1061_v53 = vadd.f32 %v1060_v20, %v5500_v48  ;;  %v4949_v57 = vld [vmem:[%s5060_s29 + $0x6c] sm:$0xf] }
 0x1cf   : > { %v3663_v50 = vsel %vm5274_vm7, %v4792_v7, %v3662_v31  ;;  %v4614_v29 = vrot.slane %v4949_v57, 9  ;;  %v3187_v26 = vrot.slane %v3185_v19, 5 }
 0x1d0   : > { %v1379_v42 = vpop.f32.mrf.mxu2  ;;  %v6051_v28 = vadd.f32 %v2288_v44, %v1722_v4  ;;  %v3191_v44 = vshll.u32 %v6049_v18, 16  ;;  %v3195_v4 = vshrl.u32 %v6049_v18, 16  ;;  %v3180_v25 = vsel %vm5072_vm3, %v3175_v59, %v3179_v1 }
 0x1d1   : > { %v1417_v8 = vadd.f32 %v1379_v42, %v1059_v2  ;;  %v3184_v42 = vrot.slane %v3182_v58, 4  ;;  %v3390_v59 = vunpack.c.l.b16 %v3180_v25  ;;  %v3739_v58 = vunpack.c.l.b16 %v3663_v50 }
 0x1d2   : > { %4775 = vmatmul.msk.bf16.gmra.mxu3 %vm706_vm4, %v3413_v23  ;;  %v3664_v23 = vrot.slane %v3662_v31, 4  ;;  %v3197_v37 = vrot.slane %v3195_v4, 4  ;;  %v6077_v31 = vld [vmem:[%s5060_s29 + $0x80] sm:$0x1] }
 0x1d4   : > { %v2291_v24 = vpop.f32.mrf.mxu0  ;;  %v3666_v1 = vsel %vm5274_vm7, %v3664_v23, %v3665_v27 }
 0x1d5   : > { %v1685_v10 = vpop.f32.mrf.mxu3  ;;  %v1063_v3 = vpop.f32.mrf.mxu1 }
 0x1d6   : > { %v1723_v49 = vadd.f32 %v1685_v10, %v1417_v8  ;;  %v2409_v8 = vrot.slane %v2407_v62, 4  ;;  %v3740_v10 = vunpack.c.l.b16 %v3666_v1  ;;  %v1064_v25 = vadd.f32 %v1063_v3, %v5519_v35 }
 0x1d7   : > { %4808 = vmatmul.msk.bf16.gmra.mxu0 %vm706_vm4, %v3763_v45  ;;  %v4950_v45 = vld [vmem:[%s5060_s29 + $0x74] sm:$0x1]  ;;  %v3669_v35 = vrot.slane %v6049_v18, 5  ;;  %v4951_v18 = vld [vmem:[%s5060_s29 + $0x7c] sm:$0xf] }
 0x1d8   : > { %v1381_v2 = vpop.f32.mrf.mxu2  ;;  %4630 = vmatmul.msk.bf16.gmra.mxu1 %vm706_vm4, %v2502_v21  ;;  %v2410_v48 = vrot.slane %v4950_v45, 5  ;;  %v6070_v20 = vadd.f32 %v2291_v24, %v1723_v49  ;;  %v6074_v21 = vrot.slane %v3191_v44, 5  ;;  %v2408_v24 = vsel %vm5274_vm7, %v4614_v29, %v2407_v62  ;;  %v6091_v45 = vld [vmem:[%s5060_s29 + $0x88] sm:$0xf] }
 0x1d9   : > { %v1418_v9 = vadd.f32 %v1381_v2, %v1061_v53  ;;  %v3188_v49 = vor.u32 %v3187_v26, %v3184_v42  ;;  %v3414_v44 = vpack.c.b16 %v3390_v59, %v3389_v61  ;;  %v3201_v53 = vshll.u32 %v6077_v31, 16  ;;  %v6088_v2 = vld [vmem:[%s5060_s29 + $0x84] sm:$0xf] }
 0x1da   : > { %v2411_v27 = vsel %vm5274_vm7, %v2409_v8, %v2410_v48  ;;  %v3198_v4 = vor.u32 %v3197_v37, %v6074_v21  ;;  %v2479_v57 = vunpack.c.l.b16 %v2408_v24  ;;  %v3764_v62 = vpack.c.b16 %v3740_v10, %v3739_v58 }
 0x1db   : > { %v3189_v1 = vrot.slane %v3188_v49, 4  ;;  %v3203_v42 = vrot.slane %v3201_v53, 5  ;;  %v3206_v26 = vshrl.u32 %v6088_v2, 16  ;;  %v3215_v3 = vshll.u32 %v6091_v45, 16 }
 0x1dc   : > { %v2293_v7 = vpop.f32.mrf.mxu0  ;;  %v3199_v61 = vrot.slane %v3198_v4, 4  ;;  %v3219_v8 = vshrl.u32 %v6091_v45, 16  ;;  %v4793_v24 = vrot.slane %v6043_v14, 9  ;;  %v2414_v49 = vrot.slane %v4951_v18, 5 }
 0x1dd   : > { %v1687_v19 = vpop.f32.mrf.mxu3  ;;  %4759 = vmatmul.msk.bf16.gmra.mxu2 %vm706_vm4, %v4860_v22  ;;  %v1065_v15 = vpop.f32.mrf.mxu1  ;;  %v2480_v22 = vunpack.c.l.b16 %v2411_v27  ;;  %v3194_v10 = vsel %vm5072_vm3, %v3189_v1, %v6074_v21  ;;  %v3672_v27 = vrot.slane %v6077_v31, 5  ;;  %v3671_v53 = vrot.slane %v3669_v35, 4  ;;  %v4861_v1 = vld [vmem:[%s5060_s29 + $0x78] sm:$0xff] }
 0x1de   : > { %v1724_v23 = vadd.f32 %v1687_v19, %v1418_v9  ;;  %v3209_v9 = vshll.u32 %v6088_v2, 16  ;;  %v1066_v21 = vadd.f32 %v1065_v15, %v5535_v32  ;;  %v3221_v14 = vrot.slane %v3219_v8, 4 }
 0x1df   : > { %v2503_v37 = vpack.c.b16 %v2480_v22, %v2479_v57  ;;  %v4668_v22 = vld [vmem:[%s5060_s29 + $0x8c] sm:$0x1]  ;;  %v3670_v32 = vsel %vm5274_vm7, %v4793_v24, %v3669_v35 }
 0x1e0   : > { %v1384_v50 = vpop.f32.mrf.mxu2  ;;  %v6099_v48 = vadd.f32 %v2293_v7, %v1724_v23  ;;  %v3204_v7 = vsel %vm5072_vm3, %v3199_v61, %v3203_v42  ;;  %v3208_v23 = vrot.slane %v3206_v26, 4  ;;  %v3211_v4 = vrot.slane %v3209_v9, 5  ;;  %v4953_v42 = vld [vmem:[%s5060_s29 + $0x80] sm:$0x1] }
 0x1e1   : > { %v1419_v29 = vadd.f32 %v1384_v50, %v1064_v25  ;;  %v6111_v25 = vrot.slane %v3215_v3, 5  ;;  %v4952_v50 = vld [vmem:[%s5060_s29 + $0x78] sm:$0xf]  ;;  %v2416_v61 = vrot.slane %v2414_v49, 4  ;;  %v2417_v26 = vrot.slane %v4953_v42, 5 }
 0x1e2   : > { %4776 = vmatmul.msk.bf16.gmra.mxu3 %vm706_vm4, %v3414_v44  ;;  %v4615_v57 = vrot.slane %v4952_v50, 9  ;;  %v3212_v15 = vor.u32 %v3211_v4, %v3208_v23  ;;  %v3673_v3 = vsel %vm5274_vm7, %v3671_v53, %v3672_v27  ;;  %v6132_v4 = vld [vmem:[%s5060_s29 + $0x90] sm:$0xf]  ;;  %v6135_v53 = vld [vmem:[%s5060_s29 + $0x94] sm:$0xf]  ;;  %v4794_v50 = vrot.slane %v6088_v2, 9 }
 0x1e3   : > { %v3222_v8 = vor.u32 %v3221_v14, %v6111_v25  ;;  %v2418_v24 = vsel %vm5274_vm7, %v2416_v61, %v2417_v26  ;;  %v3233_v26 = vshll.u32 %v6132_v4, 16 }
 0x1e4   : > { %v2296_v59 = vpop.f32.mrf.mxu0  ;;  %v2415_v35 = vsel %vm5274_vm7, %v4615_v57, %v2414_v49  ;;  %v3213_v23 = vrot.slane %v3212_v15, 4  ;;  %v2482_v57 = vunpack.c.l.b16 %v2418_v24 }
 0x1e5   : > { %v1690_v58 = vpop.f32.mrf.mxu3  ;;  %v2571_v19 = vpop.f32.mrf.mxu1  ;;  %v2481_v49 = vunpack.c.l.b16 %v2415_v35 }
 0x1e6   : > { %v1725_v44 = vadd.f32 %v1690_v58, %v1419_v29  ;;  %v3392_v58 = vunpack.c.l.b16 %v3204_v7  ;;  %v3742_v7 = vunpack.c.l.b16 %v3673_v3  ;;  %v2651_v42 = vadd.f32 %v2571_v19, %v5553_v5 }
 0x1e7   : > { %4809 = vmatmul.msk.bf16.gmra.mxu0 %vm706_vm4, %v3764_v62  ;;  %v3391_v62 = vunpack.c.l.b16 %v3194_v10  ;;  %v3218_v5 = vsel %vm5072_vm3, %v3213_v23, %v6111_v25 }
 0x1e8   : > { %v1386_v31 = vpop.f32.mrf.mxu2  ;;  %4631 = vmatmul.msk.bf16.gmra.mxu1 %vm706_vm4, %v2503_v37  ;;  %v6118_v9 = vadd.f32 %v2296_v59, %v1725_v44  ;;  %v3225_v37 = vshll.u32 %v4668_v22, 16  ;;  %v3741_v59 = vunpack.c.l.b16 %v3670_v32 }
 0x1e9   : > { %v1420_v29 = vadd.f32 %v1386_v31, %v1066_v21  ;;  %v3676_v21 = vrot.slane %v6091_v45, 5  ;;  %v3415_v27 = vpack.c.b16 %v3392_v58, %v3391_v62  ;;  %v3223_v45 = vrot.slane %v3222_v8, 4 }
 0x1ea   : > { %6586 = vst [vmem:[#allocation5_spill] sm:$0xff] %v6118_v9  ;;  %v3227_v14 = vrot.slane %v3225_v37, 5  ;;  %v3239_v62 = vshll.u32 %v6135_v53, 16  ;;  %v3243_v58 = vshrl.u32 %v6135_v53, 16  ;;  %v3765_v2 = vpack.c.b16 %v3742_v7, %v3741_v59  ;;  %v4954_v59 = vld [vmem:[%s5060_s29 + $0x88] sm:$0xf] }
 0x1eb   : > { %v3678_v61 = vrot.slane %v3676_v21, 4  ;;  %v2504_v8 = vpack.c.b16 %v2482_v57, %v2481_v49  ;;  %v3677_v37 = vsel %vm5274_vm7, %v4794_v50, %v3676_v21  ;;  %v2421_v35 = vrot.slane %v4954_v59, 5  ;;  %v6182_v59 = vld [vmem:[%s5060_s29 + $0x9c] sm:$0xf] }
 0x1ec   : > { %v2298_v18 = vpop.f32.mrf.mxu0  ;;  %v3228_v19 = vsel %vm5072_vm3, %v3223_v45, %v3227_v14  ;;  %v3235_v7 = vrot.slane %v3233_v26, 5  ;;  %v6156_v23 = vrot.slane %v3239_v62, 5  ;;  %v3393_v45 = vunpack.c.l.b16 %v3218_v5  ;;  %v6160_v14 = vld [vmem:[%s5060_s29 + $0x98] sm:$0x1]  ;;  %v4956_v26 = vld [vmem:[%s5060_s29 + $0x8c] sm:$0x1] }
 0x1ed   : > { %v1692_v31 = vpop.f32.mrf.mxu3  ;;  %4760 = vmatmul.msk.bf16.gmra.mxu2 %vm706_vm4, %v4861_v1  ;;  %v2573_v10 = vpop.f32.mrf.mxu1  ;;  %v3679_v1 = vrot.slane %v4668_v22, 5  ;;  %v3394_v21 = vunpack.c.l.b16 %v3228_v19  ;;  %v3743_v50 = vunpack.c.l.b16 %v3677_v37  ;;  %v2424_v62 = vrot.slane %v4956_v26, 5 }
 0x1ee   : > { %v1726_v44 = vadd.f32 %v1692_v31, %v1420_v29  ;;  %v3230_v29 = vshrl.u32 %v6132_v4, 16  ;;  %v2652_v57 = vadd.f32 %v2573_v10, %v5566_v13  ;;  %v3249_v13 = vshll.u32 %v6160_v14, 16 }
 0x1ef   : > { %v3680_v31 = vsel %vm5274_vm7, %v3678_v61, %v3679_v1 }
 0x1f0   : > { %v2877_v32 = vpop.f32.mrf.mxu2  ;;  %v6149_v22 = vadd.f32 %v2298_v18, %v1726_v44  ;;  %v3232_v25 = vrot.slane %v3230_v29, 4  ;;  %v3245_v18 = vrot.slane %v3243_v58, 4  ;;  %v3744_v1 = vunpack.c.l.b16 %v3680_v31  ;;  %v4862_v58 = vld [vmem:[%s5060_s29 + $0x84] sm:$0xff] }
 0x1f1   : > { %v2957_v15 = vadd.f32 %v2877_v32, %v2651_v42  ;;  %v4955_v42 = vld [vmem:[%s5060_s29 + $0x84] sm:$0xf]  ;;  %v2423_v29 = vrot.slane %v2421_v35, 4 }
 0x1f2   : > { %4777 = vmatmul.msk.bf16.gmra.mxu3 %vm706_vm4, %v3415_v27  ;;  %6587 = vst [vmem:[#allocation6_spill] sm:$0xff] %v6149_v22  ;;  %v4616_v32 = vrot.slane %v4955_v42, 9  ;;  %v3766_v37 = vpack.c.b16 %v3744_v1, %v3743_v50  ;;  %v3683_v42 = vrot.slane %v6135_v53, 5  ;;  %v3686_v50 = vrot.slane %v6160_v14, 5 }
 0x1f3   : > { %v2425_v31 = vsel %vm5274_vm7, %v2423_v29, %v2424_v62  ;;  %v3257_v29 = vshll.u32 %v6182_v59, 16 }
 0x1f4   : > { %v3833_v3 = vpop.f32.mrf.mxu0  ;;  %v2422_v19 = vsel %vm5274_vm7, %v4616_v32, %v2421_v35  ;;  %v6187_v35 = vld [vmem:[%s5060_s29 + $0xa0] sm:$0xf] }
 0x1f5   : > { %v3483_v24 = vpop.f32.mrf.mxu3  ;;  %v2576_v27 = vpop.f32.mrf.mxu1  ;;  %v3263_v53 = vshll.u32 %v6187_v35, 16 }
 0x1f6   : > { %v3563_v44 = vadd.f32 %v3483_v24, %v2957_v15  ;;  %v3236_v15 = vor.u32 %v3235_v7, %v3232_v25  ;;  %v2653_v1 = vadd.f32 %v2576_v27, %v5579_v17  ;;  %v3685_v17 = vrot.slane %v3683_v42, 4  ;;  %v4957_v27 = vld [vmem:[%s5060_s29 + $0x94] sm:$0xf] }
 0x1f7   : > { %4810 = vmatmul.msk.bf16.gmra.mxu0 %vm706_vm4, %v3765_v2  ;;  %v3246_v2 = vor.u32 %v3245_v18, %v6156_v23  ;;  %v2428_v14 = vrot.slane %v4957_v27, 5  ;;  %v6207_v27 = vrot.slane %v3263_v53, 5 }
 0x1f8   : > { %v3913_v49 = vadd.f32 %v3833_v3, %v3563_v44  ;;  %v2879_v61 = vpop.f32.mrf.mxu2  ;;  %4632 = vmatmul.msk.bf16.gmra.mxu1 %vm706_vm4, %v2504_v8  ;;  %v3416_v8 = vpack.c.b16 %v3394_v21, %v3393_v45  ;;  %v3237_v7 = vrot.slane %v3236_v15, 4  ;;  %v3251_v44 = vrot.slane %v3249_v13, 5 }
 0x1f9   : > { %v2958_v5 = vadd.f32 %v2879_v61, %v2652_v57  ;;  %v3247_v18 = vrot.slane %v3246_v2, 4  ;;  %v2483_v45 = vunpack.c.l.b16 %v2422_v19  ;;  %v4795_v21 = vrot.slane %v6132_v4, 9 }
 0x1fa   : > { %v3945_v10 = vpack.c.bf16 %v3913_v49, %v3913_v49  ;;  %v2484_v57 = vunpack.c.l.b16 %v2425_v31  ;;  %v3254_v61 = vshrl.u32 %v6182_v59, 16  ;;  %v4081_v26 = vmul.f32 %v3913_v49, %v3913_v49 }
 0x1fb   : > { %v3267_v15 = vshrl.u32 %v6187_v35, 16  ;;  %v4010_v2 = vsel %vm706_vm4, %v3913_v49, 0.0  ;;  %v3242_v4 = vsel %vm5072_vm3, %v3237_v7, %v6156_v23  ;;  %v3259_v49 = vrot.slane %v3257_v29, 5 }
 0x1fc   : > { %3978 = vst.msk [vmem:[%s6170_s18] sm:$0xf] %vm3977_vm8, %v3945_v10  ;;  %v3835_v3 = vpop.f32.mrf.mxu0  ;;  %v2505_v31 = vpack.c.b16 %v2484_v57, %v2483_v45  ;;  %v4959_v45 = vld [vmem:[%s5060_s29 + $0x98] sm:$0x1]  ;;  %v3252_v29 = vsel %vm5072_vm3, %v3247_v18, %v3251_v44  ;;  %v3395_v53 = vunpack.c.l.b16 %v3242_v4  ;;  %v4863_v44 = vld [vmem:[%s5060_s29 + $0x90] sm:$0xff] }
 0x1fd   : > { %v3485_v24 = vpop.f32.mrf.mxu3  ;;  %4761 = vmatmul.msk.bf16.gmra.mxu2 %vm706_vm4, %v4862_v58  ;;  %v2578_v25 = vpop.f32.mrf.mxu1  ;;  %v2431_v57 = vrot.slane %v4959_v45, 5 }
 0x1fe   : > { %v3564_v32 = vadd.f32 %v3485_v24, %v2958_v5  ;;  %v3256_v24 = vrot.slane %v3254_v61, 4 }
 0x200   : > { %v3914_v62 = vadd.f32 %v3835_v3, %v3564_v32  ;;  %v2882_v58 = vpop.f32.mrf.mxu2  ;;  %v4113_v32 = vsel %vm706_vm4, %v4081_v26, 0.0  ;;  %v6214_v26 = vld [vmem:[%s5060_s29 + $0xa4] sm:$0x1] }
 0x201   : > { %v2959_v19 = vadd.f32 %v2882_v58, %v2653_v1  ;;  %v4958_v1 = vld [vmem:[%s5060_s29 + $0x90] sm:$0xf] }
 0x202   : > { %v3946_v13 = vpack.c.bf16 %v3914_v62, %v3914_v62  ;;  %v4011_v10 = vsel %vm706_vm4, %v3914_v62, 0.0  ;;  %v4082_v5 = vmul.f32 %v3914_v62, %v3914_v62  ;;  %4778 = vmatmul.msk.bf16.gmra.mxu3 %vm706_vm4, %v3416_v8  ;;  %v3269_v62 = vrot.slane %v3267_v15, 4 }
 0x203   : > { %v4012_v3 = vadd.f32 %v4011_v10, %v4010_v2  ;;  %v4617_v58 = vrot.slane %v4958_v1, 9  ;;  %v2430_v2 = vrot.slane %v2428_v14, 4  ;;  %v3684_v15 = vsel %vm5274_vm7, %v4795_v21, %v3683_v42 }
 0x204   : > { %3979 = vst.msk [vmem:[%s6170_s18 + $0x4] sm:$0xf] %vm3977_vm8, %v3946_v13  ;;  %v4114_v23 = vsel %vm706_vm4, %v4082_v5, 0.0  ;;  %v3838_v7 = vpop.f32.mrf.mxu0  ;;  %v3687_v13 = vsel %vm5274_vm7, %v3685_v17, %v3686_v50  ;;  %v2654_v5 = vadd.f32 %v2578_v25, %v5592_v34  ;;  %v3270_v18 = vor.u32 %v3269_v62, %v6207_v27 }
 0x205   : > { %v4115_v22 = vadd.f32 %v4114_v23, %v4113_v32  ;;  %v3488_v9 = vpop.f32.mrf.mxu3  ;;  %v2581_v8 = vpop.f32.mrf.mxu1  ;;  %v2432_v42 = vsel %vm5274_vm7, %v2430_v2, %v2431_v57  ;;  %v3273_v21 = vshll.u32 %v6214_v26, 16 }
 0x206   : > { %v3565_v61 = vadd.f32 %v3488_v9, %v2959_v19  ;;  %v3260_v9 = vor.u32 %v3259_v49, %v3256_v24  ;;  %v3396_v19 = vunpack.c.l.b16 %v3252_v29  ;;  %v3746_v24 = vunpack.c.l.b16 %v3687_v13 }
 0x207   : > { %4811 = vmatmul.msk.bf16.gmra.mxu0 %vm706_vm4, %v3766_v37  ;;  %v2429_v37 = vsel %vm5274_vm7, %v4617_v58, %v2428_v14  ;;  %v2486_v45 = vunpack.c.l.b16 %v2432_v42  ;;  %v3275_v57 = vrot.slane %v3273_v21, 5  ;;  %v4796_v13 = vrot.slane %v6182_v59, 9 }
 0x208   : > { %v3915_v10 = vadd.f32 %v3838_v7, %v3565_v61  ;;  %v2884_v32 = vpop.f32.mrf.mxu2  ;;  %4633 = vmatmul.msk.bf16.gmra.mxu1 %vm706_vm4, %v2505_v31  ;;  %v3745_v31 = vunpack.c.l.b16 %v3684_v15  ;;  %v3261_v14 = vrot.slane %v3260_v9, 4  ;;  %v3271_v7 = vrot.slane %v3270_v18, 4  ;;  %v6242_v9 = vld [vmem:[%s5060_s29 + $0xac] sm:$0xf] }
 0x209   : > { %v2960_v4 = vadd.f32 %v2884_v32, %v2654_v5  ;;  %v2485_v2 = vunpack.c.l.b16 %v2429_v37  ;;  %v3417_v29 = vpack.c.b16 %v3396_v19, %v3395_v53 }
 0x20a   : > { %v3947_v50 = vpack.c.bf16 %v3915_v10, %v3915_v10  ;;  %v4013_v34 = vsel %vm706_vm4, %v3915_v10, 0.0  ;;  %v4083_v25 = vmul.f32 %v3915_v10, %v3915_v10  ;;  %v3767_v15 = vpack.c.b16 %v3746_v24, %v3745_v31 }
 0x20b   : > { %v4014_v17 = vadd.f32 %v4013_v34, %v4012_v3  ;;  %v6236_v3 = vld [vmem:[%s5060_s29 + $0xa8] sm:$0xf]  ;;  %v3690_v10 = vrot.slane %v6187_v35, 5  ;;  %v2506_v37 = vpack.c.b16 %v2486_v45, %v2485_v2  ;;  %v3266_v53 = vsel %vm5072_vm3, %v3261_v14, %v6207_v27  ;;  %v4960_v35 = vld [vmem:[%s5060_s29 + $0xa0] sm:$0xf] }
 0x20c   : > { %3980 = vst.msk [vmem:[%s6170_s18 + $0x8] sm:$0xf] %vm3977_vm8, %v3947_v50  ;;  %v4116_v49 = vsel %vm706_vm4, %v4083_v25, 0.0  ;;  %v3840_v23 = vpop.f32.mrf.mxu0  ;;  %v3278_v18 = vshrl.u32 %v6236_v3, 16  ;;  %v3276_v59 = vsel %vm5072_vm3, %v3271_v7, %v3275_v57  ;;  %v2435_v19 = vrot.slane %v4960_v35, 5 }
 0x20d   : > { %v4117_v62 = vadd.f32 %v4116_v49, %v4115_v22  ;;  %v3490_v1 = vpop.f32.mrf.mxu3  ;;  %4762 = vmatmul.msk.bf16.gmra.mxu2 %vm706_vm4, %v4863_v44  ;;  %v2583_v58 = vpop.f32.mrf.mxu1  ;;  %v2655_v22 = vadd.f32 %v2581_v8, %v5605_v60  ;;  %v3281_v44 = vshll.u32 %v6236_v3, 16  ;;  %v3692_v34 = vrot.slane %v3690_v10, 4  ;;  %v4961_v2 = vld [vmem:[%s5060_s29 + $0x9c] sm:$0xf]  ;;  %v4962_v57 = vld [vmem:[%s5060_s29 + $0xa4] sm:$0x1] }
 0x20e   : > { %v3566_v61 = vadd.f32 %v3490_v1, %v2960_v4  ;;  %v3693_v25 = vrot.slane %v6214_v26, 5  ;;  %v3287_v27 = vshll.u32 %v6242_v9, 16  ;;  %v3280_v24 = vrot.slane %v3278_v18, 4 }
 0x20f   : > { %v3283_v49 = vrot.slane %v3281_v44, 5  ;;  %v2437_v45 = vrot.slane %v2435_v19, 4  ;;  %v2438_v26 = vrot.slane %v4962_v57, 5 }
 0x210   : > { %v3916_v5 = vadd.f32 %v3840_v23, %v3566_v61  ;;  %v2887_v32 = vpop.f32.mrf.mxu2  ;;  %v3291_v23 = vshrl.u32 %v6242_v9, 16  ;;  %v6267_v44 = vrot.slane %v3287_v27, 5 }
 0x211   : > { %v2961_v21 = vadd.f32 %v2887_v32, %v2655_v22  ;;  %v3691_v22 = vsel %vm5274_vm7, %v4796_v13, %v3690_v10  ;;  %v2439_v13 = vsel %vm5274_vm7, %v2437_v45, %v2438_v26  ;;  %v6277_v10 = vld [vmem:[%s5060_s29 + $0xb0] sm:$0x1]  ;;  %v3697_v45 = vrot.slane %v6242_v9, 5 }
 0x212   : > { %v3948_v42 = vpack.c.bf16 %v3916_v5, %v3916_v5  ;;  %v4015_v60 = vsel %vm706_vm4, %v3916_v5, 0.0  ;;  %v4084_v8 = vmul.f32 %v3916_v5, %v3916_v5  ;;  %4779 = vmatmul.msk.bf16.gmra.mxu3 %vm706_vm4, %v3417_v29  ;;  %v3397_v29 = vunpack.c.l.b16 %v3266_v53 }
 0x213   : > { %v4016_v50 = vadd.f32 %v4015_v60, %v4014_v17  ;;  %v4618_v17 = vrot.slane %v4961_v2, 9  ;;  %v3398_v5 = vunpack.c.l.b16 %v3276_v59  ;;  %v3293_v35 = vrot.slane %v3291_v23, 4 }
 0x214   : > { %3981 = vst.msk [vmem:[%s6170_s18 + $0xc] sm:$0xf] %vm3977_vm8, %v3948_v42  ;;  %v4118_v4 = vsel %vm706_vm4, %v4084_v8, 0.0  ;;  %v3843_v31 = vpop.f32.mrf.mxu0  ;;  %v4864_v42 = vld [vmem:[%s5060_s29 + $0x9c] sm:$0xff]  ;;  %v3694_v60 = vsel %vm5274_vm7, %v3692_v34, %v3693_v25 }
 0x215   : > { %v4119_v14 = vadd.f32 %v4118_v4, %v4117_v62  ;;  %v3493_v7 = vpop.f32.mrf.mxu3  ;;  %v2586_v1 = vpop.f32.mrf.mxu1  ;;  %v2656_v62 = vadd.f32 %v2583_v58, %v5618_v38  ;;  %v3284_v38 = vor.u32 %v3283_v49, %v3280_v24  ;;  %v3748_v27 = vunpack.c.l.b16 %v3694_v60 }
 0x216   : > { %v3567_v61 = vadd.f32 %v3493_v7, %v2961_v21  ;;  %v3747_v21 = vunpack.c.l.b16 %v3691_v22  ;;  %v3297_v4 = vshll.u32 %v6277_v10, 16  ;;  %v2657_v26 = vadd.f32 %v2586_v1, %v5630_v6 }
 0x217   : > { %4812 = vmatmul.msk.bf16.gmra.mxu0 %vm706_vm4, %v3767_v15  ;;  %v2436_v15 = vsel %vm5274_vm7, %v4618_v17, %v2435_v19  ;;  %v3294_v19 = vor.u32 %v3293_v35, %v6267_v44  ;;  %v3285_v7 = vrot.slane %v3284_v38, 4  ;;  %v3418_v17 = vpack.c.b16 %v3398_v5, %v3397_v29  ;;  %v6296_v29 = vld [vmem:[%s5060_s29 + $0xb8] sm:$0xf] }
 0x218   : > { %v3917_v32 = vadd.f32 %v3843_v31, %v3567_v61  ;;  %v2889_v18 = vpop.f32.mrf.mxu2  ;;  %4634 = vmatmul.msk.bf16.gmra.mxu1 %vm706_vm4, %v2506_v37  ;;  %v2487_v23 = vunpack.c.l.b16 %v2436_v15  ;;  %v3699_v15 = vrot.slane %v3697_v45, 4 }
 0x219   : > { %v2962_v59 = vadd.f32 %v2889_v18, %v2656_v62  ;;  %v3295_v22 = vrot.slane %v3294_v19, 4  ;;  %v3768_v62 = vpack.c.b16 %v3748_v27, %v3747_v21  ;;  %v3290_v35 = vsel %vm5072_vm3, %v3285_v7, %v6267_v44 }
 0x21a   : > { %v3949_v58 = vpack.c.bf16 %v3917_v32, %v3917_v32  ;;  %v4017_v53 = vsel %vm706_vm4, %v3917_v32, 0.0  ;;  %v4085_v37 = vmul.f32 %v3917_v32, %v3917_v32  ;;  %v3299_v32 = vrot.slane %v3297_v4, 5 }
 0x21b   : > { %v4018_v8 = vadd.f32 %v4017_v53, %v4016_v50  ;;  %v2488_v50 = vunpack.c.l.b16 %v2439_v13  ;;  %v3700_v53 = vrot.slane %v6277_v10, 5  ;;  %v3315_v27 = vshrl.u32 %v6296_v29, 16 }
 0x21c   : > { %3982 = vst.msk [vmem:[%s6170_s18 + $0x10] sm:$0xf] %vm3977_vm8, %v3949_v58  ;;  %v4120_v34 = vsel %vm706_vm4, %v4085_v37, 0.0  ;;  %v3845_v25 = vpop.f32.mrf.mxu0  ;;  %v3300_v58 = vsel %vm5072_vm3, %v3295_v22, %v3299_v32  ;;  %v3311_v37 = vshll.u32 %v6296_v29, 16  ;;  %v3399_v4 = vunpack.c.l.b16 %v3290_v35  ;;  %v6324_v35 = vld [vmem:[%s5060_s29 + $0xbc] sm:$0x1] }
 0x21d   : > { %v4121_v31 = vadd.f32 %v4120_v34, %v4119_v14  ;;  %v3495_v24 = vpop.f32.mrf.mxu3  ;;  %4763 = vmatmul.msk.bf16.gmra.mxu2 %vm706_vm4, %v4864_v42  ;;  %v2588_v49 = vpop.f32.mrf.mxu1  ;;  %v6289_v14 = vld [vmem:[%s5060_s29 + $0xb4] sm:$0xf]  ;;  %v2507_v18 = vpack.c.b16 %v2488_v50, %v2487_v23  ;;  %v4797_v42 = vrot.slane %v6236_v3, 9  ;;  %v4963_v34 = vld [vmem:[%s5060_s29 + $0xac] sm:$0xf] }
 0x21e   : > { %v3568_v2 = vadd.f32 %v3495_v24, %v2962_v59  ;;  %v3302_v13 = vshrl.u32 %v6289_v14, 16  ;;  %v3305_v38 = vshll.u32 %v6289_v14, 16  ;;  %v3400_v24 = vunpack.c.l.b16 %v3300_v58 }
 0x21f   : > { %v3698_v10 = vsel %vm5274_vm7, %v4797_v42, %v3697_v45  ;;  %v2658_v7 = vadd.f32 %v2588_v49, %v5643_v54  ;;  %v3317_v42 = vrot.slane %v3315_v27, 4 }
 0x220   : > { %v3918_v57 = vadd.f32 %v3845_v25, %v3568_v2  ;;  %v2892_v61 = vpop.f32.mrf.mxu2  ;;  %v2442_v25 = vrot.slane %v4963_v34, 5  ;;  %v3304_v23 = vrot.slane %v3302_v13, 4  ;;  %v3419_v27 = vpack.c.b16 %v3400_v24, %v3399_v4 }
 0x221   : > { %v2963_v1 = vadd.f32 %v2892_v61, %v2657_v26  ;;  %v6319_v26 = vrot.slane %v3311_v37, 5  ;;  %v4964_v61 = vld [vmem:[%s5060_s29 + $0xa8] sm:$0xf] }
 0x222   : > { %v3950_v9 = vpack.c.bf16 %v3918_v57, %v3918_v57  ;;  %v4019_v5 = vsel %vm706_vm4, %v3918_v57, 0.0  ;;  %v4086_v6 = vmul.f32 %v3918_v57, %v3918_v57  ;;  %4780 = vmatmul.msk.bf16.gmra.mxu3 %vm706_vm4, %v3418_v17  ;;  %v4865_v17 = vld [vmem:[%s5060_s29 + $0xa8] sm:$0xff]  ;;  %v3701_v57 = vsel %vm5274_vm7, %v3699_v15, %v3700_v53 }
 0x223   : > { %v4020_v60 = vadd.f32 %v4019_v5, %v4018_v8  ;;  %v4619_v22 = vrot.slane %v4964_v61, 9  ;;  %v2444_v32 = vrot.slane %v2442_v25, 4  ;;  %v3704_v61 = vrot.slane %v6296_v29, 5 }
 0x224   : > { %3983 = vst.msk [vmem:[%s6170_s18 + $0x14] sm:$0xf] %vm3977_vm8, %v3950_v9  ;;  %v4122_v3 = vsel %vm706_vm4, %v4086_v6, 0.0  ;;  %v3848_v44 = vpop.f32.mrf.mxu0  ;;  %v3749_v6 = vunpack.c.l.b16 %v3698_v10 }
 0x225   : > { %v4123_v59 = vadd.f32 %v4122_v3, %v4121_v31  ;;  %v3498_v21 = vpop.f32.mrf.mxu3  ;;  %v2591_v8 = vpop.f32.mrf.mxu1  ;;  %v3307_v31 = vrot.slane %v3305_v38, 5  ;;  %v3321_v3 = vshll.u32 %v6324_v35, 16 }
 0x226   : > { %v3569_v19 = vadd.f32 %v3498_v21, %v2963_v1  ;;  %v3750_v1 = vunpack.c.l.b16 %v3701_v57  ;;  %v3318_v21 = vor.u32 %v3317_v42, %v6319_v26 }
 0x227   : > { %4813 = vmatmul.msk.bf16.gmra.mxu0 %vm706_vm4, %v3768_v62  ;;  %v4965_v62 = vld [vmem:[%s5060_s29 + $0xb0] sm:$0x1]  ;;  %v3308_v15 = vor.u32 %v3307_v31, %v3304_v23  ;;  %v2659_v31 = vadd.f32 %v2591_v8, %v5656_v39  ;;  %v3323_v57 = vrot.slane %v3321_v3, 5 }
 0x228   : > { %v3919_v50 = vadd.f32 %v3848_v44, %v3569_v19  ;;  %v2894_v2 = vpop.f32.mrf.mxu2  ;;  %4635 = vmatmul.msk.bf16.gmra.mxu1 %vm706_vm4, %v2507_v18  ;;  %v2445_v45 = vrot.slane %v4965_v62, 5  ;;  %v6338_v19 = vld [vmem:[%s5060_s29 + $0xc0] sm:$0xf]  ;;  %v3769_v10 = vpack.c.b16 %v3750_v1, %v3749_v6 }
 0x229   : > { %v2964_v18 = vadd.f32 %v2894_v2, %v2658_v7  ;;  %v3309_v23 = vrot.slane %v3308_v15, 4  ;;  %v3326_v4 = vshrl.u32 %v6338_v19, 16  ;;  %v3329_v62 = vshll.u32 %v6338_v19, 16 }
 0x22a   : > { %v3951_v9 = vpack.c.bf16 %v3919_v50, %v3919_v50  ;;  %v4021_v54 = vsel %vm706_vm4, %v3919_v50, 0.0  ;;  %v4087_v49 = vmul.f32 %v3919_v50, %v3919_v50  ;;  %v2446_v37 = vsel %vm5274_vm7, %v2444_v32, %v2445_v45 }
 0x22b   : > { %v4022_v5 = vadd.f32 %v4021_v54, %v4020_v60  ;;  %v2443_v60 = vsel %vm5274_vm7, %v4619_v22, %v2442_v25  ;;  %v2490_v2 = vunpack.c.l.b16 %v2446_v37  ;;  %v3319_v25 = vrot.slane %v3318_v21, 4 }
 0x22c   : > { %3984 = vst.msk [vmem:[%s6170_s18 + $0x18] sm:$0xf] %vm3977_vm8, %v3951_v9  ;;  %v4124_v13 = vsel %vm706_vm4, %v4087_v49, 0.0  ;;  %v3850_v38 = vpop.f32.mrf.mxu0  ;;  %v2489_v7 = vunpack.c.l.b16 %v2443_v60  ;;  %v4966_v49 = vld [vmem:[%s5060_s29 + $0xb8] sm:$0xf] }
 0x22d   : > { %v4125_v44 = vadd.f32 %v4124_v13, %v4123_v59  ;;  %v3500_v58 = vpop.f32.mrf.mxu3  ;;  %4764 = vmatmul.msk.bf16.gmra.mxu2 %vm706_vm4, %v4865_v17  ;;  %v2593_v53 = vpop.f32.mrf.mxu1  ;;  %v6342_v17 = vld [vmem:[%s5060_s29 + $0xc4] sm:$0xf]  ;;  %v3706_v13 = vrot.slane %v3704_v61, 4  ;;  %v3324_v60 = vsel %vm5072_vm3, %v3319_v25, %v3323_v57 }
 0x22e   : > { %v3570_v34 = vadd.f32 %v3500_v58, %v2964_v18  ;;  %v3335_v45 = vshll.u32 %v6342_v17, 16  ;;  %v3339_v42 = vshrl.u32 %v6342_v17, 16  ;;  %v2508_v54 = vpack.c.b16 %v2490_v2, %v2489_v7  ;;  %v6370_v7 = vld [vmem:[%s5060_s29 + $0xc8] sm:$0x1]  ;;  %v4866_v2 = vld [vmem:[%s5060_s29 + $0xb4] sm:$0xff] }
 0x22f   : > { %v2449_v18 = vrot.slane %v4966_v49, 5  ;;  %v3314_v58 = vsel %vm5072_vm3, %v3309_v23, %v6319_v26  ;;  %v2660_v37 = vadd.f32 %v2593_v53, %v5669_v51  ;;  %v3402_v25 = vunpack.c.l.b16 %v3324_v60 }
 0x230   : > { %v3920_v59 = vadd.f32 %v3850_v38, %v3570_v34  ;;  %v2897_v50 = vpop.f32.mrf.mxu2  ;;  %v3707_v38 = vrot.slane %v6324_v35, 5  ;;  %v6364_v21 = vrot.slane %v3335_v45, 5  ;;  %v3341_v35 = vrot.slane %v3339_v42, 4 }
 0x231   : > { %v2965_v39 = vadd.f32 %v2897_v50, %v2659_v31  ;;  %v2451_v23 = vrot.slane %v2449_v18, 4  ;;  %v4968_v31 = vld [vmem:[%s5060_s29 + $0xbc] sm:$0x1] }
 0x232   : > { %v3952_v24 = vpack.c.bf16 %v3920_v59, %v3920_v59  ;;  %v4023_v22 = vsel %vm706_vm4, %v3920_v59, 0.0  ;;  %v4088_v32 = vmul.f32 %v3920_v59, %v3920_v59  ;;  %4781 = vmatmul.msk.bf16.gmra.mxu3 %vm706_vm4, %v3419_v27  ;;  %v4967_v59 = vld [vmem:[%s5060_s29 + $0xb4] sm:$0xf]  ;;  %v2452_v50 = vrot.slane %v4968_v31, 5 }
 0x233   : > { %v4024_v8 = vadd.f32 %v4023_v22, %v4022_v5  ;;  %v4798_v5 = vrot.slane %v6289_v14, 9  ;;  %v3331_v14 = vrot.slane %v3329_v62, 5  ;;  %v4620_v26 = vrot.slane %v4967_v59, 9 }
 0x234   : > { %3985 = vst.msk [vmem:[%s6170_s18 + $0x1c] sm:$0xf] %vm3977_vm8, %v3952_v24  ;;  %v4126_v29 = vsel %vm706_vm4, %v4088_v32, 0.0  ;;  %v3853_v9 = vpop.f32.mrf.mxu0  ;;  %v3708_v53 = vsel %vm5274_vm7, %v3706_v13, %v3707_v38  ;;  %v3345_v62 = vshll.u32 %v6370_v7, 16  ;;  %v3711_v59 = vrot.slane %v6342_v17, 5 }
 0x235   : > { %v4127_v6 = vadd.f32 %v4126_v29, %v4125_v44  ;;  %v3503_v1 = vpop.f32.mrf.mxu3  ;;  %v2596_v15 = vpop.f32.mrf.mxu1  ;;  %v3328_v44 = vrot.slane %v3326_v4, 4  ;;  %v3705_v51 = vsel %vm5274_vm7, %v4798_v5, %v3704_v61  ;;  %v2450_v61 = vsel %vm5274_vm7, %v4620_v26, %v2449_v18  ;;  %v6394_v26 = vld [vmem:[%s5060_s29 + $0xd0] sm:$0xf] }
 0x236   : > { %v3571_v3 = vadd.f32 %v3503_v1, %v2965_v39  ;;  %v2453_v29 = vsel %vm5274_vm7, %v2451_v23, %v2452_v50  ;;  %v3752_v1 = vunpack.c.l.b16 %v3708_v53 }
 0x237   : > { %4814 = vmatmul.msk.bf16.gmra.mxu0 %vm706_vm4, %v3769_v10  ;;  %v3401_v10 = vunpack.c.l.b16 %v3314_v58  ;;  %v3332_v39 = vor.u32 %v3331_v14, %v3328_v44  ;;  %v2492_v58 = vunpack.c.l.b16 %v2453_v29  ;;  %v6588_v44 = vld [vmem:[#allocation2_spill] sm:$0xff]  ;;  %v4799_v29 = vrot.slane %v6338_v19, 9 }
 0x238   : > { %v3921_v34 = vadd.f32 %v3853_v9, %v3571_v3  ;;  %v2899_v27 = vpop.f32.mrf.mxu2  ;;  %4636 = vmatmul.msk.bf16.gmra.mxu1 %vm706_vm4, %v2508_v54  ;;  %v3342_v9 = vor.u32 %v3341_v35, %v6364_v21  ;;  %v2491_v3 = vunpack.c.l.b16 %v2450_v61  ;;  %v4970_v19 = vld [vmem:[%s5060_s29 + $0xc0] sm:$0xf] }
 0x239   : > { %v2966_v22 = vadd.f32 %v2899_v27, %v2660_v37  ;;  %v3420_v38 = vpack.c.b16 %v3402_v25, %v3401_v10  ;;  %v3333_v60 = vrot.slane %v3332_v39, 4  ;;  %v2661_v37 = vadd.f32 %v2596_v15, %v6588_v44 }
 0x23a   : > { %v3953_v57 = vpack.c.bf16 %v3921_v34, %v3921_v34  ;;  %v4025_v4 = vsel %vm706_vm4, %v3921_v34, 0.0  ;;  %v4089_v24 = vmul.f32 %v3921_v34, %v3921_v34  ;;  %v3343_v35 = vrot.slane %v3342_v9, 4  ;;  %v6390_v34 = vld [vmem:[%s5060_s29 + $0xcc] sm:$0xf] }
 0x23b   : > { %v4026_v32 = vadd.f32 %v4025_v4, %v4024_v8  ;;  %v3751_v8 = vunpack.c.l.b16 %v3705_v51  ;;  %v2509_v10 = vpack.c.b16 %v2492_v58, %v2491_v3  ;;  %v3338_v25 = vsel %vm5072_vm3, %v3333_v60, %v6364_v21  ;;  %v4867_v3 = vld [vmem:[%s5060_s29 + $0xc0] sm:$0xff] }
 0x23c   : > { %3986 = vst.msk [vmem:[%s6170_s18 + $0x20] sm:$0xf] %vm3977_vm8, %v3953_v57  ;;  %v4128_v45 = vsel %vm706_vm4, %v4089_v24, 0.0  ;;  %v3855_v42 = vpop.f32.mrf.mxu0  ;;  %v3350_v51 = vshrl.u32 %v6390_v34, 16  ;;  %v3353_v4 = vshll.u32 %v6390_v34, 16  ;;  %v3359_v24 = vshll.u32 %v6394_v26, 16 }
 0x23d   : > { %v4129_v54 = vadd.f32 %v4128_v45, %v4127_v6  ;;  %v3505_v49 = vpop.f32.mrf.mxu3  ;;  %4765 = vmatmul.msk.bf16.gmra.mxu2 %vm706_vm4, %v4866_v2  ;;  %v2598_v5 = vpop.f32.mrf.mxu1  ;;  %v3347_v6 = vrot.slane %v3345_v62, 5  ;;  %v3770_v27 = vpack.c.b16 %v3752_v1, %v3751_v8  ;;  %v4969_v62 = vld [vmem:[%s5060_s29 + $0xc4] sm:$0xf]  ;;  %v3363_v45 = vshrl.u32 %v6394_v26, 16 }
 0x23e   : > { %v3572_v13 = vadd.f32 %v3505_v49, %v2966_v22  ;;  %v2456_v21 = vrot.slane %v4969_v62, 5  ;;  %v3403_v61 = vunpack.c.l.b16 %v3338_v25  ;;  %v3713_v49 = vrot.slane %v3711_v59, 4 }
 0x23f   : > { %v3348_v57 = vsel %vm5072_vm3, %v3343_v35, %v3347_v6  ;;  %v3352_v8 = vrot.slane %v3350_v51, 4  ;;  %v3355_v58 = vrot.slane %v3353_v4, 5  ;;  %v6417_v60 = vrot.slane %v3359_v24, 5  ;;  %v6422_v35 = vld [vmem:[%s5060_s29 + $0xd4] sm:$0x1] }
 0x240   : > { %v3922_v18 = vadd.f32 %v3855_v42, %v3572_v13  ;;  %v2902_v14 = vpop.f32.mrf.mxu2  ;;  %v3404_v9 = vunpack.c.l.b16 %v3348_v57  ;;  %v2662_v13 = vadd.f32 %v2598_v5, %v5713_v43  ;;  %v2458_v44 = vrot.slane %v2456_v21, 4 }
 0x241   : > { %v2967_v2 = vadd.f32 %v2902_v14, %v2661_v37  ;;  %v4971_v37 = vld [vmem:[%s5060_s29 + $0xc8] sm:$0x1]  ;;  %v3356_v25 = vor.u32 %v3355_v58, %v3352_v8  ;;  %v3369_v51 = vshll.u32 %v6422_v35, 16 }
 0x242   : > { %v3954_v23 = vpack.c.bf16 %v3922_v18, %v3922_v18  ;;  %v4027_v31 = vsel %vm706_vm4, %v3922_v18, 0.0  ;;  %v4090_v50 = vmul.f32 %v3922_v18, %v3922_v18  ;;  %4782 = vmatmul.msk.bf16.gmra.mxu3 %vm706_vm4, %v3420_v38  ;;  %v4621_v18 = vrot.slane %v4970_v19, 9 }
 0x243   : > { %v4028_v15 = vadd.f32 %v4027_v31, %v4026_v32  ;;  %v2459_v14 = vrot.slane %v4971_v37, 5  ;;  %v3712_v31 = vsel %vm5274_vm7, %v4799_v29, %v3711_v59  ;;  %v6589_v29 = vld [vmem:[#allocation3_spill] sm:$0xff]  ;;  %v3718_v37 = vrot.slane %v6394_v26, 5 }
 0x244   : > { %3987 = vst.msk [vmem:[%s6170_s18 + $0x24] sm:$0xf] %vm3977_vm8, %v3954_v23  ;;  %v4130_v17 = vsel %vm706_vm4, %v4090_v50, 0.0  ;;  %v3858_v53 = vpop.f32.mrf.mxu0  ;;  %v3753_v62 = vunpack.c.l.b16 %v3712_v31 }
 0x245   : > { %v4131_v22 = vadd.f32 %v4130_v17, %v4129_v54  ;;  %v3508_v32 = vpop.f32.mrf.mxu3  ;;  %v2601_v39 = vpop.f32.mrf.mxu1  ;;  %v3714_v54 = vrot.slane %v6370_v7, 5  ;;  %v3365_v7 = vrot.slane %v3363_v45, 4  ;;  %v2460_v59 = vsel %vm5274_vm7, %v2458_v44, %v2459_v14 }
 0x246   : > { %v3573_v42 = vadd.f32 %v3508_v32, %v2967_v2  ;;  %v3421_v32 = vpack.c.b16 %v3404_v9, %v3403_v61  ;;  %v2494_v8 = vunpack.c.l.b16 %v2460_v59 }
 0x247   : > { %4815 = vmatmul.msk.bf16.gmra.mxu0 %vm706_vm4, %v3770_v27  ;;  %v3366_v4 = vor.u32 %v3365_v7, %v6417_v60 }
 0x248   : > { %v3923_v1 = vadd.f32 %v3858_v53, %v3573_v42  ;;  %v2904_v38 = vpop.f32.mrf.mxu2  ;;  %4637 = vmatmul.msk.bf16.gmra.mxu1 %vm706_vm4, %v2509_v10  ;;  %v3715_v10 = vsel %vm5274_vm7, %v3713_v49, %v3714_v54 }
 0x249   : > { %v2968_v5 = vadd.f32 %v2904_v38, %v2662_v13  ;;  %v3754_v45 = vunpack.c.l.b16 %v3715_v10  ;;  %v3367_v13 = vrot.slane %v3366_v4, 4  ;;  %v3371_v38 = vrot.slane %v3369_v51, 5  ;;  %v4868_v51 = vld [vmem:[%s5060_s29 + $0xcc] sm:$0xff] }
 0x24a   : > { %v3955_v6 = vpack.c.bf16 %v3923_v1, %v3923_v1  ;;  %v4029_v27 = vsel %vm706_vm4, %v3923_v1, 0.0  ;;  %v4091_v43 = vmul.f32 %v3923_v1, %v3923_v1  ;;  %v3357_v1 = vrot.slane %v3356_v25, 4 }
 0x24b   : > { %v4030_v23 = vadd.f32 %v4029_v27, %v4028_v15  ;;  %v2457_v15 = vsel %vm5274_vm7, %v4621_v18, %v2456_v21  ;;  %v3771_v9 = vpack.c.b16 %v3754_v45, %v3753_v62  ;;  %v3720_v10 = vrot.slane %v3718_v37, 4 }
 0x24c   : > { %3988 = vst.msk [vmem:[%s6170_s18 + $0x28] sm:$0xf] %vm3977_vm8, %v3955_v6  ;;  %v4132_v50 = vsel %vm706_vm4, %v4091_v43, 0.0  ;;  %v3860_v2 = vpop.f32.mrf.mxu0  ;;  %v2493_v54 = vunpack.c.l.b16 %v2457_v15  ;;  %v3362_v43 = vsel %vm5072_vm3, %v3357_v1, %v6417_v60  ;;  %v3721_v25 = vrot.slane %v6422_v35, 5 }
 0x24d   : > { %v4133_v17 = vadd.f32 %v4132_v50, %v4131_v22  ;;  %v3510_v53 = vpop.f32.mrf.mxu3  ;;  %4766 = vmatmul.msk.bf16.gmra.mxu2 %vm706_vm4, %v4867_v3  ;;  %v2603_v57 = vpop.f32.mrf.mxu1  ;;  %v2663_v22 = vadd.f32 %v2601_v39, %v6589_v29  ;;  %v6590_v50 = vld [vmem:[#allocation4_spill] sm:$0xff] }
 0x24e   : > { %v3574_v24 = vadd.f32 %v3510_v53, %v2968_v5  ;;  %v2510_v44 = vpack.c.b16 %v2494_v8, %v2493_v54  ;;  %v3372_v5 = vsel %vm5072_vm3, %v3367_v13, %v3371_v38  ;;  %v3722_v35 = vsel %vm5274_vm7, %v3720_v10, %v3721_v25 }
 0x24f   : > { %v3406_v60 = vunpack.c.l.b16 %v3372_v5 }
 0x250   : > { %v3924_v42 = vadd.f32 %v3860_v2, %v3574_v24  ;;  %v2907_v49 = vpop.f32.mrf.mxu2  ;;  %v2664_v2 = vadd.f32 %v2603_v57, %v6590_v50 }
 0x251   : > { %v2969_v19 = vadd.f32 %v2907_v49, %v2663_v22  ;;  %v3756_v49 = vunpack.c.l.b16 %v3722_v35 }
 0x252   : > { %v3956_v21 = vpack.c.bf16 %v3924_v42, %v3924_v42  ;;  %v4031_v3 = vsel %vm706_vm4, %v3924_v42, 0.0  ;;  %v4092_v58 = vmul.f32 %v3924_v42, %v3924_v42  ;;  %4783 = vmatmul.msk.bf16.gmra.mxu3 %vm706_vm4, %v3421_v32 }
 0x253   : > { %v4032_v61 = vadd.f32 %v4031_v3, %v4030_v23  ;;  %v4800_v23 = vrot.slane %v6390_v34, 9 }
 0x254   : > { %3989 = vst.msk [vmem:[%s6170_s18 + $0x2c] sm:$0xf] %vm3977_vm8, %v3956_v21  ;;  %v4134_v18 = vsel %vm706_vm4, %v4092_v58, 0.0  ;;  %v3863_v39 = vpop.f32.mrf.mxu0 }
 0x255   : > { %v4135_v14 = vadd.f32 %v4134_v18, %v4133_v17  ;;  %v3513_v7 = vpop.f32.mrf.mxu3  ;;  %v2606_v6 = vpop.f32.mrf.mxu1  ;;  %v3405_v17 = vunpack.c.l.b16 %v3362_v43  ;;  %v3719_v24 = vsel %vm5274_vm7, %v4800_v23, %v3718_v37 }
 0x256   : > { %v3575_v27 = vadd.f32 %v3513_v7, %v2969_v19  ;;  %v3755_v22 = vunpack.c.l.b16 %v3719_v24  ;;  %v2665_v8 = vadd.f32 %v2606_v6, %v5763_v63 }
 0x257   : > { %4816 = vmatmul.msk.bf16.gmra.mxu0 %vm706_vm4, %v3771_v9  ;;  %v3422_v29 = vpack.c.b16 %v3406_v60, %v3405_v17 }
 0x258   : > { %v3925_v31 = vadd.f32 %v3863_v39, %v3575_v27  ;;  %v2909_v26 = vpop.f32.mrf.mxu2  ;;  %4638 = vmatmul.msk.bf16.gmra.mxu1 %vm706_vm4, %v2510_v44  ;;  %v3772_v58 = vpack.c.b16 %v3756_v49, %v3755_v22 }
 0x259   : > { %v2970_v59 = vadd.f32 %v2909_v26, %v2664_v2 }
 0x25a   : > { %v3957_v53 = vpack.c.bf16 %v3925_v31, %v3925_v31  ;;  %v4033_v36 = vsel %vm706_vm4, %v3925_v31, 0.0  ;;  %v4093_v15 = vmul.f32 %v3925_v31, %v3925_v31 }
 0x25b   : > { %v4034_v4 = vadd.f32 %v4033_v36, %v4032_v61 }
 0x25c   : > { %3990 = vst.msk [vmem:[%s6170_s18 + $0x30] sm:$0xf] %vm3977_vm8, %v3957_v53  ;;  %v4136_v34 = vsel %vm706_vm4, %v4093_v15, 0.0  ;;  %v3865_v57 = vpop.f32.mrf.mxu0 }
 0x25d   : > { %v4137_v32 = vadd.f32 %v4136_v34, %v4135_v14  ;;  %v3515_v62 = vpop.f32.mrf.mxu3  ;;  %4767 = vmatmul.msk.bf16.gmra.mxu2 %vm706_vm4, %v4868_v51  ;;  %v2608_v45 = vpop.f32.mrf.mxu1 }
 0x25e   : > { %v3576_v42 = vadd.f32 %v3515_v62, %v2970_v59  ;;  %v2666_v37 = vadd.f32 %v2608_v45, %v5787_v12 }
 0x260   : > { %v3926_v54 = vadd.f32 %v3865_v57, %v3576_v42  ;;  %v2912_v1 = vpop.f32.mrf.mxu2 }
 0x261   : > { %v2971_v46 = vadd.f32 %v2912_v1, %v2665_v8 }
 0x262   : > { %v3958_v13 = vpack.c.bf16 %v3926_v54, %v3926_v54  ;;  %v4035_v38 = vsel %vm706_vm4, %v3926_v54, 0.0  ;;  %v4094_v21 = vmul.f32 %v3926_v54, %v3926_v54  ;;  %4784 = vmatmul.msk.bf16.gmra.mxu3 %vm706_vm4, %v3422_v29 }
 0x263   : > { %v4036_v3 = vadd.f32 %v4035_v38, %v4034_v4 }
 0x264   : > { %3991 = vst.msk [vmem:[%s6170_s18 + $0x34] sm:$0xf] %vm3977_vm8, %v3958_v13  ;;  %v4138_v19 = vsel %vm706_vm4, %v4094_v21, 0.0  ;;  %v3868_v61 = vpop.f32.mrf.mxu0 }
 0x265   : > { %v4139_v9 = vadd.f32 %v4138_v19, %v4137_v32  ;;  %v3518_v18 = vpop.f32.mrf.mxu3  ;;  %v2611_v39 = vpop.f32.mrf.mxu1 }
 0x266   : > { %v3577_v63 = vadd.f32 %v3518_v18, %v2971_v46  ;;  %v2667_v12 = vadd.f32 %v2611_v39, %v5808_v40 }
 0x267   : > { %4817 = vmatmul.msk.bf16.gmra.mxu0 %vm706_vm4, %v3772_v58 }
 0x268   : > { %v3927_v44 = vadd.f32 %v3868_v61, %v3577_v63  ;;  %v2914_v14 = vpop.f32.mrf.mxu2 }
 0x269   : > { %v2972_v43 = vadd.f32 %v2914_v14, %v2666_v37 }
 0x26a   : > { %v3959_v7 = vpack.c.bf16 %v3927_v44, %v3927_v44  ;;  %v4037_v6 = vsel %vm706_vm4, %v3927_v44, 0.0  ;;  %v4095_v27 = vmul.f32 %v3927_v44, %v3927_v44 }
 0x26b   : > { %v4038_v5 = vadd.f32 %v4037_v6, %v4036_v3 }
 0x26c   : > { %3992 = vst.msk [vmem:[%s6170_s18 + $0x38] sm:$0xf] %vm3977_vm8, %v3959_v7  ;;  %v4140_v23 = vsel %vm706_vm4, %v4095_v27, 0.0  ;;  %v3870_v31 = vpop.f32.mrf.mxu0 }
 0x26d   : > { %v4141_v50 = vadd.f32 %v4140_v23, %v4139_v9  ;;  %v3520_v2 = vpop.f32.mrf.mxu3  ;;  %v2613_v26 = vpop.f32.mrf.mxu1 }
 0x26e   : > { %v3578_v10 = vadd.f32 %v3520_v2, %v2972_v43  ;;  %v2668_v40 = vadd.f32 %v2613_v26, %v5833_v56 }
 0x270   : > { %v3928_v25 = vadd.f32 %v3870_v31, %v3578_v10  ;;  %v2917_v51 = vpop.f32.mrf.mxu2 }
 0x271   : > { %v2973_v36 = vadd.f32 %v2917_v51, %v2667_v12 }
 0x272   : > { %v3960_v17 = vpack.c.bf16 %v3928_v25, %v3928_v25  ;;  %v4039_v60 = vsel %vm706_vm4, %v3928_v25, 0.0  ;;  %v4096_v53 = vmul.f32 %v3928_v25, %v3928_v25 }
 0x273   : > { %v4040_v15 = vadd.f32 %v4039_v60, %v4038_v5 }
 0x274   : > { %3993 = vst.msk [vmem:[%s6170_s18 + $0x3c] sm:$0xf] %vm3977_vm8, %v3960_v17  ;;  %v4142_v59 = vsel %vm706_vm4, %v4096_v53, 0.0  ;;  %v3873_v4 = vpop.f32.mrf.mxu0 }
 0x275   : > { %v4143_v34 = vadd.f32 %v4142_v59, %v4141_v50  ;;  %v3523_v57 = vpop.f32.mrf.mxu3  ;;  %v2616_v24 = vpop.f32.mrf.mxu1 }
 0x276   : > { %v3579_v35 = vadd.f32 %v3523_v57, %v2973_v36  ;;  %v2669_v56 = vadd.f32 %v2616_v24, %v5853_v52 }
 0x278   : > { %v3929_v32 = vadd.f32 %v3873_v4, %v3579_v35  ;;  %v2919_v62 = vpop.f32.mrf.mxu2 }
 0x279   : > { %v2974_v22 = vadd.f32 %v2919_v62, %v2668_v40 }
 0x27a   : > { %v3961_v45 = vpack.c.bf16 %v3929_v32, %v3929_v32  ;;  %v4041_v42 = vsel %vm706_vm4, %v3929_v32, 0.0  ;;  %v4097_v29 = vmul.f32 %v3929_v32, %v3929_v32 }
 0x27b   : > { %v4042_v49 = vadd.f32 %v4041_v42, %v4040_v15 }
 0x27c   : > { %3994 = vst.msk [vmem:[%s6170_s18 + $0x40] sm:$0xf] %vm3977_vm8, %v3961_v45  ;;  %v4144_v54 = vsel %vm706_vm4, %v4097_v29, 0.0  ;;  %v3875_v8 = vpop.f32.mrf.mxu0 }
 0x27d   : > { %v4145_v1 = vadd.f32 %v4144_v54, %v4143_v34  ;;  %v3525_v13 = vpop.f32.mrf.mxu3  ;;  %v2618_v38 = vpop.f32.mrf.mxu1 }
 0x27e   : > { %v3580_v21 = vadd.f32 %v3525_v13, %v2974_v22  ;;  %v2670_v52 = vadd.f32 %v2618_v38, %v5877_v0 }
 0x280   : > { %v3930_v46 = vadd.f32 %v3875_v8, %v3580_v21  ;;  %v2922_v3 = vpop.f32.mrf.mxu2 }
 0x281   : > { %v2975_v9 = vadd.f32 %v2922_v3, %v2669_v56 }
 0x282   : > { %v3962_v58 = vpack.c.bf16 %v3930_v46, %v3930_v46  ;;  %v4043_v19 = vsel %vm706_vm4, %v3930_v46, 0.0  ;;  %v4098_v61 = vmul.f32 %v3930_v46, %v3930_v46 }
 0x283   : > { %v4044_v18 = vadd.f32 %v4043_v19, %v4042_v49 }
 0x284   : > { %3995 = vst.msk [vmem:[%s6170_s18 + $0x44] sm:$0xf] %vm3977_vm8, %v3962_v58  ;;  %v4146_v39 = vsel %vm706_vm4, %v4098_v61, 0.0  ;;  %v3878_v63 = vpop.f32.mrf.mxu0 }
 0x285   : > { %v4147_v44 = vadd.f32 %v4146_v39, %v4145_v1  ;;  %v3528_v37 = vpop.f32.mrf.mxu3  ;;  %v2621_v14 = vpop.f32.mrf.mxu1 }
 0x286   : > { %v3581_v7 = vadd.f32 %v3528_v37, %v2975_v9  ;;  %v2671_v0 = vadd.f32 %v2621_v14, %v5898_v33 }
 0x288   : > { %v3931_v6 = vadd.f32 %v3878_v63, %v3581_v7  ;;  %v2924_v27 = vpop.f32.mrf.mxu2 }
 0x289   : > { %v2976_v31 = vadd.f32 %v2924_v27, %v2670_v52 }
 0x28a   : > { %v3963_v43 = vpack.c.bf16 %v3931_v6, %v3931_v6  ;;  %v4045_v5 = vsel %vm706_vm4, %v3931_v6, 0.0  ;;  %v4099_v23 = vmul.f32 %v3931_v6, %v3931_v6 }
 0x28b   : > { %v4046_v50 = vadd.f32 %v4045_v5, %v4044_v18 }
 0x28c   : > { %3996 = vst.msk [vmem:[%s6170_s18 + $0x48] sm:$0xf] %vm3977_vm8, %v3963_v43  ;;  %v4148_v2 = vsel %vm706_vm4, %v4099_v23, 0.0  ;;  %v3880_v26 = vpop.f32.mrf.mxu0 }
 0x28d   : > { %v4149_v10 = vadd.f32 %v4148_v2, %v4147_v44  ;;  %v3530_v25 = vpop.f32.mrf.mxu3  ;;  %v2623_v12 = vpop.f32.mrf.mxu1 }
 0x28e   : > { %v3582_v51 = vadd.f32 %v3530_v25, %v2976_v31  ;;  %v2672_v33 = vadd.f32 %v2623_v12, %v5923_v55 }
 0x290   : > { %v3932_v17 = vadd.f32 %v3880_v26, %v3582_v51  ;;  %v2927_v60 = vpop.f32.mrf.mxu2 }
 0x291   : > { %v2977_v59 = vadd.f32 %v2927_v60, %v2671_v0 }
 0x292   : > { %v3964_v53 = vpack.c.bf16 %v3932_v17, %v3932_v17  ;;  %v4047_v36 = vsel %vm706_vm4, %v3932_v17, 0.0  ;;  %v4100_v15 = vmul.f32 %v3932_v17, %v3932_v17 }
 0x293   : > { %v4048_v4 = vadd.f32 %v4047_v36, %v4046_v50 }
 0x294   : > { %3997 = vst.msk [vmem:[%s6170_s18 + $0x4c] sm:$0xf] %vm3977_vm8, %v3964_v53  ;;  %v4150_v34 = vsel %vm706_vm4, %v4100_v15, 0.0  ;;  %v3883_v57 = vpop.f32.mrf.mxu0 }
 0x295   : > { %v4151_v24 = vadd.f32 %v4150_v34, %v4149_v10  ;;  %v3533_v35 = vpop.f32.mrf.mxu3  ;;  %v2626_v32 = vpop.f32.mrf.mxu1 }
 0x296   : > { %v3583_v40 = vadd.f32 %v3533_v35, %v2977_v59  ;;  %v2673_v55 = vadd.f32 %v2626_v32, %v5943_v47 }
 0x298   : > { %v3933_v62 = vadd.f32 %v3883_v57, %v3583_v40  ;;  %v2929_v45 = vpop.f32.mrf.mxu2 }
 0x299   : > { %v2978_v49 = vadd.f32 %v2929_v45, %v2672_v33 }
 0x29a   : > { %v3965_v42 = vpack.c.bf16 %v3933_v62, %v3933_v62  ;;  %v4049_v29 = vsel %vm706_vm4, %v3933_v62, 0.0  ;;  %v4101_v22 = vmul.f32 %v3933_v62, %v3933_v62 }
 0x29b   : > { %v4050_v54 = vadd.f32 %v4049_v29, %v4048_v4 }
 0x29c   : > { %3998 = vst.msk [vmem:[%s6170_s18 + $0x50] sm:$0xf] %vm3977_vm8, %v3965_v42  ;;  %v4152_v8 = vsel %vm706_vm4, %v4101_v22, 0.0  ;;  %v3885_v1 = vpop.f32.mrf.mxu0 }
 0x29d   : > { %v4153_v13 = vadd.f32 %v4152_v8, %v4151_v24  ;;  %v3535_v38 = vpop.f32.mrf.mxu3  ;;  %v2628_v21 = vpop.f32.mrf.mxu1 }
 0x29e   : > { %v3584_v46 = vadd.f32 %v3535_v38, %v2978_v49  ;;  %v2674_v47 = vadd.f32 %v2628_v21, %v5966_v11 }
 0x2a0   : > { %v3934_v56 = vadd.f32 %v3885_v1, %v3584_v46  ;;  %v2932_v3 = vpop.f32.mrf.mxu2 }
 0x2a1   : > { %v2979_v9 = vadd.f32 %v2932_v3, %v2673_v55 }
 0x2a2   : > { %v3966_v58 = vpack.c.bf16 %v3934_v56, %v3934_v56  ;;  %v4051_v19 = vsel %vm706_vm4, %v3934_v56, 0.0  ;;  %v4102_v61 = vmul.f32 %v3934_v56, %v3934_v56 }
 0x2a3   : > { %v4052_v18 = vadd.f32 %v4051_v19, %v4050_v54 }
 0x2a4   : > { %3999 = vst.msk [vmem:[%s6170_s18 + $0x54] sm:$0xf] %vm3977_vm8, %v3966_v58  ;;  %v4154_v39 = vsel %vm706_vm4, %v4102_v61, 0.0  ;;  %v3888_v63 = vpop.f32.mrf.mxu0 }
 0x2a5   : > { %v4155_v44 = vadd.f32 %v4154_v39, %v4153_v13  ;;  %v3538_v37 = vpop.f32.mrf.mxu3  ;;  %v2631_v14 = vpop.f32.mrf.mxu1 }
 0x2a6   : > { %v3585_v7 = vadd.f32 %v3538_v37, %v2979_v9  ;;  %v2675_v11 = vadd.f32 %v2631_v14, %v5986_v41 }
 0x2a8   : > { %v3935_v6 = vadd.f32 %v3888_v63, %v3585_v7  ;;  %v2934_v52 = vpop.f32.mrf.mxu2 }
 0x2a9   : > { %v2980_v23 = vadd.f32 %v2934_v52, %v2674_v47 }
 0x2aa   : > { %v3967_v27 = vpack.c.bf16 %v3935_v6, %v3935_v6  ;;  %v4053_v43 = vsel %vm706_vm4, %v3935_v6, 0.0  ;;  %v4103_v5 = vmul.f32 %v3935_v6, %v3935_v6 }
 0x2ab   : > { %v4054_v31 = vadd.f32 %v4053_v43, %v4052_v18 }
 0x2ac   : > { %4000 = vst.msk [vmem:[%s6170_s18 + $0x58] sm:$0xf] %vm3977_vm8, %v3967_v27  ;;  %v4156_v50 = vsel %vm706_vm4, %v4103_v5, 0.0  ;;  %v3890_v2 = vpop.f32.mrf.mxu0 }
 0x2ad   : > { %v4157_v26 = vadd.f32 %v4156_v50, %v4155_v44  ;;  %v3540_v10 = vpop.f32.mrf.mxu3  ;;  %v2633_v25 = vpop.f32.mrf.mxu1 }
 0x2ae   : > { %v3586_v12 = vadd.f32 %v3540_v10, %v2980_v23  ;;  %v2676_v41 = vadd.f32 %v2633_v25, %v6007_v30 }
 0x2b0   : > { %v3936_v51 = vadd.f32 %v3890_v2, %v3586_v12  ;;  %v2937_v17 = vpop.f32.mrf.mxu2 }
 0x2b1   : > { %v2981_v36 = vadd.f32 %v2937_v17, %v2675_v11 }
 0x2b2   : > { %v3968_v0 = vpack.c.bf16 %v3936_v51, %v3936_v51  ;;  %v4055_v60 = vsel %vm706_vm4, %v3936_v51, 0.0  ;;  %v4104_v53 = vmul.f32 %v3936_v51, %v3936_v51 }
 0x2b3   : > { %v4056_v15 = vadd.f32 %v4055_v60, %v4054_v31 }
 0x2b4   : > { %4001 = vst.msk [vmem:[%s6170_s18 + $0x5c] sm:$0xf] %vm3977_vm8, %v3968_v0  ;;  %v4158_v59 = vsel %vm706_vm4, %v4104_v53, 0.0  ;;  %v3893_v4 = vpop.f32.mrf.mxu0 }
 0x2b5   : > { %v4159_v34 = vadd.f32 %v4158_v59, %v4157_v26  ;;  %v3543_v57 = vpop.f32.mrf.mxu3  ;;  %v2636_v24 = vpop.f32.mrf.mxu1 }
 0x2b6   : > { %v3587_v35 = vadd.f32 %v3543_v57, %v2981_v36  ;;  %v2677_v30 = vadd.f32 %v2636_v24, %v6029_v16 }
 0x2b8   : > { %v3937_v32 = vadd.f32 %v3893_v4, %v3587_v35  ;;  %v2939_v40 = vpop.f32.mrf.mxu2 }
 0x2b9   : > { %v2982_v42 = vadd.f32 %v2939_v40, %v2676_v41 }
 0x2ba   : > { %v3969_v62 = vpack.c.bf16 %v3937_v32, %v3937_v32  ;;  %v4057_v33 = vsel %vm706_vm4, %v3937_v32, 0.0  ;;  %v4105_v45 = vmul.f32 %v3937_v32, %v3937_v32 }
 0x2bb   : > { %v4058_v29 = vadd.f32 %v4057_v33, %v4056_v15 }
 0x2bc   : > { %4002 = vst.msk [vmem:[%s6170_s18 + $0x60] sm:$0xf] %vm3977_vm8, %v3969_v62  ;;  %v4160_v22 = vsel %vm706_vm4, %v4105_v45, 0.0  ;;  %v3895_v49 = vpop.f32.mrf.mxu0 }
 0x2bd   : > { %v4161_v54 = vadd.f32 %v4160_v22, %v4159_v34  ;;  %v3545_v8 = vpop.f32.mrf.mxu3  ;;  %v2638_v1 = vpop.f32.mrf.mxu1 }
 0x2be   : > { %v3588_v13 = vadd.f32 %v3545_v8, %v2982_v42  ;;  %v2678_v16 = vadd.f32 %v2638_v1, %v6051_v28 }
 0x2c0   : > { %v3938_v38 = vadd.f32 %v3895_v49, %v3588_v13  ;;  %v2942_v21 = vpop.f32.mrf.mxu2 }
 0x2c1   : > { %v2983_v3 = vadd.f32 %v2942_v21, %v2677_v30 }
 0x2c2   : > { %v3970_v46 = vpack.c.bf16 %v3938_v38, %v3938_v38  ;;  %v4059_v56 = vsel %vm706_vm4, %v3938_v38, 0.0  ;;  %v4106_v55 = vmul.f32 %v3938_v38, %v3938_v38 }
 0x2c3   : > { %v4060_v58 = vadd.f32 %v4059_v56, %v4058_v29  ;;  %v6591_v29 = vld [vmem:[#allocation5_spill] sm:$0xff] }
 0x2c4   : > { %4003 = vst.msk [vmem:[%s6170_s18 + $0x64] sm:$0xf] %vm3977_vm8, %v3970_v46  ;;  %v4162_v19 = vsel %vm706_vm4, %v4106_v55, 0.0  ;;  %v3898_v61 = vpop.f32.mrf.mxu0 }
 0x2c5   : > { %v4163_v9 = vadd.f32 %v4162_v19, %v4161_v54  ;;  %v3548_v18 = vpop.f32.mrf.mxu3  ;;  %v2641_v63 = vpop.f32.mrf.mxu1 }
 0x2c6   : > { %v3589_v39 = vadd.f32 %v3548_v18, %v2983_v3  ;;  %v2679_v2 = vadd.f32 %v2641_v63, %v6070_v20 }
 0x2c8   : > { %v3939_v44 = vadd.f32 %v3898_v61, %v3589_v39  ;;  %v2944_v37 = vpop.f32.mrf.mxu2 }
 0x2c9   : > { %v2984_v47 = vadd.f32 %v2944_v37, %v2678_v16 }
 0x2ca   : > { %v3971_v14 = vpack.c.bf16 %v3939_v44, %v3939_v44  ;;  %v4061_v7 = vsel %vm706_vm4, %v3939_v44, 0.0  ;;  %v4107_v6 = vmul.f32 %v3939_v44, %v3939_v44 }
 0x2cb   : > { %v4062_v52 = vadd.f32 %v4061_v7, %v4060_v58  ;;  %v6592_v58 = vld [vmem:[#allocation6_spill] sm:$0xff] }
 0x2cc   : > { %4004 = vst.msk [vmem:[%s6170_s18 + $0x68] sm:$0xf] %vm3977_vm8, %v3971_v14  ;;  %v4164_v27 = vsel %vm706_vm4, %v4107_v6, 0.0  ;;  %v3900_v43 = vpop.f32.mrf.mxu0 }
 0x2cd   : > { %v4165_v5 = vadd.f32 %v4164_v27, %v4163_v9  ;;  %v3550_v23 = vpop.f32.mrf.mxu3  ;;  %v2643_v26 = vpop.f32.mrf.mxu1 }
 0x2ce   : > { %v3590_v31 = vadd.f32 %v3550_v23, %v2984_v47  ;;  %v2680_v20 = vadd.f32 %v2643_v26, %v6099_v48 }
 0x2d0   : > { %v3940_v50 = vadd.f32 %v3900_v43, %v3590_v31  ;;  %v2947_v28 = vpop.f32.mrf.mxu2 }
 0x2d1   : > { %v2985_v51 = vadd.f32 %v2947_v28, %v2679_v2 }
 0x2d2   : > { %v3972_v10 = vpack.c.bf16 %v3940_v50, %v3940_v50  ;;  %v4063_v25 = vsel %vm706_vm4, %v3940_v50, 0.0  ;;  %v4108_v12 = vmul.f32 %v3940_v50, %v3940_v50 }
 0x2d3   : > { %v4064_v11 = vadd.f32 %v4063_v25, %v4062_v52 }
 0x2d4   : > { %4005 = vst.msk [vmem:[%s6170_s18 + $0x6c] sm:$0xf] %vm3977_vm8, %v3972_v10  ;;  %v4166_v17 = vsel %vm706_vm4, %v4108_v12, 0.0  ;;  %v3903_v0 = vpop.f32.mrf.mxu0 }
 0x2d5   : > { %v4167_v60 = vadd.f32 %v4166_v17, %v4165_v5  ;;  %v3553_v53 = vpop.f32.mrf.mxu3  ;;  %v2646_v35 = vpop.f32.mrf.mxu1 }
 0x2d6   : > { %v3591_v36 = vadd.f32 %v3553_v53, %v2985_v51  ;;  %v2681_v48 = vadd.f32 %v2646_v35, %v6591_v29 }
 0x2d8   : > { %v3941_v15 = vadd.f32 %v3903_v0, %v3591_v36  ;;  %v2949_v59 = vpop.f32.mrf.mxu2 }
 0x2d9   : > { %v2986_v24 = vadd.f32 %v2949_v59, %v2680_v20 }
 0x2da   : > { %v3973_v4 = vpack.c.bf16 %v3941_v15, %v3941_v15  ;;  %v4065_v34 = vsel %vm706_vm4, %v3941_v15, 0.0  ;;  %v4109_v57 = vmul.f32 %v3941_v15, %v3941_v15 }
 0x2db   : > { %v4066_v32 = vadd.f32 %v4065_v34, %v4064_v11 }
 0x2dc   : > { %4006 = vst.msk [vmem:[%s6170_s18 + $0x70] sm:$0xf] %vm3977_vm8, %v3973_v4  ;;  %v4168_v41 = vsel %vm706_vm4, %v4109_v57, 0.0  ;;  %v3905_v40 = vpop.f32.mrf.mxu0 }
 0x2dd   : > { %v4169_v62 = vadd.f32 %v4168_v41, %v4167_v60  ;;  %v3555_v33 = vpop.f32.mrf.mxu3  ;;  %v2648_v30 = vpop.f32.mrf.mxu1 }
 0x2de   : > { %v3592_v45 = vadd.f32 %v3555_v33, %v2986_v24  ;;  %v2682_v19 = vadd.f32 %v2648_v30, %v6592_v58 }
 0x2e0   : > { %v3942_v42 = vadd.f32 %v3905_v40, %v3592_v45  ;;  %v2952_v22 = vpop.f32.mrf.mxu2 }
 0x2e1   : > { %v2987_v1 = vadd.f32 %v2952_v22, %v2681_v48 }
 0x2e2   : > { %v3974_v49 = vpack.c.bf16 %v3942_v42, %v3942_v42  ;;  %v4067_v54 = vsel %vm706_vm4, %v3942_v42, 0.0  ;;  %v4110_v8 = vmul.f32 %v3942_v42, %v3942_v42 }
 0x2e3   : > { %v4068_v13 = vadd.f32 %v4067_v54, %v4066_v32 }
 0x2e4   : > { %4007 = vst.msk [vmem:[%s6170_s18 + $0x74] sm:$0xf] %vm3977_vm8, %v3974_v49  ;;  %v4170_v38 = vsel %vm706_vm4, %v4110_v8, 0.0  ;;  %v3908_v46 = vpop.f32.mrf.mxu0 }
 0x2e5   : > { %v4171_v21 = vadd.f32 %v4170_v38, %v4169_v62  ;;  %v3558_v56 = vpop.f32.mrf.mxu3 }
 0x2e6   : > { %v3593_v55 = vadd.f32 %v3558_v56, %v2987_v1 }
 0x2e8   : > { %v3943_v3 = vadd.f32 %v3908_v46, %v3593_v55  ;;  %v2954_v61 = vpop.f32.mrf.mxu2 }
 0x2e9   : > { %v2988_v63 = vadd.f32 %v2954_v61, %v2682_v19 }
 0x2ea   : > { %v3975_v9 = vpack.c.bf16 %v3943_v3, %v3943_v3  ;;  %v4069_v18 = vsel %vm706_vm4, %v3943_v3, 0.0  ;;  %v4111_v39 = vmul.f32 %v3943_v3, %v3943_v3 }
 0x2eb   : > { %v4070_v44 = vadd.f32 %v4069_v18, %v4068_v13 }
 0x2ec   : > { %4008 = vst.msk [vmem:[%s6170_s18 + $0x78] sm:$0xf] %vm3977_vm8, %v3975_v9  ;;  %v4172_v16 = vsel %vm706_vm4, %v4111_v39, 0.0  ;;  %v3910_v6 = vpop.f32.mrf.mxu0 }
 0x2ed   : > { %v4173_v37 = vadd.f32 %v4172_v16, %v4171_v21  ;;  %v3560_v14 = vpop.f32.mrf.mxu3 }
 0x2ee   : > { %v3594_v7 = vadd.f32 %v3560_v14, %v2988_v63 }
 0x2f0   : > { %v3944_v47 = vadd.f32 %v3910_v6, %v3594_v7 }
 0x2f2   : > { %v3976_v52 = vpack.c.bf16 %v3944_v47, %v3944_v47  ;;  %v4071_v27 = vsel %vm706_vm4, %v3944_v47, 0.0  ;;  %v4112_v43 = vmul.f32 %v3944_v47, %v3944_v47 }
 0x2f3   : > { %v4072_v5 = vadd.f32 %v4071_v27, %v4070_v44 }
 0x2f4   : > { %4009 = vst.msk [vmem:[%s6170_s18 + $0x7c] sm:$0xf] %vm3977_vm8, %v3976_v52  ;;  %v4174_v23 = vsel %vm706_vm4, %v4112_v43, 0.0 }
 0x2f5   : > { %v4073_v31 = vrot.slane %v4072_v5, 4  ;;  %v4175_v50 = vadd.f32 %v4174_v23, %v4173_v37 }
 0x2f7   : > { %v4074_v2 = vadd.f32 %v4073_v31, %v4072_v5  ;;  %v4176_v28 = vrot.slane %v4175_v50, 4 }
 0x2f9   : > { %v4075_v26 = vrot.slane %v4074_v2, 2  ;;  %v4177_v10 = vadd.f32 %v4176_v28, %v4175_v50 }
 0x2fb   : > { %v4076_v25 = vadd.f32 %v4075_v26, %v4074_v2  ;;  %v4178_v12 = vrot.slane %v4177_v10, 2 }
 0x2fd   : > { %v4077_v51 = vrot.slane %v4076_v25, 1  ;;  %v4179_v11 = vadd.f32 %v4178_v12, %v4177_v10 }
 0x2ff   : > { %v4078_v17 = vadd.f32 %v4077_v51, %v4076_v25  ;;  %v4180_v0 = vrot.slane %v4179_v11, 1 }
 0x301   : > { %4080 = vst.msk [vmem:[%s214_s22] sm:$0x1] %vm4079_vm9, %v4078_v17  ;;  %v4181_v60 = vadd.f32 %v4180_v0, %v4179_v11 }
 0x303   : > { %4182 = vst.msk [vmem:[%s214_s22 + $0x1] sm:$0x1] %vm4079_vm9, %v4181_v60 }
 0x304 PF: > { %s14_s14 = sadd.s32 1, %s4994_s14   ;;  %s6593_s12 = smov %s4990_s13 }
 0x305   : > { %p11_p5 = scmp.ge.s32.totalorder %s14_s14, 4   ;;  %s6594_s13 = smov %s6596_s15 }
 0x307   :  { %13 = sbr.rel (!%p11_p5) target bundleno = 2 (0x2), region = 81 }

// kernel: double_conv.4
= control target key start
LH: loop header
LB: loop body
LE: loop exit
PB: predicated region body
PF: predicated region fallthrough
CT: control target
= control target key end

     0   :  { %s5878_s18 = smov 0   ;;  %s5880_s19 = smov 0   ;;  %s7692_s0 = inlined_call_operand.vmem [shape: bf16[2,16,16,8], index: 0, kind: input, shape index: {}]   ;;  %s7693_s1 = inlined_call_operand.vmem [shape: f32[1,8], index: 1, kind: input, shape index: {}]   ;;  %s7694_s2 = inlined_call_operand.vmem [shape: f32[1,8], index: 2, kind: input, shape index: {}]   ;;  %s7695_s3 = inlined_call_operand.vmem [shape: bf16[3,3,8,8], index: 3, kind: input, shape index: {}]   ;;  %s7696_s4 = inlined_call_operand.vmem [shape: bf16[2,16,16,8], index: 4, kind: output, shape index: {0}]   ;;  %s7697_s5 = inlined_call_operand.vmem [shape: f32[2,1,2,8], index: 5, kind: output, shape index: {1}]  }
   0x1   :  { %s5882_s20 = smov 0  }
   0x2 LB: > { %s28_s21 = sadd.s32 1, %s5841_s19  ;;  %p5080_p0 = scmp.ge.s32.totalorder %s5845_s20, 1  ;;  %s5845_s20 = sphi %s5882_s20, %s16_s20   ;;  %s5841_s19 = sphi %s5880_s19, %s7731_s19   ;;  %s5837_s18 = sphi %s5878_s18, %s7730_s18  }
   0x3   : > { %p30_p1 = scmp.ge.s32.totalorder %s28_s21, 2  ;;  %p206_p2 = scmp.lt.s32.totalorder %s5845_s20, 3 }
   0x5   : > { %s7733_s21 = smov (%p30_p1, %s28_s21), 0  ;;  %p207_p3 = pnand %p5080_p0, %p206_p2 }
   0x7   : > { %210 = sbr.rel (%p207_p3) target bundleno = 874 (0x36a), region = 36 }
   0xc   : > { %v5086_v0 = vld [vmem:[%s7695_s3 + $0x4] sm:$0xf]  ;;  %vm1510_vm0 = vcmask 1043456   ;;  %p246_p4 = scmp.lt.s32.totalorder %s5837_s18, 1  ;;  %vm442_vm1 = vcmask 60416   ;;  %vm445_vm2 = vcmask 57344  }
   0xd   : > { %v1512_v1 = vsel %vm1510_vm0, %v5086_v0, 0  ;;  %v5847_v2 = vmov 0   ;;  %v5917_v3 = vld [vmem:[%s7693_s1] ss:$0 sm:$0xff]  ;;  %vm530_vm3 = vsmask.f32 256 }
   0xe   : > { %5705 = vmatpush.bf16.msra.mxu1 %v1512_v1  ;;  %5706 = vmatpush.bf16.msra.mxu2 %v1512_v1  ;;  %s7735_s18 = smov (!%p246_p4, %s5837_s18), 1  ;;  %456 = vst.msk [vmem:[#allocation2 + $0x30] sm:$0xf] %vm442_vm1, %v5847_v2  ;;  %v5928_v8 = vld [vmem:[%s7694_s2] ss:$0 sm:$0xff]  ;;  %vm5981_vm8 = vmand %vm445_vm2, %vm530_vm3  ;;  %vm1461_vm11 = vcmask 64512  }
   0xf   : > { %5707 = vmatpush.bf16.msra.mxu3 %v1512_v1  ;;  %1521 = vmatpush.bf16.msra.mxu0 %v1512_v1  ;;  %s5576_s24 = sshll.u32 %s7735_s18, 7  ;;  %457 = vst.msk [vmem:[#allocation2 + $0x34] sm:$0xf] %vm442_vm1, %v5847_v2  ;;  %vm531_vm4 = vsmask.f32 4368  ;;  %vm1839_vm13 = vcmask 1042432  }
  0x10   : > { %s5912_s27 = scalar_lea.vmem %s7692_s0, %s5576_s24  ;;  %458 = vst.msk [vmem:[#allocation2 + $0x38] sm:$0x1] %vm445_vm2, %v5847_v2  ;;  %vm855_vm5 = vsmask.f32 7938  ;;  %vm5964_vm6 = vmor %vm530_vm3, %vm531_vm4  ;;  %vm1024_vm9 = vsmask.f32 3328  ;;  %s7289_s13 = scalar_lea.vmem %s7696_s4, %s5576_s24 }
  0x11   : > { %v5692_v4 = vld [vmem:[%s5912_s27 + $0x18] sm:$0xff]   ;;  %443 = vst.msk [vmem:[#allocation2] sm:$0xf] %vm442_vm1, %v5847_v2  ;;  %vm5972_vm7 = vmand %vm442_vm1, %vm855_vm5  ;;  %vm1025_vm10 = vsmask.f32 7440  ;;  %vm1840_vm14 = vcmask 1046532  }
  0x12   : > { %v5696_v5 = vld [vmem:[%s5912_s27 + $0x38] sm:$0xff]   ;;  %v5640_v6 = vunpack.c.l.bf16 %v5692_v4  ;;  %v5641_v7 = vunpack.c.h.bf16 %v5692_v4  ;;  %444 = vst.msk [vmem:[#allocation2 + $0x4] sm:$0xf] %vm442_vm1, %v5847_v2  ;;  %vm6050_vm12 = vmor %vm1024_vm9, %vm1025_vm10  ;;  %s5085_s24 = sshll.u32 %s7735_s18, 1 }
  0x13   : > { %v5656_v9 = vunpack.c.l.bf16 %v5696_v5  ;;  %v5657_v10 = vunpack.c.h.bf16 %v5696_v5  ;;  %446 = vst.msk [vmem:[#allocation2 + $0x8] sm:$0x1] %vm445_vm2, %v5847_v2  ;;  %v5700_v19 = vld [vmem:[%s5912_s27 + $0x58] sm:$0xff]   ;;  %v5693_v5 = vld [vmem:[%s5912_s27 + $0x20] sm:$0xff]   ;;  %vm6505_vm15 = vmor %vm1839_vm13, %vm1840_vm14  ;;  %s268_s16 = scalar_lea.vmem %s7697_s5, %s5085_s24 }
  0x14   : > { %v348_v11 = vmul.f32 %v5917_v3, %v5640_v6  ;;  %v349_v12 = vmul.f32 %v5917_v3, %v5641_v7  ;;  %447 = vst.msk [vmem:[#allocation2 + $0xc] sm:$0xf] %vm442_vm1, %v5847_v2  ;;  %v5672_v20 = vunpack.c.l.bf16 %v5700_v19  ;;  %v5673_v21 = vunpack.c.h.bf16 %v5700_v19  ;;  %v5697_v6 = vld [vmem:[%s5912_s27 + $0x40] sm:$0xff]  }
  0x15   : > { %v356_v13 = vmul.f32 %v5917_v3, %v5656_v9  ;;  %v357_v14 = vmul.f32 %v5917_v3, %v5657_v10  ;;  %448 = vst.msk [vmem:[#allocation2 + $0x10] sm:$0xf] %vm442_vm1, %v5847_v2  ;;  %v880_v41 = vld [vmem:[#allocation2 + $0x30] sm:$0xf]  ;;  %v5644_v10 = vunpack.c.l.bf16 %v5693_v5 }
  0x16   : > { %v384_v15 = vadd.f32 %v5928_v8, %v348_v11  ;;  %v385_v16 = vadd.f32 %v5928_v8, %v349_v12  ;;  %449 = vst.msk [vmem:[#allocation2 + $0x14] sm:$0x1] %vm445_vm2, %v5847_v2  ;;  %v364_v26 = vmul.f32 %v5917_v3, %v5672_v20  ;;  %v365_v29 = vmul.f32 %v5917_v3, %v5673_v21 }
  0x17   : > { %v392_v17 = vadd.f32 %v5928_v8, %v356_v13  ;;  %v393_v18 = vadd.f32 %v5928_v8, %v357_v14  ;;  %450 = vst.msk [vmem:[#allocation2 + $0x18] sm:$0xf] %vm442_vm1, %v5847_v2  ;;  %v884_v44 = vld [vmem:[#allocation2 + $0x38] sm:$0x1]  ;;  %v5645_v11 = vunpack.c.h.bf16 %v5693_v5  ;;  %v5660_v12 = vunpack.c.l.bf16 %v5697_v6 }
  0x18   : > { %v416_v22 = vmax.f32 %v384_v15, 0.0  ;;  %v417_v23 = vmax.f32 %v385_v16, 0.0  ;;  %451 = vst.msk [vmem:[#allocation2 + $0x1c] sm:$0xf] %vm442_vm1, %v5847_v2  ;;  %v400_v37 = vadd.f32 %v5928_v8, %v364_v26  ;;  %v401_v42 = vadd.f32 %v5928_v8, %v365_v29 }
  0x19   : > { %v424_v24 = vmax.f32 %v392_v17, 0.0  ;;  %452 = vst.msk [vmem:[#allocation2 + $0x20] sm:$0x1] %vm445_vm2, %v5847_v2  ;;  %v425_v25 = vmax.f32 %v393_v18, 0.0  ;;  %v5661_v17 = vunpack.c.h.bf16 %v5697_v6  ;;  %v350_v21 = vmul.f32 %v5917_v3, %v5644_v10 }
  0x1a   : > { %v504_v27 = vpack.c.bf16 %v416_v22, %v416_v22  ;;  %v505_v28 = vpack.c.bf16 %v417_v23, %v417_v23  ;;  %453 = vst.msk [vmem:[#allocation2 + $0x24] sm:$0xf] %vm442_vm1, %v5847_v2  ;;  %v432_v51 = vmax.f32 %v400_v37, 0.0  ;;  %v433_v55 = vmax.f32 %v401_v42, 0.0 }
  0x1b   : > { %454 = vst.msk [vmem:[#allocation2 + $0x28] sm:$0xf] %vm442_vm1, %v5847_v2  ;;  %v512_v30 = vpack.c.bf16 %v424_v24, %v424_v24  ;;  %v513_v36 = vpack.c.bf16 %v425_v25, %v425_v25  ;;  %v351_v22 = vmul.f32 %v5917_v3, %v5645_v11  ;;  %v358_v26 = vmul.f32 %v5917_v3, %v5660_v12 }
  0x1c   : > { %v585_v31 = vshrl.u32 %v504_v27, 16  ;;  %v588_v32 = vshll.u32 %v504_v27, 16  ;;  %v593_v33 = vshrl.u32 %v505_v28, 16  ;;  %v596_v34 = vshll.u32 %v505_v28, 16  ;;  %455 = vst.msk [vmem:[#allocation2 + $0x2c] sm:$0x1] %vm445_vm2, %v5847_v2 }
  0x1d   : > { %459 = vst.msk [vmem:[#allocation2 + $0x3c] sm:$0xf] %vm442_vm1, %v5847_v2  ;;  %v653_v45 = vshrl.u32 %v512_v30, 16  ;;  %v661_v50 = vshrl.u32 %v513_v36, 16  ;;  %v656_v57 = vshll.u32 %v512_v30, 16  ;;  %v6002_v58 = vpack.c.bf16 %v432_v51, %v432_v51 }
  0x1e   : > { %v587_v38 = vrot.slane %v585_v31, 7  ;;  %v595_v39 = vrot.slane %v593_v33, 7  ;;  %460 = vst.msk [vmem:[#allocation2 + $0x40] sm:$0xf] %vm442_vm1, %v5847_v2  ;;  %v6008_v60 = vpack.c.bf16 %v433_v55, %v433_v55  ;;  %v664_v61 = vshll.u32 %v513_v36, 16 }
  0x1f   : > { %461 = vst.msk [vmem:[#allocation2 + $0x44] sm:$0x1] %vm445_vm2, %v5847_v2  ;;  %v6000_v56 = vrot.slane %v653_v45, 7  ;;  %v6006_v59 = vrot.slane %v661_v50, 7  ;;  %v721_v1 = vshrl.u32 %v6002_v58, 16  ;;  %v724_v4 = vshll.u32 %v6002_v58, 16 }
  0x20   : > { %v590_v46 = vor.u32 %v588_v32, %v587_v38  ;;  %v591_v47 = vrot.slane %v587_v38, 4  ;;  %v598_v48 = vor.u32 %v596_v34, %v595_v39  ;;  %v600_v49 = vrot.slane %v595_v39, 4  ;;  %462 = vst.msk [vmem:[#allocation2 + $0x48] sm:$0xf] %vm442_vm1, %v5847_v2  ;;  %v975_v58 = vld [vmem:[#allocation2] sm:$0xf] }
  0x21   : > { %463 = vst.msk [vmem:[#allocation2 + $0x4c] sm:$0xf] %vm442_vm1, %v5847_v2  ;;  %v659_v62 = vrot.slane %v6000_v56, 4  ;;  %v668_v63 = vrot.slane %v6006_v59, 4  ;;  %v6019_v0 = vor.u32 %v656_v57, %v6000_v56  ;;  %v729_v9 = vshrl.u32 %v6008_v60, 16 }
  0x22   : > { %v599_v52 = vsel %vm5964_vm6, %v591_v47, %v598_v48  ;;  %v881_v53 = vsel %vm5972_vm7, %v590_v46, %v880_v41  ;;  %v885_v54 = vsel %vm5981_vm8, %v600_v49, %v884_v44  ;;  %464 = vst.msk [vmem:[#allocation2 + $0x50] sm:$0x1] %vm445_vm2, %v5847_v2  ;;  %v666_v16 = vor.u32 %v664_v61, %v6006_v59  ;;  %v5701_v47 = vld [vmem:[%s5912_s27 + $0x60] sm:$0xff]  }
  0x23   : > { %882 = vst [vmem:[#allocation2 + $0x30] sm:$0xf] %v881_v53  ;;  %v386_v29 = vadd.f32 %v5928_v8, %v350_v21  ;;  %v387_v30 = vadd.f32 %v5928_v8, %v351_v22  ;;  %v6044_v32 = vrot.slane %v721_v1, 7  ;;  %v359_v33 = vmul.f32 %v5917_v3, %v5661_v17  ;;  %v1023_v59 = vld [vmem:[%s7695_s3] sm:$0xf] }
  0x24   : > { %883 = vst.msk [vmem:[#allocation2 + $0x34] sm:$0xf] %vm442_vm1, %v599_v52  ;;  %v394_v34 = vadd.f32 %v5928_v8, %v358_v26  ;;  %v6060_v44 = vsel %vm5964_vm6, %v659_v62, %v666_v16  ;;  %v6062_v45 = vrot.slane %v729_v9, 7  ;;  %v732_v46 = vshll.u32 %v6008_v60, 16  ;;  %v976_v60 = vld [vmem:[#allocation2 + $0x4] sm:$0xf] }
  0x25   : > { %886 = vst [vmem:[#allocation2 + $0x38] sm:$0x1] %v885_v54  ;;  %v418_v39 = vmax.f32 %v386_v29, 0.0  ;;  %v419_v41 = vmax.f32 %v387_v30, 0.0  ;;  %v395_v51 = vadd.f32 %v5928_v8, %v359_v33  ;;  %v6078_v53 = vor.u32 %v724_v4, %v6044_v32 }
  0x26   : > { %465 = vst.msk [vmem:[#allocation2 + $0x54] sm:$0xf] %vm442_vm1, %v5847_v2  ;;  %v727_v54 = vrot.slane %v6044_v32, 4  ;;  %v426_v55 = vmax.f32 %v394_v34, 0.0  ;;  %v5676_v61 = vunpack.c.l.bf16 %v5701_v47  ;;  %v5677_v62 = vunpack.c.h.bf16 %v5701_v47 }
  0x27   : > { %466 = vst.msk [vmem:[#allocation2 + $0x58] sm:$0xf] %vm442_vm1, %v5847_v2  ;;  %v6068_v49 = vpack.c.bf16 %v418_v39, %v418_v39  ;;  %v6070_v50 = vpack.c.bf16 %v419_v41, %v419_v41  ;;  %v1028_v4 = vshrl.u32 %v975_v58, 16  ;;  %v1031_v5 = vshll.u32 %v975_v58, 16 }
  0x28   : > { %467 = vst.msk [vmem:[#allocation2 + $0x5c] sm:$0x1] %vm445_vm2, %v5847_v2  ;;  %v1037_v6 = vshll.u32 %v976_v60, 16  ;;  %v427_v11 = vmax.f32 %v395_v51, 0.0  ;;  %v734_v16 = vor.u32 %v732_v46, %v6062_v45  ;;  %v736_v17 = vrot.slane %v6062_v45, 4 }
  0x29   : > { %468 = vst.msk [vmem:[#allocation2 + $0x60] sm:$0xf] %vm442_vm1, %v5847_v2  ;;  %v602_v9 = vshrl.u32 %v6068_v49, 16  ;;  %v610_v10 = vshrl.u32 %v6070_v50, 16  ;;  %v605_v29 = vshll.u32 %v6068_v49, 16  ;;  %v613_v34 = vshll.u32 %v6070_v50, 16 }
  0x2a   : > { %v987_v7 = vld [vmem:[#allocation2 + $0x30] sm:$0xf]  ;;  %469 = vst.msk [vmem:[#allocation2 + $0x64] sm:$0xf] %vm442_vm1, %v5847_v2  ;;  %v6112_v30 = vpack.c.bf16 %v427_v11, %v427_v11 }
  0x2b   : > { %v988_v13 = vld [vmem:[#allocation2 + $0x34] sm:$0xf]  ;;  %v1124_v14 = vshrl.u32 %v987_v7, 16  ;;  %v1127_v15 = vshll.u32 %v987_v7, 16  ;;  %470 = vst.msk [vmem:[#allocation2 + $0x68] sm:$0x1] %vm445_vm2, %v5847_v2 }
  0x2c   : > { %v989_v18 = vld [vmem:[#allocation2 + $0x38] sm:$0x1]  ;;  %v1133_v19 = vshll.u32 %v988_v13, 16  ;;  %v1137_v20 = vshrl.u32 %v988_v13, 16  ;;  %471 = vst.msk [vmem:[#allocation2 + $0x6c] sm:$0xf] %vm442_vm1, %v5847_v2 }
  0x2d   : > { %v1126_v23 = vrot.slane %v1124_v14, 4  ;;  %v1129_v24 = vrot.slane %v1127_v15, 5  ;;  %v1143_v25 = vshll.u32 %v989_v18, 16  ;;  %472 = vst.msk [vmem:[#allocation2 + $0x70] sm:$0xf] %vm442_vm1, %v5847_v2  ;;  %v1041_v7 = vshrl.u32 %v976_v60, 16 }
  0x2e   : > { %v1135_v27 = vrot.slane %v1133_v19, 5  ;;  %v1139_v28 = vrot.slane %v1137_v20, 4  ;;  %473 = vst.msk [vmem:[#allocation2 + $0x74] sm:$0x1] %vm445_vm2, %v5847_v2  ;;  %v1030_v13 = vrot.slane %v1028_v4, 4  ;;  %v1033_v14 = vrot.slane %v1031_v5, 5 }
  0x2f   : > { %v1130_v31 = vor.u32 %v1129_v24, %v1126_v23  ;;  %474 = vst.msk [vmem:[#allocation2 + $0x78] sm:$0xf] %vm442_vm1, %v5847_v2  ;;  %v1145_v38 = vrot.slane %v1143_v25, 5  ;;  %v1039_v15 = vrot.slane %v1037_v6, 5  ;;  %v977_v18 = vld [vmem:[#allocation2 + $0x8] sm:$0x1]  ;;  %v6097_v20 = vpack.c.bf16 %v426_v55, %v426_v55 }
  0x30   : > { %v1140_v37 = vor.u32 %v1139_v28, %v1135_v27  ;;  %475 = vst.msk [vmem:[#allocation2 + $0x7c] sm:$0xf] %vm442_vm1, %v5847_v2  ;;  %v1043_v19 = vrot.slane %v1041_v7, 4  ;;  %v1034_v21 = vor.u32 %v1033_v14, %v1030_v13  ;;  %v1047_v22 = vshll.u32 %v977_v18, 16  ;;  %v5627_v25 = vld [vmem:[%s5912_s27] sm:$0xff]  }
  0x31   : > { %v1131_v42 = vrot.slane %v1130_v31, 4  ;;  %476 = vst.msk [vmem:[#allocation2 + $0x80] sm:$0x1] %vm445_vm2, %v5847_v2  ;;  %v366_v23 = vmul.f32 %v5917_v3, %v5676_v61  ;;  %v367_v24 = vmul.f32 %v5917_v3, %v5677_v62  ;;  %v6107_v26 = vld [vmem:[#allocation2 + $0x60] sm:$0xf]  ;;  %v6109_v28 = vrot.slane %v602_v9, 7 }
  0x32   : > { %v1141_v48 = vrot.slane %v1140_v37, 4  ;;  %477 = vst.msk [vmem:[#allocation2 + $0x84] sm:$0xf] %vm442_vm1, %v5847_v2  ;;  %v1035_v31 = vrot.slane %v1034_v21, 4  ;;  %v1049_v32 = vrot.slane %v1047_v22, 5  ;;  %v6116_v33 = vrot.slane %v610_v10, 7 }
  0x33   : > { %v1136_v52 = vsel %vm6050_vm12, %v1131_v42, %v1135_v27  ;;  %478 = vst.msk [vmem:[#allocation2 + $0x88] sm:$0xf] %vm442_vm1, %v5847_v2  ;;  %v1044_v27 = vor.u32 %v1043_v19, %v1039_v15  ;;  %v6123_v37 = vsel %vm5964_vm6, %v727_v54, %v734_v16  ;;  %v670_v39 = vshrl.u32 %v6097_v20, 16  ;;  %v912_v46 = vld [vmem:[#allocation2 + $0x68] sm:$0x1] }
  0x34   : > { %v1146_v56 = vsel %vm6050_vm12, %v1141_v48, %v1145_v38  ;;  %v1421_v57 = vunpack.c.l.b16 %v1136_v52  ;;  %479 = vst.msk [vmem:[#allocation2 + $0x8c] sm:$0x1] %vm445_vm2, %v5847_v2  ;;  %v5628_v41 = vunpack.c.l.bf16 %v5627_v25  ;;  %v909_v42 = vsel %vm5972_vm7, %v6019_v0, %v6107_v26  ;;  %v6143_v54 = vld [vmem:[#allocation2 + $0x3c] sm:$0xf]  ;;  %v5199_v61 = vld [vmem:[%s7695_s3 + $0x8] sm:$0xf] }
  0x35   : > { %v1422_v1 = vunpack.c.l.b16 %v1146_v56  ;;  %480 = vst.msk [vmem:[#allocation2 + $0x90] sm:$0xf] %vm442_vm1, %v5847_v2  ;;  %v1045_v38 = vrot.slane %v1044_v27, 4  ;;  %v1040_v47 = vsel %vm6050_vm12, %v1035_v31, %v1039_v15  ;;  %v402_v48 = vadd.f32 %v5928_v8, %v366_v23 }
  0x36   : > { %481 = vst.msk [vmem:[#allocation2 + $0x94] sm:$0xf] %vm442_vm1, %v5847_v2  ;;  %v403_v49 = vadd.f32 %v5928_v8, %v367_v24  ;;  %v1413_v51 = vunpack.c.l.b16 %v1040_v47  ;;  %v6141_v52 = vor.u32 %v605_v29, %v6109_v28  ;;  %v678_v0 = vshrl.u32 %v6112_v30, 16 }
  0x37   : > { %v1449_v12 = vpack.c.b16 %v1422_v1, %v1421_v57  ;;  %482 = vst.msk [vmem:[#allocation2 + $0x98] sm:$0x1] %vm445_vm2, %v5847_v2  ;;  %v1050_v50 = vsel %vm6050_vm12, %v1045_v38, %v1049_v32  ;;  %v608_v57 = vrot.slane %v6109_v28, 4  ;;  %v615_v58 = vor.u32 %v613_v34, %v6116_v33  ;;  %v891_v1 = vld [vmem:[#allocation2 + $0x44] sm:$0x1] }
  0x38   : > { %483 = vst.msk [vmem:[#allocation2 + $0x9c] sm:$0xf] %vm442_vm1, %v5847_v2  ;;  %v1414_v56 = vunpack.c.l.b16 %v1050_v50  ;;  %v673_v60 = vshll.u32 %v6097_v20, 16  ;;  %v617_v62 = vrot.slane %v6116_v33, 4  ;;  %v6159_v4 = vrot.slane %v670_v39, 7 }
  0x39   : > { %5091 = vmatmul.msk.bf16.vlgmr.msra.gmra.mxu1 %vm1461_vm11, %v1449_v12  ;;  %484 = vst.msk [vmem:[#allocation2 + $0xa0] sm:$0xf] %vm442_vm1, %v5847_v2  ;;  %v5629_v5 = vunpack.c.h.bf16 %v5627_v25  ;;  %v342_v6 = vmul.f32 %v5917_v3, %v5628_v41  ;;  %v913_v7 = vsel %vm5981_vm8, %v668_v63, %v912_v46  ;;  %v2053_v10 = vsel %vm1510_vm0, %v5199_v61, 0  ;;  %v5264_v12 = vld [vmem:[%s7695_s3 + $0xc] sm:$0xf] }
  0x3a   : > { %485 = vst.msk [vmem:[#allocation2 + $0xa4] sm:$0x1] %vm445_vm2, %v5847_v2  ;;  %v1445_v11 = vpack.c.b16 %v1414_v56, %v1413_v51  ;;  %v6172_v13 = vrot.slane %v678_v0, 7  ;;  %2062 = vmatpush.bf16.msrb.mxu2 %v2053_v10  ;;  %v2359_v14 = vsel %vm1510_vm0, %v5264_v12, 0  ;;  %v681_v63 = vshll.u32 %v6112_v30, 16 }
  0x3b   : > { %486 = vst.msk [vmem:[#allocation2 + $0xa8] sm:$0xf] %vm442_vm1, %v5847_v2  ;;  %v343_v15 = vmul.f32 %v5917_v3, %v5629_v5  ;;  %v378_v16 = vadd.f32 %v5928_v8, %v342_v6  ;;  %2368 = vmatpush.bf16.msrb.mxu3 %v2359_v14  ;;  %v1732_v19 = vsel %vm1510_vm0, %v1023_v59, 0  ;;  %v5345_v20 = vld [vmem:[%s7695_s3 + $0x10] sm:$0xf]  ;;  %v888_v21 = vsel %vm5972_vm7, %v6141_v52, %v6143_v54 }
  0x3c   : > { %487 = vst.msk [vmem:[#allocation2 + $0xac] sm:$0xf] %vm442_vm1, %v5847_v2  ;;  %v6148_v55 = vld [vmem:[#allocation2 + $0x90] sm:$0xf]  ;;  %5087 = vmatmul.msk.bf16.vlgmr.msra.gmra.mxu0 %vm1461_vm11, %v1445_v11  ;;  %v434_v22 = vmax.f32 %v402_v48, 0.0  ;;  %1741 = vmatpush.bf16.msrb.mxu1 %v1732_v19  ;;  %v616_v23 = vsel %vm5964_vm6, %v608_v57, %v615_v58  ;;  %v435_v24 = vmax.f32 %v403_v49, 0.0  ;;  %v892_v26 = vsel %vm5981_vm8, %v617_v62, %v891_v1 }
  0x3d   : > { %488 = vst.msk [vmem:[#allocation2 + $0xb0] sm:$0x1] %vm445_vm2, %v5847_v2  ;;  %v937_v18 = vsel %vm5972_vm7, %v6078_v53, %v6148_v55  ;;  %v2965_v53 = vsel %vm1510_vm0, %v5345_v20, 0  ;;  %v379_v25 = vadd.f32 %v5928_v8, %v343_v15  ;;  %v6209_v27 = vor.u32 %v673_v60, %v6159_v4  ;;  %v915_v30 = vld [vmem:[#allocation2 + $0x6c] sm:$0xf] }
  0x3e   : > { %489 = vst.msk [vmem:[#allocation2 + $0xb4] sm:$0xf] %vm442_vm1, %v5847_v2  ;;  %v940_v9 = vld [vmem:[#allocation2 + $0x98] sm:$0x1]  ;;  %2974 = vmatpush.bf16.msrb.mxu0 %v2965_v53  ;;  %v522_v28 = vpack.c.bf16 %v434_v22, %v434_v22  ;;  %v523_v31 = vpack.c.bf16 %v435_v24, %v435_v24  ;;  %v410_v32 = vmax.f32 %v378_v16, 0.0  ;;  %v676_v34 = vrot.slane %v6159_v4, 4 }
  0x3f   : > { %490 = vst.msk [vmem:[#allocation2 + $0xb8] sm:$0xf] %vm442_vm1, %v5847_v2  ;;  %v941_v29 = vsel %vm5981_vm8, %v736_v17, %v940_v9  ;;  %v411_v33 = vmax.f32 %v379_v25, 0.0  ;;  %v683_v38 = vor.u32 %v681_v63, %v6172_v13  ;;  %v5694_v17 = vld [vmem:[%s5912_s27 + $0x28] sm:$0xff]   ;;  %v685_v48 = vrot.slane %v6172_v13, 4 }
  0x40   : > { %491 = vst.msk [vmem:[#allocation2 + $0xbc] sm:$0x1] %vm445_vm2, %v5847_v2  ;;  %v738_v39 = vshrl.u32 %v522_v28, 16  ;;  %v741_v41 = vshll.u32 %v522_v28, 16  ;;  %v749_v45 = vshll.u32 %v523_v31, 16  ;;  %v498_v46 = vpack.c.bf16 %v410_v32, %v410_v32  ;;  %v6227_v55 = vld [vmem:[%s5912_s27 + $0x48] sm:$0xff]  }
  0x41   : > { %492 = vst.msk [vmem:[#allocation2 + $0xc0] sm:$0xf] %vm442_vm1, %v5847_v2  ;;  %v499_v47 = vpack.c.bf16 %v411_v33, %v411_v33  ;;  %v919_v49 = vld [vmem:[#allocation2 + $0x74] sm:$0x1]  ;;  %v5648_v51 = vunpack.c.l.bf16 %v5694_v17  ;;  %v5649_v0 = vunpack.c.h.bf16 %v5694_v17  ;;  %v6233_v56 = vsel %vm5964_vm6, %v676_v34, %v683_v38  ;;  %v6237_v60 = vld [vmem:[#allocation2 + $0x9c] sm:$0xf] }
  0x42   : > { %493 = vst.msk [vmem:[#allocation2 + $0xc4] sm:$0xf] %vm442_vm1, %v5847_v2  ;;  %v740_v50 = vrot.slane %v738_v39, 7  ;;  %v534_v54 = vshrl.u32 %v498_v46, 16  ;;  %v537_v5 = vshll.u32 %v498_v46, 16  ;;  %v5664_v10 = vunpack.c.l.bf16 %v6227_v55 }
  0x43   : > { %494 = vst.msk [vmem:[#allocation2 + $0xc8] sm:$0x1] %vm445_vm2, %v5847_v2  ;;  %v352_v61 = vmul.f32 %v5917_v3, %v5648_v51  ;;  %v947_v6 = vld [vmem:[#allocation2 + $0xa4] sm:$0x1]  ;;  %v545_v9 = vshll.u32 %v499_v47, 16  ;;  %v6256_v14 = vmul.f32 %v5917_v3, %v5649_v0  ;;  %v5665_v19 = vunpack.c.h.bf16 %v6227_v55 }
  0x44   : > { %495 = vst.msk [vmem:[#allocation2 + $0xcc] sm:$0xf] %vm442_vm1, %v5847_v2  ;;  %v6235_v57 = vor.u32 %v741_v41, %v740_v50  ;;  %v744_v58 = vrot.slane %v740_v50, 4  ;;  %v6240_v4 = vrot.slane %v534_v54, 7  ;;  %v857_v24 = vld [vmem:[#allocation2 + $0xc] sm:$0xf] }
  0x45   : > { %496 = vst.msk [vmem:[#allocation2 + $0xd0] sm:$0xf] %vm442_vm1, %v5847_v2  ;;  %v6259_v59 = vadd.f32 %v5928_v8, %v352_v61 }
  0x46   : > { %497 = vst.msk [vmem:[#allocation2 + $0xd4] sm:$0x1] %vm445_vm2, %v5847_v2  ;;  %v746_v2 = vshrl.u32 %v523_v31, 16  ;;  %v944_v12 = vsel %vm5972_vm7, %v6235_v57, %v6237_v60  ;;  %v540_v13 = vrot.slane %v6240_v4, 4 }
  0x47   : > { %910 = vst [vmem:[#allocation2 + $0x60] sm:$0xf] %v909_v42  ;;  %v916_v42 = vsel %vm5972_vm7, %v6209_v27, %v915_v30 }
  0x48   : > { %911 = vst.msk [vmem:[#allocation2 + $0x64] sm:$0xf] %vm442_vm1, %v6060_v44  ;;  %v748_v52 = vrot.slane %v746_v2, 7  ;;  %v542_v44 = vshrl.u32 %v499_v47, 16 }
  0x49   : > { %914 = vst [vmem:[#allocation2 + $0x68] sm:$0x1] %v913_v7 }
  0x4a   : > { %938 = vst [vmem:[#allocation2 + $0x90] sm:$0xf] %v937_v18  ;;  %v751_v62 = vor.u32 %v749_v45, %v748_v52  ;;  %v753_v1 = vrot.slane %v748_v52, 4  ;;  %v6246_v7 = vrot.slane %v542_v44, 7 }
  0x4b   : > { %939 = vst.msk [vmem:[#allocation2 + $0x94] sm:$0xf] %vm442_vm1, %v6123_v37  ;;  %v6244_v37 = vsel %vm5981_vm8, %v685_v48, %v919_v49 }
  0x4c   : > { %942 = vst [vmem:[#allocation2 + $0x98] sm:$0x1] %v941_v29  ;;  %v752_v18 = vsel %vm5964_vm6, %v744_v58, %v751_v62  ;;  %v948_v53 = vsel %vm5981_vm8, %v753_v1, %v947_v6 }
  0x4d   : > { %889 = vst [vmem:[#allocation2 + $0x3c] sm:$0xf] %v888_v21 }
  0x4e   : > { %v999_v11 = vld [vmem:[#allocation2 + $0x60] sm:$0xf]  ;;  %890 = vst.msk [vmem:[#allocation2 + $0x40] sm:$0xf] %vm442_vm1, %v616_v23  ;;  %v539_v23 = vor.u32 %v537_v5, %v6240_v4 }
  0x4f   : > { %v1000_v63 = vld [vmem:[#allocation2 + $0x64] sm:$0xf]  ;;  %v1220_v15 = vshrl.u32 %v999_v11, 16  ;;  %v1223_v16 = vshll.u32 %v999_v11, 16  ;;  %893 = vst [vmem:[#allocation2 + $0x44] sm:$0x1] %v892_v26  ;;  %v547_v26 = vor.u32 %v545_v9, %v6246_v7 }
  0x50   : > { %v1001_v20 = vld [vmem:[#allocation2 + $0x68] sm:$0x1]  ;;  %v1229_v21 = vshll.u32 %v1000_v63, 16  ;;  %v1233_v22 = vshrl.u32 %v1000_v63, 16  ;;  %917 = vst [vmem:[#allocation2 + $0x6c] sm:$0xf] %v916_v42  ;;  %v858_v54 = vsel %vm5972_vm7, %v539_v23, %v857_v24 }
  0x51   : > { %v1222_v25 = vrot.slane %v1220_v15, 4  ;;  %v1225_v27 = vrot.slane %v1223_v16, 5  ;;  %v1239_v28 = vshll.u32 %v1001_v20, 16  ;;  %v1011_v29 = vld [vmem:[#allocation2 + $0x90] sm:$0xf] }
  0x52   : > { %v1231_v30 = vrot.slane %v1229_v21, 5  ;;  %v1235_v31 = vrot.slane %v1233_v22, 4  ;;  %v1012_v32 = vld [vmem:[#allocation2 + $0x94] sm:$0xf]  ;;  %v1316_v33 = vshrl.u32 %v1011_v29, 16  ;;  %v1319_v34 = vshll.u32 %v1011_v29, 16 }
  0x53   : > { %v1226_v38 = vor.u32 %v1225_v27, %v1222_v25  ;;  %v1241_v39 = vrot.slane %v1239_v28, 5  ;;  %v1013_v41 = vld [vmem:[#allocation2 + $0x98] sm:$0x1]  ;;  %v1325_v2 = vshll.u32 %v1012_v32, 16  ;;  %v1329_v45 = vshrl.u32 %v1012_v32, 16 }
  0x54   : > { %v1236_v46 = vor.u32 %v1235_v31, %v1231_v30  ;;  %v1318_v47 = vrot.slane %v1316_v33, 4  ;;  %v1321_v17 = vrot.slane %v1319_v34, 5  ;;  %v1335_v48 = vshll.u32 %v1013_v41, 16  ;;  %v990_v42 = vld [vmem:[#allocation2 + $0x3c] sm:$0xf] }
  0x55   : > { %v1227_v49 = vrot.slane %v1226_v38, 4  ;;  %v1327_v50 = vrot.slane %v1325_v2, 5  ;;  %v1331_v51 = vrot.slane %v1329_v45, 4  ;;  %v991_v52 = vld [vmem:[#allocation2 + $0x40] sm:$0xf]  ;;  %v1148_v60 = vshrl.u32 %v990_v42, 16 }
  0x56   : > { %v1237_v44 = vrot.slane %v1236_v46, 4  ;;  %v1322_v0 = vor.u32 %v1321_v17, %v1318_v47  ;;  %v1337_v57 = vrot.slane %v1335_v48, 5  ;;  %v992_v58 = vld [vmem:[#allocation2 + $0x44] sm:$0x1]  ;;  %v1151_v1 = vshll.u32 %v990_v42, 16 }
  0x57   : > { %v1232_v61 = vsel %vm6050_vm12, %v1227_v49, %v1231_v30  ;;  %v1332_v62 = vor.u32 %v1331_v51, %v1327_v50  ;;  %v1157_v5 = vshll.u32 %v991_v52, 16  ;;  %918 = vst.msk [vmem:[#allocation2 + $0x70] sm:$0xf] %vm442_vm1, %v6233_v56  ;;  %v1002_v6 = vld [vmem:[#allocation2 + $0x6c] sm:$0xf]  ;;  %v1150_v15 = vrot.slane %v1148_v60, 4 }
  0x58   : > { %v1242_v9 = vsel %vm6050_vm12, %v1237_v44, %v1241_v39  ;;  %v1429_v11 = vunpack.c.l.b16 %v1232_v61  ;;  %v1323_v63 = vrot.slane %v1322_v0, 4  ;;  %921 = vst [vmem:[#allocation2 + $0x74] sm:$0x1] %v6244_v37  ;;  %v1153_v21 = vrot.slane %v1151_v1, 5 }
  0x59   : > { %v1430_v16 = vunpack.c.l.b16 %v1242_v9  ;;  %v1333_v20 = vrot.slane %v1332_v62, 4  ;;  %v1159_v22 = vrot.slane %v1157_v5, 5  ;;  %945 = vst [vmem:[#allocation2 + $0x9c] sm:$0xf] %v944_v12  ;;  %v1161_v24 = vshrl.u32 %v991_v52, 16 }
  0x5a   : > { %v1328_v23 = vsel %vm6050_vm12, %v1323_v63, %v1327_v50  ;;  %v1167_v25 = vshll.u32 %v992_v58, 16  ;;  %v1244_v56 = vshrl.u32 %v1002_v6, 16  ;;  %946 = vst.msk [vmem:[#allocation2 + $0xa0] sm:$0xf] %vm442_vm1, %v752_v18  ;;  %v1154_v30 = vor.u32 %v1153_v21, %v1150_v15  ;;  %v863_v5 = vld [vmem:[#allocation2 + $0x14] sm:$0x1] }
  0x5b   : > { %v1453_v27 = vpack.c.b16 %v1430_v16, %v1429_v11  ;;  %v1338_v28 = vsel %vm6050_vm12, %v1333_v20, %v1337_v57  ;;  %v1437_v29 = vunpack.c.l.b16 %v1328_v23  ;;  %949 = vst [vmem:[#allocation2 + $0xa4] sm:$0x1] %v948_v53  ;;  %v1163_v31 = vrot.slane %v1161_v24, 4 }
  0x5c   : > { %v1438_v37 = vunpack.c.l.b16 %v1338_v28  ;;  %859 = vst [vmem:[#allocation2 + $0xc] sm:$0xf] %v858_v54  ;;  %v6284_v12 = vadd.f32 %v5928_v8, %v6256_v14  ;;  %v6289_v32 = vmul.f32 %v5917_v3, %v5664_v10  ;;  %v1155_v18 = vrot.slane %v1154_v30, 4 }
  0x5d   : > { %5095 = vmatmul.msk.bf16.vlgmr.msra.gmra.mxu2 %vm1461_vm11, %v1453_v27  ;;  %v1246_v33 = vrot.slane %v1244_v56, 4  ;;  %v1247_v34 = vshll.u32 %v1002_v6, 16  ;;  %v548_v53 = vsel %vm5964_vm6, %v540_v13, %v547_v26  ;;  %v1164_v39 = vor.u32 %v1163_v31, %v1159_v22 }
  0x5e   : > { %v1457_v38 = vpack.c.b16 %v1438_v37, %v1437_v29  ;;  %v1169_v41 = vrot.slane %v1167_v25, 5  ;;  %v1003_v14 = vld [vmem:[#allocation2 + $0x70] sm:$0xf]  ;;  %v549_v2 = vrot.slane %v6246_v7, 4  ;;  %860 = vst.msk [vmem:[#allocation2 + $0x10] sm:$0xf] %vm442_vm1, %v548_v53  ;;  %v1160_v10 = vsel %vm6050_vm12, %v1155_v18, %v1159_v22 }
  0x5f   : > { %v1004_v45 = vld [vmem:[#allocation2 + $0x74] sm:$0x1]  ;;  %v1249_v46 = vrot.slane %v1247_v34, 5  ;;  %v1253_v47 = vshll.u32 %v1003_v14, 16  ;;  %v1257_v17 = vshrl.u32 %v1003_v14, 16  ;;  %v1165_v4 = vrot.slane %v1164_v39, 4 }
  0x60   : > { %5099 = vmatmul.msk.bf16.vlgmr.msra.gmra.mxu3 %vm1461_vm11, %v1457_v38  ;;  %v1423_v48 = vunpack.c.l.b16 %v1160_v10  ;;  %v1263_v13 = vshll.u32 %v1004_v45, 16  ;;  %v1014_v26 = vld [vmem:[#allocation2 + $0x9c] sm:$0xf]  ;;  %v420_v42 = vmax.f32 %v6259_v59, 0.0  ;;  %v421_v22 = vmax.f32 %v6284_v12, 0.0 }
  0x61   : > { %v1250_v49 = vor.u32 %v1249_v46, %v1246_v33  ;;  %v1255_v50 = vrot.slane %v1253_v47, 5  ;;  %v1259_v7 = vrot.slane %v1257_v17, 4  ;;  %v1015_v51 = vld [vmem:[#allocation2 + $0xa0] sm:$0xf]  ;;  %v1340_v52 = vshrl.u32 %v1014_v26, 16 }
  0x62   : > { %v1170_v54 = vsel %vm6050_vm12, %v1165_v4, %v1169_v41  ;;  %v1265_v44 = vrot.slane %v1263_v13, 5  ;;  %v1016_v0 = vld [vmem:[#allocation2 + $0xa4] sm:$0x1]  ;;  %v1343_v57 = vshll.u32 %v1014_v26, 16  ;;  %v1349_v58 = vshll.u32 %v1015_v51, 16 }
  0x63   : > { %v1424_v60 = vunpack.c.l.b16 %v1170_v54  ;;  %v1251_v61 = vrot.slane %v1250_v49, 4  ;;  %v1260_v62 = vor.u32 %v1259_v7, %v1255_v50  ;;  %v1342_v1 = vrot.slane %v1340_v52, 4  ;;  %v6304_v63 = vld [vmem:[#allocation2 + $0xc] sm:$0xf] }
  0x64   : > { %v1345_v6 = vrot.slane %v1343_v57, 5  ;;  %v1351_v9 = vrot.slane %v1349_v58, 5  ;;  %v1353_v59 = vshrl.u32 %v1015_v51, 16  ;;  %v1359_v11 = vshll.u32 %v1016_v0, 16 }
  0x65   : > { %v1450_v15 = vpack.c.b16 %v1424_v60, %v1423_v48  ;;  %v1256_v16 = vsel %vm6050_vm12, %v1251_v61, %v1255_v50  ;;  %v1261_v20 = vrot.slane %v1260_v62, 4  ;;  %v6308_v21 = vld [vmem:[#allocation2 + $0x10] sm:$0xf]  ;;  %v864_v28 = vsel %vm5981_vm8, %v549_v2, %v863_v5  ;;  %v894_v60 = vld [vmem:[#allocation2 + $0x48] sm:$0xf] }
  0x66   : > { %v1431_v23 = vunpack.c.l.b16 %v1256_v16  ;;  %v1346_v24 = vor.u32 %v1345_v6, %v1342_v1  ;;  %v1355_v25 = vrot.slane %v1353_v59, 4  ;;  %v1361_v56 = vrot.slane %v1359_v11, 5  ;;  %865 = vst [vmem:[#allocation2 + $0x14] sm:$0x1] %v864_v28  ;;  %v898_v6 = vld [vmem:[#allocation2 + $0x50] sm:$0x1] }
  0x67   : > { %5092 = vmatmul.msk.bf16.gmra.mxu1 %vm1461_vm11, %v1450_v15  ;;  %v1266_v27 = vsel %vm6050_vm12, %v1261_v20, %v1265_v44  ;;  %v1052_v29 = vshrl.u32 %v6304_v63, 16  ;;  %v1055_v30 = vshll.u32 %v6304_v63, 16  ;;  %v1061_v12 = vshll.u32 %v6308_v21, 16  ;;  %v5702_v44 = vld [vmem:[%s5912_s27 + $0x68] sm:$0xff]  }
  0x68   : > { %v1432_v37 = vunpack.c.l.b16 %v1266_v27  ;;  %v1347_v31 = vrot.slane %v1346_v24, 4  ;;  %v1356_v18 = vor.u32 %v1355_v25, %v1351_v9  ;;  %v1065_v53 = vshrl.u32 %v6308_v21, 16  ;;  %v5690_v15 = vld [vmem:[%s5912_s27 + $0x8] sm:$0xff]  }
  0x69   : > { %v1054_v33 = vrot.slane %v1052_v29, 4  ;;  %v1057_v34 = vrot.slane %v1055_v30, 5  ;;  %v508_v38 = vpack.c.bf16 %v420_v42, %v420_v42  ;;  %v1063_v2 = vrot.slane %v1061_v12, 5 }
  0x6a   : > { %v1454_v39 = vpack.c.b16 %v1432_v37, %v1431_v23  ;;  %v1352_v41 = vsel %vm6050_vm12, %v1347_v31, %v1351_v9  ;;  %v1357_v14 = vrot.slane %v1356_v18, 4  ;;  %v1067_v46 = vrot.slane %v1065_v53, 4 }
  0x6b   : > { %v1439_v10 = vunpack.c.l.b16 %v1352_v41  ;;  %v1058_v45 = vor.u32 %v1057_v34, %v1054_v33  ;;  %v509_v47 = vpack.c.bf16 %v421_v22, %v421_v22  ;;  %v619_v4 = vshrl.u32 %v508_v38, 16 }
  0x6c   : > { %v1362_v17 = vsel %vm6050_vm12, %v1357_v14, %v1361_v56  ;;  %v622_v48 = vshll.u32 %v508_v38, 16  ;;  %v361_v13 = vmul.f32 %v5917_v3, %v5665_v19  ;;  %v1068_v49 = vor.u32 %v1067_v46, %v1063_v2  ;;  %v922_v46 = vld [vmem:[#allocation2 + $0x78] sm:$0xf] }
  0x6d   : > { %5096 = vmatmul.msk.bf16.gmra.mxu2 %vm1461_vm11, %v1454_v39  ;;  %v1440_v26 = vunpack.c.l.b16 %v1362_v17  ;;  %v1059_v42 = vrot.slane %v1058_v45, 4  ;;  %v627_v50 = vshrl.u32 %v509_v47, 16  ;;  %v621_v7 = vrot.slane %v619_v4, 7  ;;  %v6332_v57 = vld [vmem:[#allocation2 + $0x14] sm:$0x1] }
  0x6e   : > { %v630_v51 = vshll.u32 %v509_v47, 16  ;;  %v396_v52 = vadd.f32 %v5928_v8, %v6289_v32  ;;  %v397_v54 = vadd.f32 %v5928_v8, %v361_v13  ;;  %v1069_v19 = vrot.slane %v1068_v49, 4  ;;  %v6359_v45 = vld [vmem:[%s5912_s27 + $0x30] sm:$0xff]  }
  0x6f   : > { %v1458_v0 = vpack.c.b16 %v1440_v26, %v1439_v10  ;;  %v1064_v55 = vsel %vm6050_vm12, %v1059_v42, %v1063_v2  ;;  %v629_v58 = vrot.slane %v627_v50, 7  ;;  %v1071_v61 = vshll.u32 %v6332_v57, 16  ;;  %v926_v42 = vld [vmem:[#allocation2 + $0x80] sm:$0x1] }
  0x70   : > { %v1415_v62 = vunpack.c.l.b16 %v1064_v55  ;;  %v624_v1 = vor.u32 %v622_v48, %v621_v7  ;;  %v625_v5 = vrot.slane %v621_v7, 4  ;;  %v428_v59 = vmax.f32 %v396_v52, 0.0 }
  0x71   : > { %5100 = vmatmul.msk.bf16.gmra.mxu3 %vm1461_vm11, %v1458_v0  ;;  %v632_v32 = vor.u32 %v630_v51, %v629_v58  ;;  %v634_v9 = vrot.slane %v629_v58, 4  ;;  %v429_v11 = vmax.f32 %v397_v54, 0.0  ;;  %v1073_v16 = vrot.slane %v1071_v61, 5  ;;  %v6366_v51 = vld [vmem:[%s7694_s2] ss:$0 sm:$0xff] }
  0x72   : > { %v895_v20 = vsel %vm5972_vm7, %v624_v1, %v894_v60  ;;  %v5680_v22 = vunpack.c.l.bf16 %v5702_v44  ;;  %v5681_v23 = vunpack.c.h.bf16 %v5702_v44  ;;  %v516_v56 = vpack.c.bf16 %v428_v59, %v428_v59 }
  0x73   : > { %v633_v24 = vsel %vm5964_vm6, %v625_v5, %v632_v32  ;;  %896 = vst [vmem:[#allocation2 + $0x48] sm:$0xf] %v895_v20  ;;  %v899_v25 = vsel %vm5981_vm8, %v634_v9, %v898_v6  ;;  %v517_v27 = vpack.c.bf16 %v429_v11, %v429_v11  ;;  %v1074_v28 = vsel %vm6050_vm12, %v1069_v19, %v1073_v16 }
  0x74   : > { %897 = vst.msk [vmem:[#allocation2 + $0x4c] sm:$0xf] %vm442_vm1, %v633_v24  ;;  %v368_v29 = vmul.f32 %v5917_v3, %v5680_v22  ;;  %v369_v30 = vmul.f32 %v5917_v3, %v5681_v23  ;;  %v5632_v37 = vunpack.c.l.bf16 %v5690_v15  ;;  %v1416_v31 = vunpack.c.l.b16 %v1074_v28  ;;  %v6355_v3 = vld [vmem:[%s7693_s1] ss:$0 sm:$0xff]  ;;  %v950_v28 = vld [vmem:[#allocation2 + $0xa8] sm:$0xf] }
  0x75   : > { %900 = vst [vmem:[#allocation2 + $0x50] sm:$0x1] %v899_v25  ;;  %v687_v18 = vshrl.u32 %v516_v56, 16  ;;  %v690_v12 = vshll.u32 %v516_v56, 16  ;;  %v695_v33 = vshrl.u32 %v517_v27, 16  ;;  %v698_v34 = vshll.u32 %v517_v27, 16 }
  0x76   : > { %v404_v53 = vadd.f32 %v5928_v8, %v368_v29  ;;  %v405_v38 = vadd.f32 %v5928_v8, %v369_v30  ;;  %v5633_v39 = vunpack.c.h.bf16 %v5690_v15  ;;  %v1446_v41 = vpack.c.b16 %v1416_v31, %v1415_v62 }
  0x77   : > { %v689_v14 = vrot.slane %v687_v18, 7  ;;  %v697_v2 = vrot.slane %v695_v33, 7  ;;  %v344_v10 = vmul.f32 %v6355_v3, %v5632_v37  ;;  %v5652_v54 = vunpack.c.l.bf16 %v6359_v45 }
  0x78   : > { %v436_v47 = vmax.f32 %v404_v53, 0.0  ;;  %v437_v17 = vmax.f32 %v405_v38, 0.0  ;;  %v345_v4 = vmul.f32 %v6355_v3, %v5633_v39  ;;  %5088 = vmatmul.msk.bf16.gmra.mxu0 %vm1461_vm11, %v1446_v41 }
  0x79   : > { %v692_v8 = vor.u32 %v690_v12, %v689_v14  ;;  %v693_v48 = vrot.slane %v689_v14, 4  ;;  %v700_v13 = vor.u32 %v698_v34, %v697_v2  ;;  %v702_v26 = vrot.slane %v697_v2, 4  ;;  %v954_v2 = vld [vmem:[#allocation2 + $0xb0] sm:$0x1] }
  0x7a   : > { %v993_v49 = vld [vmem:[#allocation2 + $0x48] sm:$0xf]  ;;  %v524_v50 = vpack.c.bf16 %v436_v47, %v436_v47  ;;  %v525_v7 = vpack.c.bf16 %v437_v17, %v437_v17  ;;  %v380_v52 = vadd.f32 %v6366_v51, %v344_v10  ;;  %v381_v5 = vadd.f32 %v6366_v51, %v345_v4 }
  0x7b   : > { %v994_v44 = vld [vmem:[#allocation2 + $0x4c] sm:$0xf]  ;;  %v1172_v0 = vshrl.u32 %v993_v49, 16  ;;  %v1175_v55 = vshll.u32 %v993_v49, 16  ;;  %v701_v19 = vsel %vm5964_vm6, %v693_v48, %v700_v13  ;;  %v923_v58 = vsel %vm5972_vm7, %v692_v8, %v922_v46 }
  0x7c   : > { %v995_v60 = vld [vmem:[#allocation2 + $0x50] sm:$0x1]  ;;  %v1181_v61 = vshll.u32 %v994_v44, 16  ;;  %v1185_v62 = vshrl.u32 %v994_v44, 16  ;;  %924 = vst [vmem:[#allocation2 + $0x78] sm:$0xf] %v923_v58  ;;  %v927_v1 = vsel %vm5981_vm8, %v702_v26, %v926_v42  ;;  %v5653_v12 = vunpack.c.h.bf16 %v6359_v45 }
  0x7d   : > { %v1174_v6 = vrot.slane %v1172_v0, 4  ;;  %v1177_v32 = vrot.slane %v1175_v55, 5  ;;  %v1191_v9 = vshll.u32 %v995_v60, 16  ;;  %925 = vst.msk [vmem:[#allocation2 + $0x7c] sm:$0xf] %vm442_vm1, %v701_v19  ;;  %v755_v59 = vshrl.u32 %v524_v50, 16 }
  0x7e   : > { %v1183_v11 = vrot.slane %v1181_v61, 5  ;;  %v1187_v15 = vrot.slane %v1185_v62, 4  ;;  %928 = vst [vmem:[#allocation2 + $0x80] sm:$0x1] %v927_v1  ;;  %v758_v16 = vshll.u32 %v524_v50, 16  ;;  %v763_v20 = vshrl.u32 %v525_v7, 16 }
  0x7f   : > { %v1178_v22 = vor.u32 %v1177_v32, %v1174_v6  ;;  %v1193_v23 = vrot.slane %v1191_v9, 5  ;;  %v757_v24 = vrot.slane %v755_v59, 7  ;;  %v766_v25 = vshll.u32 %v525_v7, 16  ;;  %v5699_v58 = vld [vmem:[%s5912_s27 + $0x50] sm:$0xff]  }
  0x80   : > { %v1188_v56 = vor.u32 %v1187_v15, %v1183_v11  ;;  %v765_v27 = vrot.slane %v763_v20, 7  ;;  %v412_v29 = vmax.f32 %v380_v52, 0.0  ;;  %v413_v30 = vmax.f32 %v381_v5, 0.0 }
  0x81   : > { %v1179_v37 = vrot.slane %v1178_v22, 4  ;;  %v760_v31 = vor.u32 %v758_v16, %v757_v24  ;;  %v761_v18 = vrot.slane %v757_v24, 4  ;;  %v354_v38 = vmul.f32 %v6355_v3, %v5652_v54 }
  0x82   : > { %v1189_v33 = vrot.slane %v1188_v56, 4  ;;  %v768_v34 = vor.u32 %v766_v25, %v765_v27  ;;  %v770_v53 = vrot.slane %v765_v27, 4  ;;  %v500_v10 = vpack.c.bf16 %v412_v29, %v412_v29 }
  0x83   : > { %v1184_v39 = vsel %vm6050_vm12, %v1179_v37, %v1183_v11  ;;  %v1005_v41 = vld [vmem:[#allocation2 + $0x78] sm:$0xf]  ;;  %v951_v14 = vsel %vm5972_vm7, %v760_v31, %v950_v28  ;;  %v501_v46 = vpack.c.bf16 %v413_v30, %v413_v30  ;;  %v355_v54 = vmul.f32 %v6355_v3, %v5653_v12 }
  0x84   : > { %v1194_v47 = vsel %vm6050_vm12, %v1189_v33, %v1193_v23  ;;  %v1425_v17 = vunpack.c.l.b16 %v1184_v39  ;;  %v1006_v45 = vld [vmem:[#allocation2 + $0x7c] sm:$0xf]  ;;  %v1268_v4 = vshrl.u32 %v1005_v41, 16  ;;  %v1271_v8 = vshll.u32 %v1005_v41, 16  ;;  %952 = vst [vmem:[#allocation2 + $0xa8] sm:$0xf] %v951_v14 }
  0x85   : > { %v1426_v48 = vunpack.c.l.b16 %v1194_v47  ;;  %v1007_v13 = vld [vmem:[#allocation2 + $0x80] sm:$0x1]  ;;  %v1277_v26 = vshll.u32 %v1006_v45, 16  ;;  %v1281_v42 = vshrl.u32 %v1006_v45, 16  ;;  %v769_v49 = vsel %vm5964_vm6, %v761_v18, %v768_v34  ;;  %v866_v30 = vld [vmem:[#allocation2 + $0x18] sm:$0xf] }
  0x86   : > { %v1270_v50 = vrot.slane %v1268_v4, 4  ;;  %v1273_v7 = vrot.slane %v1271_v8, 5  ;;  %v1287_v52 = vshll.u32 %v1007_v13, 16  ;;  %953 = vst.msk [vmem:[#allocation2 + $0xac] sm:$0xf] %vm442_vm1, %v769_v49  ;;  %v955_v19 = vsel %vm5981_vm8, %v770_v53, %v954_v2 }
  0x87   : > { %v1451_v44 = vpack.c.b16 %v1426_v48, %v1425_v17  ;;  %v1279_v0 = vrot.slane %v1277_v26, 5  ;;  %v1283_v55 = vrot.slane %v1281_v42, 4  ;;  %956 = vst [vmem:[#allocation2 + $0xb0] sm:$0x1] %v955_v19  ;;  %v551_v62 = vshrl.u32 %v500_v10, 16  ;;  %v6405_v48 = vld [vmem:[%s5912_s27 + $0x70] sm:$0xff]  }
  0x88   : > { %v1274_v60 = vor.u32 %v1273_v7, %v1270_v50  ;;  %v1289_v61 = vrot.slane %v1287_v52, 5  ;;  %v554_v1 = vshll.u32 %v500_v10, 16  ;;  %v559_v6 = vshrl.u32 %v501_v46, 16  ;;  %v870_v41 = vld [vmem:[#allocation2 + $0x20] sm:$0x1] }
  0x89   : > { %5093 = vmatmul.msk.bf16.gmra.mxu1 %vm1461_vm11, %v1451_v44  ;;  %v1284_v5 = vor.u32 %v1283_v55, %v1279_v0  ;;  %v562_v32 = vshll.u32 %v501_v46, 16  ;;  %v390_v9 = vadd.f32 %v6366_v51, %v354_v38  ;;  %v553_v11 = vrot.slane %v551_v62, 7  ;;  %v6418_v62 = vld [vmem:[%s5912_s27 + $0x10] sm:$0xff]  }
  0x8a   : > { %v1275_v59 = vrot.slane %v1274_v60, 4  ;;  %v391_v15 = vadd.f32 %v6366_v51, %v355_v54  ;;  %v5668_v16 = vunpack.c.l.bf16 %v5699_v58  ;;  %v561_v23 = vrot.slane %v559_v6, 7 }
  0x8b   : > { %v1285_v20 = vrot.slane %v1284_v5, 4  ;;  %v1017_v22 = vld [vmem:[#allocation2 + $0xa8] sm:$0xf]  ;;  %v422_v24 = vmax.f32 %v390_v9, 0.0  ;;  %v5669_v25 = vunpack.c.h.bf16 %v5699_v58  ;;  %v556_v29 = vor.u32 %v554_v1, %v553_v11 }
  0x8c   : > { %v1280_v56 = vsel %vm6050_vm12, %v1275_v59, %v1279_v0  ;;  %v1364_v27 = vshrl.u32 %v1017_v22, 16  ;;  %v1367_v28 = vshll.u32 %v1017_v22, 16  ;;  %v557_v12 = vrot.slane %v553_v11, 4 }
  0x8d   : > { %v1290_v37 = vsel %vm6050_vm12, %v1285_v20, %v1289_v61  ;;  %v1433_v31 = vunpack.c.l.b16 %v1280_v56  ;;  %v1018_v18 = vld [vmem:[#allocation2 + $0xac] sm:$0xf]  ;;  %v564_v33 = vor.u32 %v562_v32, %v561_v23  ;;  %v566_v46 = vrot.slane %v561_v23, 4 }
  0x8e   : > { %v1434_v34 = vunpack.c.l.b16 %v1290_v37  ;;  %v1366_v53 = vrot.slane %v1364_v27, 4  ;;  %v1369_v38 = vrot.slane %v1367_v28, 5  ;;  %v1373_v39 = vshll.u32 %v1018_v18, 16  ;;  %v1019_v14 = vld [vmem:[#allocation2 + $0xb0] sm:$0x1] }
  0x8f   : > { %v1377_v2 = vshrl.u32 %v1018_v18, 16  ;;  %v565_v10 = vsel %vm5964_vm6, %v557_v12, %v564_v33  ;;  %v867_v47 = vsel %vm5972_vm7, %v556_v29, %v866_v30  ;;  %v1383_v8 = vshll.u32 %v1019_v14, 16  ;;  %v901_v30 = vld [vmem:[#allocation2 + $0x54] sm:$0xf] }
  0x90   : > { %v1455_v17 = vpack.c.b16 %v1434_v34, %v1433_v31  ;;  %v1370_v45 = vor.u32 %v1369_v38, %v1366_v53  ;;  %v1375_v4 = vrot.slane %v1373_v39, 5  ;;  %868 = vst [vmem:[#allocation2 + $0x18] sm:$0xf] %v867_v47  ;;  %v871_v26 = vsel %vm5981_vm8, %v566_v46, %v870_v41  ;;  %v905_v41 = vld [vmem:[#allocation2 + $0x5c] sm:$0x1] }
  0x91   : > { %v1379_v13 = vrot.slane %v1377_v2, 4  ;;  %869 = vst.msk [vmem:[#allocation2 + $0x1c] sm:$0xf] %vm442_vm1, %v565_v10  ;;  %v423_v42 = vmax.f32 %v391_v15, 0.0  ;;  %v1385_v50 = vrot.slane %v1383_v8, 5  ;;  %v510_v7 = vpack.c.bf16 %v422_v24, %v422_v24 }
  0x92   : > { %5097 = vmatmul.msk.bf16.gmra.mxu2 %vm1461_vm11, %v1455_v17  ;;  %v1371_v49 = vrot.slane %v1370_v45, 4  ;;  %872 = vst [vmem:[#allocation2 + $0x20] sm:$0x1] %v871_v26  ;;  %v362_v52 = vmul.f32 %v6355_v3, %v5668_v16  ;;  %v363_v0 = vmul.f32 %v6355_v3, %v5669_v25  ;;  %v5684_v55 = vunpack.c.l.bf16 %v6405_v48 }
  0x93   : > { %v1380_v54 = vor.u32 %v1379_v13, %v1375_v4  ;;  %v511_v44 = vpack.c.bf16 %v423_v42, %v423_v42  ;;  %v636_v58 = vshrl.u32 %v510_v7, 16  ;;  %v639_v60 = vshll.u32 %v510_v7, 16 }
  0x94   : > { %v1376_v19 = vsel %vm6050_vm12, %v1371_v49, %v1375_v4  ;;  %v398_v61 = vadd.f32 %v6366_v51, %v362_v52  ;;  %v399_v59 = vadd.f32 %v6366_v51, %v363_v0  ;;  %v5685_v15 = vunpack.c.h.bf16 %v6405_v48 }
  0x95   : > { %v1381_v1 = vrot.slane %v1380_v54, 4  ;;  %v1441_v5 = vunpack.c.l.b16 %v1376_v19  ;;  %v644_v6 = vshrl.u32 %v511_v44, 16  ;;  %v647_v32 = vshll.u32 %v511_v44, 16 }
  0x96   : > { %v638_v9 = vrot.slane %v636_v58, 7  ;;  %v430_v11 = vmax.f32 %v398_v61, 0.0  ;;  %v370_v23 = vmul.f32 %v6355_v3, %v5684_v55  ;;  %v5636_v24 = vunpack.c.l.bf16 %v6418_v62 }
  0x97   : > { %v1386_v16 = vsel %vm6050_vm12, %v1381_v1, %v1385_v50  ;;  %v6424_v20 = vld [vmem:[#allocation2 + $0x18] sm:$0xf]  ;;  %v646_v22 = vrot.slane %v644_v6, 7  ;;  %v431_v4 = vmax.f32 %v399_v59, 0.0  ;;  %v371_v26 = vmul.f32 %v6355_v3, %v5685_v15 }
  0x98   : > { %v1442_v25 = vunpack.c.l.b16 %v1386_v16  ;;  %v6428_v56 = vld [vmem:[#allocation2 + $0x1c] sm:$0xf]  ;;  %v1076_v27 = vshrl.u32 %v6424_v20, 16  ;;  %v1079_v28 = vshll.u32 %v6424_v20, 16  ;;  %v641_v29 = vor.u32 %v639_v60, %v638_v9 }
  0x99   : > { %v6432_v37 = vld [vmem:[#allocation2 + $0x20] sm:$0x1]  ;;  %v1085_v31 = vshll.u32 %v6428_v56, 16  ;;  %v1089_v18 = vshrl.u32 %v6428_v56, 16  ;;  %v642_v12 = vrot.slane %v638_v9, 4  ;;  %v649_v33 = vor.u32 %v647_v32, %v646_v22 }
  0x9a   : > { %v1459_v34 = vpack.c.b16 %v1442_v25, %v1441_v5  ;;  %v1078_v53 = vrot.slane %v1076_v27, 4  ;;  %v1081_v38 = vrot.slane %v1079_v28, 5  ;;  %v1095_v39 = vshll.u32 %v6432_v37, 16 }
  0x9b   : > { %v1087_v14 = vrot.slane %v1085_v31, 5  ;;  %v1091_v2 = vrot.slane %v1089_v18, 4  ;;  %v650_v10 = vsel %vm5964_vm6, %v642_v12, %v649_v33  ;;  %v651_v46 = vrot.slane %v646_v22, 4  ;;  %v933_v18 = vld [vmem:[#allocation2 + $0x8c] sm:$0x1] }
  0x9c   : > { %5101 = vmatmul.msk.bf16.gmra.mxu3 %vm1461_vm11, %v1459_v34  ;;  %v1082_v47 = vor.u32 %v1081_v38, %v1078_v53  ;;  %v1097_v17 = vrot.slane %v1095_v39, 5  ;;  %v902_v45 = vsel %vm5972_vm7, %v641_v29, %v901_v30  ;;  %904 = vst.msk [vmem:[#allocation2 + $0x58] sm:$0xf] %vm442_vm1, %v650_v10  ;;  %v518_v13 = vpack.c.bf16 %v430_v11, %v430_v11 }
  0x9d   : > { %v1092_v8 = vor.u32 %v1091_v2, %v1087_v14  ;;  %903 = vst [vmem:[#allocation2 + $0x54] sm:$0xf] %v902_v45  ;;  %v906_v48 = vsel %vm5981_vm8, %v651_v46, %v905_v41  ;;  %v519_v49 = vpack.c.bf16 %v431_v4, %v431_v4  ;;  %v406_v50 = vadd.f32 %v6366_v51, %v370_v23 }
  0x9e   : > { %v1083_v42 = vrot.slane %v1082_v47, 4  ;;  %907 = vst [vmem:[#allocation2 + $0x5c] sm:$0x1] %v906_v48  ;;  %v5637_v7 = vunpack.c.h.bf16 %v6418_v62  ;;  %v704_v54 = vshrl.u32 %v518_v13, 16  ;;  %v707_v44 = vshll.u32 %v518_v13, 16 }
  0x9f   : > { %v1093_v52 = vrot.slane %v1092_v8, 4  ;;  %v407_v0 = vadd.f32 %v6366_v51, %v371_v26  ;;  %v712_v19 = vshrl.u32 %v519_v49, 16  ;;  %v715_v58 = vshll.u32 %v519_v49, 16  ;;  %v929_v62 = vld [vmem:[#allocation2 + $0x84] sm:$0xf] }
  0xa0   : > { %v1088_v55 = vsel %vm6050_vm12, %v1083_v42, %v1087_v14  ;;  %v438_v60 = vmax.f32 %v406_v50, 0.0  ;;  %v706_v5 = vrot.slane %v704_v54, 7  ;;  %v346_v11 = vmul.f32 %v6355_v3, %v5636_v24  ;;  %v957_v50 = vld [vmem:[#allocation2 + $0xb4] sm:$0xf] }
  0xa1   : > { %v1098_v61 = vsel %vm6050_vm12, %v1093_v52, %v1097_v17  ;;  %v1417_v1 = vunpack.c.l.b16 %v1088_v55  ;;  %v439_v6 = vmax.f32 %v407_v0, 0.0  ;;  %v714_v9 = vrot.slane %v712_v19, 7 }
  0xa2   : > { %v1418_v32 = vunpack.c.l.b16 %v1098_v61  ;;  %v526_v59 = vpack.c.bf16 %v438_v60, %v438_v60  ;;  %v709_v16 = vor.u32 %v707_v44, %v706_v5  ;;  %v710_v22 = vrot.slane %v706_v5, 4  ;;  %v961_v60 = vld [vmem:[#allocation2 + $0xbc] sm:$0x1] }
  0xa3   : > { %v6454_v15 = vld [vmem:[#allocation2 + $0x58] sm:$0xf]  ;;  %v527_v23 = vpack.c.bf16 %v439_v6, %v439_v6  ;;  %v347_v25 = vmul.f32 %v6355_v3, %v5637_v7  ;;  %v717_v31 = vor.u32 %v715_v58, %v714_v9  ;;  %v719_v34 = vrot.slane %v714_v9, 4 }
  0xa4   : > { %v1447_v27 = vpack.c.b16 %v1418_v32, %v1417_v1  ;;  %v6457_v28 = vld [vmem:[#allocation2 + $0x54] sm:$0xf]  ;;  %v1205_v29 = vshll.u32 %v6454_v15, 16  ;;  %v1209_v30 = vshrl.u32 %v6454_v15, 16  ;;  %v930_v53 = vsel %vm5972_vm7, %v709_v16, %v929_v62 }
  0xa5   : > { %v6461_v12 = vld [vmem:[#allocation2 + $0x5c] sm:$0x1]  ;;  %v1196_v24 = vshrl.u32 %v6457_v28, 16  ;;  %v1199_v33 = vshll.u32 %v6457_v28, 16  ;;  %v718_v41 = vsel %vm5964_vm6, %v710_v22, %v717_v31  ;;  %931 = vst [vmem:[#allocation2 + $0x84] sm:$0xf] %v930_v53  ;;  %v934_v10 = vsel %vm5981_vm8, %v719_v34, %v933_v18 }
  0xa6   : > { %5089 = vmatmul.msk.bf16.gmra.mxu0 %vm1461_vm11, %v1447_v27  ;;  %v1207_v3 = vrot.slane %v1205_v29, 5  ;;  %v1211_v38 = vrot.slane %v1209_v30, 4  ;;  %v1215_v39 = vshll.u32 %v6461_v12, 16  ;;  %932 = vst.msk [vmem:[#allocation2 + $0x88] sm:$0xf] %vm442_vm1, %v718_v41  ;;  %v772_v46 = vshrl.u32 %v526_v59, 16 }
  0xa7   : > { %v1198_v14 = vrot.slane %v1196_v24, 4  ;;  %v1201_v2 = vrot.slane %v1199_v33, 5  ;;  %935 = vst [vmem:[#allocation2 + $0x8c] sm:$0x1] %v934_v10  ;;  %v775_v45 = vshll.u32 %v526_v59, 16  ;;  %v780_v4 = vshrl.u32 %v527_v23, 16 }
  0xa8   : > { %v1212_v47 = vor.u32 %v1211_v38, %v1207_v3  ;;  %v1217_v17 = vrot.slane %v1215_v39, 5  ;;  %v774_v48 = vrot.slane %v772_v46, 7  ;;  %v783_v13 = vshll.u32 %v527_v23, 16  ;;  %v5737_v46 = vld [vmem:[#allocation2 + $0x8] sm:$0x1] }
  0xa9   : > { %v1202_v8 = vor.u32 %v1201_v2, %v1198_v14  ;;  %v382_v26 = vadd.f32 %v6366_v51, %v346_v11  ;;  %v782_v49 = vrot.slane %v780_v4, 7  ;;  %v383_v7 = vadd.f32 %v6366_v51, %v347_v25 }
  0xaa   : > { %v1213_v42 = vrot.slane %v1212_v47, 4  ;;  %v777_v54 = vor.u32 %v775_v45, %v774_v48  ;;  %v778_v44 = vrot.slane %v774_v48, 4  ;;  %v1847_v47 = vrot.slane %v5737_v46, 5 }
  0xab   : > { %v1203_v52 = vrot.slane %v1202_v8, 4  ;;  %v414_v0 = vmax.f32 %v382_v26, 0.0  ;;  %v785_v19 = vor.u32 %v783_v13, %v782_v49  ;;  %v787_v58 = vrot.slane %v782_v49, 4  ;;  %v5738_v26 = vld [vmem:[#allocation2 + $0x4] sm:$0xf] }
  0xac   : > { %v1218_v55 = vsel %vm6050_vm12, %v1213_v42, %v1217_v17  ;;  %v415_v61 = vmax.f32 %v383_v7, 0.0  ;;  %v1008_v6 = vld [vmem:[#allocation2 + $0x84] sm:$0xf]  ;;  %v958_v32 = vsel %vm5972_vm7, %v777_v54, %v957_v50  ;;  %v1844_v42 = vrot.slane %v5738_v26, 5 }
  0xad   : > { %v1208_v1 = vsel %vm6050_vm12, %v1203_v52, %v1207_v3  ;;  %v1428_v5 = vunpack.c.l.b16 %v1218_v55  ;;  %v502_v51 = vpack.c.bf16 %v414_v0, %v414_v0  ;;  %v1009_v62 = vld [vmem:[#allocation2 + $0x88] sm:$0xf]  ;;  %v1292_v59 = vshrl.u32 %v1008_v6, 16  ;;  %959 = vst [vmem:[#allocation2 + $0xb4] sm:$0xf] %v958_v32 }
  0xae   : > { %v1427_v9 = vunpack.c.l.b16 %v1208_v1  ;;  %v1295_v11 = vshll.u32 %v1008_v6, 16  ;;  %v786_v16 = vsel %vm5964_vm6, %v778_v44, %v785_v19  ;;  %v1010_v22 = vld [vmem:[#allocation2 + $0x8c] sm:$0x1]  ;;  %v1301_v23 = vshll.u32 %v1009_v62, 16 }
  0xaf   : > { %v1305_v25 = vshrl.u32 %v1009_v62, 16  ;;  %960 = vst.msk [vmem:[#allocation2 + $0xb8] sm:$0xf] %vm442_vm1, %v786_v16  ;;  %v962_v27 = vsel %vm5981_vm8, %v787_v58, %v961_v60  ;;  %v503_v29 = vpack.c.bf16 %v415_v61, %v415_v61  ;;  %v1294_v31 = vrot.slane %v1292_v59, 4  ;;  %v873_v60 = vld [vmem:[#allocation2 + $0x24] sm:$0xf] }
  0xb0   : > { %v1452_v30 = vpack.c.b16 %v1428_v5, %v1427_v9  ;;  %v1297_v18 = vrot.slane %v1295_v11, 5  ;;  %v1311_v24 = vshll.u32 %v1010_v22, 16  ;;  %963 = vst [vmem:[#allocation2 + $0xbc] sm:$0x1] %v962_v27  ;;  %v1303_v33 = vrot.slane %v1301_v23, 5 }
  0xb1   : > { %v1307_v34 = vrot.slane %v1305_v25, 4  ;;  %v568_v53 = vshrl.u32 %v502_v51, 16  ;;  %v571_v38 = vshll.u32 %v502_v51, 16  ;;  %v576_v39 = vshrl.u32 %v503_v29, 16  ;;  %v877_v32 = vld [vmem:[#allocation2 + $0x2c] sm:$0x1] }
  0xb2   : > { %5094 = vmatmul.msk.bf16.gmra.mxu1 %vm1461_vm11, %v1452_v30  ;;  %v1298_v3 = vor.u32 %v1297_v18, %v1294_v31  ;;  %v1313_v14 = vrot.slane %v1311_v24, 5  ;;  %v579_v10 = vshll.u32 %v503_v29, 16  ;;  %v5443_v59 = vld [vmem:[%s7695_s3 + $0x18] sm:$0xf]  ;;  %v5739_v29 = vld [vmem:[#allocation2] sm:$0xf] }
  0xb3   : > { %v1308_v41 = vor.u32 %v1307_v34, %v1303_v33  ;;  %v570_v2 = vrot.slane %v568_v53, 7  ;;  %v578_v45 = vrot.slane %v576_v39, 7  ;;  %v5183_v30 = vrot.slane %v5739_v29, 9  ;;  %v5216_v39 = vld [vmem:[#allocation2 + $0xc] sm:$0xf] }
  0xb4   : > { %v1299_v17 = vrot.slane %v1298_v3, 4  ;;  %v1020_v8 = vld [vmem:[#allocation2 + $0xb4] sm:$0xf]  ;;  %v1846_v24 = vrot.slane %v1844_v42, 4 }
  0xb5   : > { %v1309_v4 = vrot.slane %v1308_v41, 4  ;;  %v573_v48 = vor.u32 %v571_v38, %v570_v2  ;;  %v574_v13 = vrot.slane %v570_v2, 4  ;;  %v1388_v7 = vshrl.u32 %v1020_v8, 16  ;;  %v5578_v38 = vld [vmem:[#allocation2] sm:$0xff]  ;;  %v5217_v2 = vld [vmem:[#allocation2 + $0x10] sm:$0xf] }
  0xb6   : > { %v1304_v49 = vsel %vm6050_vm12, %v1299_v17, %v1303_v33  ;;  %v1021_v50 = vld [vmem:[#allocation2 + $0xb8] sm:$0xf]  ;;  %v1391_v52 = vshll.u32 %v1020_v8, 16  ;;  %v581_v54 = vor.u32 %v579_v10, %v578_v45  ;;  %v583_v22 = vrot.slane %v578_v45, 4  ;;  %v5218_v29 = vld [vmem:[#allocation2 + $0x14] sm:$0x1] }
  0xb7   : > { %v1314_v44 = vsel %vm6050_vm12, %v1309_v4, %v1313_v14  ;;  %v1435_v0 = vunpack.c.l.b16 %v1304_v49  ;;  %v1022_v55 = vld [vmem:[#allocation2 + $0xbc] sm:$0x1]  ;;  %v1397_v19 = vshll.u32 %v1021_v50, 16  ;;  %v1401_v58 = vshrl.u32 %v1021_v50, 16 }
  0xb8   : > { %v1436_v61 = vunpack.c.l.b16 %v1314_v44  ;;  %v1390_v1 = vrot.slane %v1388_v7, 4  ;;  %v1393_v5 = vrot.slane %v1391_v52, 5  ;;  %v1407_v6 = vshll.u32 %v1022_v55, 16  ;;  %v5524_v50 = vld [vmem:[%s7695_s3 + $0x1c] sm:$0xf] }
  0xb9   : > { %v1399_v51 = vrot.slane %v1397_v19, 5  ;;  %v1403_v9 = vrot.slane %v1401_v58, 4  ;;  %v582_v62 = vsel %vm5964_vm6, %v574_v13, %v581_v54  ;;  %v874_v27 = vsel %vm5972_vm7, %v573_v48, %v873_v60  ;;  %v5378_v54 = vld [vmem:[%s7695_s3 + $0x14] sm:$0xf] }
  0xba   : > { %v1456_v11 = vpack.c.b16 %v1436_v61, %v1435_v0  ;;  %v1394_v16 = vor.u32 %v1393_v5, %v1390_v1  ;;  %876 = vst.msk [vmem:[#allocation2 + $0x28] sm:$0xf] %vm442_vm1, %v582_v62  ;;  %v1409_v25 = vrot.slane %v1407_v6, 5  ;;  %v878_v18 = vsel %vm5981_vm8, %v583_v22, %v877_v32  ;;  %v5557_v6 = vld [vmem:[%s7695_s3 + $0x20] sm:$0xf] }
  0xbb   : > { %v1404_v23 = vor.u32 %v1403_v9, %v1399_v51  ;;  %875 = vst [vmem:[#allocation2 + $0x24] sm:$0xf] %v874_v27  ;;  %v3621_v33 = vsel %vm1510_vm0, %v5443_v59, 0  ;;  %v1845_v46 = vsel %vm6505_vm15, %v5183_v30, %v1844_v42  ;;  %v1848_v17 = vsel %vm6505_vm15, %v1846_v24, %v1847_v47 }
  0xbc   : > { %5098 = vmatmul.msk.bf16.gmra.mxu2 %vm1461_vm11, %v1456_v11  ;;  %v1395_v31 = vrot.slane %v1394_v16, 4  ;;  %879 = vst [vmem:[#allocation2 + $0x2c] sm:$0x1] %v878_v18  ;;  %v2483_v4 = vshrl.u32 %v5216_v39, 16  ;;  %v2486_v8 = vshll.u32 %v5216_v39, 16  ;;  %v2492_v49 = vshll.u32 %v5217_v2, 16 }
  0xbd   : > { %v1405_v34 = vrot.slane %v1404_v23, 4  ;;  %3630 = vmatpush.bf16.msra.mxu2 %v3621_v33  ;;  %v1956_v7 = vunpack.c.l.b16 %v1845_v46  ;;  %v1957_v47 = vunpack.c.l.b16 %v1848_v17  ;;  %v2496_v52 = vshrl.u32 %v5217_v2, 16 }
  0xbe   : > { %v1400_v3 = vsel %vm6050_vm12, %v1395_v31, %v1399_v51  ;;  %v2485_v61 = vrot.slane %v2483_v4, 4  ;;  %v2488_v1 = vrot.slane %v2486_v8, 5  ;;  %v4227_v5 = vsel %vm1510_vm0, %v5524_v50, 0  ;;  %v5594_v8 = vld [vmem:[#allocation2 + $0xc] sm:$0xff] }
  0xbf   : > { %v1410_v41 = vsel %vm6050_vm12, %v1405_v34, %v1409_v25  ;;  %v1443_v14 = vunpack.c.l.b16 %v1400_v3  ;;  %v2494_v62 = vrot.slane %v2492_v49, 5  ;;  %4236 = vmatpush.bf16.msra.mxu3 %v4227_v5  ;;  %v2498_v11 = vrot.slane %v2496_v52, 4 }
  0xc0   : > { %v1444_v10 = vunpack.c.l.b16 %v1410_v41  ;;  %v3315_v16 = vsel %vm1510_vm0, %v5378_v54, 0  ;;  %v4577_v22 = vsel %vm1510_vm0, %v5557_v6, 0  ;;  %v1988_v27 = vpack.c.b16 %v1957_v47, %v1956_v7 }
  0xc1   : > { %v6517_v45 = vld [vmem:[#allocation2 + $0x28] sm:$0xf]  ;;  %3324 = vmatpush.bf16.msra.mxu1 %v3315_v16  ;;  %4586 = vmatpush.bf16.msra.mxu0 %v4577_v22  ;;  %v1851_v30 = vrot.slane %v6308_v21, 5  ;;  %v2489_v33 = vor.u32 %v2488_v1, %v2485_v61  ;;  %v2499_v34 = vor.u32 %v2498_v11, %v2494_v62  ;;  %v2502_v3 = vshll.u32 %v5218_v29, 16  ;;  %v5579_v21 = vld [vmem:[#allocation2 + $0xc] sm:$0xff]  ;;  %v5595_v29 = vld [vmem:[#allocation2 + $0x18] sm:$0xff] }
  0xc2   : > { %v1460_v48 = vpack.c.b16 %v1444_v10, %v1443_v14  ;;  %v1109_v13 = vshll.u32 %v6517_v45, 16  ;;  %v1113_v26 = vshrl.u32 %v6517_v45, 16  ;;  %5167 = vmatmul.msk.bf16.vlgmr.msrb.gmra.mxu1 %vm1461_vm11, %v5578_v38  ;;  %v6525_v42 = vld [vmem:[#allocation2 + $0x24] sm:$0xf]  ;;  %v5184_v41 = vrot.slane %v6304_v63, 9 }
  0xc3   : > { %v6531_v44 = vld [vmem:[#allocation2 + $0x2c] sm:$0x1]  ;;  %v1100_v0 = vshrl.u32 %v6525_v42, 16  ;;  %v1103_v55 = vshll.u32 %v6525_v42, 16  ;;  %v1853_v14 = vrot.slane %v1851_v30, 4  ;;  %v1854_v2 = vrot.slane %v6332_v57, 5 }
  0xc4   : > { %5102 = vmatmul.msk.bf16.gmra.mxu3 %vm1461_vm11, %v1460_v48  ;;  %v1111_v19 = vrot.slane %v1109_v13, 5  ;;  %v1115_v58 = vrot.slane %v1113_v26, 4  ;;  %v1119_v60 = vshll.u32 %v6531_v44, 16  ;;  %v2490_v46 = vrot.slane %v2489_v33, 4  ;;  %v5219_v26 = vld [vmem:[#allocation2 + $0x18] sm:$0xf] }
  0xc5   : > { %v1102_v32 = vrot.slane %v1100_v0, 4  ;;  %v1105_v51 = vrot.slane %v1103_v55, 5  ;;  %v2500_v17 = vrot.slane %v2499_v34, 4  ;;  %v2504_v4 = vrot.slane %v2502_v3, 5  ;;  %v5220_v57 = vld [vmem:[#allocation2 + $0x1c] sm:$0xf] }
  0xc6   : > { %v1116_v9 = vor.u32 %v1115_v58, %v1111_v19  ;;  %v1121_v59 = vrot.slane %v1119_v60, 5  ;;  %v1852_v48 = vsel %vm6505_vm15, %v5184_v41, %v1851_v30  ;;  %v1855_v13 = vsel %vm6505_vm15, %v1853_v14, %v1854_v2  ;;  %v5221_v11 = vld [vmem:[#allocation2 + $0x20] sm:$0x1]  ;;  %v5222_v30 = vld [vmem:[#allocation2 + $0x24] sm:$0xf] }
  0xc7   : > { %v1106_v23 = vor.u32 %v1105_v51, %v1102_v32  ;;  %v5185_v63 = vrot.slane %v6424_v20, 9  ;;  %v1858_v49 = vrot.slane %v6428_v56, 5  ;;  %v1861_v50 = vrot.slane %v6432_v37, 5  ;;  %v5223_v33 = vld [vmem:[#allocation2 + $0x28] sm:$0xf] }
  0xc8   : > { %v1117_v25 = vrot.slane %v1116_v9, 4  ;;  %v2495_v7 = vsel %vm6050_vm12, %v2490_v46, %v2494_v62  ;;  %v2505_v47 = vsel %vm6050_vm12, %v2500_v17, %v2504_v4  ;;  %v1958_v20 = vunpack.c.l.b16 %v1852_v48  ;;  %v5224_v17 = vld [vmem:[#allocation2 + $0x2c] sm:$0x1] }
  0xc9   : > { %v1107_v31 = vrot.slane %v1106_v23, 4  ;;  %v1859_v52 = vsel %vm6505_vm15, %v5185_v63, %v1858_v49  ;;  %v1860_v54 = vrot.slane %v1858_v49, 4  ;;  %v1959_v0 = vunpack.c.l.b16 %v1855_v13 }
  0xca   : > { %v1122_v18 = vsel %vm6050_vm12, %v1117_v25, %v1121_v59  ;;  %v2507_v56 = vshrl.u32 %v5219_v26, 16  ;;  %v1960_v55 = vunpack.c.l.b16 %v1859_v52  ;;  %v2516_v58 = vshll.u32 %v5220_v57, 16 }
  0xcb   : > { %v1420_v24 = vunpack.c.l.b16 %v1122_v18  ;;  %v1112_v38 = vsel %vm6050_vm12, %v1107_v31, %v1111_v19  ;;  %v2510_v19 = vshll.u32 %v5219_v26, 16  ;;  %v2520_v60 = vshrl.u32 %v5220_v57, 16 }
  0xcc   : > { %5200 = vmatmul.msk.bf16.vlgmr.msrb.gmra.mxu2 %vm1461_vm11, %v1988_v27  ;;  %v1419_v39 = vunpack.c.l.b16 %v1112_v38  ;;  %v1862_v37 = vsel %vm6505_vm15, %v1860_v54, %v1861_v50  ;;  %v2868_v1 = vunpack.c.l.b16 %v2495_v7  ;;  %v2869_v5 = vunpack.c.l.b16 %v2505_v47  ;;  %v5580_v27 = vld [vmem:[#allocation2 + $0x18] sm:$0xff]  ;;  %v5581_v47 = vld [vmem:[#allocation2 + $0x24] sm:$0xff] }
  0xcd   : > { %v1961_v61 = vunpack.c.l.b16 %v1862_v37  ;;  %v1989_v6 = vpack.c.b16 %v1959_v0, %v1958_v20  ;;  %v2509_v51 = vrot.slane %v2507_v56, 4  ;;  %v2512_v9 = vrot.slane %v2510_v19, 5  ;;  %v5596_v54 = vld [vmem:[#allocation2 + $0x24] sm:$0xff] }
  0xce   : > { %v1448_v10 = vpack.c.b16 %v1420_v24, %v1419_v39  ;;  %v2518_v62 = vrot.slane %v2516_v58, 5  ;;  %v2522_v59 = vrot.slane %v2520_v60, 4  ;;  %v2900_v16 = vpack.c.b16 %v2869_v5, %v2868_v1 }
  0xcf   : > { %v1990_v32 = vpack.c.b16 %v1961_v61, %v1960_v55  ;;  %v2513_v22 = vor.u32 %v2512_v9, %v2509_v51  ;;  %v2526_v25 = vshll.u32 %v5221_v11, 16  ;;  %v2531_v34 = vshrl.u32 %v5222_v30, 16  ;;  %v5225_v55 = vld [vmem:[#allocation2 + $0x30] sm:$0xf]  ;;  %v5227_v11 = vld [vmem:[#allocation2 + $0x38] sm:$0x1] }
  0xd0   : > { %5090 = vmatmul.msk.bf16.gmra.mxu0 %vm1461_vm11, %v1448_v10  ;;  %v2523_v23 = vor.u32 %v2522_v59, %v2518_v62  ;;  %v2534_v3 = vshll.u32 %v5222_v30, 16  ;;  %v2540_v41 = vshll.u32 %v5223_v33, 16  ;;  %v2544_v14 = vshrl.u32 %v5223_v33, 16  ;;  %v6591_v59 = vpop.f32.mrf.mxu1 }
  0xd1   : > { %v2514_v31 = vrot.slane %v2513_v22, 4  ;;  %v2528_v24 = vrot.slane %v2526_v25, 5  ;;  %v2533_v2 = vrot.slane %v2531_v34, 4  ;;  %v1865_v48 = vrot.slane %v6517_v45, 5  ;;  %v5742_v34 = vld [vmem:[#allocation2 + $0x38] sm:$0x1] }
  0xd2   : > { %5168 = vmatmul.msk.bf16.gmra.mxu1 %vm1461_vm11, %v5579_v21  ;;  %v2524_v18 = vrot.slane %v2523_v23, 4  ;;  %v2536_v21 = vrot.slane %v2534_v3, 5  ;;  %v2542_v4 = vrot.slane %v2540_v41, 5  ;;  %v2550_v63 = vshll.u32 %v5224_v17, 16  ;;  %v5740_v23 = vld [vmem:[#allocation2 + $0x34] sm:$0xf] }
  0xd3   : > { %v2519_v38 = vsel %vm6050_vm12, %v2514_v31, %v2518_v62  ;;  %v5186_v57 = vrot.slane %v6525_v42, 9  ;;  %v1867_v50 = vrot.slane %v1865_v48, 4  ;;  %v1868_v7 = vrot.slane %v6531_v44, 5  ;;  %v5226_v42 = vld [vmem:[#allocation2 + $0x34] sm:$0xf] }
  0xd4   : > { %5329 = vmatmul.msk.bf16.vlgmr.msrb.gmra.mxu3 %vm1461_vm11, %v5594_v8  ;;  %v2529_v39 = vsel %vm6050_vm12, %v2524_v18, %v2528_v24  ;;  %v2870_v10 = vunpack.c.l.b16 %v2519_v38  ;;  %v2546_v8 = vrot.slane %v2544_v14, 4  ;;  %v2537_v13 = vor.u32 %v2536_v21, %v2533_v2  ;;  %v5741_v18 = vld [vmem:[#allocation2 + $0x30] sm:$0xf]  ;;  %v5228_v14 = vld [vmem:[#allocation2 + $0x3c] sm:$0xf] }
  0xd5   : > { %v2871_v46 = vunpack.c.l.b16 %v2529_v39  ;;  %v2552_v0 = vrot.slane %v2550_v63, 5  ;;  %v1866_v45 = vsel %vm6505_vm15, %v5186_v57, %v1865_v48  ;;  %v1869_v56 = vsel %vm6505_vm15, %v1867_v50, %v1868_v7  ;;  %v5582_v38 = vld [vmem:[#allocation2 + $0x30] sm:$0xff]  ;;  %v5229_v17 = vld [vmem:[#allocation2 + $0x40] sm:$0xf] }
  0xd6   : > { %v2547_v49 = vor.u32 %v2546_v8, %v2542_v4  ;;  %v2538_v52 = vrot.slane %v2537_v13, 4  ;;  %v1962_v19 = vunpack.c.l.b16 %v1866_v45  ;;  %v1963_v58 = vunpack.c.l.b16 %v1869_v56  ;;  %v5597_v39 = vld [vmem:[#allocation2 + $0x30] sm:$0xff]  ;;  %v5230_v45 = vld [vmem:[#allocation2 + $0x44] sm:$0x1] }
  0xd7   : > { %v2901_v26 = vpack.c.b16 %v2871_v46, %v2870_v10  ;;  %v2555_v60 = vshrl.u32 %v5225_v55, 16  ;;  %v2558_v37 = vshll.u32 %v5225_v55, 16  ;;  %v2564_v1 = vshll.u32 %v5226_v42, 16 }
  0xd8   : > { %v2548_v20 = vrot.slane %v2547_v49, 4  ;;  %v2543_v44 = vsel %vm6050_vm12, %v2538_v52, %v2542_v4  ;;  %v2568_v5 = vshrl.u32 %v5226_v42, 16  ;;  %v1991_v51 = vpack.c.b16 %v1963_v58, %v1962_v19  ;;  %v6600_v4 = vpop.f32.mrf.mxu1  ;;  %v5743_v42 = vld [vmem:[#allocation2 + $0x40] sm:$0xf] }
  0xd9   : > { %v2557_v9 = vrot.slane %v2555_v60, 4  ;;  %v2560_v62 = vrot.slane %v2558_v37, 5  ;;  %v1872_v25 = vrot.slane %v5740_v23, 5  ;;  %v2574_v30 = vshll.u32 %v5227_v11, 16  ;;  %v5583_v11 = vld [vmem:[#allocation2 + $0x3c] sm:$0xff] }
  0xda   : > { %v2553_v61 = vsel %vm6050_vm12, %v2548_v20, %v2552_v0  ;;  %v2570_v22 = vrot.slane %v2568_v5, 4  ;;  %v5187_v24 = vrot.slane %v5741_v18, 9  ;;  %v1875_v3 = vrot.slane %v5742_v34, 5  ;;  %v5232_v18 = vld [vmem:[#allocation2 + $0x4c] sm:$0xf] }
  0xdb   : > { %v1874_v33 = vrot.slane %v1872_v25, 4  ;;  %v2576_v41 = vrot.slane %v2574_v30, 5  ;;  %v2579_v8 = vshrl.u32 %v5228_v14, 16  ;;  %v2582_v48 = vshll.u32 %v5228_v14, 16  ;;  %v5231_v30 = vld [vmem:[#allocation2 + $0x48] sm:$0xf] }
  0xdc   : > { %5201 = vmatmul.msk.bf16.gmra.mxu2 %vm1461_vm11, %v1989_v6  ;;  %v2872_v6 = vunpack.c.l.b16 %v2543_v44  ;;  %v1873_v10 = vsel %vm6505_vm15, %v5187_v24, %v1872_v25  ;;  %v2588_v50 = vshll.u32 %v5229_v17, 16  ;;  %v2592_v7 = vshrl.u32 %v5229_v17, 16 }
  0xdd   : > { %v1876_v46 = vsel %vm6505_vm15, %v1874_v33, %v1875_v3  ;;  %v2584_v52 = vrot.slane %v2582_v48, 5  ;;  %v1879_v44 = vrot.slane %v5743_v42, 5 }
  0xde   : > { %v1965_v63 = vunpack.c.l.b16 %v1876_v46  ;;  %v2590_v56 = vrot.slane %v2588_v50, 5  ;;  %v2594_v55 = vrot.slane %v2592_v7, 4  ;;  %v5746_v50 = vld [vmem:[#allocation2 + $0x4c] sm:$0xf] }
  0xdf   : > { %v1886_v7 = vrot.slane %v5746_v50, 5 }
  0xe0   : > { %5346 = vmatmul.msk.bf16.vlgmr.msrb.gmra.mxu0 %vm1461_vm11, %v2900_v16  ;;  %v2566_v16 = vrot.slane %v2564_v1, 5  ;;  %v6602_v13 = vpop.f32.mrf.mxu2  ;;  %v2595_v1 = vor.u32 %v2594_v55, %v2590_v56 }
  0xe1   : > { %v1888_v42 = vrot.slane %v1886_v7, 4 }
  0xe2   : > { %5169 = vmatmul.msk.bf16.gmra.mxu1 %vm1461_vm11, %v5580_v27  ;;  %v2571_v31 = vor.u32 %v2570_v22, %v2566_v16  ;;  %v5598_v22 = vld [vmem:[#allocation2 + $0x3c] sm:$0xff]  ;;  %v2596_v23 = vrot.slane %v2595_v1, 4  ;;  %v5599_v1 = vld [vmem:[#allocation2 + $0x48] sm:$0xff] }
  0xe3   : > { %v6611_v60 = vpop.f32.mrf.mxu3 }
  0xe4   : > { %5330 = vmatmul.msk.bf16.gmra.mxu3 %vm1461_vm11, %v5595_v29  ;;  %v2561_v29 = vor.u32 %v2560_v62, %v2557_v9  ;;  %v2572_v21 = vrot.slane %v2571_v31, 4  ;;  %v6609_v19 = vpop.f32.mrf.mxu1  ;;  %v5745_v9 = vld [vmem:[#allocation2 + $0x44] sm:$0x1]  ;;  %v6621_v31 = vpop.f32.mrf.mxu0 }
  0xe5   : > { %v1882_v62 = vrot.slane %v5745_v9, 5 }
  0xe6   : > { %v2562_v2 = vrot.slane %v2561_v29, 4  ;;  %v2577_v57 = vsel %vm6050_vm12, %v2572_v21, %v2576_v41  ;;  %v2616_v21 = vshrl.u32 %v5232_v18, 16 }
  0xe7   : > { %v2875_v20 = vunpack.c.l.b16 %v2577_v57 }
  0xe8   : > { %v2567_v49 = vsel %vm6050_vm12, %v2562_v2, %v2566_v16  ;;  %v6614_v5 = vpop.f32.mrf.mxu2  ;;  %v2612_v2 = vshll.u32 %v5232_v18, 16  ;;  %v2618_v57 = vrot.slane %v2616_v21, 4 }
  0xeb   : > { %v6631_v14 = vpop.f32.mrf.mxu3 }
  0xec   : > { %5202 = vmatmul.msk.bf16.gmra.mxu2 %vm1461_vm11, %v1990_v32  ;;  %v2873_v32 = vunpack.c.l.b16 %v2553_v61  ;;  %v2598_v61 = vshll.u32 %v5230_v45, 16  ;;  %v6624_v24 = vpop.f32.mrf.mxu1 }
  0xee   : > { %v2902_v27 = vpack.c.b16 %v2873_v32, %v2872_v6  ;;  %v5744_v6 = vld [vmem:[#allocation2 + $0x3c] sm:$0xf]  ;;  %v2600_v25 = vrot.slane %v2598_v61, 5 }
  0xef   : > { %v5188_v32 = vrot.slane %v5744_v6, 9 }
  0xf0   : > { %5347 = vmatmul.msk.bf16.gmra.mxu0 %vm1461_vm11, %v2901_v26  ;;  %v1964_v26 = vunpack.c.l.b16 %v1873_v10  ;;  %v2601_v41 = vsel %vm6050_vm12, %v2596_v23, %v2600_v25  ;;  %v6633_v46 = vpop.f32.mrf.mxu2 }
  0xf1   : > { %v2877_v17 = vunpack.c.l.b16 %v2601_v41 }
  0xf2   : > { %5170 = vmatmul.msk.bf16.gmra.mxu1 %vm1461_vm11, %v5581_v47  ;;  %v2581_v47 = vrot.slane %v2579_v8, 4  ;;  %v1992_v0 = vpack.c.b16 %v1965_v63, %v1964_v26  ;;  %v5233_v63 = vld [vmem:[#allocation2 + $0x50] sm:$0x1] }
  0xf4   : > { %5331 = vmatmul.msk.bf16.gmra.mxu3 %vm1461_vm11, %v5596_v54  ;;  %v2874_v54 = vunpack.c.l.b16 %v2567_v49  ;;  %v2585_v58 = vor.u32 %v2584_v52, %v2581_v47  ;;  %v2614_v49 = vrot.slane %v2612_v2, 5  ;;  %v6640_v61 = vpop.f32.mrf.mxu3 }
  0xf6   : > { %v2903_v37 = vpack.c.b16 %v2875_v20, %v2874_v54  ;;  %v2586_v16 = vrot.slane %v2585_v58, 4  ;;  %v6637_v54 = vpop.f32.mrf.mxu0  ;;  %v2619_v45 = vor.u32 %v2618_v57, %v2614_v49 }
  0xf8   : > { %v2591_v33 = vsel %vm6050_vm12, %v2586_v16, %v2590_v56  ;;  %v5747_v56 = vld [vmem:[#allocation2 + $0x48] sm:$0xf]  ;;  %v6643_v9 = vpop.f32.mrf.mxu2  ;;  %v5234_v16 = vld [vmem:[#allocation2 + $0x54] sm:$0xf] }
  0xf9   : > { %v2876_v10 = vunpack.c.l.b16 %v2591_v33  ;;  %v5189_v55 = vrot.slane %v5747_v56, 9  ;;  %v2630_v18 = vshll.u32 %v5234_v16, 16  ;;  %v5585_v56 = vld [vmem:[#allocation2 + $0x54] sm:$0xff] }
  0xfb   : > { %v2904_v52 = vpack.c.b16 %v2877_v17, %v2876_v10  ;;  %v2632_v17 = vrot.slane %v2630_v18, 5 }
  0xfc   : > { %5203 = vmatmul.msk.bf16.gmra.mxu2 %vm1461_vm11, %v1991_v51  ;;  %v1881_v51 = vrot.slane %v1879_v44, 4  ;;  %v6659_v21 = vpop.f32.mrf.mxu3 }
  0xfe   : > { %v1883_v29 = vsel %vm6505_vm15, %v1881_v51, %v1882_v62  ;;  %v2620_v51 = vrot.slane %v2619_v45, 4  ;;  %v1887_v62 = vsel %vm6505_vm15, %v5189_v55, %v1886_v7  ;;  %v5190_v7 = vrot.slane %v6457_v28, 9 }
  0xff   : > { %v1967_v3 = vunpack.c.l.b16 %v1883_v29  ;;  %v1968_v23 = vunpack.c.l.b16 %v1887_v62 }
 0x100   : > { %5348 = vmatmul.msk.bf16.gmra.mxu0 %vm1461_vm11, %v2902_v27  ;;  %v1880_v27 = vsel %vm6505_vm15, %v5188_v32, %v1879_v44  ;;  %v5748_v44 = vld [vmem:[#allocation2 + $0x50] sm:$0x1] }
 0x101   : > { %v1966_v34 = vunpack.c.l.b16 %v1880_v27  ;;  %v1889_v58 = vrot.slane %v5748_v44, 5 }
 0x102   : > { %5171 = vmatmul.msk.bf16.gmra.mxu1 %vm1461_vm11, %v5582_v38  ;;  %v2603_v38 = vshrl.u32 %v5231_v30, 16 }
 0x103   : > { %v1993_v8 = vpack.c.b16 %v1967_v3, %v1966_v34  ;;  %v6657_v34 = vpop.f32.mrf.mxu0 }
 0x104   : > { %5332 = vmatmul.msk.bf16.gmra.mxu3 %vm1461_vm11, %v5597_v39  ;;  %v2606_v39 = vshll.u32 %v5231_v30, 16  ;;  %v2605_v48 = vrot.slane %v2603_v38, 4  ;;  %v2627_v30 = vshrl.u32 %v5234_v16, 16 }
 0x106   : > { %v2608_v26 = vrot.slane %v2606_v39, 5  ;;  %v6635_v47 = vpop.f32.mrf.mxu1  ;;  %v2629_v10 = vrot.slane %v2627_v30, 4 }
 0x108   : > { %v2609_v20 = vor.u32 %v2608_v26, %v2605_v48  ;;  %v2633_v50 = vor.u32 %v2632_v17, %v2629_v10 }
 0x10a   : > { %v2610_v32 = vrot.slane %v2609_v20, 4  ;;  %v1896_v20 = vrot.slane %v6461_v12, 5  ;;  %v2634_v44 = vrot.slane %v2633_v50, 4  ;;  %v5237_v12 = vld [vmem:[#allocation2 + $0x60] sm:$0xf] }
 0x10c   : > { %5204 = vmatmul.msk.bf16.gmra.mxu2 %vm1461_vm11, %v1992_v0  ;;  %v2622_v0 = vshll.u32 %v5233_v63, 16  ;;  %v2615_v27 = vsel %vm6050_vm12, %v2610_v32, %v2614_v49  ;;  %v5236_v63 = vld [vmem:[#allocation2 + $0x5c] sm:$0x1]  ;;  %v5238_v32 = vld [vmem:[#allocation2 + $0x64] sm:$0xf] }
 0x10d   : > { %v2878_v39 = vunpack.c.l.b16 %v2615_v27  ;;  %v2646_v45 = vshll.u32 %v5236_v63, 16  ;;  %v2660_v27 = vshll.u32 %v5238_v32, 16  ;;  %v5750_v63 = vld [vmem:[#allocation2 + $0x68] sm:$0x1] }
 0x10e   : > { %v2624_v6 = vrot.slane %v2622_v0, 5  ;;  %v6655_v33 = vpop.f32.mrf.mxu1 }
 0x110   : > { %5349 = vmatmul.msk.bf16.gmra.mxu0 %vm1461_vm11, %v2903_v37  ;;  %v5584_v37 = vld [vmem:[#allocation2 + $0x48] sm:$0xff]  ;;  %v2625_v29 = vsel %vm6050_vm12, %v2620_v51, %v2624_v6 }
 0x111   : > { %v2879_v41 = vunpack.c.l.b16 %v2625_v29  ;;  %v2664_v29 = vshrl.u32 %v5238_v32, 16 }
 0x112   : > { %5172 = vmatmul.msk.bf16.gmra.mxu1 %vm1461_vm11, %v5583_v11  ;;  %v1890_v11 = vsel %vm6505_vm15, %v1888_v42, %v1889_v58  ;;  %v5600_v42 = vld [vmem:[#allocation2 + $0x54] sm:$0xff] }
 0x113   : > { %v1969_v25 = vunpack.c.l.b16 %v1890_v11  ;;  %v2905_v57 = vpack.c.b16 %v2879_v41, %v2878_v39 }
 0x114   : > { %5333 = vmatmul.msk.bf16.gmra.mxu3 %vm1461_vm11, %v5598_v22  ;;  %v5235_v22 = vld [vmem:[#allocation2 + $0x58] sm:$0xf] }
 0x115   : > { %v2636_v3 = vshll.u32 %v5235_v22, 16  ;;  %v2640_v38 = vshrl.u32 %v5235_v22, 16  ;;  %v1994_v2 = vpack.c.b16 %v1969_v25, %v1968_v23  ;;  %v6662_v49 = vpop.f32.mrf.mxu2  ;;  %v2651_v22 = vshrl.u32 %v5237_v12, 16 }
 0x116   : > { %v2654_v23 = vshll.u32 %v5237_v12, 16 }
 0x117   : > { %v2638_v48 = vrot.slane %v2636_v3, 5  ;;  %v2642_v26 = vrot.slane %v2640_v38, 4  ;;  %v2653_v39 = vrot.slane %v2651_v22, 4 }
 0x118   : > { %v2656_v41 = vrot.slane %v2654_v23, 5  ;;  %v5241_v23 = vld [vmem:[#allocation2 + $0x70] sm:$0xf] }
 0x119   : > { %v2643_v0 = vor.u32 %v2642_v26, %v2638_v48  ;;  %v2639_v11 = vsel %vm6050_vm12, %v2634_v44, %v2638_v48  ;;  %v2666_v48 = vrot.slane %v2664_v29, 4  ;;  %v5239_v26 = vld [vmem:[#allocation2 + $0x68] sm:$0x1]  ;;  %v5586_v44 = vld [vmem:[#allocation2 + $0x60] sm:$0xff] }
 0x11a   : > { %v2880_v18 = vunpack.c.l.b16 %v2639_v11 }
 0x11c   : > { %5205 = vmatmul.msk.bf16.gmra.mxu2 %vm1461_vm11, %v1993_v8  ;;  %v1893_v8 = vrot.slane %v6454_v15, 5  ;;  %v6669_v15 = vpop.f32.mrf.mxu0 }
 0x11d   : > { %v6682_v16 = vpop.f32.mrf.mxu2 }
 0x11e   : > { %v1894_v58 = vsel %vm6505_vm15, %v5190_v7, %v1893_v8 }
 0x11f   : > { %v6677_v6 = vpop.f32.mrf.mxu3  ;;  %v1970_v51 = vunpack.c.l.b16 %v1894_v58 }
 0x120   : > { %5350 = vmatmul.msk.bf16.gmra.mxu0 %vm1461_vm11, %v2904_v52  ;;  %v1895_v52 = vrot.slane %v1893_v8, 4  ;;  %v2662_v8 = vrot.slane %v2660_v27, 5 }
 0x122   : > { %5173 = vmatmul.msk.bf16.gmra.mxu1 %vm1461_vm11, %v5584_v37  ;;  %v1897_v28 = vsel %vm6505_vm15, %v1895_v52, %v1896_v20  ;;  %v2644_v37 = vrot.slane %v2643_v0, 4  ;;  %v2657_v52 = vor.u32 %v2656_v41, %v2653_v39  ;;  %v5751_v20 = vld [vmem:[#allocation2 + $0x60] sm:$0xf]  ;;  %v2688_v39 = vshrl.u32 %v5241_v23, 16 }
 0x123   : > { %v1971_v62 = vunpack.c.l.b16 %v1897_v28  ;;  %v5191_v0 = vrot.slane %v5751_v20, 9  ;;  %v5242_v20 = vld [vmem:[#allocation2 + $0x74] sm:$0x1] }
 0x124   : > { %5334 = vmatmul.msk.bf16.gmra.mxu3 %vm1461_vm11, %v5599_v1  ;;  %v2648_v1 = vrot.slane %v2646_v45, 5  ;;  %v6688_v17 = vpop.f32.mrf.mxu0  ;;  %v2658_v12 = vrot.slane %v2657_v52, 4 }
 0x125   : > { %v1995_v3 = vpack.c.b16 %v1971_v62, %v1970_v51  ;;  %v5240_v62 = vld [vmem:[#allocation2 + $0x6c] sm:$0xf] }
 0x126   : > { %v2649_v25 = vsel %vm6050_vm12, %v2644_v37, %v2648_v1  ;;  %v5601_v37 = vld [vmem:[#allocation2 + $0x60] sm:$0xff]  ;;  %v2675_v29 = vshrl.u32 %v5240_v62, 16 }
 0x127   : > { %v2881_v38 = vunpack.c.l.b16 %v2649_v25  ;;  %v6691_v7 = vpop.f32.mrf.mxu3 }
 0x129   : > { %v2906_v50 = vpack.c.b16 %v2881_v38, %v2880_v18  ;;  %v2678_v18 = vshll.u32 %v5240_v62, 16  ;;  %v2684_v38 = vshll.u32 %v5241_v23, 16  ;;  %v5587_v23 = vld [vmem:[#allocation2 + $0x6c] sm:$0xff] }
 0x12c   : > { %5206 = vmatmul.msk.bf16.gmra.mxu2 %vm1461_vm11, %v1994_v2  ;;  %v5749_v2 = vld [vmem:[#allocation2 + $0x64] sm:$0xf]  ;;  %v6702_v25 = vpop.f32.mrf.mxu0 }
 0x12d   : > { %v1900_v10 = vrot.slane %v5749_v2, 5 }
 0x12f   : > { %v6667_v55 = vpop.f32.mrf.mxu1  ;;  %v1902_v45 = vrot.slane %v1900_v10, 4  ;;  %v1901_v32 = vsel %vm6505_vm15, %v5191_v0, %v1900_v10  ;;  %v2686_v0 = vrot.slane %v2684_v38, 5 }
 0x130   : > { %5351 = vmatmul.msk.bf16.gmra.mxu0 %vm1461_vm11, %v2905_v57  ;;  %v1903_v57 = vrot.slane %v5750_v63, 5  ;;  %v2677_v63 = vrot.slane %v2675_v29, 4  ;;  %v5602_v29 = vld [vmem:[#allocation2 + $0x6c] sm:$0xff] }
 0x132   : > { %5174 = vmatmul.msk.bf16.gmra.mxu1 %vm1461_vm11, %v5585_v56  ;;  %v2667_v56 = vor.u32 %v2666_v48, %v2662_v8  ;;  %v1904_v51 = vsel %vm6505_vm15, %v1902_v45, %v1903_v57  ;;  %v2680_v57 = vrot.slane %v2678_v18, 5  ;;  %v2690_v45 = vrot.slane %v2688_v39, 4 }
 0x133   : > { %v1973_v27 = vunpack.c.l.b16 %v1904_v51  ;;  %v5754_v51 = vld [vmem:[#allocation2 + $0x6c] sm:$0xf] }
 0x134   : > { %5335 = vmatmul.msk.bf16.gmra.mxu3 %vm1461_vm11, %v5600_v42  ;;  %v2670_v42 = vshll.u32 %v5239_v26, 16  ;;  %v2668_v11 = vrot.slane %v2667_v56, 4  ;;  %v5752_v56 = vld [vmem:[#allocation2 + $0x70] sm:$0xf]  ;;  %v5192_v62 = vrot.slane %v5754_v51, 9 }
 0x136   : > { %v2672_v22 = vrot.slane %v2670_v42, 5  ;;  %v5753_v42 = vld [vmem:[#allocation2 + $0x74] sm:$0x1] }
 0x137   : > { %v6686_v30 = vpop.f32.mrf.mxu1 }
 0x138   : > { %v2673_v41 = vsel %vm6050_vm12, %v2668_v11, %v2672_v22 }
 0x139   : > { %v2883_v52 = vunpack.c.l.b16 %v2673_v41 }
 0x13c   : > { %5207 = vmatmul.msk.bf16.gmra.mxu2 %vm1461_vm11, %v1995_v3  ;;  %v2663_v3 = vsel %vm6050_vm12, %v2658_v12, %v2662_v8  ;;  %v1907_v8 = vrot.slane %v5752_v56, 5 }
 0x13d   : > { %v2882_v48 = vunpack.c.l.b16 %v2663_v3 }
 0x13e   : > { %v1909_v11 = vrot.slane %v1907_v8, 4 }
 0x13f   : > { %v6693_v58 = vpop.f32.mrf.mxu2  ;;  %v1743_v28 = vpop.f32.mrf.mxu1  ;;  %v2907_v12 = vpack.c.b16 %v2883_v52, %v2882_v48  ;;  %v5244_v52 = vld [vmem:[#allocation2 + $0x7c] sm:$0xf] }
 0x140   : > { %v1744_v1 = vadd.f32 %v1743_v28, %v6621_v31  ;;  %5352 = vmatmul.msk.bf16.gmra.mxu0 %vm1461_vm11, %v2906_v50  ;;  %v1972_v31 = vunpack.c.l.b16 %v1901_v32  ;;  %v2681_v28 = vor.u32 %v2680_v57, %v2677_v63  ;;  %v2691_v32 = vor.u32 %v2690_v45, %v2686_v0  ;;  %v5243_v57 = vld [vmem:[#allocation2 + $0x78] sm:$0xf] }
 0x141   : > { %v2699_v56 = vshrl.u32 %v5243_v57, 16 }
 0x142   : > { %5175 = vmatmul.msk.bf16.gmra.mxu1 %vm1461_vm11, %v5586_v44  ;;  %v1996_v26 = vpack.c.b16 %v1973_v27, %v1972_v31  ;;  %v1910_v44 = vrot.slane %v5753_v42, 5  ;;  %v2682_v18 = vrot.slane %v2681_v28, 4  ;;  %v2692_v41 = vrot.slane %v2691_v32, 4 }
 0x143   : > { %v2708_v28 = vshll.u32 %v5244_v52, 16 }
 0x144   : > { %5336 = vmatmul.msk.bf16.gmra.mxu3 %vm1461_vm11, %v5601_v37  ;;  %v2694_v37 = vshll.u32 %v5242_v20, 16  ;;  %v1911_v63 = vsel %vm6505_vm15, %v1909_v11, %v1910_v44  ;;  %v2687_v45 = vsel %vm6050_vm12, %v2682_v18, %v2686_v0  ;;  %v2702_v44 = vshll.u32 %v5243_v57, 16  ;;  %v5755_v0 = vld [vmem:[#allocation2 + $0x7c] sm:$0xf] }
 0x145   : > { %v1914_v18 = vrot.slane %v5755_v0, 5 }
 0x146   : > { %v2696_v3 = vrot.slane %v2694_v37, 5  ;;  %v2712_v37 = vshrl.u32 %v5244_v52, 16  ;;  %v5757_v52 = vld [vmem:[#allocation2 + $0x78] sm:$0xf] }
 0x147   : > { %v6709_v2 = vpop.f32.mrf.mxu3  ;;  %v6711_v10 = vpop.f32.mrf.mxu2 }
 0x148   : > { %7708 = vst [vmem:[#allocation3_spill] sm:$0xff] %v6709_v2  ;;  %v1745_v50 = vpop.f32.mrf.mxu1  ;;  %v5247_v2 = vld [vmem:[#allocation2 + $0x88] sm:$0xf] }
 0x14c   : > { %5208 = vmatmul.msk.bf16.gmra.mxu2 %vm1461_vm11, %v1996_v26  ;;  %v1908_v26 = vsel %vm6505_vm15, %v5192_v62, %v1907_v8  ;;  %v1746_v8 = vadd.f32 %v1745_v50, %v6637_v54  ;;  %v5756_v54 = vld [vmem:[#allocation2 + $0x80] sm:$0x1] }
 0x14d   : > { %v6714_v22 = vpop.f32.mrf.mxu0  ;;  %v1974_v20 = vunpack.c.l.b16 %v1908_v26  ;;  %v2714_v26 = vrot.slane %v2712_v37, 4  ;;  %v1917_v50 = vrot.slane %v5756_v54, 5 }
 0x14f   : > { %v6716_v31 = vpop.f32.mrf.mxu3  ;;  %v2064_v27 = vpop.f32.mrf.mxu2 }
 0x150   : > { %7709 = vst [vmem:[#allocation4_spill] sm:$0xff] %v6716_v31  ;;  %v2144_v38 = vadd.f32 %v2064_v27, %v1744_v1  ;;  %v1748_v39 = vpop.f32.mrf.mxu1  ;;  %5353 = vmatmul.msk.bf16.gmra.mxu0 %vm1461_vm11, %v2907_v12  ;;  %v1975_v1 = vunpack.c.l.b16 %v1911_v63  ;;  %v2884_v27 = vunpack.c.l.b16 %v2687_v45  ;;  %v5245_v63 = vld [vmem:[#allocation2 + $0x80] sm:$0x1]  ;;  %v5193_v31 = vrot.slane %v5757_v52, 9 }
 0x151   : > { %v1749_v48 = vadd.f32 %v1748_v39, %v6657_v34  ;;  %v2697_v34 = vsel %vm6050_vm12, %v2692_v41, %v2696_v3  ;;  %v2701_v39 = vrot.slane %v2699_v56, 4  ;;  %v2704_v3 = vrot.slane %v2702_v44, 5 }
 0x152   : > { %5176 = vmatmul.msk.bf16.gmra.mxu1 %vm1461_vm11, %v5587_v23  ;;  %v1997_v11 = vpack.c.b16 %v1975_v1, %v1974_v20  ;;  %v2710_v41 = vrot.slane %v2708_v28, 5  ;;  %v2718_v45 = vshll.u32 %v5245_v63, 16  ;;  %v5603_v28 = vld [vmem:[#allocation2 + $0x78] sm:$0xff]  ;;  %v2732_v63 = vshll.u32 %v5247_v2, 16 }
 0x153   : > { %v2705_v20 = vor.u32 %v2704_v3, %v2701_v39  ;;  %v2736_v52 = vshrl.u32 %v5247_v2, 16 }
 0x154   : > { %5337 = vmatmul.msk.bf16.gmra.mxu3 %vm1461_vm11, %v5602_v29  ;;  %v2885_v29 = vunpack.c.l.b16 %v2697_v34  ;;  %v2715_v1 = vor.u32 %v2714_v26, %v2710_v41  ;;  %v5588_v34 = vld [vmem:[#allocation2 + $0x78] sm:$0xff] }
 0x155   : > { %v6730_v42 = vpop.f32.mrf.mxu0  ;;  %v2706_v3 = vrot.slane %v2705_v20, 4  ;;  %v2738_v2 = vrot.slane %v2736_v52, 4  ;;  %v5589_v52 = vld [vmem:[#allocation2 + $0x84] sm:$0xff] }
 0x156   : > { %v2908_v57 = vpack.c.b16 %v2885_v29, %v2884_v27  ;;  %v1915_v29 = vsel %vm6505_vm15, %v5193_v31, %v1914_v18  ;;  %v2716_v26 = vrot.slane %v2715_v1, 4 }
 0x157   : > { %v2370_v12 = vpop.f32.mrf.mxu3  ;;  %v2066_v32 = vpop.f32.mrf.mxu2  ;;  %v1976_v54 = vunpack.c.l.b16 %v1915_v29  ;;  %v2711_v31 = vsel %vm6050_vm12, %v2706_v3, %v2710_v41 }
 0x158   : > { %v2450_v51 = vadd.f32 %v2370_v12, %v2144_v38  ;;  %v2145_v62 = vadd.f32 %v2066_v32, %v1746_v8  ;;  %v1750_v23 = vpop.f32.mrf.mxu1  ;;  %v1916_v38 = vrot.slane %v1914_v18, 4 }
 0x15a   : > { %v1918_v39 = vsel %vm6505_vm15, %v1916_v38, %v1917_v50  ;;  %v1751_v50 = vadd.f32 %v1750_v23, %v6669_v15  ;;  %v5759_v15 = vld [vmem:[#allocation2 + $0x8c] sm:$0x1] }
 0x15b   : > { %v1924_v23 = vrot.slane %v5759_v15, 5 }
 0x15c   : > { %5209 = vmatmul.msk.bf16.gmra.mxu2 %vm1461_vm11, %v1997_v11  ;;  %v5246_v11 = vld [vmem:[#allocation2 + $0x84] sm:$0xf] }
 0x15d   : > { %v2976_v8 = vpop.f32.mrf.mxu0 }
 0x15e   : > { %v6734_v56 = vadd.f32 %v2976_v8, %v2450_v51  ;;  %v2720_v51 = vrot.slane %v2718_v45, 5  ;;  %v2734_v45 = vrot.slane %v2732_v63, 5 }
 0x15f   : > { %v2372_v12 = vpop.f32.mrf.mxu3  ;;  %v2069_v32 = vpop.f32.mrf.mxu2 }
 0x160   : > { %v2451_v44 = vadd.f32 %v2372_v12, %v2145_v62  ;;  %v2146_v37 = vadd.f32 %v2069_v32, %v1749_v48  ;;  %v1753_v0 = vpop.f32.mrf.mxu1  ;;  %5354 = vmatmul.msk.bf16.gmra.mxu0 %vm1461_vm11, %v2908_v57  ;;  %v2723_v62 = vshrl.u32 %v5246_v11, 16  ;;  %v2726_v48 = vshll.u32 %v5246_v11, 16 }
 0x161   : > { %v1754_v27 = vadd.f32 %v1753_v0, %v6688_v17  ;;  %v1977_v57 = vunpack.c.l.b16 %v1918_v39  ;;  %v2721_v18 = vsel %vm6050_vm12, %v2716_v26, %v2720_v51  ;;  %v2886_v11 = vunpack.c.l.b16 %v2711_v31  ;;  %v5758_v39 = vld [vmem:[#allocation2 + $0x88] sm:$0xf]  ;;  %v5248_v26 = vld [vmem:[#allocation2 + $0x8c] sm:$0x1] }
 0x162   : > { %5177 = vmatmul.msk.bf16.gmra.mxu1 %vm1461_vm11, %v5588_v34  ;;  %v2725_v20 = vrot.slane %v2723_v62, 4  ;;  %v2728_v1 = vrot.slane %v2726_v48, 5  ;;  %v2887_v29 = vunpack.c.l.b16 %v2721_v18  ;;  %v1921_v3 = vrot.slane %v5758_v39, 5 }
 0x163   : > { %v2739_v62 = vor.u32 %v2738_v2, %v2734_v45  ;;  %v2742_v48 = vshll.u32 %v5248_v26, 16 }
 0x164   : > { %5338 = vmatmul.msk.bf16.gmra.mxu3 %vm1461_vm11, %v5603_v28  ;;  %v1998_v28 = vpack.c.b16 %v1977_v57, %v1976_v54  ;;  %v2729_v51 = vor.u32 %v2728_v1, %v2725_v20  ;;  %v1923_v54 = vrot.slane %v1921_v3, 4 }
 0x165   : > { %v2978_v17 = vpop.f32.mrf.mxu0  ;;  %v2744_v20 = vrot.slane %v2742_v48, 5 }
 0x166   : > { %v6749_v34 = vadd.f32 %v2978_v17, %v2451_v44  ;;  %v2909_v44 = vpack.c.b16 %v2887_v29, %v2886_v11  ;;  %v1925_v2 = vsel %vm6505_vm15, %v1923_v54, %v1924_v23 }
 0x167   : > { %v2375_v38 = vpop.f32.mrf.mxu3  ;;  %v2071_v8 = vpop.f32.mrf.mxu2 }
 0x168   : > { %v2452_v12 = vadd.f32 %v2375_v38, %v2146_v37  ;;  %v2147_v32 = vadd.f32 %v2071_v8, %v1751_v50  ;;  %v1755_v0 = vpop.f32.mrf.mxu1  ;;  %v5760_v37 = vld [vmem:[#allocation2 + $0x84] sm:$0xf]  ;;  %v2730_v38 = vrot.slane %v2729_v51, 4  ;;  %v2740_v8 = vrot.slane %v2739_v62, 4 }
 0x169   : > { %v1756_v41 = vadd.f32 %v1755_v0, %v6702_v25  ;;  %v5194_v63 = vrot.slane %v5760_v37, 9  ;;  %v5604_v50 = vld [vmem:[#allocation2 + $0x84] sm:$0xff] }
 0x16a   : > { %v2735_v29 = vsel %vm6050_vm12, %v2730_v38, %v2734_v45 }
 0x16c   : > { %5210 = vmatmul.msk.bf16.gmra.mxu2 %vm1461_vm11, %v1998_v28  ;;  %v1922_v28 = vsel %vm6505_vm15, %v5194_v63, %v1921_v3 }
 0x16d   : > { %v2981_v57 = vpop.f32.mrf.mxu0  ;;  %v1978_v11 = vunpack.c.l.b16 %v1922_v28  ;;  %v5251_v28 = vld [vmem:[#allocation2 + $0x98] sm:$0x1] }
 0x16e   : > { %v6753_v18 = vadd.f32 %v2981_v57, %v2452_v12  ;;  %v5249_v12 = vld [vmem:[#allocation2 + $0x90] sm:$0xf] }
 0x16f   : > { %v2377_v17 = vpop.f32.mrf.mxu3  ;;  %v2074_v31 = vpop.f32.mrf.mxu2  ;;  %v2747_v15 = vshrl.u32 %v5249_v12, 16  ;;  %v2750_v3 = vshll.u32 %v5249_v12, 16 }
 0x170   : > { %v2453_v25 = vadd.f32 %v2377_v17, %v2147_v32  ;;  %v2148_v0 = vadd.f32 %v2074_v31, %v1754_v27  ;;  %v1758_v39 = vpop.f32.mrf.mxu1  ;;  %5355 = vmatmul.msk.bf16.gmra.mxu0 %vm1461_vm11, %v2909_v44  ;;  %v5250_v32 = vld [vmem:[#allocation2 + $0x94] sm:$0xf]  ;;  %v1979_v27 = vunpack.c.l.b16 %v1925_v2  ;;  %v5762_v2 = vld [vmem:[#allocation2 + $0x98] sm:$0x1] }
 0x171   : > { %v1759_v1 = vadd.f32 %v1758_v39, %v6714_v22  ;;  %v2745_v22 = vsel %vm6050_vm12, %v2740_v8, %v2744_v20  ;;  %v2756_v51 = vshll.u32 %v5250_v32, 16  ;;  %v2760_v62 = vshrl.u32 %v5250_v32, 16  ;;  %v5761_v31 = vld [vmem:[#allocation2 + $0x94] sm:$0xf] }
 0x172   : > { %5178 = vmatmul.msk.bf16.gmra.mxu1 %vm1461_vm11, %v5589_v52  ;;  %v1999_v54 = vpack.c.b16 %v1979_v27, %v1978_v11  ;;  %v2888_v52 = vunpack.c.l.b16 %v2735_v29  ;;  %v2889_v17 = vunpack.c.l.b16 %v2745_v22  ;;  %v2749_v38 = vrot.slane %v2747_v15, 4 }
 0x173   : > { %v2752_v8 = vrot.slane %v2750_v3, 5  ;;  %v2758_v39 = vrot.slane %v2756_v51, 5  ;;  %v2762_v20 = vrot.slane %v2760_v62, 4  ;;  %v2766_v22 = vshll.u32 %v5251_v28, 16  ;;  %v5605_v62 = vld [vmem:[#allocation2 + $0x90] sm:$0xff] }
 0x174   : > { %5339 = vmatmul.msk.bf16.gmra.mxu3 %vm1461_vm11, %v5604_v50  ;;  %v1928_v50 = vrot.slane %v5761_v31, 5  ;;  %v2910_v12 = vpack.c.b16 %v2889_v17, %v2888_v52 }
 0x175   : > { %v2983_v26 = vpop.f32.mrf.mxu0  ;;  %v2753_v27 = vor.u32 %v2752_v8, %v2749_v38  ;;  %v2763_v29 = vor.u32 %v2762_v20, %v2758_v39  ;;  %v2768_v28 = vrot.slane %v2766_v22, 5 }
 0x176   : > { %v6767_v48 = vadd.f32 %v2983_v26, %v2453_v25  ;;  %v1931_v25 = vrot.slane %v5762_v2, 5  ;;  %v1930_v32 = vrot.slane %v1928_v50, 4  ;;  %v5252_v26 = vld [vmem:[#allocation2 + $0x9c] sm:$0xf] }
 0x177   : > { %v2380_v23 = vpop.f32.mrf.mxu3  ;;  %v2076_v44 = vpop.f32.mrf.mxu2  ;;  %v2771_v31 = vshrl.u32 %v5252_v26, 16  ;;  %v2774_v38 = vshll.u32 %v5252_v26, 16  ;;  %v2754_v8 = vrot.slane %v2753_v27, 4  ;;  %v2764_v20 = vrot.slane %v2763_v29, 4 }
 0x178   : > { %7710 = vst [vmem:[#allocation5_spill] sm:$0xff] %v6767_v48  ;;  %v2454_v37 = vadd.f32 %v2380_v23, %v2148_v0  ;;  %v2149_v63 = vadd.f32 %v2076_v44, %v1756_v41  ;;  %v1760_v57 = vpop.f32.mrf.mxu1  ;;  %v5763_v0 = vld [vmem:[#allocation2 + $0x90] sm:$0xf]  ;;  %v1932_v17 = vsel %vm6505_vm15, %v1930_v32, %v1931_v25  ;;  %v964_v48 = vld [vmem:[#allocation2 + $0xc0] sm:$0xf] }
 0x179   : > { %v1761_v45 = vadd.f32 %v1760_v57, %v6730_v42  ;;  %v5195_v41 = vrot.slane %v5763_v0, 9  ;;  %v5590_v42 = vld [vmem:[#allocation2 + $0x90] sm:$0xff]  ;;  %v5253_v57 = vld [vmem:[#allocation2 + $0xa0] sm:$0xf]  ;;  %v1981_v2 = vunpack.c.l.b16 %v1932_v17  ;;  %v2776_v0 = vrot.slane %v2774_v38, 5  ;;  %v5704_v38 = vld [vmem:[%s5912_s27 + $0x78] sm:$0xff]  }
 0x17a   : > { %v2769_v25 = vsel %vm6050_vm12, %v2764_v20, %v2768_v28  ;;  %v5765_v28 = vld [vmem:[#allocation2 + $0xa4] sm:$0x1] }
 0x17b   : > { %v1929_v52 = vsel %vm6505_vm15, %v5195_v41, %v1928_v50  ;;  %v2759_v50 = vsel %vm6050_vm12, %v2754_v8, %v2758_v39 }
 0x17c   : > { %5211 = vmatmul.msk.bf16.gmra.mxu2 %vm1461_vm11, %v1999_v54 }
 0x17d   : > { %v2986_v11 = vpop.f32.mrf.mxu0 }
 0x17e   : > { %v6771_v3 = vadd.f32 %v2986_v11, %v2454_v37  ;;  %v2780_v37 = vshll.u32 %v5253_v57, 16 }
 0x17f   : > { %v2382_v23 = vpop.f32.mrf.mxu3  ;;  %v2079_v15 = vpop.f32.mrf.mxu2 }
 0x180   : > { %7711 = vst [vmem:[#allocation6_spill] sm:$0xff] %v6771_v3  ;;  %v2455_v51 = vadd.f32 %v2382_v23, %v2149_v63  ;;  %v2150_v44 = vadd.f32 %v2079_v15, %v1759_v1  ;;  %v1763_v54 = vpop.f32.mrf.mxu1  ;;  %5356 = vmatmul.msk.bf16.gmra.mxu0 %vm1461_vm11, %v2910_v12  ;;  %v2784_v63 = vshrl.u32 %v5253_v57, 16  ;;  %v1980_v1 = vunpack.c.l.b16 %v1929_v52  ;;  %v5254_v15 = vld [vmem:[#allocation2 + $0xa4] sm:$0x1] }
 0x181   : > { %v2773_v12 = vrot.slane %v2771_v31, 4  ;;  %v2782_v27 = vrot.slane %v2780_v37, 5  ;;  %v2890_v57 = vunpack.c.l.b16 %v2759_v50  ;;  %v2891_v52 = vunpack.c.l.b16 %v2769_v25  ;;  %v5764_v31 = vld [vmem:[#allocation2 + $0xa0] sm:$0xf] }
 0x182   : > { %5179 = vmatmul.msk.bf16.gmra.mxu1 %vm1461_vm11, %v5590_v42  ;;  %v2786_v29 = vrot.slane %v2784_v63, 4  ;;  %v2000_v23 = vpack.c.b16 %v1981_v2, %v1980_v1  ;;  %v1935_v39 = vrot.slane %v5764_v31, 5  ;;  %v2790_v20 = vshll.u32 %v5254_v15, 16  ;;  %v5255_v31 = vld [vmem:[#allocation2 + $0xa8] sm:$0xf] }
 0x183   : > { %v2777_v17 = vor.u32 %v2776_v0, %v2773_v12  ;;  %v1938_v3 = vrot.slane %v5765_v28, 5  ;;  %v5688_v37 = vunpack.c.l.bf16 %v5704_v38  ;;  %v2911_v63 = vpack.c.b16 %v2891_v52, %v2890_v57  ;;  %v5591_v12 = vld [vmem:[#allocation2 + $0x9c] sm:$0xff] }
 0x184   : > { %5340 = vmatmul.msk.bf16.gmra.mxu3 %vm1461_vm11, %v5605_v62  ;;  %v2787_v8 = vor.u32 %v2786_v29, %v2782_v27  ;;  %v1937_v2 = vrot.slane %v1935_v39, 4  ;;  %v1764_v50 = vadd.f32 %v1763_v54, %v6591_v59  ;;  %v5767_v0 = vld [vmem:[%s7693_s1] ss:$0 sm:$0xff] }
 0x185   : > { %v2988_v11 = vpop.f32.mrf.mxu0  ;;  %v372_v25 = vmul.f32 %v5767_v0, %v5688_v37  ;;  %v5768_v59 = vld [vmem:[%s7694_s2] ss:$0 sm:$0xff]  ;;  %v2798_v37 = vshll.u32 %v5255_v31, 16 }
 0x186   : > { %v6784_v22 = vadd.f32 %v2988_v11, %v2455_v51  ;;  %v5689_v51 = vunpack.c.h.bf16 %v5704_v38  ;;  %v2788_v29 = vrot.slane %v2787_v8, 4 }
 0x187   : > { %v2385_v41 = vpop.f32.mrf.mxu3  ;;  %v2081_v32 = vpop.f32.mrf.mxu2  ;;  %v408_v54 = vadd.f32 %v5768_v59, %v372_v25 }
 0x188   : > { %7712 = vst [vmem:[#allocation7_spill] sm:$0xff] %v6784_v22  ;;  %v2456_v42 = vadd.f32 %v2385_v41, %v2150_v44  ;;  %v2151_v26 = vadd.f32 %v2081_v32, %v1761_v45  ;;  %v1765_v62 = vpop.f32.mrf.mxu1  ;;  %v2778_v44 = vrot.slane %v2777_v17, 4  ;;  %v5766_v45 = vld [vmem:[#allocation2 + $0x9c] sm:$0xf]  ;;  %v373_v41 = vmul.f32 %v5767_v0, %v5689_v51 }
 0x189   : > { %v5196_v1 = vrot.slane %v5766_v45, 9  ;;  %v5606_v17 = vld [vmem:[#allocation2 + $0x9c] sm:$0xff]  ;;  %v5256_v45 = vld [vmem:[#allocation2 + $0xac] sm:$0xf]  ;;  %v440_v51 = vmax.f32 %v408_v54, 0.0 }
 0x18a   : > { %v409_v22 = vadd.f32 %v5768_v59, %v373_v41  ;;  %v2783_v8 = vsel %vm6050_vm12, %v2778_v44, %v2782_v27  ;;  %v2804_v0 = vshll.u32 %v5256_v45, 16 }
 0x18b   : > { %v2892_v25 = vunpack.c.l.b16 %v2783_v8 }
 0x18c   : > { %5212 = vmatmul.msk.bf16.gmra.mxu2 %vm1461_vm11, %v2000_v23  ;;  %v2792_v23 = vrot.slane %v2790_v20, 5  ;;  %v2795_v20 = vshrl.u32 %v5255_v31, 16  ;;  %v6809_v31 = vrot.slane %v2804_v0, 5 }
 0x18d   : > { %v2991_v11 = vpop.f32.mrf.mxu0 }
 0x18e   : > { %v6792_v57 = vadd.f32 %v2991_v11, %v2456_v42  ;;  %v1936_v42 = vsel %vm6505_vm15, %v5196_v1, %v1935_v39  ;;  %v441_v11 = vmax.f32 %v409_v22, 0.0  ;;  %v528_v39 = vpack.c.bf16 %v440_v51, %v440_v51 }
 0x18f   : > { %v2387_v32 = vpop.f32.mrf.mxu3  ;;  %v2084_v15 = vpop.f32.mrf.mxu2  ;;  %v1982_v27 = vunpack.c.l.b16 %v1936_v42 }
 0x190   : > { %7713 = vst [vmem:[#allocation8_spill] sm:$0xff] %v6792_v57  ;;  %v2457_v52 = vadd.f32 %v2387_v32, %v2151_v26  ;;  %v2152_v38 = vadd.f32 %v2084_v15, %v1764_v50  ;;  %v1768_v28 = vpop.f32.mrf.mxu1  ;;  %5357 = vmatmul.msk.bf16.gmra.mxu0 %vm1461_vm11, %v2911_v63  ;;  %v1939_v26 = vsel %vm6505_vm15, %v1937_v2, %v1938_v3  ;;  %v2808_v63 = vshrl.u32 %v5256_v45, 16  ;;  %v5770_v57 = vld [vmem:[#allocation2 + $0xb0] sm:$0x1] }
 0x191   : > { %v2793_v50 = vsel %vm6050_vm12, %v2788_v29, %v2792_v23  ;;  %v1983_v44 = vunpack.c.l.b16 %v1939_v26  ;;  %v529_v1 = vpack.c.bf16 %v441_v11, %v441_v11  ;;  %v1766_v2 = vadd.f32 %v1765_v62, %v6600_v4  ;;  %v5769_v26 = vld [vmem:[#allocation2 + $0xac] sm:$0xf] }
 0x192   : > { %5180 = vmatmul.msk.bf16.gmra.mxu1 %vm1461_vm11, %v5591_v12  ;;  %v2893_v3 = vunpack.c.l.b16 %v2793_v50  ;;  %v2797_v12 = vrot.slane %v2795_v20, 4  ;;  %v2800_v32 = vrot.slane %v2798_v37, 5  ;;  %v2810_v29 = vrot.slane %v2808_v63, 4  ;;  %v5257_v20 = vld [vmem:[#allocation2 + $0xb0] sm:$0x1] }
 0x193   : > { %v789_v23 = vshrl.u32 %v528_v39, 16  ;;  %v797_v45 = vshrl.u32 %v529_v1, 16  ;;  %v2001_v54 = vpack.c.b16 %v1983_v44, %v1982_v27  ;;  %v792_v8 = vshll.u32 %v528_v39, 16  ;;  %v5771_v27 = vld [vmem:[#allocation2 + $0xa8] sm:$0xf] }
 0x194   : > { %5341 = vmatmul.msk.bf16.gmra.mxu3 %vm1461_vm11, %v5606_v17  ;;  %v1942_v51 = vrot.slane %v5769_v26, 5  ;;  %v1945_v4 = vrot.slane %v5770_v57, 5  ;;  %v2912_v62 = vpack.c.b16 %v2893_v3, %v2892_v25  ;;  %v2801_v37 = vor.u32 %v2800_v32, %v2797_v12  ;;  %v5592_v3 = vld [vmem:[#allocation2 + $0xa8] sm:$0xff] }
 0x195   : > { %v2993_v41 = vpop.f32.mrf.mxu0  ;;  %v791_v11 = vrot.slane %v789_v23, 7  ;;  %v799_v50 = vrot.slane %v797_v45, 7  ;;  %v2811_v0 = vor.u32 %v2810_v29, %v6809_v31  ;;  %v5197_v44 = vrot.slane %v5771_v27, 9  ;;  %v968_v45 = vld [vmem:[#allocation2 + $0xc8] sm:$0x1] }
 0x196   : > { %v1944_v39 = vrot.slane %v1942_v51, 4  ;;  %v1769_v57 = vadd.f32 %v1768_v28, %v6609_v19  ;;  %v2814_v25 = vshll.u32 %v5257_v20, 16  ;;  %v5258_v19 = vld [vmem:[#allocation2 + $0xb4] sm:$0xf]  ;;  %v2802_v40 = vrot.slane %v2801_v37, 4 }
 0x197   : > { %v2390_v15 = vpop.f32.mrf.mxu3  ;;  %v2086_v22 = vpop.f32.mrf.mxu2  ;;  %v794_v63 = vor.u32 %v792_v8, %v791_v11  ;;  %v2819_v20 = vshrl.u32 %v5258_v19, 16 }
 0x198   : > { %v2458_v59 = vadd.f32 %v2390_v15, %v2152_v38  ;;  %v2153_v17 = vadd.f32 %v2086_v22, %v1766_v2  ;;  %v1770_v42 = vpop.f32.mrf.mxu1  ;;  %v795_v38 = vrot.slane %v791_v11, 4  ;;  %v800_v2 = vshll.u32 %v529_v1, 16 }
 0x199   : > { %v804_v15 = vrot.slane %v799_v50, 4  ;;  %v6813_v22 = vadd.f32 %v2993_v41, %v2457_v52  ;;  %v965_v32 = vsel %vm5972_vm7, %v794_v63, %v964_v48  ;;  %v5607_v41 = vld [vmem:[#allocation2 + $0xa8] sm:$0xff]  ;;  %v1943_v48 = vsel %vm6505_vm15, %v5197_v44, %v1942_v51 }
 0x19a   : > { %v802_v12 = vor.u32 %v800_v2, %v799_v50  ;;  %966 = vst [vmem:[#allocation2 + $0xc0] sm:$0xf] %v965_v32  ;;  %v1946_v43 = vsel %vm6505_vm15, %v1944_v39, %v1945_v4  ;;  %v5259_v50 = vld [vmem:[#allocation2 + $0xb8] sm:$0xf]  ;;  %v1984_v35 = vunpack.c.l.b16 %v1943_v48  ;;  %v2807_v51 = vsel %vm6050_vm12, %v2802_v40, %v6809_v31 }
 0x19b   : > { %v969_v1 = vsel %vm5981_vm8, %v804_v15, %v968_v45  ;;  %v1985_v63 = vunpack.c.l.b16 %v1946_v43  ;;  %v2832_v2 = vshrl.u32 %v5259_v50, 16  ;;  %v2821_v39 = vrot.slane %v2819_v20, 4  ;;  %v5772_v45 = vld [vmem:[#allocation2 + $0xb8] sm:$0xf] }
 0x19c   : > { %5213 = vmatmul.msk.bf16.gmra.mxu2 %vm1461_vm11, %v2001_v54  ;;  %v803_v28 = vsel %vm5964_vm6, %v795_v38, %v802_v12  ;;  %970 = vst [vmem:[#allocation2 + $0xc8] sm:$0x1] %v969_v1  ;;  %v2828_v38 = vshll.u32 %v5259_v50, 16  ;;  %v2894_v32 = vunpack.c.l.b16 %v2807_v51  ;;  %v5593_v50 = vld [vmem:[#allocation2 + $0xb4] sm:$0xff]  ;;  %v5775_v51 = vld [vmem:[#allocation2 + $0x10] sm:$0xf] }
 0x19d   : > { %v2996_v23 = vpop.f32.mrf.mxu0  ;;  %967 = vst.msk [vmem:[#allocation2 + $0xc4] sm:$0xf] %vm442_vm1, %v803_v28  ;;  %v2834_v1 = vrot.slane %v2832_v2, 4  ;;  %v5774_v28 = vld [vmem:[#allocation2 + $0xb4] sm:$0xf] }
 0x19e   : > { %v6820_v8 = vadd.f32 %v2996_v23, %v2458_v59  ;;  %v2812_v59 = vrot.slane %v2811_v0, 4  ;;  %v1771_v0 = vadd.f32 %v1770_v42, %v6624_v24  ;;  %v5260_v24 = vld [vmem:[#allocation2 + $0xbc] sm:$0x1] }
 0x19f   : > { %v2392_v29 = vpop.f32.mrf.mxu3  ;;  %v2089_v54 = vpop.f32.mrf.mxu2 }
 0x1a0   : > { %v2459_v52 = vadd.f32 %v2392_v29, %v2153_v17  ;;  %v2154_v26 = vadd.f32 %v2089_v54, %v1769_v57  ;;  %v1773_v11 = vpop.f32.mrf.mxu1  ;;  %5358 = vmatmul.msk.bf16.gmra.mxu0 %vm1461_vm11, %v2912_v62  ;;  %v2816_v17 = vrot.slane %v2814_v25, 5  ;;  %v2822_v62 = vshll.u32 %v5258_v19, 16 }
 0x1a1   : > { %v2002_v25 = vpack.c.b16 %v1985_v63, %v1984_v35  ;;  %v1949_v29 = vrot.slane %v5772_v45, 5  ;;  %v6840_v54 = vrot.slane %v2828_v38, 5  ;;  %v1774_v43 = vadd.f32 %v1773_v11, %v6635_v47  ;;  %v5261_v20 = vld [vmem:[#allocation2 + $0xc0] sm:$0xf]  ;;  %v6853_v45 = vld [vmem:[#allocation2 + $0x18] sm:$0xf] }
 0x1a2   : > { %5181 = vmatmul.msk.bf16.gmra.mxu1 %vm1461_vm11, %v5592_v3  ;;  %v2817_v4 = vsel %vm6050_vm12, %v2812_v59, %v2816_v17  ;;  %v2824_v3 = vrot.slane %v2822_v62, 5  ;;  %v2838_v17 = vshll.u32 %v5260_v24, 16 }
 0x1a3   : > { %v2895_v31 = vunpack.c.l.b16 %v2817_v4  ;;  %v1951_v40 = vrot.slane %v1949_v29, 4  ;;  %v2835_v59 = vor.u32 %v2834_v1, %v6840_v54 }
 0x1a4   : > { %5342 = vmatmul.msk.bf16.gmra.mxu3 %vm1461_vm11, %v5607_v41  ;;  %v2825_v42 = vor.u32 %v2824_v3, %v2821_v39  ;;  %v5773_v41 = vld [vmem:[#allocation2 + $0xbc] sm:$0x1]  ;;  %v2843_v39 = vshrl.u32 %v5261_v20, 16  ;;  %v2840_v3 = vrot.slane %v2838_v17, 5  ;;  %v3745_v17 = vshrl.u32 %v6853_v45, 16 }
 0x1a5   : > { %v2998_v37 = vpop.f32.mrf.mxu0  ;;  %v1952_v19 = vrot.slane %v5773_v41, 5  ;;  %v6856_v41 = vld [vmem:[#allocation2 + $0x1c] sm:$0xf] }
 0x1a6   : > { %v6838_v15 = vadd.f32 %v2998_v37, %v2459_v52  ;;  %v2913_v52 = vpack.c.b16 %v2895_v31, %v2894_v32  ;;  %v3106_v37 = vrot.slane %v5775_v51, 5  ;;  %v2826_v38 = vrot.slane %v2825_v42, 4 }
 0x1a7   : > { %v2395_v27 = vpop.f32.mrf.mxu3  ;;  %v2091_v44 = vpop.f32.mrf.mxu2  ;;  %v1953_v11 = vsel %vm6505_vm15, %v1951_v40, %v1952_v19  ;;  %v5777_v19 = vld [vmem:[#allocation2 + $0x14] sm:$0x1]  ;;  %v3754_v51 = vshll.u32 %v6856_v41, 16 }
 0x1a8   : > { %v2460_v23 = vadd.f32 %v2395_v27, %v2154_v26  ;;  %v2155_v57 = vadd.f32 %v2091_v44, %v1771_v0  ;;  %v1775_v12 = vpop.f32.mrf.mxu1  ;;  %v5198_v26 = vrot.slane %v5774_v28, 9  ;;  %v5608_v0 = vld [vmem:[#allocation2 + $0xb4] sm:$0xff]  ;;  %v5262_v44 = vld [vmem:[#allocation2 + $0xc4] sm:$0xf]  ;;  %v3108_v1 = vrot.slane %v3106_v37, 4 }
 0x1a9   : > { %v2852_v31 = vshll.u32 %v5262_v44, 16  ;;  %v1987_v42 = vunpack.c.l.b16 %v1953_v11  ;;  %v2831_v28 = vsel %vm6050_vm12, %v2826_v38, %v6840_v54 }
 0x1aa   : > { %v1950_v47 = vsel %vm6505_vm15, %v5198_v26, %v1949_v29  ;;  %v2856_v29 = vshrl.u32 %v5262_v44, 16  ;;  %v2845_v26 = vrot.slane %v2843_v39, 4 }
 0x1ab   : > { %v1986_v24 = vunpack.c.l.b16 %v1950_v47 }
 0x1ac   : > { %5214 = vmatmul.msk.bf16.gmra.mxu2 %vm1461_vm11, %v2002_v25  ;;  %v2846_v25 = vshll.u32 %v5261_v20, 16  ;;  %v2858_v11 = vrot.slane %v2856_v29, 4  ;;  %v6877_v29 = vld [vmem:[#allocation2 + $0x20] sm:$0x1] }
 0x1ad   : > { %v3001_v48 = vpop.f32.mrf.mxu0  ;;  %v2003_v47 = vpack.c.b16 %v1987_v42, %v1986_v24 }
 0x1ae   : > { %v6845_v62 = vadd.f32 %v3001_v48, %v2460_v23  ;;  %v2836_v23 = vrot.slane %v2835_v59, 4  ;;  %v2848_v40 = vrot.slane %v2846_v25, 5  ;;  %v1776_v59 = vadd.f32 %v1775_v12, %v6655_v33  ;;  %v5263_v12 = vld [vmem:[#allocation2 + $0xc8] sm:$0x1] }
 0x1af   : > { %v2397_v35 = vpop.f32.mrf.mxu3  ;;  %v2094_v63 = vpop.f32.mrf.mxu2  ;;  %v2896_v25 = vunpack.c.l.b16 %v2831_v28  ;;  %v2862_v42 = vshll.u32 %v5263_v12, 16 }
 0x1b0   : > { %7714 = vst [vmem:[#allocation9_spill] sm:$0xff] %v6845_v62  ;;  %v2461_v4 = vadd.f32 %v2397_v35, %v2155_v57  ;;  %v2156_v2 = vadd.f32 %v2094_v63, %v1774_v43  ;;  %v1778_v27 = vpop.f32.mrf.mxu1  ;;  %5359 = vmatmul.msk.bf16.gmra.mxu0 %vm1461_vm11, %v2913_v52  ;;  %v5776_v57 = vld [vmem:[#allocation2 + $0xc] sm:$0xf]  ;;  %v3109_v52 = vrot.slane %v5777_v19, 5  ;;  %v2841_v43 = vsel %vm6050_vm12, %v2836_v23, %v2840_v3 }
 0x1b1   : > { %v5362_v32 = vrot.slane %v5776_v57, 9  ;;  %v2854_v63 = vrot.slane %v2852_v31, 5  ;;  %v2897_v33 = vunpack.c.l.b16 %v2841_v43  ;;  %v2849_v23 = vor.u32 %v2848_v40, %v2845_v26 }
 0x1b2   : > { %5182 = vmatmul.msk.bf16.gmra.mxu1 %vm1461_vm11, %v5593_v50  ;;  %v3748_v50 = vshll.u32 %v6853_v45, 16  ;;  %v3110_v57 = vsel %vm6505_vm15, %v3108_v1, %v3109_v52  ;;  %v3747_v31 = vrot.slane %v3745_v17, 4  ;;  %v3764_v17 = vshll.u32 %v6877_v29, 16 }
 0x1b3   : > { %v3107_v3 = vsel %vm6505_vm15, %v5362_v32, %v3106_v37  ;;  %v2859_v24 = vor.u32 %v2858_v11, %v2854_v63  ;;  %v2914_v28 = vpack.c.b16 %v2897_v33, %v2896_v25  ;;  %v1779_v37 = vadd.f32 %v1778_v27, %v6667_v55 }
 0x1b4   : > { %5343 = vmatmul.msk.bf16.gmra.mxu3 %vm1461_vm11, %v5608_v0  ;;  %v3758_v0 = vshrl.u32 %v6856_v41, 16  ;;  %v3750_v19 = vrot.slane %v3748_v50, 5  ;;  %v3218_v62 = vunpack.c.l.b16 %v3107_v3  ;;  %v2850_v32 = vrot.slane %v2849_v23, 4 }
 0x1b5   : > { %v3003_v48 = vpop.f32.mrf.mxu0  ;;  %v3766_v25 = vrot.slane %v3764_v17, 5 }
 0x1b6   : > { %v6868_v54 = vadd.f32 %v3003_v48, %v2461_v4  ;;  %v3219_v4 = vunpack.c.l.b16 %v3110_v57  ;;  %v6874_v48 = vrot.slane %v3754_v51, 5  ;;  %v3751_v43 = vor.u32 %v3750_v19, %v3747_v31  ;;  %v5779_v57 = vld [vmem:[#allocation2 + $0x1c] sm:$0xf]  ;;  %v6892_v19 = vld [vmem:[#allocation2 + $0x24] sm:$0xf] }
 0x1b7   : > { %v2400_v20 = vpop.f32.mrf.mxu3  ;;  %v2096_v35 = vpop.f32.mrf.mxu2  ;;  %v2860_v51 = vrot.slane %v2859_v24, 4  ;;  %v2855_v55 = vsel %vm6050_vm12, %v2850_v32, %v2854_v63  ;;  %v3113_v31 = vrot.slane %v5779_v57, 5  ;;  %v5780_v32 = vld [vmem:[#allocation2 + $0x18] sm:$0xf] }
 0x1b8   : > { %v2462_v38 = vadd.f32 %v2400_v20, %v2156_v2  ;;  %v2157_v44 = vadd.f32 %v2096_v35, %v1776_v59  ;;  %v1780_v39 = vpop.f32.mrf.mxu1  ;;  %v3760_v2 = vrot.slane %v3758_v0, 4  ;;  %v3250_v26 = vpack.c.b16 %v3219_v4, %v3218_v62  ;;  %v5609_v35 = vld [vmem:[#allocation2 + $0xc0] sm:$0xff]  ;;  %v6894_v4 = vld [vmem:[#allocation2 + $0x28] sm:$0xf] }
 0x1b9   : > { %v2864_v0 = vrot.slane %v2862_v42, 5  ;;  %v3752_v62 = vrot.slane %v3751_v43, 4  ;;  %v2898_v23 = vunpack.c.l.b16 %v2855_v55  ;;  %v1781_v3 = vadd.f32 %v1780_v39, %v6686_v30  ;;  %v5610_v39 = vld [vmem:[#allocation2 + $0x18] sm:$0xff] }
 0x1ba   : > { %v3761_v59 = vor.u32 %v3760_v2, %v6874_v48  ;;  %v3769_v43 = vshrl.u32 %v6892_v19, 16  ;;  %v3778_v17 = vshll.u32 %v6894_v4, 16 }
 0x1bb   : > { %v3757_v42 = vsel %vm6050_vm12, %v3752_v62, %v6874_v48  ;;  %v3782_v48 = vshrl.u32 %v6894_v4, 16 }
 0x1bc   : > { %5215 = vmatmul.msk.bf16.gmra.mxu2 %vm1461_vm11, %v2003_v47  ;;  %v3762_v27 = vrot.slane %v3761_v59, 4  ;;  %v3772_v59 = vshll.u32 %v6892_v19, 16  ;;  %v4130_v55 = vunpack.c.l.b16 %v3757_v42 }
 0x1bd   : > { %v3006_v40 = vpop.f32.mrf.mxu0 }
 0x1be   : > { %v6882_v50 = vadd.f32 %v3006_v40, %v2462_v38  ;;  %v2865_v38 = vsel %vm6050_vm12, %v2860_v51, %v2864_v0 }
 0x1bf   : > { %v2402_v1 = vpop.f32.mrf.mxu3  ;;  %v2099_v52 = vpop.f32.mrf.mxu2  ;;  %v2899_v63 = vunpack.c.l.b16 %v2865_v38  ;;  %v3774_v38 = vrot.slane %v3772_v59, 5  ;;  %v6931_v59 = vld [vmem:[#allocation2 + $0x34] sm:$0xf] }
 0x1c0   : > { %v2463_v20 = vadd.f32 %v2402_v1, %v2157_v44  ;;  %v2158_v47 = vadd.f32 %v2099_v52, %v1779_v37  ;;  %v1783_v11 = vpop.f32.mrf.mxu1  ;;  %5360 = vmatmul.msk.bf16.gmra.mxu0 %vm1461_vm11, %v2914_v28  ;;  %v5778_v44 = vld [vmem:[#allocation2 + $0x20] sm:$0x1]  ;;  %v3767_v28 = vsel %vm6050_vm12, %v3762_v27, %v3766_v25  ;;  %v5363_v1 = vrot.slane %v5780_v32, 9 }
 0x1c1   : > { %v3116_v33 = vrot.slane %v5778_v44, 5  ;;  %v3115_v52 = vrot.slane %v3113_v31, 4  ;;  %v4131_v62 = vunpack.c.l.b16 %v3767_v28  ;;  %v4368_v27 = vrot.slane %v6856_v41, 5 }
 0x1c2   : > { %5379 = vmatmul.msk.bf16.vlgmr.msra.gmra.mxu1 %vm1461_vm11, %v3250_v26  ;;  %v3771_v25 = vrot.slane %v3769_v43, 4  ;;  %v6913_v44 = vrot.slane %v3778_v17, 5  ;;  %v1784_v57 = vadd.f32 %v1783_v11, %v6602_v13 }
 0x1c3   : > { %v4162_v28 = vpack.c.b16 %v4131_v62, %v4130_v55  ;;  %v4370_v41 = vrot.slane %v4368_v27, 4 }
 0x1c4   : > { %5344 = vmatmul.msk.bf16.gmra.mxu3 %vm1461_vm11, %v5609_v35  ;;  %v3114_v35 = vsel %vm6505_vm15, %v5363_v1, %v3113_v31  ;;  %v4371_v1 = vrot.slane %v6877_v29, 5 }
 0x1c5   : > { %v3008_v12 = vpop.f32.mrf.mxu0  ;;  %v3220_v51 = vunpack.c.l.b16 %v3114_v35 }
 0x1c6   : > { %v6901_v26 = vadd.f32 %v3008_v12, %v2463_v20  ;;  %v3117_v20 = vsel %vm6505_vm15, %v3115_v52, %v3116_v33  ;;  %v3784_v12 = vrot.slane %v3782_v48, 4  ;;  %v3775_v52 = vor.u32 %v3774_v38, %v3771_v25 }
 0x1c7   : > { %v2405_v2 = vpop.f32.mrf.mxu3  ;;  %v2101_v24 = vpop.f32.mrf.mxu2  ;;  %v3221_v0 = vunpack.c.l.b16 %v3117_v20  ;;  %v4372_v29 = vsel %vm6505_vm15, %v4370_v41, %v4371_v1 }
 0x1c8   : > { %v2464_v40 = vadd.f32 %v2405_v2, %v2158_v47  ;;  %v2159_v30 = vadd.f32 %v2101_v24, %v1781_v3  ;;  %v1785_v37 = vpop.f32.mrf.mxu1  ;;  %v2915_v47 = vpack.c.b16 %v2899_v63, %v2898_v23  ;;  %v6916_v2 = vld [vmem:[#allocation2 + $0x2c] sm:$0x1]  ;;  %v5541_v23 = vrot.slane %v6853_v45, 9  ;;  %v6926_v45 = vld [vmem:[#allocation2 + $0x30] sm:$0xf] }
 0x1c9   : > { %v3251_v31 = vpack.c.b16 %v3221_v0, %v3220_v51  ;;  %v3785_v13 = vor.u32 %v3784_v12, %v6913_v44  ;;  %v3788_v11 = vshll.u32 %v6916_v2, 16  ;;  %v3776_v17 = vrot.slane %v3775_v52, 4  ;;  %v5782_v0 = vld [vmem:[#allocation2 + $0x28] sm:$0xf] }
 0x1ca   : > { %v1786_v51 = vadd.f32 %v1785_v37, %v6614_v5  ;;  %v3793_v55 = vshrl.u32 %v6926_v45, 16  ;;  %v3796_v62 = vshll.u32 %v6926_v45, 16  ;;  %v3802_v12 = vshll.u32 %v6931_v59, 16  ;;  %v5783_v5 = vld [vmem:[#allocation2 + $0x24] sm:$0xf] }
 0x1cb   : > { %v3786_v48 = vrot.slane %v3785_v13, 4  ;;  %v3790_v35 = vrot.slane %v3788_v11, 5  ;;  %v5364_v37 = vrot.slane %v5783_v5, 9  ;;  %v4481_v41 = vunpack.c.l.b16 %v4372_v29 }
 0x1cc   : > { %5508 = vmatmul.msk.bf16.vlgmr.msra.gmra.mxu2 %vm1461_vm11, %v5610_v39  ;;  %v3781_v1 = vsel %vm6050_vm12, %v3776_v17, %v6913_v44  ;;  %v4375_v13 = vrot.slane %v6894_v4, 5  ;;  %v3795_v11 = vrot.slane %v3793_v55, 4  ;;  %v6952_v29 = vrot.slane %v3802_v12, 5 }
 0x1cd   : > { %v3011_v3 = vpop.f32.mrf.mxu0  ;;  %v3791_v52 = vsel %vm6050_vm12, %v3786_v48, %v3790_v35  ;;  %v4132_v44 = vunpack.c.l.b16 %v3781_v1  ;;  %v6955_v48 = vld [vmem:[#allocation2 + $0x38] sm:$0x1] }
 0x1ce   : > { %v6919_v24 = vadd.f32 %v3011_v3, %v2464_v40  ;;  %v5781_v40 = vld [vmem:[#allocation2 + $0x2c] sm:$0x1]  ;;  %v3806_v3 = vshrl.u32 %v6931_v59, 16  ;;  %v4133_v17 = vunpack.c.l.b16 %v3791_v52 }
 0x1cf   : > { %v2407_v33 = vpop.f32.mrf.mxu3  ;;  %v2104_v63 = vpop.f32.mrf.mxu2  ;;  %v3123_v43 = vrot.slane %v5781_v40, 5  ;;  %v3798_v40 = vrot.slane %v3796_v62, 5 }
 0x1d0   : > { %v2465_v42 = vadd.f32 %v2407_v33, %v2159_v30  ;;  %v2160_v39 = vadd.f32 %v2104_v63, %v1784_v57  ;;  %v1788_v32 = vpop.f32.mrf.mxu1  ;;  %5361 = vmatmul.msk.bf16.gmra.mxu0 %vm1461_vm11, %v2915_v47  ;;  %v4369_v30 = vsel %vm6505_vm15, %v5541_v23, %v4368_v27  ;;  %v3120_v47 = vrot.slane %v5782_v0, 5  ;;  %v5611_v23 = vld [vmem:[#allocation2 + $0x24] sm:$0xff] }
 0x1d1   : > { %v4480_v25 = vunpack.c.l.b16 %v4369_v30  ;;  %v1789_v0 = vadd.f32 %v1788_v32, %v6633_v46 }
 0x1d2   : > { %5380 = vmatmul.msk.bf16.gmra.mxu1 %vm1461_vm11, %v3251_v31 }
 0x1d3   : > { %v4512_v4 = vpack.c.b16 %v4481_v41, %v4480_v25  ;;  %v4378_v25 = vrot.slane %v6916_v2, 5 }
 0x1d4   : > { %5525 = vmatmul.msk.bf16.vlgmr.msra.gmra.mxu3 %vm1461_vm11, %v4162_v28  ;;  %v3122_v28 = vrot.slane %v3120_v47, 4 }
 0x1d5   : > { %v3013_v20 = vpop.f32.mrf.mxu0 }
 0x1d6   : > { %v6940_v57 = vadd.f32 %v3013_v20, %v2465_v42  ;;  %v3121_v42 = vsel %vm6505_vm15, %v5364_v37, %v3120_v47  ;;  %v5542_v47 = vrot.slane %v6892_v19, 9  ;;  %v4163_v37 = vpack.c.b16 %v4133_v17, %v4132_v44 }
 0x1d7   : > { %v2410_v38 = vpop.f32.mrf.mxu3  ;;  %v2106_v27 = vpop.f32.mrf.mxu2  ;;  %v3222_v30 = vunpack.c.l.b16 %v3121_v42 }
 0x1d8   : > { %v2466_v31 = vadd.f32 %v2410_v38, %v2160_v39  ;;  %v2161_v33 = vadd.f32 %v2106_v27, %v1786_v51  ;;  %v1790_v63 = vpop.f32.mrf.mxu1  ;;  %v3124_v39 = vsel %vm6505_vm15, %v3122_v28, %v3123_v43  ;;  %v3808_v51 = vrot.slane %v3806_v3, 4 }
 0x1d9   : > { %v3223_v20 = vunpack.c.l.b16 %v3124_v39  ;;  %v4377_v43 = vrot.slane %v4375_v13, 4  ;;  %v3799_v27 = vor.u32 %v3798_v40, %v3795_v11  ;;  %v3812_v3 = vshll.u32 %v6955_v48, 16  ;;  %v5785_v11 = vld [vmem:[#allocation2 + $0x34] sm:$0xf] }
 0x1da   : > { %v3809_v12 = vor.u32 %v3808_v51, %v6952_v29  ;;  %v4376_v46 = vsel %vm6505_vm15, %v5542_v47, %v4375_v13  ;;  %v1791_v39 = vadd.f32 %v1790_v63, %v6643_v9  ;;  %v3127_v40 = vrot.slane %v5785_v11, 5  ;;  %v5612_v63 = vld [vmem:[#allocation2 + $0x30] sm:$0xff] }
 0x1db   : > { %v3252_v55 = vpack.c.b16 %v3223_v20, %v3222_v30  ;;  %v3800_v19 = vrot.slane %v3799_v27, 4  ;;  %v3814_v1 = vrot.slane %v3812_v3, 5  ;;  %v4482_v42 = vunpack.c.l.b16 %v4376_v46  ;;  %v6972_v30 = vld [vmem:[#allocation2 + $0x3c] sm:$0xf]  ;;  %v6974_v20 = vld [vmem:[#allocation2 + $0x40] sm:$0xf] }
 0x1dc   : > { %5509 = vmatmul.msk.bf16.gmra.mxu2 %vm1461_vm11, %v5611_v23  ;;  %v3810_v32 = vrot.slane %v3809_v12, 4  ;;  %v3820_v27 = vshll.u32 %v6972_v30, 16  ;;  %v3826_v12 = vshll.u32 %v6974_v20, 16 }
 0x1dd   : > { %v3016_v35 = vpop.f32.mrf.mxu0  ;;  %v3805_v17 = vsel %vm6050_vm12, %v3800_v19, %v6952_v29  ;;  %v3830_v29 = vshrl.u32 %v6974_v20, 16 }
 0x1de   : > { %v6961_v23 = vadd.f32 %v3016_v35, %v2466_v31  ;;  %v4379_v31 = vsel %vm6505_vm15, %v4377_v43, %v4378_v25  ;;  %v5786_v43 = vld [vmem:[#allocation2 + $0x30] sm:$0xf]  ;;  %v4134_v46 = vunpack.c.l.b16 %v3805_v17 }
 0x1df   : > { %v2412_v62 = vpop.f32.mrf.mxu3  ;;  %v2109_v38 = vpop.f32.mrf.mxu2  ;;  %v4483_v13 = vunpack.c.l.b16 %v4379_v31  ;;  %v3822_v31 = vrot.slane %v3820_v27, 5  ;;  %v7011_v27 = vld [vmem:[#allocation2 + $0x4c] sm:$0xf] }
 0x1e0   : > { %v2467_v5 = vadd.f32 %v2412_v62, %v2161_v33  ;;  %v2162_v28 = vadd.f32 %v2109_v38, %v1789_v0  ;;  %v1793_v41 = vpop.f32.mrf.mxu1  ;;  %5558 = vmatmul.msk.bf16.vlgmr.msra.gmra.mxu0 %vm1461_vm11, %v4512_v4  ;;  %v5784_v33 = vld [vmem:[#allocation2 + $0x38] sm:$0x1]  ;;  %v3815_v4 = vsel %vm6050_vm12, %v3810_v32, %v3814_v1  ;;  %v3129_v62 = vrot.slane %v3127_v40, 4 }
 0x1e1   : > { %v3130_v52 = vrot.slane %v5784_v33, 5  ;;  %v3817_v38 = vshrl.u32 %v6972_v30, 16  ;;  %v4135_v19 = vunpack.c.l.b16 %v3815_v4  ;;  %v4382_v32 = vrot.slane %v6931_v59, 5 }
 0x1e2   : > { %5381 = vmatmul.msk.bf16.gmra.mxu1 %vm1461_vm11, %v3252_v55  ;;  %v5365_v55 = vrot.slane %v5786_v43, 9  ;;  %v6993_v33 = vrot.slane %v3826_v12, 5  ;;  %v1794_v11 = vadd.f32 %v1793_v41, %v6662_v49 }
 0x1e3   : > { %v3819_v1 = vrot.slane %v3817_v38, 4  ;;  %v4164_v4 = vpack.c.b16 %v4135_v19, %v4134_v46  ;;  %v4384_v59 = vrot.slane %v4382_v32, 4 }
 0x1e4   : > { %5526 = vmatmul.msk.bf16.gmra.mxu3 %vm1461_vm11, %v4163_v37  ;;  %v3128_v3 = vsel %vm6505_vm15, %v5365_v55, %v3127_v40  ;;  %v4385_v55 = vrot.slane %v6955_v48, 5 }
 0x1e5   : > { %v3018_v2 = vpop.f32.mrf.mxu0  ;;  %v3224_v37 = vunpack.c.l.b16 %v3128_v3 }
 0x1e6   : > { %v6981_v35 = vadd.f32 %v3018_v2, %v2467_v5  ;;  %v3131_v5 = vsel %vm6505_vm15, %v3129_v62, %v3130_v52  ;;  %v3832_v2 = vrot.slane %v3830_v29, 4  ;;  %v3823_v62 = vor.u32 %v3822_v31, %v3819_v1 }
 0x1e7   : > { %v2415_v51 = vpop.f32.mrf.mxu3  ;;  %v2111_v44 = vpop.f32.mrf.mxu2  ;;  %v3225_v25 = vunpack.c.l.b16 %v3131_v5  ;;  %v4386_v48 = vsel %vm6505_vm15, %v4384_v59, %v4385_v55 }
 0x1e8   : > { %v2468_v0 = vadd.f32 %v2415_v51, %v2162_v28  ;;  %v2163_v9 = vadd.f32 %v2111_v44, %v1791_v39  ;;  %v1795_v47 = vpop.f32.mrf.mxu1  ;;  %v4513_v28 = vpack.c.b16 %v4483_v13, %v4482_v42  ;;  %v6996_v51 = vld [vmem:[#allocation2 + $0x44] sm:$0x1]  ;;  %v5543_v42 = vrot.slane %v6926_v45, 9  ;;  %v7006_v45 = vld [vmem:[#allocation2 + $0x48] sm:$0xf] }
 0x1e9   : > { %v3253_v40 = vpack.c.b16 %v3225_v25, %v3224_v37  ;;  %v3833_v49 = vor.u32 %v3832_v2, %v6993_v33  ;;  %v3836_v41 = vshll.u32 %v6996_v51, 16  ;;  %v3824_v12 = vrot.slane %v3823_v62, 4  ;;  %v5788_v25 = vld [vmem:[#allocation2 + $0x40] sm:$0xf] }
 0x1ea   : > { %v1796_v37 = vadd.f32 %v1795_v47, %v6682_v16  ;;  %v3841_v46 = vshrl.u32 %v7006_v45, 16  ;;  %v3844_v19 = vshll.u32 %v7006_v45, 16  ;;  %v3850_v2 = vshll.u32 %v7011_v27, 16  ;;  %v5789_v16 = vld [vmem:[#allocation2 + $0x3c] sm:$0xf] }
 0x1eb   : > { %v3834_v29 = vrot.slane %v3833_v49, 4  ;;  %v3838_v3 = vrot.slane %v3836_v41, 5  ;;  %v5366_v47 = vrot.slane %v5789_v16, 9  ;;  %v4485_v59 = vunpack.c.l.b16 %v4386_v48 }
 0x1ec   : > { %5510 = vmatmul.msk.bf16.gmra.mxu2 %vm1461_vm11, %v5612_v63  ;;  %v3829_v55 = vsel %vm6050_vm12, %v3824_v12, %v6993_v33  ;;  %v4389_v49 = vrot.slane %v6974_v20, 5  ;;  %v3843_v41 = vrot.slane %v3841_v46, 4  ;;  %v7032_v48 = vrot.slane %v3850_v2, 5 }
 0x1ed   : > { %v3021_v39 = vpop.f32.mrf.mxu0  ;;  %v3839_v62 = vsel %vm6050_vm12, %v3834_v29, %v3838_v3  ;;  %v4136_v33 = vunpack.c.l.b16 %v3829_v55  ;;  %v7035_v29 = vld [vmem:[#allocation2 + $0x50] sm:$0x1] }
 0x1ee   : > { %v6999_v44 = vadd.f32 %v3021_v39, %v2468_v0  ;;  %v5787_v0 = vld [vmem:[#allocation2 + $0x44] sm:$0x1]  ;;  %v3854_v39 = vshrl.u32 %v7011_v27, 16  ;;  %v4137_v12 = vunpack.c.l.b16 %v3839_v62 }
 0x1ef   : > { %v2417_v52 = vpop.f32.mrf.mxu3  ;;  %v2114_v13 = vpop.f32.mrf.mxu2  ;;  %v3137_v38 = vrot.slane %v5787_v0, 5  ;;  %v3846_v0 = vrot.slane %v3844_v19, 5 }
 0x1f0   : > { %v2469_v17 = vadd.f32 %v2417_v52, %v2163_v9  ;;  %v2164_v63 = vadd.f32 %v2114_v13, %v1794_v11  ;;  %v1798_v43 = vpop.f32.mrf.mxu1  ;;  %5559 = vmatmul.msk.bf16.gmra.mxu0 %vm1461_vm11, %v4513_v28  ;;  %v4383_v9 = vsel %vm6505_vm15, %v5543_v42, %v4382_v32  ;;  %v3134_v28 = vrot.slane %v5788_v25, 5  ;;  %v5613_v42 = vld [vmem:[#allocation2 + $0x3c] sm:$0xff] }
 0x1f1   : > { %v4484_v1 = vunpack.c.l.b16 %v4383_v9  ;;  %v1799_v25 = vadd.f32 %v1798_v43, %v6693_v58 }
 0x1f2   : > { %5382 = vmatmul.msk.bf16.gmra.mxu1 %vm1461_vm11, %v3253_v40 }
 0x1f3   : > { %v4514_v20 = vpack.c.b16 %v4485_v59, %v4484_v1  ;;  %v4392_v1 = vrot.slane %v6996_v51, 5 }
 0x1f4   : > { %5527 = vmatmul.msk.bf16.gmra.mxu3 %vm1461_vm11, %v4164_v4  ;;  %v3136_v4 = vrot.slane %v3134_v28, 4 }
 0x1f5   : > { %v3023_v5 = vpop.f32.mrf.mxu0 }
 0x1f6   : > { %v7020_v11 = vadd.f32 %v3023_v5, %v2469_v17  ;;  %v3135_v17 = vsel %vm6505_vm15, %v5366_v47, %v3134_v28  ;;  %v5544_v28 = vrot.slane %v6972_v30, 9  ;;  %v4165_v47 = vpack.c.b16 %v4137_v12, %v4136_v33 }
 0x1f7   : > { %v2420_v31 = vpop.f32.mrf.mxu3  ;;  %v2116_v32 = vpop.f32.mrf.mxu2  ;;  %v3226_v9 = vunpack.c.l.b16 %v3135_v17 }
 0x1f8   : > { %v2470_v40 = vadd.f32 %v2420_v31, %v2164_v63  ;;  %v2165_v52 = vadd.f32 %v2116_v32, %v1796_v37  ;;  %v1800_v13 = vpop.f32.mrf.mxu1  ;;  %v3138_v63 = vsel %vm6505_vm15, %v3136_v4, %v3137_v38  ;;  %v3856_v37 = vrot.slane %v3854_v39, 4 }
 0x1f9   : > { %v3227_v5 = vunpack.c.l.b16 %v3138_v63  ;;  %v4391_v38 = vrot.slane %v4389_v49, 4  ;;  %v3847_v32 = vor.u32 %v3846_v0, %v3843_v41  ;;  %v3860_v39 = vshll.u32 %v7035_v29, 16  ;;  %v5791_v41 = vld [vmem:[#allocation2 + $0x4c] sm:$0xf] }
 0x1fa   : > { %v3857_v2 = vor.u32 %v3856_v37, %v7032_v48  ;;  %v4390_v58 = vsel %vm6505_vm15, %v5544_v28, %v4389_v49  ;;  %v1801_v63 = vadd.f32 %v1800_v13, %v6711_v10  ;;  %v3141_v0 = vrot.slane %v5791_v41, 5  ;;  %v5614_v13 = vld [vmem:[#allocation2 + $0x48] sm:$0xff] }
 0x1fb   : > { %v3254_v46 = vpack.c.b16 %v3227_v5, %v3226_v9  ;;  %v3848_v30 = vrot.slane %v3847_v32, 4  ;;  %v3862_v55 = vrot.slane %v3860_v39, 5  ;;  %v4486_v17 = vunpack.c.l.b16 %v4390_v58  ;;  %v7052_v9 = vld [vmem:[#allocation2 + $0x54] sm:$0xf]  ;;  %v7054_v5 = vld [vmem:[#allocation2 + $0x58] sm:$0xf] }
 0x1fc   : > { %5511 = vmatmul.msk.bf16.gmra.mxu2 %vm1461_vm11, %v5613_v42  ;;  %v3858_v43 = vrot.slane %v3857_v2, 4  ;;  %v3868_v32 = vshll.u32 %v7052_v9, 16  ;;  %v3874_v2 = vshll.u32 %v7054_v5, 16 }
 0x1fd   : > { %v3026_v3 = vpop.f32.mrf.mxu0  ;;  %v3853_v12 = vsel %vm6050_vm12, %v3848_v30, %v7032_v48  ;;  %v3878_v48 = vshrl.u32 %v7054_v5, 16 }
 0x1fe   : > { %v7041_v42 = vadd.f32 %v3026_v3, %v2470_v40  ;;  %v4393_v40 = vsel %vm6505_vm15, %v4391_v38, %v4392_v1  ;;  %v5792_v38 = vld [vmem:[#allocation2 + $0x48] sm:$0xf]  ;;  %v4138_v58 = vunpack.c.l.b16 %v3853_v12 }
 0x1ff   : > { %v2422_v19 = vpop.f32.mrf.mxu3  ;;  %v2119_v31 = vpop.f32.mrf.mxu2  ;;  %v4487_v49 = vunpack.c.l.b16 %v4393_v40  ;;  %v3870_v40 = vrot.slane %v3868_v32, 5  ;;  %v7091_v32 = vld [vmem:[#allocation2 + $0x64] sm:$0xf] }
 0x200   : > { %v2471_v16 = vadd.f32 %v2422_v19, %v2165_v52  ;;  %v2166_v4 = vadd.f32 %v2119_v31, %v1799_v25  ;;  %v1803_v59 = vpop.f32.mrf.mxu1  ;;  %5560 = vmatmul.msk.bf16.gmra.mxu0 %vm1461_vm11, %v4514_v20  ;;  %v5790_v52 = vld [vmem:[#allocation2 + $0x50] sm:$0x1]  ;;  %v3863_v20 = vsel %vm6050_vm12, %v3858_v43, %v3862_v55  ;;  %v3143_v19 = vrot.slane %v3141_v0, 4 }
 0x201   : > { %v3144_v62 = vrot.slane %v5790_v52, 5  ;;  %v3865_v31 = vshrl.u32 %v7052_v9, 16  ;;  %v4139_v30 = vunpack.c.l.b16 %v3863_v20  ;;  %v4396_v43 = vrot.slane %v7011_v27, 5 }
 0x202   : > { %5383 = vmatmul.msk.bf16.gmra.mxu1 %vm1461_vm11, %v3254_v46  ;;  %v5367_v46 = vrot.slane %v5792_v38, 9  ;;  %v7073_v52 = vrot.slane %v3874_v2, 5  ;;  %v1804_v41 = vadd.f32 %v1803_v59, %v6611_v60 }
 0x203   : > { %v3867_v55 = vrot.slane %v3865_v31, 4  ;;  %v4166_v20 = vpack.c.b16 %v4139_v30, %v4138_v58  ;;  %v4398_v27 = vrot.slane %v4396_v43, 4 }
 0x204   : > { %5528 = vmatmul.msk.bf16.gmra.mxu3 %vm1461_vm11, %v4165_v47  ;;  %v3142_v39 = vsel %vm6505_vm15, %v5367_v46, %v3141_v0  ;;  %v4399_v46 = vrot.slane %v7035_v29, 5 }
 0x205   : > { %v3028_v51 = vpop.f32.mrf.mxu0  ;;  %v3228_v47 = vunpack.c.l.b16 %v3142_v39 }
 0x206   : > { %v7061_v3 = vadd.f32 %v3028_v51, %v2471_v16  ;;  %v3145_v16 = vsel %vm6505_vm15, %v3143_v19, %v3144_v62  ;;  %v3880_v51 = vrot.slane %v3878_v48, 4  ;;  %v3871_v19 = vor.u32 %v3870_v40, %v3867_v55 }
 0x207   : > { %v2425_v37 = vpop.f32.mrf.mxu3  ;;  %v2121_v33 = vpop.f32.mrf.mxu2  ;;  %v3229_v1 = vunpack.c.l.b16 %v3145_v16  ;;  %v4400_v29 = vsel %vm6505_vm15, %v4398_v27, %v4399_v46 }
 0x208   : > { %v2472_v25 = vadd.f32 %v2425_v37, %v2166_v4  ;;  %v2167_v10 = vadd.f32 %v2121_v33, %v1801_v63  ;;  %v1805_v28 = vpop.f32.mrf.mxu1  ;;  %v4515_v4 = vpack.c.b16 %v4487_v49, %v4486_v17  ;;  %v7076_v37 = vld [vmem:[#allocation2 + $0x5c] sm:$0x1]  ;;  %v5545_v17 = vrot.slane %v7006_v45, 9  ;;  %v7086_v45 = vld [vmem:[#allocation2 + $0x60] sm:$0xf] }
 0x209   : > { %v3255_v0 = vpack.c.b16 %v3229_v1, %v3228_v47  ;;  %v3881_v60 = vor.u32 %v3880_v51, %v7073_v52  ;;  %v3884_v59 = vshll.u32 %v7076_v37, 16  ;;  %v3872_v2 = vrot.slane %v3871_v19, 4  ;;  %v5794_v1 = vld [vmem:[#allocation2 + $0x58] sm:$0xf] }
 0x20a   : > { %v1806_v47 = vadd.f32 %v1805_v28, %v6631_v14  ;;  %v3889_v58 = vshrl.u32 %v7086_v45, 16  ;;  %v3892_v30 = vshll.u32 %v7086_v45, 16  ;;  %v3898_v51 = vshll.u32 %v7091_v32, 16  ;;  %v5795_v14 = vld [vmem:[#allocation2 + $0x54] sm:$0xf] }
 0x20b   : > { %v3882_v48 = vrot.slane %v3881_v60, 4  ;;  %v3886_v39 = vrot.slane %v3884_v59, 5  ;;  %v5368_v28 = vrot.slane %v5795_v14, 9  ;;  %v4489_v27 = vunpack.c.l.b16 %v4400_v29 }
 0x20c   : > { %5512 = vmatmul.msk.bf16.gmra.mxu2 %vm1461_vm11, %v5614_v13  ;;  %v3877_v46 = vsel %vm6050_vm12, %v3872_v2, %v7073_v52  ;;  %v4403_v60 = vrot.slane %v7054_v5, 5  ;;  %v3891_v59 = vrot.slane %v3889_v58, 4  ;;  %v7112_v29 = vrot.slane %v3898_v51, 5 }
 0x20d   : > { %v3031_v63 = vpop.f32.mrf.mxu0  ;;  %v3887_v19 = vsel %vm6050_vm12, %v3882_v48, %v3886_v39  ;;  %v4140_v52 = vunpack.c.l.b16 %v3877_v46  ;;  %v7115_v48 = vld [vmem:[#allocation2 + $0x68] sm:$0x1] }
 0x20e   : > { %v7079_v33 = vadd.f32 %v3031_v63, %v2472_v25  ;;  %v5793_v25 = vld [vmem:[#allocation2 + $0x5c] sm:$0x1]  ;;  %v3902_v63 = vshrl.u32 %v7091_v32, 16  ;;  %v4141_v2 = vunpack.c.l.b16 %v3887_v19 }
 0x20f   : > { %v2427_v62 = vpop.f32.mrf.mxu3  ;;  %v2124_v49 = vpop.f32.mrf.mxu2  ;;  %v3151_v31 = vrot.slane %v5793_v25, 5  ;;  %v3894_v25 = vrot.slane %v3892_v30, 5 }
 0x210   : > { %v2473_v12 = vadd.f32 %v2427_v62, %v2167_v10  ;;  %v2168_v13 = vadd.f32 %v2124_v49, %v1804_v41  ;;  %v1808_v38 = vpop.f32.mrf.mxu1  ;;  %5561 = vmatmul.msk.bf16.gmra.mxu0 %vm1461_vm11, %v4515_v4  ;;  %v4397_v10 = vsel %vm6505_vm15, %v5545_v17, %v4396_v43  ;;  %v3148_v4 = vrot.slane %v5794_v1, 5  ;;  %v5615_v17 = vld [vmem:[#allocation2 + $0x54] sm:$0xff] }
 0x211   : > { %v4488_v55 = vunpack.c.l.b16 %v4397_v10  ;;  %v1809_v1 = vadd.f32 %v1808_v38, %v6640_v61 }
 0x212   : > { %5384 = vmatmul.msk.bf16.gmra.mxu1 %vm1461_vm11, %v3255_v0 }
 0x213   : > { %v4516_v5 = vpack.c.b16 %v4489_v27, %v4488_v55  ;;  %v4406_v55 = vrot.slane %v7076_v37, 5 }
 0x214   : > { %5529 = vmatmul.msk.bf16.gmra.mxu3 %vm1461_vm11, %v4166_v20  ;;  %v3150_v20 = vrot.slane %v3148_v4, 4 }
 0x215   : > { %v3033_v16 = vpop.f32.mrf.mxu0 }
 0x216   : > { %v7100_v41 = vadd.f32 %v3033_v16, %v2473_v12  ;;  %v3149_v12 = vsel %vm6505_vm15, %v5368_v28, %v3148_v4  ;;  %v5546_v4 = vrot.slane %v7052_v9, 9  ;;  %v4167_v28 = vpack.c.b16 %v4141_v2, %v4140_v52 }
 0x217   : > { %v2430_v40 = vpop.f32.mrf.mxu3  ;;  %v2126_v43 = vpop.f32.mrf.mxu2  ;;  %v3230_v10 = vunpack.c.l.b16 %v3149_v12 }
 0x218   : > { %v2474_v0 = vadd.f32 %v2430_v40, %v2168_v13  ;;  %v2169_v62 = vadd.f32 %v2126_v43, %v1806_v47  ;;  %v1810_v49 = vpop.f32.mrf.mxu1  ;;  %v3152_v13 = vsel %vm6505_vm15, %v3150_v20, %v3151_v31  ;;  %v3904_v47 = vrot.slane %v3902_v63, 4 }
 0x219   : > { %v3231_v16 = vunpack.c.l.b16 %v3152_v13  ;;  %v4405_v31 = vrot.slane %v4403_v60, 4  ;;  %v3895_v43 = vor.u32 %v3894_v25, %v3891_v59  ;;  %v3908_v63 = vshll.u32 %v7115_v48, 16  ;;  %v5797_v59 = vld [vmem:[#allocation2 + $0x64] sm:$0xf] }
 0x21a   : > { %v3905_v51 = vor.u32 %v3904_v47, %v7112_v29  ;;  %v4404_v61 = vsel %vm6505_vm15, %v5546_v4, %v4403_v60  ;;  %v1811_v13 = vadd.f32 %v1810_v49, %v6659_v21  ;;  %v3155_v25 = vrot.slane %v5797_v59, 5  ;;  %v5616_v49 = vld [vmem:[#allocation2 + $0x60] sm:$0xff] }
 0x21b   : > { %v3256_v58 = vpack.c.b16 %v3231_v16, %v3230_v10  ;;  %v3896_v9 = vrot.slane %v3895_v43, 4  ;;  %v3910_v46 = vrot.slane %v3908_v63, 5  ;;  %v4490_v12 = vunpack.c.l.b16 %v4404_v61  ;;  %v7132_v10 = vld [vmem:[#allocation2 + $0x6c] sm:$0xf]  ;;  %v7134_v16 = vld [vmem:[#allocation2 + $0x70] sm:$0xf] }
 0x21c   : > { %5513 = vmatmul.msk.bf16.gmra.mxu2 %vm1461_vm11, %v5615_v17  ;;  %v3906_v38 = vrot.slane %v3905_v51, 4  ;;  %v3916_v43 = vshll.u32 %v7132_v10, 16  ;;  %v3922_v51 = vshll.u32 %v7134_v16, 16 }
 0x21d   : > { %v3036_v39 = vpop.f32.mrf.mxu0  ;;  %v3901_v2 = vsel %vm6050_vm12, %v3896_v9, %v7112_v29  ;;  %v3926_v29 = vshrl.u32 %v7134_v16, 16 }
 0x21e   : > { %v7121_v17 = vadd.f32 %v3036_v39, %v2474_v0  ;;  %v4407_v0 = vsel %vm6505_vm15, %v4405_v31, %v4406_v55  ;;  %v5798_v31 = vld [vmem:[#allocation2 + $0x60] sm:$0xf]  ;;  %v4142_v61 = vunpack.c.l.b16 %v3901_v2 }
 0x21f   : > { %v2432_v30 = vpop.f32.mrf.mxu3  ;;  %v2129_v40 = vpop.f32.mrf.mxu2  ;;  %v4491_v60 = vunpack.c.l.b16 %v4407_v0  ;;  %v3918_v0 = vrot.slane %v3916_v43, 5 }
 0x220   : > { %v2475_v14 = vadd.f32 %v2432_v30, %v2169_v62  ;;  %v2170_v20 = vadd.f32 %v2129_v40, %v1809_v1  ;;  %v1813_v27 = vpop.f32.mrf.mxu1  ;;  %5562 = vmatmul.msk.bf16.gmra.mxu0 %vm1461_vm11, %v4516_v5  ;;  %v5796_v62 = vld [vmem:[#allocation2 + $0x68] sm:$0x1]  ;;  %v3911_v5 = vsel %vm6050_vm12, %v3906_v38, %v3910_v46  ;;  %v3157_v30 = vrot.slane %v3155_v25, 4 }
 0x221   : > { %v3158_v19 = vrot.slane %v5796_v62, 5  ;;  %v3913_v40 = vshrl.u32 %v7132_v10, 16  ;;  %v4143_v9 = vunpack.c.l.b16 %v3911_v5  ;;  %v4410_v38 = vrot.slane %v7091_v32, 5 }
 0x222   : > { %5385 = vmatmul.msk.bf16.gmra.mxu1 %vm1461_vm11, %v3256_v58  ;;  %v5369_v58 = vrot.slane %v5798_v31, 9  ;;  %v3924_v62 = vrot.slane %v3922_v51, 5  ;;  %v1814_v59 = vadd.f32 %v1813_v27, %v6677_v6 }
 0x223   : > { %v3915_v46 = vrot.slane %v3913_v40, 4  ;;  %v4168_v5 = vpack.c.b16 %v4143_v9, %v4142_v61  ;;  %v7163_v40 = vld [vmem:[#allocation2 + $0x78] sm:$0xf] }
 0x224   : > { %5530 = vmatmul.msk.bf16.gmra.mxu3 %vm1461_vm11, %v4167_v28  ;;  %v3156_v63 = vsel %vm6505_vm15, %v5369_v58, %v3155_v25  ;;  %v4413_v58 = vrot.slane %v7115_v48, 5 }
 0x225   : > { %v3038_v37 = vpop.f32.mrf.mxu0  ;;  %v3232_v28 = vunpack.c.l.b16 %v3156_v63 }
 0x226   : > { %v7141_v39 = vadd.f32 %v3038_v37, %v2475_v14  ;;  %v3159_v14 = vsel %vm6505_vm15, %v3157_v30, %v3158_v19  ;;  %v3928_v37 = vrot.slane %v3926_v29, 4  ;;  %v3919_v30 = vor.u32 %v3918_v0, %v3915_v46 }
 0x227   : > { %v2435_v47 = vpop.f32.mrf.mxu3  ;;  %v2131_v52 = vpop.f32.mrf.mxu2  ;;  %v3233_v55 = vunpack.c.l.b16 %v3159_v14  ;;  %v5799_v14 = vld [vmem:[#allocation2 + $0x70] sm:$0xf] }
 0x228   : > { %v2476_v1 = vadd.f32 %v2435_v47, %v2170_v20  ;;  %v2171_v21 = vadd.f32 %v2131_v52, %v1811_v13  ;;  %v1815_v4 = vpop.f32.mrf.mxu1  ;;  %v4517_v20 = vpack.c.b16 %v4491_v60, %v4490_v12  ;;  %v7154_v47 = vld [vmem:[#allocation2 + $0x74] sm:$0x1]  ;;  %v5547_v52 = vrot.slane %v7086_v45, 9 }
 0x229   : > { %v3257_v25 = vpack.c.b16 %v3233_v55, %v3232_v28  ;;  %v3929_v6 = vor.u32 %v3928_v37, %v3924_v62  ;;  %v3932_v27 = vshll.u32 %v7154_v47, 16  ;;  %v3920_v43 = vrot.slane %v3919_v30, 4 }
 0x22a   : > { %v4411_v45 = vsel %vm6505_vm15, %v5547_v52, %v4410_v38  ;;  %v1816_v63 = vadd.f32 %v1815_v4, %v6691_v7  ;;  %v3162_v28 = vrot.slane %v5799_v14, 5  ;;  %v3937_v55 = vshrl.u32 %v7163_v40, 16  ;;  %v5800_v7 = vld [vmem:[#allocation2 + $0x6c] sm:$0xf] }
 0x22b   : > { %v3930_v48 = vrot.slane %v3929_v6, 4  ;;  %v3934_v51 = vrot.slane %v3932_v27, 5  ;;  %v4492_v61 = vunpack.c.l.b16 %v4411_v45  ;;  %v5370_v4 = vrot.slane %v5800_v7, 9 }
 0x22c   : > { %5514 = vmatmul.msk.bf16.gmra.mxu2 %vm1461_vm11, %v5616_v49  ;;  %v4412_v49 = vrot.slane %v4410_v38, 4  ;;  %v3164_v52 = vrot.slane %v3162_v28, 4  ;;  %v4417_v6 = vrot.slane %v7134_v16, 5  ;;  %v5548_v14 = vrot.slane %v7132_v10, 9 }
 0x22d   : > { %v3041_v13 = vpop.f32.mrf.mxu0 }
 0x22e   : > { %v7157_v60 = vadd.f32 %v3041_v13, %v2476_v1  ;;  %v7168_v1 = vld [vmem:[#allocation2 + $0x7c] sm:$0xf] }
 0x22f   : > { %v2437_v19 = vpop.f32.mrf.mxu3  ;;  %v2134_v12 = vpop.f32.mrf.mxu2  ;;  %v3946_v46 = vshll.u32 %v7168_v1, 16  ;;  %v3950_v0 = vshrl.u32 %v7168_v1, 16 }
 0x230   : > { %v2477_v2 = vadd.f32 %v2437_v19, %v2171_v21  ;;  %v2172_v32 = vadd.f32 %v2134_v12, %v1814_v59  ;;  %v1818_v31 = vpop.f32.mrf.mxu1  ;;  %5563 = vmatmul.msk.bf16.gmra.mxu0 %vm1461_vm11, %v4517_v20  ;;  %v4414_v21 = vsel %vm6505_vm15, %v4412_v49, %v4413_v58  ;;  %v3940_v20 = vshll.u32 %v7163_v40, 16  ;;  %v5801_v58 = vld [vmem:[#allocation2 + $0x74] sm:$0x1] }
 0x231   : > { %v4493_v12 = vunpack.c.l.b16 %v4414_v21  ;;  %v3935_v49 = vsel %vm6050_vm12, %v3930_v48, %v3934_v51  ;;  %v3165_v30 = vrot.slane %v5801_v58, 5  ;;  %v7188_v21 = vrot.slane %v3946_v46, 5  ;;  %v7191_v51 = vld [vmem:[#allocation2 + $0x80] sm:$0x1] }
 0x232   : > { %5386 = vmatmul.msk.bf16.gmra.mxu1 %vm1461_vm11, %v3257_v25  ;;  %v5617_v25 = vld [vmem:[#allocation2 + $0x6c] sm:$0xff]  ;;  %v3942_v27 = vrot.slane %v3940_v20, 5 }
 0x233   : > { %v3166_v45 = vsel %vm6505_vm15, %v3164_v52, %v3165_v30  ;;  %v4518_v16 = vpack.c.b16 %v4493_v12, %v4492_v61  ;;  %v3956_v52 = vshll.u32 %v7191_v51, 16 }
 0x234   : > { %5531 = vmatmul.msk.bf16.gmra.mxu3 %vm1461_vm11, %v4168_v5  ;;  %v3925_v5 = vsel %vm6050_vm12, %v3920_v43, %v3924_v62  ;;  %v4145_v43 = vunpack.c.l.b16 %v3935_v49  ;;  %v3235_v48 = vunpack.c.l.b16 %v3166_v45  ;;  %v7716_v45 = vld [vmem:[#allocation4_spill] sm:$0xff] }
 0x235   : > { %v3043_v29 = vpop.f32.mrf.mxu0  ;;  %v4144_v62 = vunpack.c.l.b16 %v3925_v5 }
 0x236   : > { %v7177_v37 = vadd.f32 %v3043_v29, %v2477_v2  ;;  %v3163_v2 = vsel %vm6505_vm15, %v5370_v4, %v3162_v28 }
 0x237   : > { %v2440_v9 = vpop.f32.mrf.mxu3  ;;  %v2136_v38 = vpop.f32.mrf.mxu2  ;;  %v3234_v29 = vunpack.c.l.b16 %v3163_v2  ;;  %v4169_v61 = vpack.c.b16 %v4145_v43, %v4144_v62  ;;  %v3958_v2 = vrot.slane %v3956_v52, 5 }
 0x238   : > { %v2478_v13 = vadd.f32 %v2440_v9, %v2172_v32  ;;  %v2173_v59 = vadd.f32 %v2136_v38, %v1816_v63  ;;  %v1820_v19 = vpop.f32.mrf.mxu1  ;;  %v3939_v32 = vrot.slane %v3937_v55, 4  ;;  %v3952_v63 = vrot.slane %v3950_v0, 4  ;;  %v7715_v55 = vld [vmem:[#allocation3_spill] sm:$0xff] }
 0x239   : > { %v1819_v20 = vadd.f32 %v1818_v31, %v7715_v55  ;;  %v4419_v9 = vrot.slane %v4417_v6, 4  ;;  %v4420_v38 = vrot.slane %v7154_v47, 5  ;;  %v3258_v7 = vpack.c.b16 %v3235_v48, %v3234_v29 }
 0x23a   : > { %v3943_v0 = vor.u32 %v3942_v27, %v3939_v32  ;;  %v4418_v47 = vsel %vm6505_vm15, %v5548_v14, %v4417_v6  ;;  %v1821_v29 = vadd.f32 %v1820_v19, %v7716_v45  ;;  %v7212_v6 = vld [vmem:[#allocation2 + $0x88] sm:$0xf]  ;;  %v5618_v19 = vld [vmem:[#allocation2 + $0x78] sm:$0xff] }
 0x23b   : > { %v4421_v31 = vsel %vm6505_vm15, %v4419_v9, %v4420_v38  ;;  %v4494_v32 = vunpack.c.l.b16 %v4418_v47 }
 0x23c   : > { %5515 = vmatmul.msk.bf16.gmra.mxu2 %vm1461_vm11, %v5617_v25  ;;  %v3953_v25 = vor.u32 %v3952_v63, %v7188_v21  ;;  %v3944_v58 = vrot.slane %v3943_v0, 4  ;;  %v4495_v27 = vunpack.c.l.b16 %v4421_v31  ;;  %v5802_v63 = vld [vmem:[#allocation2 + $0x7c] sm:$0xf]  ;;  %v5804_v0 = vld [vmem:[#allocation2 + $0x80] sm:$0x1] }
 0x23d   : > { %v3046_v28 = vpop.f32.mrf.mxu0  ;;  %v3169_v62 = vrot.slane %v5802_v63, 5 }
 0x23e   : > { %v7198_v5 = vadd.f32 %v3046_v28, %v2478_v13  ;;  %v3954_v30 = vrot.slane %v3953_v25, 4  ;;  %v7209_v13 = vld [vmem:[#allocation2 + $0x84] sm:$0xf]  ;;  %v3172_v25 = vrot.slane %v5804_v0, 5  ;;  %v4519_v31 = vpack.c.b16 %v4495_v27, %v4494_v32 }
 0x23f   : > { %v2442_v46 = vpop.f32.mrf.mxu3  ;;  %v2139_v4 = vpop.f32.mrf.mxu2  ;;  %v3961_v28 = vshrl.u32 %v7209_v13, 16  ;;  %v3964_v52 = vshll.u32 %v7209_v13, 16 }
 0x240   : > { %v2479_v49 = vadd.f32 %v2442_v46, %v2173_v59  ;;  %v2174_v12 = vadd.f32 %v2139_v4, %v1819_v20  ;;  %v7200_v10 = vpop.f32.mrf.mxu1  ;;  %5564 = vmatmul.msk.bf16.gmra.mxu0 %vm1461_vm11, %v4518_v16  ;;  %v3949_v16 = vsel %vm6050_vm12, %v3944_v58, %v7188_v21  ;;  %v3959_v14 = vsel %vm6050_vm12, %v3954_v30, %v3958_v2 }
 0x241   : > { %v3171_v4 = vrot.slane %v3169_v62, 4  ;;  %v3970_v21 = vshll.u32 %v7212_v6, 16  ;;  %v4146_v58 = vunpack.c.l.b16 %v3949_v16  ;;  %v4147_v30 = vunpack.c.l.b16 %v3959_v14 }
 0x242   : > { %5387 = vmatmul.msk.bf16.gmra.mxu1 %vm1461_vm11, %v3258_v7  ;;  %v5803_v7 = vld [vmem:[#allocation2 + $0x78] sm:$0xf]  ;;  %v3966_v45 = vrot.slane %v3964_v52, 5  ;;  %v5549_v16 = vrot.slane %v7163_v40, 9 }
 0x243   : > { %v5371_v46 = vrot.slane %v5803_v7, 9  ;;  %v4170_v27 = vpack.c.b16 %v4147_v30, %v4146_v58  ;;  %v5805_v30 = vld [vmem:[#allocation2 + $0x88] sm:$0xf] }
 0x244   : > { %5532 = vmatmul.msk.bf16.gmra.mxu3 %vm1461_vm11, %v4169_v61  ;;  %v3974_v61 = vshrl.u32 %v7212_v6, 16 }
 0x245   : > { %v3048_v59 = vpop.f32.mrf.mxu0 }
 0x246   : > { %v7220_v55 = vadd.f32 %v3048_v59, %v2479_v49  ;;  %v3170_v49 = vsel %vm6505_vm15, %v5371_v46, %v3169_v62  ;;  %v3963_v59 = vrot.slane %v3961_v28, 4  ;;  %v3976_v63 = vrot.slane %v3974_v61, 4  ;;  %v7235_v62 = vld [vmem:[#allocation2 + $0x8c] sm:$0x1] }
 0x247   : > { %v2445_v43 = vpop.f32.mrf.mxu3  ;;  %v2141_v48 = vpop.f32.mrf.mxu2  ;;  %v3236_v47 = vunpack.c.l.b16 %v3170_v49  ;;  %v3406_v49 = vadd.f32 %v7200_v10, %v6734_v56  ;;  %v5619_v10 = vld [vmem:[#allocation2 + $0x84] sm:$0xff] }
 0x248   : > { %7717 = vst [vmem:[#allocation3_spill] sm:$0xff] %v7220_v55  ;;  %v2480_v20 = vadd.f32 %v2445_v43, %v2174_v12  ;;  %v2175_v9 = vadd.f32 %v2141_v48, %v1821_v29  ;;  %v7222_v38 = vpop.f32.mrf.mxu1  ;;  %v3173_v12 = vsel %vm6505_vm15, %v3171_v4, %v3172_v25  ;;  %v7232_v29 = vrot.slane %v3970_v21, 5  ;;  %v7245_v25 = vld [vmem:[#allocation2 + $0x90] sm:$0xf] }
 0x249   : > { %v3237_v2 = vunpack.c.l.b16 %v3173_v12  ;;  %v4424_v48 = vrot.slane %v7168_v1, 5  ;;  %v3967_v28 = vor.u32 %v3966_v45, %v3963_v59  ;;  %v3980_v1 = vshll.u32 %v7235_v62, 16 }
 0x24a   : > { %v4427_v21 = vrot.slane %v7191_v51, 5  ;;  %v3985_v40 = vshrl.u32 %v7245_v25, 16 }
 0x24b   : > { %v3259_v7 = vpack.c.b16 %v3237_v2, %v3236_v47  ;;  %v4426_v52 = vrot.slane %v4424_v48, 4  ;;  %v4425_v61 = vsel %vm6505_vm15, %v5549_v16, %v4424_v48  ;;  %v3968_v12 = vrot.slane %v3967_v28, 4  ;;  %v5806_v28 = vld [vmem:[#allocation2 + $0x84] sm:$0xf] }
 0x24c   : > { %5516 = vmatmul.msk.bf16.gmra.mxu2 %vm1461_vm11, %v5618_v19  ;;  %v3977_v19 = vor.u32 %v3976_v63, %v7232_v29  ;;  %v3176_v2 = vrot.slane %v5805_v30, 5  ;;  %v3987_v48 = vrot.slane %v3985_v40, 4  ;;  %v4496_v56 = vunpack.c.l.b16 %v4425_v61 }
 0x24d   : > { %v3051_v43 = vpop.f32.mrf.mxu0  ;;  %v4428_v58 = vsel %vm6505_vm15, %v4426_v52, %v4427_v21  ;;  %v3973_v21 = vsel %vm6050_vm12, %v3968_v12, %v7232_v29 }
 0x24e   : > { %v7237_v0 = vadd.f32 %v3051_v43, %v2480_v20  ;;  %v7249_v20 = vld [vmem:[#allocation2 + $0x94] sm:$0xf]  ;;  %v3978_v47 = vrot.slane %v3977_v19, 4  ;;  %v5372_v19 = vrot.slane %v5806_v28, 9  ;;  %v4497_v52 = vunpack.c.l.b16 %v4428_v58 }
 0x24f   : > { %v2447_v46 = vpop.f32.mrf.mxu3  ;;  %v3632_v4 = vpop.f32.mrf.mxu2  ;;  %v3994_v59 = vshll.u32 %v7249_v20, 16  ;;  %v3998_v45 = vshrl.u32 %v7249_v20, 16  ;;  %v4148_v12 = vunpack.c.l.b16 %v3973_v21 }
 0x250   : > { %7718 = vst [vmem:[#allocation4_spill] sm:$0xff] %v7237_v0  ;;  %v2481_v32 = vadd.f32 %v2447_v46, %v2175_v9  ;;  %v7240_v14 = vpop.f32.mrf.mxu1  ;;  %5565 = vmatmul.msk.bf16.gmra.mxu0 %vm1461_vm11, %v4519_v31  ;;  %v3988_v9 = vshll.u32 %v7245_v25, 16  ;;  %v3982_v31 = vrot.slane %v3980_v1, 5  ;;  %v3712_v63 = vadd.f32 %v3632_v4, %v3406_v49  ;;  %v5807_v49 = vld [vmem:[#allocation2 + $0x8c] sm:$0x1] }
 0x251   : > { %v3178_v1 = vrot.slane %v3176_v2, 4  ;;  %v3179_v40 = vrot.slane %v5807_v49, 5  ;;  %v3996_v61 = vrot.slane %v3994_v59, 5  ;;  %v5550_v59 = vrot.slane %v7209_v13, 9  ;;  %v7331_v0 = vld [vmem:[#allocation2 + $0xa4] sm:$0x1] }
 0x252   : > { %5388 = vmatmul.msk.bf16.gmra.mxu1 %vm1461_vm11, %v3259_v7  ;;  %v3990_v46 = vrot.slane %v3988_v9, 5  ;;  %v3983_v4 = vsel %vm6050_vm12, %v3978_v47, %v3982_v31  ;;  %v3177_v9 = vsel %vm6505_vm15, %v5372_v19, %v3176_v2  ;;  %v3407_v2 = vadd.f32 %v7222_v38, %v6749_v34 }
 0x253   : > { %v3180_v58 = vsel %vm6505_vm15, %v3178_v1, %v3179_v40  ;;  %v3238_v28 = vunpack.c.l.b16 %v3177_v9  ;;  %v4149_v47 = vunpack.c.l.b16 %v3983_v4  ;;  %v7301_v9 = vld [vmem:[#allocation2 + $0xa0] sm:$0xf] }
 0x254   : > { %5533 = vmatmul.msk.bf16.gmra.mxu3 %vm1461_vm11, %v4170_v27  ;;  %v3991_v29 = vor.u32 %v3990_v46, %v3987_v48  ;;  %v3239_v31 = vunpack.c.l.b16 %v3180_v58 }
 0x255   : > { %v3053_v51 = vpop.f32.mrf.mxu0  ;;  %v4171_v34 = vpack.c.b16 %v4149_v47, %v4148_v12 }
 0x256   : > { %v7262_v27 = vadd.f32 %v3053_v51, %v2481_v32  ;;  %v4431_v32 = vrot.slane %v7212_v6, 5  ;;  %v4000_v51 = vrot.slane %v3998_v45, 4  ;;  %v4520_v6 = vpack.c.b16 %v4497_v52, %v4496_v56 }
 0x257   : > { %v4238_v43 = vpop.f32.mrf.mxu3  ;;  %v3634_v7 = vpop.f32.mrf.mxu2  ;;  %v4434_v45 = vrot.slane %v7235_v62, 5  ;;  %v3260_v19 = vpack.c.b16 %v3239_v31, %v3238_v28  ;;  %v3992_v49 = vrot.slane %v3991_v29, 4  ;;  %v3408_v29 = vadd.f32 %v7240_v14, %v6753_v18 }
 0x258   : > { %7719 = vst [vmem:[#allocation10_spill] sm:$0xff] %v7262_v27  ;;  %v7264_v16 = vpop.f32.mrf.mxu1  ;;  %v4318_v30 = vadd.f32 %v4238_v43, %v3712_v63  ;;  %v7276_v27 = vld [vmem:[#allocation2 + $0x98] sm:$0x1]  ;;  %v4433_v43 = vrot.slane %v4431_v32, 4  ;;  %v4001_v1 = vor.u32 %v4000_v51, %v3996_v61  ;;  %v4432_v62 = vsel %vm6505_vm15, %v5550_v59, %v4431_v32  ;;  %v5808_v59 = vld [vmem:[#allocation2 + $0x94] sm:$0xf] }
 0x259   : > { %v4004_v48 = vshll.u32 %v7276_v27, 16  ;;  %v4498_v32 = vunpack.c.l.b16 %v4432_v62  ;;  %v4018_v31 = vshll.u32 %v7301_v9, 16 }
 0x25a   : > { %v4435_v56 = vsel %vm6505_vm15, %v4433_v43, %v4434_v45  ;;  %v4002_v52 = vrot.slane %v4001_v1, 4  ;;  %v3183_v45 = vrot.slane %v5808_v59, 5 }
 0x25b   : > { %v4006_v40 = vrot.slane %v4004_v48, 5  ;;  %v4499_v12 = vunpack.c.l.b16 %v4435_v56  ;;  %v7323_v59 = vrot.slane %v4018_v31, 5 }
 0x25c   : > { %5517 = vmatmul.msk.bf16.gmra.mxu2 %vm1461_vm11, %v5619_v10  ;;  %v3713_v10 = vadd.f32 %v3634_v7, %v3407_v2  ;;  %v7296_v7 = vld [vmem:[#allocation2 + $0x9c] sm:$0xf] }
 0x25d   : > { %v4588_v63 = vpop.f32.mrf.mxu0  ;;  %v4009_v58 = vshrl.u32 %v7296_v7, 16  ;;  %v4012_v28 = vshll.u32 %v7296_v7, 16  ;;  %v4007_v2 = vsel %vm6050_vm12, %v4002_v52, %v4006_v40 }
 0x25e   : > { %v4668_v46 = vadd.f32 %v4588_v63, %v4318_v30  ;;  %v3997_v30 = vsel %vm6050_vm12, %v3992_v49, %v3996_v61  ;;  %v4022_v63 = vshrl.u32 %v7301_v9, 16  ;;  %v5809_v49 = vld [vmem:[#allocation2 + $0x90] sm:$0xf]  ;;  %v4151_v31 = vunpack.c.l.b16 %v4007_v2 }
 0x25f   : > { %v4240_v21 = vpop.f32.mrf.mxu3  ;;  %v3637_v4 = vpop.f32.mrf.mxu2  ;;  %v7316_v61 = vunpack.c.l.b16 %v3997_v30  ;;  %v4011_v62 = vrot.slane %v4009_v58, 4  ;;  %v4014_v56 = vrot.slane %v4012_v28, 5 }
 0x260   : > { %v7291_v13 = vpop.f32.mrf.mxu1  ;;  %5566 = vmatmul.msk.bf16.gmra.mxu0 %vm1461_vm11, %v4520_v6  ;;  %v4700_v38 = vpack.c.bf16 %v4668_v46, %v4668_v46  ;;  %v4319_v51 = vadd.f32 %v4240_v21, %v3713_v10  ;;  %v4765_v43 = vsel %vm1461_vm11, %v4668_v46, 0.0  ;;  %v3714_v18 = vadd.f32 %v3637_v4, %v3408_v29  ;;  %v5620_v10 = vld [vmem:[#allocation2 + $0x90] sm:$0xff] }
 0x262   : > { %5389 = vmatmul.msk.bf16.gmra.mxu1 %vm1461_vm11, %v3260_v19  ;;  %4733 = vst.msk [vmem:[%s7289_s13] sm:$0xf] %vm442_vm1, %v4700_v38  ;;  %v4836_v19 = vmul.f32 %v4668_v46, %v4668_v46  ;;  %v3185_v38 = vrot.slane %v3183_v45, 4 }
 0x264   : > { %5534 = vmatmul.msk.bf16.gmra.mxu3 %vm1461_vm11, %v4171_v34  ;;  %v5373_v34 = vrot.slane %v5809_v49, 9  ;;  %v4868_v47 = vsel %vm1461_vm11, %v4836_v19, 0.0 }
 0x265   : > { %v4590_v6 = vpop.f32.mrf.mxu0 }
 0x266   : > { %v4669_v1 = vadd.f32 %v4590_v6, %v4319_v51  ;;  %v3184_v4 = vsel %vm6505_vm15, %v5373_v34, %v3183_v45  ;;  %v5810_v51 = vld [vmem:[#allocation2 + $0x98] sm:$0x1]  ;;  %v4024_v6 = vrot.slane %v4022_v63, 4  ;;  %v4521_v34 = vpack.c.b16 %v4499_v12, %v4498_v32  ;;  %v7720_v63 = vld [vmem:[#allocation5_spill] sm:$0xff] }
 0x267   : > { %v4243_v14 = vpop.f32.mrf.mxu3  ;;  %v3639_v48 = vpop.f32.mrf.mxu2  ;;  %v3186_v29 = vrot.slane %v5810_v51, 5  ;;  %v3240_v49 = vunpack.c.l.b16 %v3184_v4  ;;  %v3409_v19 = vadd.f32 %v7264_v16, %v7720_v63  ;;  %v4172_v16 = vpack.c.b16 %v4151_v31, %v7316_v61  ;;  %v7354_v61 = vld [vmem:[#allocation2 + $0xa8] sm:$0xf] }
 0x268   : > { %v7320_v21 = vpop.f32.mrf.mxu1  ;;  %v4701_v52 = vpack.c.bf16 %v4669_v1, %v4669_v1  ;;  %v4766_v40 = vsel %vm1461_vm11, %v4669_v1, 0.0  ;;  %v4837_v30 = vmul.f32 %v4669_v1, %v4669_v1  ;;  %v4320_v28 = vadd.f32 %v4243_v14, %v3714_v18 }
 0x269   : > { %v4767_v46 = vadd.f32 %v4766_v40, %v4765_v43  ;;  %v3187_v45 = vsel %vm6505_vm15, %v3185_v38, %v3186_v29  ;;  %v4015_v43 = vor.u32 %v4014_v56, %v4011_v62  ;;  %v4441_v18 = vrot.slane %v7276_v27, 5 }
 0x26a   : > { %4734 = vst.msk [vmem:[%s7289_s13 + $0x4] sm:$0xf] %vm442_vm1, %v4701_v52  ;;  %v4869_v58 = vsel %vm1461_vm11, %v4837_v30, 0.0  ;;  %v3241_v40 = vunpack.c.l.b16 %v3187_v45  ;;  %v5551_v30 = vrot.slane %v7245_v25, 9  ;;  %v4025_v14 = vor.u32 %v4024_v6, %v7323_v59 }
 0x26b   : > { %v4870_v1 = vadd.f32 %v4869_v58, %v4868_v47  ;;  %v4028_v47 = vshll.u32 %v7331_v0, 16  ;;  %v3715_v2 = vadd.f32 %v3639_v48, %v3409_v19  ;;  %v7721_v38 = vrot.slane %v7249_v20, 5 }
 0x26c   : > { %5518 = vmatmul.msk.bf16.gmra.mxu2 %vm1461_vm11, %v5620_v10  ;;  %v3261_v12 = vpack.c.b16 %v3241_v40, %v3240_v49  ;;  %v4016_v25 = vrot.slane %v4015_v43, 4  ;;  %v7367_v40 = vld [vmem:[#allocation2 + $0xac] sm:$0xf] }
 0x26d   : > { %v4593_v52 = vpop.f32.mrf.mxu0  ;;  %v4440_v62 = vrot.slane %v7721_v38, 4  ;;  %v7722_v48 = vmov %v7721_v38  ;;  %v4030_v49 = vrot.slane %v4028_v47, 5 }
 0x26e   : > { %v4670_v10 = vadd.f32 %v4593_v52, %v4320_v28  ;;  %v4439_v58 = vsel %vm6505_vm15, %v5551_v30, %v7722_v48  ;;  %v4026_v28 = vrot.slane %v4025_v14, 4  ;;  %v4021_v20 = vsel %vm6050_vm12, %v4016_v25, %v7323_v59  ;;  %v5812_v25 = vld [vmem:[#allocation2 + $0x9c] sm:$0xf] }
 0x26f   : > { %v4245_v4 = vpop.f32.mrf.mxu3  ;;  %v3642_v32 = vpop.f32.mrf.mxu2  ;;  %v4442_v43 = vsel %vm6505_vm15, %v4440_v62, %v4441_v18  ;;  %v4500_v19 = vunpack.c.l.b16 %v4439_v58  ;;  %v4033_v52 = vshrl.u32 %v7354_v61, 16  ;;  %v7373_v62 = vunpack.c.l.b16 %v4021_v20 }
 0x270   : > { %v7345_v56 = vpop.f32.mrf.mxu1  ;;  %5567 = vmatmul.msk.bf16.gmra.mxu0 %vm1461_vm11, %v4521_v34  ;;  %v4702_v27 = vpack.c.bf16 %v4670_v10, %v4670_v10  ;;  %v4768_v51 = vsel %vm1461_vm11, %v4670_v10, 0.0  ;;  %v4838_v29 = vmul.f32 %v4670_v10, %v4670_v10  ;;  %v4321_v45 = vadd.f32 %v4245_v4, %v3715_v2  ;;  %v7723_v34 = vld [vmem:[#allocation6_spill] sm:$0xff] }
 0x271   : > { %v4769_v6 = vadd.f32 %v4768_v51, %v4767_v46  ;;  %v3410_v63 = vadd.f32 %v7291_v13, %v7723_v34  ;;  %v4501_v14 = vunpack.c.l.b16 %v4442_v43  ;;  %v4031_v18 = vsel %vm6050_vm12, %v4026_v28, %v4030_v49 }
 0x272   : > { %5390 = vmatmul.msk.bf16.gmra.mxu1 %vm1461_vm11, %v3261_v12  ;;  %4735 = vst.msk [vmem:[%s7289_s13 + $0x8] sm:$0xf] %vm442_vm1, %v4702_v27  ;;  %v4871_v31 = vsel %vm1461_vm11, %v4838_v29, 0.0  ;;  %v4036_v10 = vshll.u32 %v7354_v61, 16  ;;  %v4445_v13 = vrot.slane %v7301_v9, 5  ;;  %v5621_v12 = vld [vmem:[#allocation2 + $0x9c] sm:$0xff] }
 0x273   : > { %v4872_v46 = vadd.f32 %v4871_v31, %v4870_v1  ;;  %v5811_v1 = vld [vmem:[#allocation2 + $0xa0] sm:$0xf]  ;;  %v3716_v4 = vadd.f32 %v3642_v32, %v3410_v63  ;;  %v5374_v27 = vrot.slane %v5812_v25, 9  ;;  %v4042_v29 = vshll.u32 %v7367_v40, 16 }
 0x274   : > { %5535 = vmatmul.msk.bf16.gmra.mxu3 %vm1461_vm11, %v4172_v16  ;;  %v3190_v47 = vrot.slane %v5811_v1, 5  ;;  %v4046_v48 = vshrl.u32 %v7367_v40, 16  ;;  %v4035_v49 = vrot.slane %v4033_v52, 4  ;;  %v4038_v20 = vrot.slane %v4036_v10, 5 }
 0x275   : > { %v4595_v30 = vpop.f32.mrf.mxu0 }
 0x276   : > { %v4671_v2 = vadd.f32 %v4595_v30, %v4321_v45  ;;  %v3192_v51 = vrot.slane %v3190_v47, 4  ;;  %v3191_v9 = vsel %vm6505_vm15, %v5374_v27, %v3190_v47  ;;  %v5813_v45 = vld [vmem:[#allocation2 + $0xa4] sm:$0x1]  ;;  %v4153_v30 = vunpack.c.l.b16 %v4031_v18  ;;  %v7724_v27 = vld [vmem:[#allocation7_spill] sm:$0xff] }
 0x277   : > { %v4248_v59 = vpop.f32.mrf.mxu3  ;;  %v3644_v38 = vpop.f32.mrf.mxu2  ;;  %v3193_v43 = vrot.slane %v5813_v45, 5  ;;  %v3242_v1 = vunpack.c.l.b16 %v3191_v9  ;;  %v4522_v47 = vpack.c.b16 %v4501_v14, %v4500_v19  ;;  %v3411_v10 = vadd.f32 %v7320_v21, %v7724_v27  ;;  %v7725_v27 = vld [vmem:[#allocation8_spill] sm:$0xff] }
 0x278   : > { %v7376_v16 = vpop.f32.mrf.mxu1  ;;  %v4703_v58 = vpack.c.bf16 %v4671_v2, %v4671_v2  ;;  %v4770_v32 = vsel %vm1461_vm11, %v4671_v2, 0.0  ;;  %v4839_v28 = vmul.f32 %v4671_v2, %v4671_v2  ;;  %v4322_v63 = vadd.f32 %v4248_v59, %v3716_v4 }
 0x279   : > { %v4771_v31 = vadd.f32 %v4770_v32, %v4769_v6  ;;  %v3194_v52 = vsel %vm6505_vm15, %v3192_v51, %v3193_v43  ;;  %v7389_v6 = vrot.slane %v4042_v29, 5  ;;  %v4048_v2 = vrot.slane %v4046_v48, 4  ;;  %v7404_v43 = vld [vmem:[#allocation2 + $0xb4] sm:$0xf] }
 0x27a   : > { %4736 = vst.msk [vmem:[%s7289_s13 + $0xc] sm:$0xf] %vm442_vm1, %v4703_v58  ;;  %v4873_v34 = vsel %vm1461_vm11, %v4839_v28, 0.0  ;;  %v3243_v32 = vunpack.c.l.b16 %v3194_v52  ;;  %v7393_v58 = vld [vmem:[#allocation2 + $0xb0] sm:$0x1]  ;;  %v5552_v18 = vrot.slane %v7296_v7, 9  ;;  %v4039_v59 = vor.u32 %v4038_v20, %v4035_v49 }
 0x27b   : > { %v4874_v25 = vadd.f32 %v4873_v34, %v4872_v46  ;;  %v4447_v4 = vrot.slane %v4445_v13, 4  ;;  %v4448_v46 = vrot.slane %v7331_v0, 5  ;;  %v3717_v9 = vadd.f32 %v3644_v38, %v3411_v10 }
 0x27c   : > { %5519 = vmatmul.msk.bf16.gmra.mxu2 %vm1461_vm11, %v5621_v12  ;;  %v3262_v45 = vpack.c.b16 %v3243_v32, %v3242_v1  ;;  %v4173_v19 = vpack.c.b16 %v4153_v30, %v7373_v62  ;;  %v4049_v21 = vor.u32 %v4048_v2, %v7389_v6  ;;  %v4052_v48 = vshll.u32 %v7393_v58, 16 }
 0x27d   : > { %v4598_v28 = vpop.f32.mrf.mxu0  ;;  %v4446_v20 = vsel %vm6505_vm15, %v5552_v18, %v4445_v13  ;;  %v4449_v62 = vsel %vm6505_vm15, %v4447_v4, %v4448_v46  ;;  %v4040_v34 = vrot.slane %v4039_v59, 4  ;;  %v4057_v52 = vshrl.u32 %v7404_v43, 16  ;;  %v5814_v59 = vld [vmem:[#allocation2 + $0xac] sm:$0xf] }
 0x27e   : > { %v4672_v12 = vadd.f32 %v4598_v28, %v4322_v63  ;;  %v7411_v63 = vld [vmem:[#allocation2 + $0xb8] sm:$0xf]  ;;  %v4050_v13 = vrot.slane %v4049_v21, 4  ;;  %v3412_v10 = vadd.f32 %v7345_v56, %v7725_v27  ;;  %v4502_v32 = vunpack.c.l.b16 %v4446_v20  ;;  %v5622_v56 = vld [vmem:[#allocation2 + $0xa8] sm:$0xff] }
 0x27f   : > { %v4250_v51 = vpop.f32.mrf.mxu3  ;;  %v3647_v29 = vpop.f32.mrf.mxu2  ;;  %v4066_v28 = vshll.u32 %v7411_v63, 16  ;;  %v4503_v4 = vunpack.c.l.b16 %v4449_v62  ;;  %v4045_v46 = vsel %vm6050_vm12, %v4040_v34, %v7389_v6  ;;  %v4059_v21 = vrot.slane %v4057_v52, 4  ;;  %v5815_v6 = vld [vmem:[#allocation2 + $0xa8] sm:$0xf] }
 0x280   : > { %v7398_v14 = vpop.f32.mrf.mxu1  ;;  %5568 = vmatmul.msk.bf16.gmra.mxu0 %vm1461_vm11, %v4522_v47  ;;  %v4704_v7 = vpack.c.bf16 %v4672_v12, %v4672_v12  ;;  %v4772_v0 = vsel %vm1461_vm11, %v4672_v12, 0.0  ;;  %v4840_v49 = vmul.f32 %v4672_v12, %v4672_v12  ;;  %v4323_v1 = vadd.f32 %v4250_v51, %v3717_v9 }
 0x281   : > { %v4773_v38 = vadd.f32 %v4772_v0, %v4771_v31  ;;  %v4060_v31 = vshll.u32 %v7404_v43, 16  ;;  %v4054_v47 = vrot.slane %v4052_v48, 5  ;;  %v3197_v12 = vrot.slane %v5814_v59, 5  ;;  %v7437_v59 = vld [vmem:[#allocation2 + $0xbc] sm:$0x1] }
 0x282   : > { %5391 = vmatmul.msk.bf16.gmra.mxu1 %vm1461_vm11, %v3262_v45  ;;  %4737 = vst.msk [vmem:[%s7289_s13 + $0x10] sm:$0xf] %vm442_vm1, %v4704_v7  ;;  %v4875_v30 = vsel %vm1461_vm11, %v4840_v49, 0.0  ;;  %v3718_v51 = vadd.f32 %v3647_v29, %v3412_v10  ;;  %v4452_v0 = vrot.slane %v7367_v40, 5  ;;  %v5375_v20 = vrot.slane %v5815_v6, 9 }
 0x283   : > { %v4876_v2 = vadd.f32 %v4875_v30, %v4874_v25  ;;  %v4070_v25 = vshrl.u32 %v7411_v63, 16  ;;  %v4062_v48 = vrot.slane %v4060_v31, 5  ;;  %v4055_v7 = vsel %vm6050_vm12, %v4050_v13, %v4054_v47  ;;  %v5816_v31 = vld [vmem:[#allocation2 + $0xb0] sm:$0x1] }
 0x284   : > { %5536 = vmatmul.msk.bf16.gmra.mxu3 %vm1461_vm11, %v4173_v19  ;;  %v3199_v62 = vrot.slane %v3197_v12, 4  ;;  %v3198_v52 = vsel %vm6505_vm15, %v5375_v20, %v3197_v12  ;;  %v3200_v10 = vrot.slane %v5816_v31, 5  ;;  %v5553_v20 = vrot.slane %v7354_v61, 9 }
 0x285   : > { %v4600_v18 = vpop.f32.mrf.mxu0  ;;  %v3244_v47 = vunpack.c.l.b16 %v3198_v52  ;;  %v4063_v6 = vor.u32 %v4062_v48, %v4059_v21  ;;  %v7453_v52 = vld [vmem:[#allocation2 + $0xc0] sm:$0xf] }
 0x286   : > { %v4673_v9 = vadd.f32 %v4600_v18, %v4323_v1  ;;  %v4068_v1 = vrot.slane %v4066_v28, 5  ;;  %v4072_v18 = vrot.slane %v4070_v25, 4  ;;  %v4154_v28 = vunpack.c.l.b16 %v4045_v46 }
 0x287   : > { %v4253_v45 = vpop.f32.mrf.mxu3  ;;  %v3649_v19 = vpop.f32.mrf.mxu2  ;;  %v3201_v12 = vsel %vm6505_vm15, %v3199_v62, %v3200_v10  ;;  %v3413_v25 = vadd.f32 %v7376_v16, %v6813_v22 }
 0x288   : > { %v7429_v49 = vpop.f32.mrf.mxu1  ;;  %v4705_v34 = vpack.c.bf16 %v4673_v9, %v4673_v9  ;;  %v4774_v30 = vsel %vm1461_vm11, %v4673_v9, 0.0  ;;  %v4841_v29 = vmul.f32 %v4673_v9, %v4673_v9  ;;  %v4324_v13 = vadd.f32 %v4253_v45, %v3718_v51 }
 0x289   : > { %v4775_v27 = vadd.f32 %v4774_v30, %v4773_v38  ;;  %v4155_v38 = vunpack.c.l.b16 %v4055_v7  ;;  %v4523_v9 = vpack.c.b16 %v4503_v4, %v4502_v32  ;;  %v4454_v45 = vrot.slane %v4452_v0, 4 }
 0x28a   : > { %4738 = vst.msk [vmem:[%s7289_s13 + $0x14] sm:$0xf] %vm442_vm1, %v4705_v34  ;;  %v4877_v40 = vsel %vm1461_vm11, %v4841_v29, 0.0  ;;  %v3245_v34 = vunpack.c.l.b16 %v3201_v12  ;;  %v4455_v30 = vrot.slane %v7393_v58, 5  ;;  %v4073_v21 = vor.u32 %v4072_v18, %v4068_v1 }
 0x28b   : > { %v4878_v55 = vadd.f32 %v4877_v40, %v4876_v2  ;;  %v4076_v2 = vshll.u32 %v7437_v59, 16  ;;  %v3719_v46 = vadd.f32 %v3649_v19, %v3413_v25  ;;  %v4064_v32 = vrot.slane %v4063_v6, 4  ;;  %v7458_v40 = vld [vmem:[#allocation2 + $0xc4] sm:$0xf] }
 0x28c   : > { %5520 = vmatmul.msk.bf16.gmra.mxu2 %vm1461_vm11, %v5622_v56  ;;  %v3263_v29 = vpack.c.b16 %v3245_v34, %v3244_v47  ;;  %v4174_v4 = vpack.c.b16 %v4155_v38, %v4154_v28  ;;  %v4453_v58 = vsel %vm6505_vm15, %v5553_v20, %v4452_v0  ;;  %v4456_v31 = vsel %vm6505_vm15, %v4454_v45, %v4455_v30 }
 0x28d   : > { %v4603_v51 = vpop.f32.mrf.mxu0  ;;  %v4074_v10 = vrot.slane %v4073_v21, 4  ;;  %v4078_v18 = vrot.slane %v4076_v2, 5  ;;  %v4069_v0 = vsel %vm6050_vm12, %v4064_v32, %v4068_v1  ;;  %v4081_v28 = vshrl.u32 %v7453_v52, 16 }
 0x28e   : > { %v4674_v48 = vadd.f32 %v4603_v51, %v4324_v13  ;;  %v4084_v38 = vshll.u32 %v7453_v52, 16  ;;  %v3414_v12 = vadd.f32 %v7398_v14, %v6820_v8  ;;  %v5554_v25 = vrot.slane %v7404_v43, 9  ;;  %v5817_v51 = vld [vmem:[#allocation2 + $0xb8] sm:$0xf] }
 0x28f   : > { %v4255_v56 = vpop.f32.mrf.mxu3  ;;  %v3652_v7 = vpop.f32.mrf.mxu2  ;;  %v4090_v20 = vshll.u32 %v7458_v40, 16  ;;  %v4079_v1 = vsel %vm6050_vm12, %v4074_v10, %v4078_v18  ;;  %v3204_v45 = vrot.slane %v5817_v51, 5  ;;  %v4094_v30 = vshrl.u32 %v7458_v40, 16  ;;  %v5623_v43 = vld [vmem:[#allocation2 + $0xb4] sm:$0xff]  ;;  %v5819_v18 = vld [vmem:[#allocation2 + $0xbc] sm:$0x1] }
 0x290   : > { %v7447_v62 = vpop.f32.mrf.mxu1  ;;  %5569 = vmatmul.msk.bf16.gmra.mxu0 %vm1461_vm11, %v4523_v9  ;;  %v4706_v22 = vpack.c.bf16 %v4674_v48, %v4674_v48  ;;  %v4776_v61 = vsel %vm1461_vm11, %v4674_v48, 0.0  ;;  %v4842_v16 = vmul.f32 %v4674_v48, %v4674_v48  ;;  %v4325_v47 = vadd.f32 %v4255_v56, %v3719_v46 }
 0x291   : > { %v4777_v19 = vadd.f32 %v4776_v61, %v4775_v27  ;;  %v4504_v27 = vunpack.c.l.b16 %v4453_v58  ;;  %v4505_v9 = vunpack.c.l.b16 %v4456_v31  ;;  %v3720_v2 = vadd.f32 %v3652_v7, %v3414_v12 }
 0x292   : > { %5392 = vmatmul.msk.bf16.gmra.mxu1 %vm1461_vm11, %v3263_v29  ;;  %4739 = vst.msk [vmem:[%s7289_s13 + $0x18] sm:$0xf] %vm442_vm1, %v4706_v22  ;;  %v4879_v13 = vsel %vm1461_vm11, %v4842_v16, 0.0  ;;  %v4459_v8 = vrot.slane %v7411_v63, 5  ;;  %v4462_v14 = vrot.slane %v7437_v59, 5  ;;  %v4083_v22 = vrot.slane %v4081_v28, 4 }
 0x293   : > { %v4880_v6 = vadd.f32 %v4879_v13, %v4878_v55  ;;  %v7474_v55 = vunpack.c.l.b16 %v4069_v0  ;;  %v5818_v29 = vld [vmem:[#allocation2 + $0xb4] sm:$0xf]  ;;  %v4086_v61 = vrot.slane %v4084_v38, 5  ;;  %v4092_v7 = vrot.slane %v4090_v20, 5  ;;  %v7487_v38 = vld [vmem:[#allocation2 + $0xc8] sm:$0x1] }
 0x294   : > { %5537 = vmatmul.msk.bf16.gmra.mxu3 %vm1461_vm11, %v4174_v4  ;;  %v5376_v32 = vrot.slane %v5818_v29, 9  ;;  %v3206_v4 = vrot.slane %v3204_v45, 4  ;;  %v3207_v59 = vrot.slane %v5819_v18, 5  ;;  %v4096_v13 = vrot.slane %v4094_v30, 4 }
 0x295   : > { %v4605_v34 = vpop.f32.mrf.mxu0  ;;  %v4461_v12 = vrot.slane %v4459_v8, 4  ;;  %v4157_v20 = vunpack.c.l.b16 %v4079_v1  ;;  %v4087_v51 = vor.u32 %v4086_v61, %v4083_v22  ;;  %v3415_v30 = vadd.f32 %v7429_v49, %v6838_v15 }
 0x296   : > { %v4675_v21 = vadd.f32 %v4605_v34, %v4325_v47  ;;  %v3205_v63 = vsel %vm6505_vm15, %v5376_v32, %v3204_v45  ;;  %v4524_v45 = vpack.c.b16 %v4505_v9, %v4504_v27  ;;  %v4100_v32 = vshll.u32 %v7487_v38, 16 }
 0x297   : > { %v4258_v48 = vpop.f32.mrf.mxu3  ;;  %v3654_v46 = vpop.f32.mrf.mxu2  ;;  %v3246_v28 = vunpack.c.l.b16 %v3205_v63  ;;  %v4463_v1 = vsel %vm6505_vm15, %v4461_v12, %v4462_v14  ;;  %v4175_v9 = vpack.c.b16 %v4157_v20, %v7474_v55  ;;  %v4088_v49 = vrot.slane %v4087_v51, 4 }
 0x298   : > { %v7479_v56 = vpop.f32.mrf.mxu1  ;;  %v4707_v16 = vpack.c.bf16 %v4675_v21, %v4675_v21  ;;  %v4778_v58 = vsel %vm1461_vm11, %v4675_v21, 0.0  ;;  %v4843_v31 = vmul.f32 %v4675_v21, %v4675_v21  ;;  %v4326_v0 = vadd.f32 %v4258_v48, %v3720_v2 }
 0x299   : > { %v4779_v10 = vadd.f32 %v4778_v58, %v4777_v19  ;;  %v3208_v19 = vsel %vm6505_vm15, %v3206_v4, %v3207_v59  ;;  %v4460_v2 = vsel %vm6505_vm15, %v5554_v25, %v4459_v8  ;;  %v4097_v48 = vor.u32 %v4096_v13, %v4092_v7  ;;  %v7511_v13 = vld [vmem:[#allocation2 + $0xcc] sm:$0xf] }
 0x29a   : > { %4740 = vst.msk [vmem:[%s7289_s13 + $0x1c] sm:$0xf] %vm442_vm1, %v4707_v16  ;;  %v4881_v47 = vsel %vm1461_vm11, %v4843_v31, 0.0  ;;  %v3247_v21 = vunpack.c.l.b16 %v3208_v19  ;;  %v3721_v16 = vadd.f32 %v3654_v46, %v3415_v30  ;;  %v4506_v61 = vunpack.c.l.b16 %v4460_v2  ;;  %v5820_v19 = vld [vmem:[#allocation2 + $0xc4] sm:$0xf] }
 0x29b   : > { %v4882_v34 = vadd.f32 %v4881_v47, %v4880_v6  ;;  %v4507_v58 = vunpack.c.l.b16 %v4463_v1  ;;  %v4098_v14 = vrot.slane %v4097_v48, 4  ;;  %v4102_v31 = vrot.slane %v4100_v32, 5  ;;  %v7726_v47 = vld [vmem:[#allocation9_spill] sm:$0xff]  ;;  %v5624_v2 = vld [vmem:[#allocation2 + $0xc0] sm:$0xff] }
 0x29c   : > { %5521 = vmatmul.msk.bf16.gmra.mxu2 %vm1461_vm11, %v5623_v43  ;;  %v3264_v27 = vpack.c.b16 %v3247_v21, %v3246_v28  ;;  %v4093_v59 = vsel %vm6050_vm12, %v4088_v49, %v4092_v7  ;;  %v3211_v51 = vrot.slane %v5820_v19, 5  ;;  %v4105_v7 = vshrl.u32 %v7511_v13, 16 }
 0x29d   : > { %v4608_v29 = vpop.f32.mrf.mxu0  ;;  %v4525_v28 = vpack.c.b16 %v4507_v58, %v4506_v61  ;;  %v4103_v20 = vsel %vm6050_vm12, %v4098_v14, %v4102_v31 }
 0x29e   : > { %v4676_v6 = vadd.f32 %v4608_v29, %v4326_v0  ;;  %v7515_v0 = vld [vmem:[#allocation2 + $0xd0] sm:$0xf]  ;;  %v4158_v29 = vunpack.c.l.b16 %v4093_v59  ;;  %v4159_v31 = vunpack.c.l.b16 %v4103_v20  ;;  %v4107_v59 = vrot.slane %v4105_v7, 4 }
 0x29f   : > { %v4260_v43 = vpop.f32.mrf.mxu3  ;;  %v3657_v4 = vpop.f32.mrf.mxu2  ;;  %v5555_v20 = vrot.slane %v7453_v52, 9  ;;  %v4473_v36 = vrot.slane %v7515_v0, 5 }
 0x2a0   : > { %v7500_v15 = vpop.f32.mrf.mxu1  ;;  %5570 = vmatmul.msk.bf16.gmra.mxu0 %vm1461_vm11, %v4524_v45  ;;  %v4708_v25 = vpack.c.bf16 %v4676_v6, %v4676_v6  ;;  %v4780_v8 = vsel %vm1461_vm11, %v4676_v6, 0.0  ;;  %v4844_v22 = vmul.f32 %v4676_v6, %v4676_v6  ;;  %v4327_v63 = vadd.f32 %v4260_v43, %v3721_v16 }
 0x2a1   : > { %v4781_v46 = vadd.f32 %v4780_v8, %v4779_v10  ;;  %v3416_v10 = vadd.f32 %v7447_v62, %v7726_v47  ;;  %v5821_v62 = vld [vmem:[#allocation2 + $0xc0] sm:$0xf]  ;;  %v3213_v6 = vrot.slane %v3211_v51, 4  ;;  %v4108_v16 = vshll.u32 %v7511_v13, 16 }
 0x2a2   : > { %5393 = vmatmul.msk.bf16.gmra.mxu1 %vm1461_vm11, %v3264_v27  ;;  %4741 = vst.msk [vmem:[%s7289_s13 + $0x20] sm:$0xf] %vm442_vm1, %v4708_v25  ;;  %v4883_v55 = vsel %vm1461_vm11, %v4844_v22, 0.0  ;;  %v5377_v32 = vrot.slane %v5821_v62, 9  ;;  %v4114_v43 = vshll.u32 %v7515_v0, 16  ;;  %v4466_v25 = vrot.slane %v7458_v40, 5 }
 0x2a3   : > { %v4884_v18 = vadd.f32 %v4883_v55, %v4882_v34  ;;  %v3722_v45 = vadd.f32 %v3657_v4, %v3416_v10  ;;  %v5822_v22 = vld [vmem:[#allocation2 + $0xc8] sm:$0x1]  ;;  %v4110_v40 = vrot.slane %v4108_v16, 5  ;;  %v3417_v47 = vadd.f32 %v7479_v56, %v6868_v54 }
 0x2a4   : > { %5538 = vmatmul.msk.bf16.gmra.mxu3 %vm1461_vm11, %v4175_v9  ;;  %v4118_v9 = vshrl.u32 %v7515_v0, 16  ;;  %v3212_v8 = vsel %vm6505_vm15, %v5377_v32, %v3211_v51  ;;  %v3214_v61 = vrot.slane %v5822_v22, 5  ;;  %v4116_v19 = vrot.slane %v4114_v43, 5 }
 0x2a5   : > { %v4610_v12 = vpop.f32.mrf.mxu0  ;;  %v3248_v55 = vunpack.c.l.b16 %v3212_v8  ;;  %v4176_v32 = vpack.c.b16 %v4159_v31, %v4158_v29  ;;  %v4111_v54 = vor.u32 %v4110_v40, %v4107_v59  ;;  %v3418_v8 = vadd.f32 %v7500_v15, %v6882_v50  ;;  %v5625_v40 = vld [vmem:[#allocation2 + $0xcc] sm:$0xff] }
 0x2a6   : > { %v4677_v34 = vadd.f32 %v4610_v12, %v4327_v63  ;;  %v7537_v12 = vld [vmem:[#allocation2 + $0xd4] sm:$0x1]  ;;  %v4120_v51 = vrot.slane %v4118_v9, 4  ;;  %v4467_v9 = vsel %vm6505_vm15, %v5555_v20, %v4466_v25 }
 0x2a7   : > { %v4263_v30 = vpop.f32.mrf.mxu3  ;;  %v3659_v21 = vpop.f32.mrf.mxu2  ;;  %v4124_v56 = vshll.u32 %v7537_v12, 16 }
 0x2a8   : > { %v7520_v48 = vpop.f32.mrf.mxu1  ;;  %v4709_v1 = vpack.c.bf16 %v4677_v34, %v4677_v34  ;;  %v4782_v27 = vsel %vm1461_vm11, %v4677_v34, 0.0  ;;  %v4845_v4 = vmul.f32 %v4677_v34, %v4677_v34  ;;  %v4328_v14 = vadd.f32 %v4263_v30, %v3722_v45 }
 0x2a9   : > { %v4783_v49 = vadd.f32 %v4782_v27, %v4781_v46  ;;  %v3215_v46 = vsel %vm6505_vm15, %v3213_v6, %v3214_v61  ;;  %v4468_v6 = vrot.slane %v4466_v25, 4  ;;  %v4126_v61 = vrot.slane %v4124_v56, 5 }
 0x2aa   : > { %4742 = vst.msk [vmem:[%s7289_s13 + $0x24] sm:$0xf] %vm442_vm1, %v4709_v1  ;;  %v4885_v58 = vsel %vm1461_vm11, %v4845_v4, 0.0  ;;  %v3249_v10 = vunpack.c.l.b16 %v3215_v46  ;;  %v4508_v46 = vunpack.c.l.b16 %v4467_v9 }
 0x2ab   : > { %v4886_v63 = vadd.f32 %v4885_v58, %v4884_v18  ;;  %v3723_v18 = vadd.f32 %v3659_v21, %v3417_v47  ;;  %v4121_v21 = vor.u32 %v4120_v51, %v4116_v19 }
 0x2ac   : > { %5522 = vmatmul.msk.bf16.gmra.mxu2 %vm1461_vm11, %v5624_v2  ;;  %v4469_v2 = vrot.slane %v7487_v38, 5  ;;  %v3265_v7 = vpack.c.b16 %v3249_v10, %v3248_v55 }
 0x2ad   : > { %v4613_v34 = vpop.f32.mrf.mxu0  ;;  %v4122_v22 = vrot.slane %v4121_v21, 4 }
 0x2ae   : > { %v4678_v45 = vadd.f32 %v4613_v34, %v4328_v14 }
 0x2af   : > { %v4265_v30 = vpop.f32.mrf.mxu3  ;;  %v3662_v62 = vpop.f32.mrf.mxu2  ;;  %v4127_v51 = vsel %vm6050_vm12, %v4122_v22, %v4126_v61 }
 0x2b0   : > { %v7541_v16 = vpop.f32.mrf.mxu1  ;;  %5571 = vmatmul.msk.bf16.gmra.mxu0 %vm1461_vm11, %v4525_v28  ;;  %v4710_v43 = vpack.c.bf16 %v4678_v45, %v4678_v45  ;;  %v4784_v52 = vsel %vm1461_vm11, %v4678_v45, 0.0  ;;  %v4846_v1 = vmul.f32 %v4678_v45, %v4678_v45  ;;  %v4329_v29 = vadd.f32 %v4265_v30, %v3723_v18 }
 0x2b1   : > { %v4785_v27 = vadd.f32 %v4784_v52, %v4783_v49  ;;  %v4112_v28 = vrot.slane %v4111_v54, 4  ;;  %v4470_v49 = vsel %vm6505_vm15, %v4468_v6, %v4469_v2  ;;  %v3724_v31 = vadd.f32 %v3662_v62, %v3418_v8 }
 0x2b2   : > { %5394 = vmatmul.msk.bf16.gmra.mxu1 %vm1461_vm11, %v3265_v7  ;;  %4743 = vst.msk [vmem:[%s7289_s13 + $0x28] sm:$0xf] %vm442_vm1, %v4710_v43  ;;  %v4887_v38 = vsel %vm1461_vm11, %v4846_v1, 0.0  ;;  %v4509_v59 = vunpack.c.l.b16 %v4470_v49  ;;  %v4161_v2 = vunpack.c.l.b16 %v4127_v51  ;;  %v3419_v62 = vadd.f32 %v7520_v48, %v6901_v26 }
 0x2b3   : > { %v4888_v4 = vadd.f32 %v4887_v38, %v4886_v63  ;;  %v4117_v25 = vsel %vm6050_vm12, %v4112_v28, %v4116_v19  ;;  %v5556_v38 = vrot.slane %v7511_v13, 9  ;;  %v4475_v26 = vrot.slane %v4473_v36, 4 }
 0x2b4   : > { %5539 = vmatmul.msk.bf16.gmra.mxu3 %vm1461_vm11, %v4176_v32  ;;  %v4160_v30 = vunpack.c.l.b16 %v4117_v25  ;;  %v4526_v19 = vpack.c.b16 %v4509_v59, %v4508_v46  ;;  %v4476_v48 = vrot.slane %v7537_v12, 5  ;;  %v3420_v28 = vadd.f32 %v7541_v16, %v6919_v24 }
 0x2b5   : > { %v4615_v58 = vpop.f32.mrf.mxu0  ;;  %v4474_v8 = vsel %vm6505_vm15, %v5556_v38, %v4473_v36 }
 0x2b6   : > { %v4679_v14 = vadd.f32 %v4615_v58, %v4329_v29  ;;  %v4177_v43 = vpack.c.b16 %v4161_v2, %v4160_v30  ;;  %v4477_v49 = vsel %vm6505_vm15, %v4475_v26, %v4476_v48 }
 0x2b7   : > { %v4268_v55 = vpop.f32.mrf.mxu3  ;;  %v3664_v63 = vpop.f32.mrf.mxu2  ;;  %v4511_v59 = vunpack.c.l.b16 %v4477_v49 }
 0x2b8   : > { %v3363_v47 = vpop.f32.mrf.mxu1  ;;  %v4711_v10 = vpack.c.bf16 %v4679_v14, %v4679_v14  ;;  %v4786_v50 = vsel %vm1461_vm11, %v4679_v14, 0.0  ;;  %v4847_v15 = vmul.f32 %v4679_v14, %v4679_v14  ;;  %v4330_v45 = vadd.f32 %v4268_v55, %v3724_v31 }
 0x2b9   : > { %v4787_v34 = vadd.f32 %v4786_v50, %v4785_v27  ;;  %v3725_v6 = vadd.f32 %v3664_v63, %v3419_v62  ;;  %v4510_v14 = vunpack.c.l.b16 %v4474_v8 }
 0x2ba   : > { %4744 = vst.msk [vmem:[%s7289_s13 + $0x2c] sm:$0xf] %vm442_vm1, %v4711_v10  ;;  %v4889_v20 = vsel %vm1461_vm11, %v4847_v15, 0.0  ;;  %v3421_v10 = vadd.f32 %v3363_v47, %v6940_v57 }
 0x2bb   : > { %v4890_v18 = vadd.f32 %v4889_v20, %v4888_v4  ;;  %v4527_v25 = vpack.c.b16 %v4511_v59, %v4510_v14 }
 0x2bc   : > { %5523 = vmatmul.msk.bf16.gmra.mxu2 %vm1461_vm11, %v5625_v40 }
 0x2bd   : > { %v4618_v7 = vpop.f32.mrf.mxu0 }
 0x2be   : > { %v4680_v32 = vadd.f32 %v4618_v7, %v4330_v45 }
 0x2bf   : > { %v4270_v54 = vpop.f32.mrf.mxu3  ;;  %v3667_v56 = vpop.f32.mrf.mxu2 }
 0x2c0   : > { %v3366_v52 = vpop.f32.mrf.mxu1  ;;  %5572 = vmatmul.msk.bf16.gmra.mxu0 %vm1461_vm11, %v4526_v19  ;;  %v4712_v1 = vpack.c.bf16 %v4680_v32, %v4680_v32  ;;  %v4788_v21 = vsel %vm1461_vm11, %v4680_v32, 0.0  ;;  %v4848_v27 = vmul.f32 %v4680_v32, %v4680_v32  ;;  %v4331_v4 = vadd.f32 %v4270_v54, %v3725_v6 }
 0x2c1   : > { %v4789_v29 = vadd.f32 %v4788_v21, %v4787_v34  ;;  %v3726_v22 = vadd.f32 %v3667_v56, %v3420_v28  ;;  %v3422_v47 = vadd.f32 %v3366_v52, %v6961_v23 }
 0x2c2   : > { %4745 = vst.msk [vmem:[%s7289_s13 + $0x30] sm:$0xf] %vm442_vm1, %v4712_v1  ;;  %v4891_v0 = vsel %vm1461_vm11, %v4848_v27, 0.0 }
 0x2c3   : > { %v4892_v9 = vadd.f32 %v4891_v0, %v4890_v18 }
 0x2c4   : > { %5540 = vmatmul.msk.bf16.gmra.mxu3 %vm1461_vm11, %v4177_v43 }
 0x2c5   : > { %v4620_v13 = vpop.f32.mrf.mxu0 }
 0x2c6   : > { %v4681_v12 = vadd.f32 %v4620_v13, %v4331_v4 }
 0x2c7   : > { %v4273_v61 = vpop.f32.mrf.mxu3  ;;  %v3669_v58 = vpop.f32.mrf.mxu2 }
 0x2c8   : > { %v3368_v31 = vpop.f32.mrf.mxu1  ;;  %v4713_v55 = vpack.c.bf16 %v4681_v12, %v4681_v12  ;;  %v4790_v63 = vsel %vm1461_vm11, %v4681_v12, 0.0  ;;  %v4849_v46 = vmul.f32 %v4681_v12, %v4681_v12  ;;  %v4332_v16 = vadd.f32 %v4273_v61, %v3726_v22 }
 0x2c9   : > { %v4791_v40 = vadd.f32 %v4790_v63, %v4789_v29  ;;  %v3727_v51 = vadd.f32 %v3669_v58, %v3421_v10  ;;  %v3423_v23 = vadd.f32 %v3368_v31, %v6981_v35 }
 0x2ca   : > { %4746 = vst.msk [vmem:[%s7289_s13 + $0x34] sm:$0xf] %vm442_vm1, %v4713_v55  ;;  %v4893_v24 = vsel %vm1461_vm11, %v4849_v46, 0.0 }
 0x2cb   : > { %v4894_v53 = vadd.f32 %v4893_v24, %v4892_v9 }
 0x2cd   : > { %v4623_v50 = vpop.f32.mrf.mxu0 }
 0x2ce   : > { %v4682_v15 = vadd.f32 %v4623_v50, %v4332_v16 }
 0x2cf   : > { %v4275_v34 = vpop.f32.mrf.mxu3  ;;  %v3672_v20 = vpop.f32.mrf.mxu2 }
 0x2d0   : > { %v3371_v45 = vpop.f32.mrf.mxu1  ;;  %5573 = vmatmul.msk.bf16.gmra.mxu0 %vm1461_vm11, %v4527_v25  ;;  %v4714_v18 = vpack.c.bf16 %v4682_v15, %v4682_v15  ;;  %v4792_v30 = vsel %vm1461_vm11, %v4682_v15, 0.0  ;;  %v4850_v2 = vmul.f32 %v4682_v15, %v4682_v15  ;;  %v4333_v7 = vadd.f32 %v4275_v34, %v3727_v51 }
 0x2d1   : > { %v4793_v19 = vadd.f32 %v4792_v30, %v4791_v40  ;;  %v3728_v6 = vadd.f32 %v3672_v20, %v3422_v47  ;;  %v3424_v35 = vadd.f32 %v3371_v45, %v6999_v44 }
 0x2d2   : > { %4747 = vst.msk [vmem:[%s7289_s13 + $0x38] sm:$0xf] %vm442_vm1, %v4714_v18  ;;  %v4895_v62 = vsel %vm1461_vm11, %v4850_v2, 0.0 }
 0x2d3   : > { %v4896_v57 = vadd.f32 %v4895_v62, %v4894_v53 }
 0x2d5   : > { %v4625_v36 = vpop.f32.mrf.mxu0 }
 0x2d6   : > { %v4683_v32 = vadd.f32 %v4625_v36, %v4333_v7 }
 0x2d7   : > { %v4278_v54 = vpop.f32.mrf.mxu3  ;;  %v3674_v56 = vpop.f32.mrf.mxu2 }
 0x2d8   : > { %v3373_v43 = vpop.f32.mrf.mxu1  ;;  %v4715_v1 = vpack.c.bf16 %v4683_v32, %v4683_v32  ;;  %v4794_v21 = vsel %vm1461_vm11, %v4683_v32, 0.0  ;;  %v4851_v27 = vmul.f32 %v4683_v32, %v4683_v32  ;;  %v4334_v26 = vadd.f32 %v4278_v54, %v3728_v6 }
 0x2d9   : > { %v4795_v38 = vadd.f32 %v4794_v21, %v4793_v19  ;;  %v3729_v4 = vadd.f32 %v3674_v56, %v3423_v23  ;;  %v3425_v44 = vadd.f32 %v3373_v43, %v7020_v11 }
 0x2da   : > { %4748 = vst.msk [vmem:[%s7289_s13 + $0x3c] sm:$0xf] %vm442_vm1, %v4715_v1  ;;  %v4897_v29 = vsel %vm1461_vm11, %v4851_v27, 0.0 }
 0x2db   : > { %v4898_v48 = vadd.f32 %v4897_v29, %v4896_v57 }
 0x2dd   : > { %v4628_v52 = vpop.f32.mrf.mxu0 }
 0x2de   : > { %v4684_v0 = vadd.f32 %v4628_v52, %v4334_v26 }
 0x2df   : > { %v4280_v9 = vpop.f32.mrf.mxu3  ;;  %v3677_v28 = vpop.f32.mrf.mxu2 }
 0x2e0   : > { %v3376_v8 = vpop.f32.mrf.mxu1  ;;  %v4716_v13 = vpack.c.bf16 %v4684_v0, %v4684_v0  ;;  %v4796_v49 = vsel %vm1461_vm11, %v4684_v0, 0.0  ;;  %v4852_v12 = vmul.f32 %v4684_v0, %v4684_v0  ;;  %v4335_v58 = vadd.f32 %v4280_v9, %v3729_v4 }
 0x2e1   : > { %v4797_v22 = vadd.f32 %v4796_v49, %v4795_v38  ;;  %v3730_v63 = vadd.f32 %v3677_v28, %v3424_v35  ;;  %v3426_v11 = vadd.f32 %v3376_v8, %v7041_v42 }
 0x2e2   : > { %4749 = vst.msk [vmem:[%s7289_s13 + $0x40] sm:$0xf] %vm442_vm1, %v4716_v13  ;;  %v4899_v61 = vsel %vm1461_vm11, %v4852_v12, 0.0 }
 0x2e3   : > { %v4900_v14 = vadd.f32 %v4899_v61, %v4898_v48 }
 0x2e5   : > { %v4630_v31 = vpop.f32.mrf.mxu0 }
 0x2e6   : > { %v4685_v55 = vadd.f32 %v4630_v31, %v4335_v58 }
 0x2e7   : > { %v4283_v46 = vpop.f32.mrf.mxu3  ;;  %v3679_v59 = vpop.f32.mrf.mxu2 }
 0x2e8   : > { %v3378_v40 = vpop.f32.mrf.mxu1  ;;  %v4717_v24 = vpack.c.bf16 %v4685_v55, %v4685_v55  ;;  %v4798_v16 = vsel %vm1461_vm11, %v4685_v55, 0.0  ;;  %v4853_v53 = vmul.f32 %v4685_v55, %v4685_v55  ;;  %v4336_v50 = vadd.f32 %v4283_v46, %v3730_v63 }
 0x2e9   : > { %v4799_v25 = vadd.f32 %v4798_v16, %v4797_v22  ;;  %v3731_v20 = vadd.f32 %v3679_v59, %v3425_v44  ;;  %v3427_v42 = vadd.f32 %v3378_v40, %v7061_v3 }
 0x2ea   : > { %4750 = vst.msk [vmem:[%s7289_s13 + $0x44] sm:$0xf] %vm442_vm1, %v4717_v24  ;;  %v4901_v10 = vsel %vm1461_vm11, %v4853_v53, 0.0 }
 0x2eb   : > { %v4902_v15 = vadd.f32 %v4901_v10, %v4900_v14 }
 0x2ed   : > { %v4633_v51 = vpop.f32.mrf.mxu0 }
 0x2ee   : > { %v4686_v34 = vadd.f32 %v4633_v51, %v4336_v50 }
 0x2ef   : > { %v4285_v45 = vpop.f32.mrf.mxu3  ;;  %v3682_v18 = vpop.f32.mrf.mxu2 }
 0x2f0   : > { %v3381_v30 = vpop.f32.mrf.mxu1  ;;  %v4718_v2 = vpack.c.bf16 %v4686_v34, %v4686_v34  ;;  %v4800_v19 = vsel %vm1461_vm11, %v4686_v34, 0.0  ;;  %v4854_v62 = vmul.f32 %v4686_v34, %v4686_v34  ;;  %v4337_v47 = vadd.f32 %v4285_v45, %v3731_v20 }
 0x2f1   : > { %v4801_v7 = vadd.f32 %v4800_v19, %v4799_v25  ;;  %v3732_v54 = vadd.f32 %v3682_v18, %v3426_v11  ;;  %v3428_v3 = vadd.f32 %v3381_v30, %v7079_v33 }
 0x2f2   : > { %4751 = vst.msk [vmem:[%s7289_s13 + $0x48] sm:$0xf] %vm442_vm1, %v4718_v2  ;;  %v4903_v57 = vsel %vm1461_vm11, %v4854_v62, 0.0 }
 0x2f3   : > { %v4904_v36 = vadd.f32 %v4903_v57, %v4902_v15 }
 0x2f5   : > { %v4635_v32 = vpop.f32.mrf.mxu0 }
 0x2f6   : > { %v4687_v6 = vadd.f32 %v4635_v32, %v4337_v47 }
 0x2f7   : > { %v4288_v56 = vpop.f32.mrf.mxu3  ;;  %v3684_v43 = vpop.f32.mrf.mxu2 }
 0x2f8   : > { %v4719_v1 = vpack.c.bf16 %v4687_v6, %v4687_v6  ;;  %v4802_v21 = vsel %vm1461_vm11, %v4687_v6, 0.0  ;;  %v4855_v27 = vmul.f32 %v4687_v6, %v4687_v6  ;;  %v3383_v29 = vpop.f32.mrf.mxu1  ;;  %v4338_v48 = vadd.f32 %v4288_v56, %v3732_v54 }
 0x2f9   : > { %v4803_v38 = vadd.f32 %v4802_v21, %v4801_v7  ;;  %v3733_v4 = vadd.f32 %v3684_v43, %v3427_v42  ;;  %v3429_v50 = vadd.f32 %v3383_v29, %v7100_v41 }
 0x2fa   : > { %4752 = vst.msk [vmem:[%s7289_s13 + $0x4c] sm:$0xf] %vm442_vm1, %v4719_v1  ;;  %v4905_v26 = vsel %vm1461_vm11, %v4855_v27, 0.0 }
 0x2fb   : > { %v4906_v23 = vadd.f32 %v4905_v26, %v4904_v36 }
 0x2fd   : > { %v4638_v52 = vpop.f32.mrf.mxu0 }
 0x2fe   : > { %v4688_v0 = vadd.f32 %v4638_v52, %v4338_v48 }
 0x2ff   : > { %v4290_v9 = vpop.f32.mrf.mxu3  ;;  %v3687_v28 = vpop.f32.mrf.mxu2 }
 0x300   : > { %v4720_v8 = vpack.c.bf16 %v4688_v0, %v4688_v0  ;;  %v4804_v13 = vsel %vm1461_vm11, %v4688_v0, 0.0  ;;  %v4856_v49 = vmul.f32 %v4688_v0, %v4688_v0  ;;  %v4339_v61 = vadd.f32 %v4290_v9, %v3733_v4  ;;  %v3386_v14 = vpop.f32.mrf.mxu1 }
 0x301   : > { %v4805_v12 = vadd.f32 %v4804_v13, %v4803_v38  ;;  %v3734_v55 = vadd.f32 %v3687_v28, %v3428_v3  ;;  %v3430_v41 = vadd.f32 %v3386_v14, %v7121_v17 }
 0x302   : > { %4753 = vst.msk [vmem:[%s7289_s13 + $0x50] sm:$0xf] %vm442_vm1, %v4720_v8  ;;  %v4907_v22 = vsel %vm1461_vm11, %v4856_v49, 0.0 }
 0x303   : > { %v4908_v58 = vadd.f32 %v4907_v22, %v4906_v23 }
 0x305   : > { %v4640_v35 = vpop.f32.mrf.mxu0 }
 0x306   : > { %v4689_v31 = vadd.f32 %v4640_v35, %v4339_v61 }
 0x307   : > { %v4293_v63 = vpop.f32.mrf.mxu3  ;;  %v3689_v46 = vpop.f32.mrf.mxu2 }
 0x308   : > { %v4721_v59 = vpack.c.bf16 %v4689_v31, %v4689_v31  ;;  %v4806_v40 = vsel %vm1461_vm11, %v4689_v31, 0.0  ;;  %v4857_v24 = vmul.f32 %v4689_v31, %v4689_v31  ;;  %v4340_v25 = vadd.f32 %v4293_v63, %v3734_v55  ;;  %v3388_v15 = vpop.f32.mrf.mxu1 }
 0x309   : > { %v4807_v16 = vadd.f32 %v4806_v40, %v4805_v12  ;;  %v3735_v51 = vadd.f32 %v3689_v46, %v3429_v50  ;;  %v3431_v17 = vadd.f32 %v3388_v15, %v7141_v39 }
 0x30a   : > { %4754 = vst.msk [vmem:[%s7289_s13 + $0x54] sm:$0xf] %vm442_vm1, %v4721_v59  ;;  %v4909_v53 = vsel %vm1461_vm11, %v4857_v24, 0.0 }
 0x30b   : > { %v4910_v10 = vadd.f32 %v4909_v53, %v4908_v58 }
 0x30d   : > { %v4643_v33 = vpop.f32.mrf.mxu0 }
 0x30e   : > { %v4690_v44 = vadd.f32 %v4643_v33, %v4340_v25 }
 0x30f   : > { %v4295_v34 = vpop.f32.mrf.mxu3  ;;  %v3692_v20 = vpop.f32.mrf.mxu2 }
 0x310   : > { %v4722_v45 = vpack.c.bf16 %v4690_v44, %v4690_v44  ;;  %v4808_v18 = vsel %vm1461_vm11, %v4690_v44, 0.0  ;;  %v4858_v30 = vmul.f32 %v4690_v44, %v4690_v44  ;;  %v4341_v62 = vadd.f32 %v4295_v34, %v3735_v51  ;;  %v3391_v6 = vpop.f32.mrf.mxu1 }
 0x311   : > { %v4809_v2 = vadd.f32 %v4808_v18, %v4807_v16  ;;  %v3736_v36 = vadd.f32 %v3692_v20, %v3430_v41  ;;  %v3432_v39 = vadd.f32 %v3391_v6, %v7157_v60  ;;  %v7727_v6 = vld [vmem:[#allocation3_spill] sm:$0xff] }
 0x312   : > { %4755 = vst.msk [vmem:[%s7289_s13 + $0x58] sm:$0xf] %vm442_vm1, %v4722_v45  ;;  %v4911_v19 = vsel %vm1461_vm11, %v4858_v30, 0.0 }
 0x313   : > { %v4912_v7 = vadd.f32 %v4911_v19, %v4910_v10 }
 0x315   : > { %v4645_v57 = vpop.f32.mrf.mxu0 }
 0x316   : > { %v4691_v47 = vadd.f32 %v4645_v57, %v4341_v62 }
 0x317   : > { %v4298_v11 = vpop.f32.mrf.mxu3  ;;  %v3694_v32 = vpop.f32.mrf.mxu2 }
 0x318   : > { %v4723_v54 = vpack.c.bf16 %v4691_v47, %v4691_v47  ;;  %v4810_v56 = vsel %vm1461_vm11, %v4691_v47, 0.0  ;;  %v4859_v43 = vmul.f32 %v4691_v47, %v4691_v47  ;;  %v4342_v27 = vadd.f32 %v4298_v11, %v3736_v36  ;;  %v3393_v28 = vpop.f32.mrf.mxu1 }
 0x319   : > { %v4811_v1 = vadd.f32 %v4810_v56, %v4809_v2  ;;  %v3737_v48 = vadd.f32 %v3694_v32, %v3431_v17  ;;  %v3433_v60 = vadd.f32 %v3393_v28, %v7177_v37 }
 0x31a   : > { %4756 = vst.msk [vmem:[%s7289_s13 + $0x5c] sm:$0xf] %vm442_vm1, %v4723_v54  ;;  %v4913_v21 = vsel %vm1461_vm11, %v4859_v43, 0.0 }
 0x31b   : > { %v4914_v38 = vadd.f32 %v4913_v21, %v4912_v7 }
 0x31d   : > { %v4648_v29 = vpop.f32.mrf.mxu0 }
 0x31e   : > { %v4692_v26 = vadd.f32 %v4648_v29, %v4342_v27 }
 0x31f   : > { %v4300_v23 = vpop.f32.mrf.mxu3  ;;  %v3697_v42 = vpop.f32.mrf.mxu2 }
 0x320   : > { %v4724_v52 = vpack.c.bf16 %v4692_v26, %v4692_v26  ;;  %v4812_v0 = vsel %vm1461_vm11, %v4692_v26, 0.0  ;;  %v4860_v4 = vmul.f32 %v4692_v26, %v4692_v26  ;;  %v4343_v13 = vadd.f32 %v4300_v23, %v3737_v48  ;;  %v3396_v40 = vpop.f32.mrf.mxu1 }
 0x321   : > { %v4813_v9 = vadd.f32 %v4812_v0, %v4811_v1  ;;  %v3738_v61 = vadd.f32 %v3697_v42, %v3432_v39  ;;  %v3434_v45 = vadd.f32 %v3396_v40, %v7198_v5 }
 0x322   : > { %4757 = vst.msk [vmem:[%s7289_s13 + $0x60] sm:$0xf] %vm442_vm1, %v4724_v52  ;;  %v4915_v8 = vsel %vm1461_vm11, %v4860_v4, 0.0  ;;  %v7728_v52 = vld [vmem:[#allocation4_spill] sm:$0xff] }
 0x323   : > { %v4916_v49 = vadd.f32 %v4915_v8, %v4914_v38 }
 0x325   : > { %v4650_v12 = vpop.f32.mrf.mxu0 }
 0x326   : > { %v4693_v22 = vadd.f32 %v4650_v12, %v4343_v13 }
 0x327   : > { %v4303_v58 = vpop.f32.mrf.mxu3  ;;  %v3699_v14 = vpop.f32.mrf.mxu2 }
 0x328   : > { %v4725_v3 = vpack.c.bf16 %v4693_v22, %v4693_v22  ;;  %v4814_v35 = vsel %vm1461_vm11, %v4693_v22, 0.0  ;;  %v4861_v31 = vmul.f32 %v4693_v22, %v4693_v22  ;;  %v4344_v46 = vadd.f32 %v4303_v58, %v3738_v61  ;;  %v3398_v18 = vpop.f32.mrf.mxu1 }
 0x329   : > { %v4815_v55 = vadd.f32 %v4814_v35, %v4813_v9  ;;  %v3739_v53 = vadd.f32 %v3699_v14, %v3433_v60  ;;  %v3435_v5 = vadd.f32 %v3398_v18, %v7727_v6  ;;  %v7729_v35 = vld [vmem:[#allocation10_spill] sm:$0xff] }
 0x32a   : > { %4758 = vst.msk [vmem:[%s7289_s13 + $0x64] sm:$0xf] %vm442_vm1, %v4725_v3  ;;  %v4917_v63 = vsel %vm1461_vm11, %v4861_v31, 0.0 }
 0x32b   : > { %v4918_v59 = vadd.f32 %v4917_v63, %v4916_v49 }
 0x32d   : > { %v4653_v24 = vpop.f32.mrf.mxu0 }
 0x32e   : > { %v4694_v16 = vadd.f32 %v4653_v24, %v4344_v46 }
 0x32f   : > { %v4305_v25 = vpop.f32.mrf.mxu3  ;;  %v3702_v10 = vpop.f32.mrf.mxu2 }
 0x330   : > { %v4726_v50 = vpack.c.bf16 %v4694_v16, %v4694_v16  ;;  %v4816_v33 = vsel %vm1461_vm11, %v4694_v16, 0.0  ;;  %v4862_v15 = vmul.f32 %v4694_v16, %v4694_v16  ;;  %v4345_v34 = vadd.f32 %v4305_v25, %v3739_v53  ;;  %v3401_v21 = vpop.f32.mrf.mxu1 }
 0x331   : > { %v4817_v44 = vadd.f32 %v4816_v33, %v4815_v55  ;;  %v3740_v2 = vadd.f32 %v3702_v10, %v3434_v45  ;;  %v3436_v0 = vadd.f32 %v3401_v21, %v7728_v52 }
 0x332   : > { %4759 = vst.msk [vmem:[%s7289_s13 + $0x68] sm:$0xf] %vm442_vm1, %v4726_v50  ;;  %v4919_v51 = vsel %vm1461_vm11, %v4862_v15, 0.0 }
 0x333   : > { %v4920_v20 = vadd.f32 %v4919_v51, %v4918_v59 }
 0x335   : > { %v4655_v37 = vpop.f32.mrf.mxu0 }
 0x336   : > { %v4695_v30 = vadd.f32 %v4655_v37, %v4345_v34 }
 0x337   : > { %v4308_v19 = vpop.f32.mrf.mxu3  ;;  %v3704_v62 = vpop.f32.mrf.mxu2 }
 0x338   : > { %v4727_v7 = vpack.c.bf16 %v4695_v30, %v4695_v30  ;;  %v4818_v41 = vsel %vm1461_vm11, %v4695_v30, 0.0  ;;  %v4863_v57 = vmul.f32 %v4695_v30, %v4695_v30  ;;  %v4346_v11 = vadd.f32 %v4308_v19, %v3740_v2  ;;  %v3403_v22 = vpop.f32.mrf.mxu1 }
 0x339   : > { %v4819_v47 = vadd.f32 %v4818_v41, %v4817_v44  ;;  %v3741_v43 = vadd.f32 %v3704_v62, %v3435_v5  ;;  %v3437_v31 = vadd.f32 %v3403_v22, %v7729_v35 }
 0x33a   : > { %4760 = vst.msk [vmem:[%s7289_s13 + $0x6c] sm:$0xf] %vm442_vm1, %v4727_v7  ;;  %v4921_v36 = vsel %vm1461_vm11, %v4863_v57, 0.0 }
 0x33b   : > { %v4922_v32 = vadd.f32 %v4921_v36, %v4920_v20 }
 0x33d   : > { %v4658_v54 = vpop.f32.mrf.mxu0 }
 0x33e   : > { %v4696_v56 = vadd.f32 %v4658_v54, %v4346_v11 }
 0x33f   : > { %v4310_v1 = vpop.f32.mrf.mxu3  ;;  %v3707_v26 = vpop.f32.mrf.mxu2 }
 0x340   : > { %v4728_v27 = vpack.c.bf16 %v4696_v56, %v4696_v56  ;;  %v4820_v38 = vsel %vm1461_vm11, %v4696_v56, 0.0  ;;  %v4864_v17 = vmul.f32 %v4696_v56, %v4696_v56  ;;  %v4347_v23 = vadd.f32 %v4310_v1, %v3741_v43 }
 0x341   : > { %v4821_v29 = vadd.f32 %v4820_v38, %v4819_v47  ;;  %v3742_v28 = vadd.f32 %v3707_v26, %v3436_v0 }
 0x342   : > { %4761 = vst.msk [vmem:[%s7289_s13 + $0x70] sm:$0xf] %vm442_vm1, %v4728_v27  ;;  %v4923_v48 = vsel %vm1461_vm11, %v4864_v17, 0.0 }
 0x343   : > { %v4924_v42 = vadd.f32 %v4923_v48, %v4922_v32 }
 0x345   : > { %v4660_v4 = vpop.f32.mrf.mxu0 }
 0x346   : > { %v4697_v9 = vadd.f32 %v4660_v4, %v4347_v23 }
 0x347   : > { %v4313_v8 = vpop.f32.mrf.mxu3  ;;  %v3709_v3 = vpop.f32.mrf.mxu2 }
 0x348   : > { %v4729_v13 = vpack.c.bf16 %v4697_v9, %v4697_v9  ;;  %v4822_v49 = vsel %vm1461_vm11, %v4697_v9, 0.0  ;;  %v4865_v39 = vmul.f32 %v4697_v9, %v4697_v9  ;;  %v4348_v58 = vadd.f32 %v4313_v8, %v3742_v28 }
 0x349   : > { %v4823_v12 = vadd.f32 %v4822_v49, %v4821_v29  ;;  %v3743_v46 = vadd.f32 %v3709_v3, %v3437_v31 }
 0x34a   : > { %4762 = vst.msk [vmem:[%s7289_s13 + $0x74] sm:$0xf] %vm442_vm1, %v4729_v13  ;;  %v4925_v61 = vsel %vm1461_vm11, %v4865_v39, 0.0 }
 0x34b   : > { %v4926_v14 = vadd.f32 %v4925_v61, %v4924_v42 }
 0x34d   : > { %v4663_v55 = vpop.f32.mrf.mxu0 }
 0x34e   : > { %v4698_v63 = vadd.f32 %v4663_v55, %v4348_v58 }
 0x34f   : > { %v4315_v16 = vpop.f32.mrf.mxu3 }
 0x350   : > { %v4730_v59 = vpack.c.bf16 %v4698_v63, %v4698_v63  ;;  %v4824_v40 = vsel %vm1461_vm11, %v4698_v63, 0.0  ;;  %v4866_v60 = vmul.f32 %v4698_v63, %v4698_v63  ;;  %v4349_v25 = vadd.f32 %v4315_v16, %v3743_v46 }
 0x351   : > { %v4825_v24 = vadd.f32 %v4824_v40, %v4823_v12 }
 0x352   : > { %4763 = vst.msk [vmem:[%s7289_s13 + $0x78] sm:$0xf] %vm442_vm1, %v4730_v59  ;;  %v4927_v53 = vsel %vm1461_vm11, %v4866_v60, 0.0 }
 0x353   : > { %v4928_v10 = vadd.f32 %v4927_v53, %v4926_v14 }
 0x355   : > { %v4665_v50 = vpop.f32.mrf.mxu0 }
 0x356   : > { %v4699_v33 = vadd.f32 %v4665_v50, %v4349_v25 }
 0x358   : > { %v4731_v15 = vpack.c.bf16 %v4699_v33, %v4699_v33  ;;  %v4826_v44 = vsel %vm1461_vm11, %v4699_v33, 0.0  ;;  %v4867_v51 = vmul.f32 %v4699_v33, %v4699_v33 }
 0x359   : > { %v4827_v34 = vadd.f32 %v4826_v44, %v4825_v24 }
 0x35a   : > { %4764 = vst.msk [vmem:[%s7289_s13 + $0x7c] sm:$0xf] %vm442_vm1, %v4731_v15  ;;  %v4929_v20 = vsel %vm1461_vm11, %v4867_v51, 0.0 }
 0x35b   : > { %v4828_v45 = vrot.slane %v4827_v34, 4  ;;  %v4930_v37 = vadd.f32 %v4929_v20, %v4928_v10 }
 0x35d   : > { %v4829_v18 = vadd.f32 %v4828_v45, %v4827_v34  ;;  %v4931_v30 = vrot.slane %v4930_v37, 4 }
 0x35f   : > { %v4830_v2 = vrot.slane %v4829_v18, 2  ;;  %v4932_v19 = vadd.f32 %v4931_v30, %v4930_v37 }
 0x361   : > { %v4831_v62 = vadd.f32 %v4830_v2, %v4829_v18  ;;  %v4933_v7 = vrot.slane %v4932_v19, 2 }
 0x363   : > { %v4832_v41 = vrot.slane %v4831_v62, 1  ;;  %v4934_v57 = vadd.f32 %v4933_v7, %v4932_v19 }
 0x365   : > { %v4833_v47 = vadd.f32 %v4832_v41, %v4831_v62  ;;  %v4935_v36 = vrot.slane %v4934_v57, 1 }
 0x367   : > { %4835 = vst.msk [vmem:[%s268_s16] sm:$0x1] %vm445_vm2, %v4833_v47  ;;  %v4936_v11 = vadd.f32 %v4935_v36, %v4934_v57 }
 0x369   : > { %4937 = vst.msk [vmem:[%s268_s16 + $0x1] sm:$0x1] %vm445_vm2, %v4936_v11 }
 0x36a PF: > { %s16_s20 = sadd.s32 1, %s5845_s20   ;;  %s7730_s18 = smov %s5841_s19 }
 0x36b   : > { %p13_p5 = scmp.ge.s32.totalorder %s16_s20, 4   ;;  %s7731_s19 = smov %s7733_s21 }
 0x36d   :  { %15 = sbr.rel (!%p13_p5) target bundleno = 2 (0x2), region = 94 }

</bundles_post_ra>
